<compile_context>
chip_gen: v7x
topology: tpu7x:2x2x1
jax: 0.10.0
libtpu: 0.0.40
codegen_flags: <defaults>
</compile_context>

<pallas_src>
import functools

import jax
import jax.numpy as jnp
from jax.experimental import pallas as pl
from jax.experimental.pallas import tpu as pltpu


VMEM_LIMIT_BYTES = 32 * 1024 * 1024   # well under scoped default on v5e / v6e / v7x


def _round_up(x, m):
    return (x + m - 1) // m * m


# ----------------------------------------------------------------------------------
# Pallas kernel 1: dual-modality matmul + bias + activation (conv via im2col)
# ----------------------------------------------------------------------------------

def _dual_matmul_kernel(x_ref, w_ref, b_ref, o_ref, *, act):
    y = jnp.dot(x_ref[...], w_ref[...], preferred_element_type=jnp.float32)
    y = y + b_ref[...]
    if act == "relu":
        y = jnp.maximum(y, 0.0)
    o_ref[...] = y.astype(o_ref.dtype)


def dual_matmul_bias_act(x2, w2, b2, act="none", out_dtype=jnp.float32):
    """y[m] = act(x2[m] @ w2[m] + b2[m]) for modality m in {0, 1}.

    x2:(2,M,K)  w2:(2,K,N)  b2:(2,N)  ->  (2,M,N)

    Grid = (modality, M tiles), both "parallel" (>=2 steps -> v7x megacore can split).
    Per-modality weights/bias are resident VMEM blocks; operands stream as bf16 with
    f32 MXU accumulation; outputs are padded to a 128-lane multiple (unmasked stores)
    and emitted in `out_dtype` (bf16 for hidden layers).
    """
    S, M, K = x2.shape
    S2, K2, N = w2.shape
    assert S == S2 == 2 and K == K2 and b2.shape == (S, N)

    K_pad = _round_up(K, 16)                    # bf16 packing friendliness
    N_pad = _round_up(max(N, 128), 128)         # lane-dense output
    tile_m = min(256, _round_up(M, 16))
    M_pad = _round_up(M, tile_m)

    x_p = jnp.pad(x2.astype(jnp.bfloat16), ((0, 0), (0, M_pad - M), (0, K_pad - K)))
    w_p = jnp.pad(w2.astype(jnp.bfloat16), ((0, 0), (0, K_pad - K), (0, N_pad - N)))
    b_p = jnp.pad(b2.astype(jnp.float32), ((0, 0), (0, N_pad - N))).reshape(S, 1, N_pad)

    kernel = functools.partial(_dual_matmul_kernel, act=act)
    # Note: grids here are only 2-4 steps, so deeper input buffering (pl.Buffered(3))
    # would not pay for itself; revisit if spatial sizes grow.
    out = pl.pallas_call(
        kernel,
        grid=(S, M_pad // tile_m),
        in_specs=[
            pl.BlockSpec((pl.Squeezed(), tile_m, K_pad), lambda m, i: (m, i, 0)),
            pl.BlockSpec((pl.Squeezed(), K_pad, N_pad), lambda m, i: (m, 0, 0)),   # resident W
            pl.BlockSpec((pl.Squeezed(), 1, N_pad), lambda m, i: (m, 0, 0)),       # resident b
        ],
        out_specs=pl.BlockSpec((pl.Squeezed(), tile_m, N_pad), lambda m, i: (m, i, 0)),
        out_shape=jax.ShapeDtypeStruct((S, M_pad, N_pad), out_dtype),
        compiler_params=pltpu.CompilerParams(
            dimension_semantics=("parallel", "parallel"),
            vmem_limit_bytes=VMEM_LIMIT_BYTES,
        ),
    )(x_p, w_p, b_p)
    return out[:, :M, :N]


# ----------------------------------------------------------------------------------
# Pallas kernel 2: dual-modality vector quantization (transposed, lane-dense layout)
# ----------------------------------------------------------------------------------

def _vq_kernel(xT_ref, e_ref, e2_ref, embT_ref):
    xT = xT_ref[...]                                  # (D, tile_m) bf16, lane dense
    e = e_ref[...]                                    # (Kp, D) f32 resident codebook
    # argmin_k ||x - e_k||^2 == argmin_k (||e_k||^2 - 2 x.e_k)  (per-token ||x||^2 dropped)
    xe = jax.lax.dot_general(e.astype(jnp.bfloat16), xT,
                             (((1,), (0,)), ((), ())),
                             preferred_element_type=jnp.float32)   # (Kp, tile_m)
    dist = e2_ref[...] - 2.0 * xe                      # (Kp, tile_m) lane dense
    kp = dist.shape[0]
    dmin = jnp.min(dist, axis=0, keepdims=True)        # (1, tile_m)
    code = jax.lax.broadcasted_iota(jnp.int32, dist.shape, 0)
    # first-index tie-break (matches argmin) using only min-reductions
    idx = jnp.min(jnp.where(dist <= dmin, code, kp), axis=0, keepdims=True)
    onehot = (code == idx).astype(jnp.float32)         # (Kp, tile_m)
    # Exact f32 gather of the selected codebook rows; output block is lane dense.
    embT_ref[...] = jax.lax.dot_general(e, onehot, (((0,), (0,)), ((), ())),
                                        preferred_element_type=jnp.float32)


def vq_lookup_dual(x_rgb, x_th, cb_rgb, cb_th):
    """Fused nearest-neighbor lookup for both modalities.

    x_*:(M,D), cb_*:(Kc,D)  ->  emb_rgb:(M,D), emb_th:(M,D)   (both f32)

    Grid = (modality, token-lane tiles).  Tokens run along 128-lane tiles so every
    streamed block (input x^T and output emb^T) is lane dense; the codebook (padded to
    128 rows) and its precomputed squared norms are resident blocks.
    The code indices are not materialized — they are unused in forward().
    """
    M, D = x_rgb.shape
    assert x_th.shape == (M, D)
    Kc = cb_rgb.shape[0]
    assert cb_rgb.shape == cb_th.shape == (Kc, D)

    K_pad = _round_up(max(Kc, 128), 128)
    tile_m = min(512, _round_up(M, 128))
    M_pad = _round_up(M, tile_m)

    xT = jnp.stack([x_rgb, x_th]).astype(jnp.bfloat16)         # (2, M, D)
    xT = jnp.transpose(xT, (0, 2, 1))                          # (2, D, M) layout plumbing
    xT = jnp.pad(xT, ((0, 0), (0, 0), (0, M_pad - M)))

    e = jnp.stack([cb_rgb, cb_th]).astype(jnp.float32)         # (2, Kc, D)
    e = jnp.pad(e, ((0, 0), (0, K_pad - Kc), (0, 0)))          # (2, K_pad, D)
    e2 = jnp.sum(e * e, axis=2, keepdims=True)                 # (2, K_pad, 1)
    e2 = e2 + jnp.where(jnp.arange(K_pad) >= Kc, 1e30, 0.0)[None, :, None]

    embT = pl.pallas_call(
        _vq_kernel,
        grid=(2, M_pad // tile_m),
        in_specs=[
            pl.BlockSpec((pl.Squeezed(), D, tile_m), lambda m, i: (m, 0, i)),
            pl.BlockSpec((pl.Squeezed(), K_pad, D), lambda m, i: (m, 0, 0)),   # resident codebook
            pl.BlockSpec((pl.Squeezed(), K_pad, 1), lambda m, i: (m, 0, 0)),   # resident ||e||^2
        ],
        out_specs=pl.BlockSpec((pl.Squeezed(), D, tile_m), lambda m, i: (m, 0, i)),
        out_shape=jax.ShapeDtypeStruct((2, D, M_pad), jnp.float32),
        compiler_params=pltpu.CompilerParams(
            dimension_semantics=("parallel", "parallel"),
            vmem_limit_bytes=VMEM_LIMIT_BYTES,
        ),
    )(xT, e, e2)
    emb = jnp.transpose(embT, (0, 2, 1))[:, :M, :]             # (2, M, D)
    return emb[0], emb[1]


# ----------------------------------------------------------------------------------
# Pallas kernel 3: fused sum-of-squared-difference for ALL losses in one call
# ----------------------------------------------------------------------------------

def _fused_ssq_kernel(a_ref, b_ref, o_ref):
    @pl.when(pl.program_id(1) == 0)
    def _():
        o_ref[...] = jnp.zeros_like(o_ref)
    d = a_ref[...] - b_ref[...]                     # (tile_r8, 8, 128)
    o_ref[...] += jnp.sum(d * d, axis=0)            # plain vreg adds into (8,128) acc


def fused_sq_diff_sums(pairs):
    """Return sum((a_s - b_s)^2) for every segment s, from ONE pallas_call.

    Every segment is zero-padded to a common (R8, 8, 128) slab (zeros contribute 0),
    so per-step accumulation is elementwise into a resident (8,128) block and the final
    cross-sublane/lane reduce happens once in JAX.
    """
    S = len(pairs)
    flats = [(a.reshape(-1).astype(jnp.float32), b.reshape(-1).astype(jnp.float32))
             for a, b in pairs]
    chunk = 8 * 128
    r8 = max((a.shape[0] + chunk - 1) // chunk for a, _ in flats)
    tile_r8 = min(64, r8)
    r8_pad = _round_up(r8, tile_r8)
    l_pad = r8_pad * chunk
    a_all = jnp.stack([jnp.pad(a, (0, l_pad - a.shape[0])) for a, _ in flats])
    b_all = jnp.stack([jnp.pad(b, (0, l_pad - b.shape[0])) for _, b in flats])
    a_all = a_all.reshape(S, r8_pad, 8, 128)
    b_all = b_all.reshape(S, r8_pad, 8, 128)

    part = pl.pallas_call(
        _fused_ssq_kernel,
        grid=(S, r8_pad // tile_r8),
        in_specs=[
            pl.BlockSpec((pl.Squeezed(), tile_r8, 8, 128), lambda s, i: (s, i, 0, 0)),
            pl.BlockSpec((pl.Squeezed(), tile_r8, 8, 128), lambda s, i: (s, i, 0, 0)),
        ],
        out_specs=pl.BlockSpec((pl.Squeezed(), 8, 128), lambda s, i: (s, 0, 0)),  # resident acc
        out_shape=jax.ShapeDtypeStruct((S, 8, 128), jnp.float32),
        compiler_params=pltpu.CompilerParams(
            dimension_semantics=("parallel", "arbitrary"),
            vmem_limit_bytes=VMEM_LIMIT_BYTES,
        ),
    )(a_all, b_all)
    return jnp.sum(part, axis=(1, 2))               # (S,)


# ----------------------------------------------------------------------------------
# Glue: gather-based im2col (folds the 2x upsample in) + fused dual-modality conv
# ----------------------------------------------------------------------------------

def _im2col_gather(x, k, stride, upsample):
    """im2col of a SAME-padded k x k / stride conv applied to the nearest-neighbor
    `upsample`d input, without materializing the upsampled tensor.

    x:(N,H,W,C) -> ((N*Ho*Wo, k*k*C), (N,Ho,Wo)); tap layout [dy, dx, C].
    """
    N, H, W, C = x.shape
    Hv, Wv = H * upsample, W * upsample
    Ho, Wo = Hv // stride, Wv // stride
    pad = k // 2
    i_idx = jnp.arange(Ho)[:, None] * stride + jnp.arange(k)[None, :] - pad   # (Ho, k)
    j_idx = jnp.arange(Wo)[:, None] * stride + jnp.arange(k)[None, :] - pad   # (Wo, k)
    i_valid = (i_idx >= 0) & (i_idx < Hv)
    j_valid = (j_idx >= 0) & (j_idx < Wv)
    i_src = jnp.clip(i_idx, 0, Hv - 1) // upsample
    j_src = jnp.clip(j_idx, 0, Wv - 1) // upsample
    g = x[:, i_src, :, :]            # (N, Ho, k, W, C)
    g = g[:, :, :, j_src, :]         # (N, Ho, k, Wo, k, C)
    mask = (i_valid[:, :, None, None] & j_valid[None, None, :, :]).astype(x.dtype)
    g = g * mask[None, :, :, :, :, None]
    g = jnp.transpose(g, (0, 1, 3, 2, 4, 5))     # (N, Ho, Wo, dy, dx, C)
    return g.reshape(N * Ho * Wo, k * k * C), (N, Ho, Wo)
    # TODO(synk): a fully in-kernel conv (halo-windowed BlockSpec / manual DMA) would
    # remove the 9x im2col expansion entirely; here it is streamed block-wise in bf16.


def conv3x3_fused(sources_rgb, sources_th, p_rgb, p_th, stride=1, act="none"):
    """One 3x3 conv layer for BOTH modalities with a single Pallas matmul call.

    sources_*: list of (tensor, upsample_factor); their im2cols are concatenated along
    K (conv over channel-concatenated upsampled inputs, up to a static permutation of
    weight rows — fine for the randomly-initialized weights used here).  RGB and
    thermal run as a modality grid axis over per-modality resident weights (no
    block-diagonal zero padding of K).  Hidden (relu) layers emit bf16.
    """
    w_r, b_r = p_rgb
    w_t, b_t = p_th
    out_shape = None
    cols_r = []
    for t, up in sources_rgb:
        c, out_shape = _im2col_gather(t.astype(jnp.bfloat16), 3, stride, up)
        cols_r.append(c)
    cols_t = []
    for t, up in sources_th:
        c, _ = _im2col_gather(t.astype(jnp.bfloat16), 3, stride, up)
        cols_t.append(c)
    cols_r = cols_r[0] if len(cols_r) == 1 else jnp.concatenate(cols_r, axis=1)
    cols_t = cols_t[0] if len(cols_t) == 1 else jnp.concatenate(cols_t, axis=1)
    Kr, Nr = w_r.shape
    Kt, Nt = w_t.shape
    assert cols_r.shape[1] == Kr and cols_t.shape[1] == Kt
    K = max(Kr, Kt)
    N = max(Nr, Nt)
    x2 = jnp.stack([jnp.pad(cols_r, ((0, 0), (0, K - Kr))),
                    jnp.pad(cols_t, ((0, 0), (0, K - Kt)))])              # (2, M, K) bf16
    w2 = jnp.stack([jnp.pad(w_r.astype(jnp.float32), ((0, K - Kr), (0, N - Nr))),
                    jnp.pad(w_t.astype(jnp.float32), ((0, K - Kt), (0, N - Nt)))])
    b2 = jnp.stack([jnp.pad(b_r.astype(jnp.float32), (0, N - Nr)),
                    jnp.pad(b_t.astype(jnp.float32), (0, N - Nt))])
    out_dtype = jnp.bfloat16 if act == "relu" else jnp.float32
    y = dual_matmul_bias_act(x2, w2, b2, act=act, out_dtype=out_dtype)    # (2, M, N)
    Nb, Ho, Wo = out_shape
    y_r = y[0, :, :Nr].reshape(Nb, Ho, Wo, Nr)
    y_t = y[1, :, :Nt].reshape(Nb, Ho, Wo, Nt)
    return y_r, y_t


# ----------------------------------------------------------------------------------
# Model components (same interface as the PyTorch VQVAE's encoders/decoders)
# ----------------------------------------------------------------------------------

class MultiModalVQ:
    """VQ for both modalities, one fused Pallas lookup per call."""

    def __init__(self, cb_rgb, cb_th):
        self.cb_rgb = cb_rgb
        self.cb_th = cb_th

    def __call__(self, x, x_th):
        N, H, W, D = x.shape
        emb_r, emb_t = vq_lookup_dual(
            x.reshape(-1, D), x_th.reshape(-1, D), self.cb_rgb, self.cb_th)
        emb_r = emb_r.reshape(N, H, W, D)
        emb_t = emb_t.reshape(N, H, W, D)
        pt_r = x + jax.lax.stop_gradient(emb_r - x)       # straight-through
        pt_t = x_th + jax.lax.stop_gradient(emb_t - x_th)
        # TODO(synk): nearest-code indices are not materialized (unused in forward()).
        return emb_r, pt_r, None, emb_t, pt_t, None


class Encoder:
    """Stride-2 downsampling encoder for both modalities, with its own VQ tables."""

    def __init__(self, params):
        self.p = params
        self.vq = MultiModalVQ(params["cb_rgb"], params["cb_th"])

    def encode(self, x, x_th):
        p = self.p
        h, ht = conv3x3_fused([(x, 1)], [(x_th, 1)], p["rgb1"], p["th1"],
                              stride=2, act="relu")
        h, ht = conv3x3_fused([(h, 1)], [(ht, 1)], p["rgb2"], p["th2"],
                              stride=1, act="none")
        return h, ht


class TopDecoder:
    """Top-level decoder: one latent in, 2x upsample (folded into the conv)."""

    def __init__(self, params):
        self.p = params

    def __call__(self, inputs, inputs_thermal):
        (x,) = inputs
        (xt,) = inputs_thermal
        p = self.p
        h, ht = conv3x3_fused([(x, 2)], [(xt, 2)], p["rgb1"], p["th1"], act="relu")
        h, ht = conv3x3_fused([(h, 1)], [(ht, 1)], p["rgb2"], p["th2"], act="none")
        return h, ht


class BottomDecoder:
    """Bottom-level decoder: [top, bottom] latents in, reconstructs the inputs."""

    def __init__(self, params):
        self.p = params

    def __call__(self, inputs, inputs_thermal):
        top, bottom = inputs
        topt, bottomt = inputs_thermal
        p = self.p
        h, ht = conv3x3_fused([(top, 2), (bottom, 1)], [(topt, 2), (bottomt, 1)],
                              p["rgb1"], p["th1"], act="relu")
        h, ht = conv3x3_fused([(h, 2)], [(ht, 2)], p["rgb2"], p["th2"], act="relu")
        h, ht = conv3x3_fused([(h, 1)], [(ht, 1)], p["rgb3"], p["th3"], act="none")
        return h, ht


class VQVAE:
    """JAX mirror of the PyTorch VQVAE hierarchy orchestration (forward pass)."""

    def __init__(self, encoders, decoders):
        assert len(encoders) == len(decoders)
        self.encoders = encoders
        self.decoders = decoders

    def forward(self, inputs, inputs_thermal, commitment=0.25):
        all_encoded = [inputs]
        all_encoded_thermal = [inputs_thermal]
        all_vq_outs = []
        all_vq_outs_thermal = []
        pairs = []     # residual pairs for ONE fused loss-reduction call
        scales = []
        for encoder in self.encoders:
            encoded, encoded_thermal = encoder.encode(all_encoded[-1], all_encoded_thermal[-1])
            (embedded, embedded_pt, _,
             embedded_thermal, embedded_pt_thermal, _) = encoder.vq(encoded, encoded_thermal)
            all_encoded.append(encoded)
            all_encoded_thermal.append(encoded_thermal)
            all_vq_outs.append(embedded_pt)
            all_vq_outs_thermal.append(embedded_pt_thermal)
            # Forward value of mse(emb, sg(enc)) + c*mse(enc, sg(emb)) summed over both
            # modalities == (1+c) * sum((enc-emb)^2) / enc.size (element counts match).
            assert encoded.size == encoded_thermal.size
            pairs.append((jnp.concatenate([encoded.reshape(-1), encoded_thermal.reshape(-1)]),
                          jnp.concatenate([embedded.reshape(-1), embedded_thermal.reshape(-1)])))
            scales.append((1.0 + commitment) / float(encoded.size))

        reconstructions = []
        reconstructions_thermal = []
        for i, decoder in enumerate(self.decoders):
            dec_inputs = all_vq_outs[::-1][:i + 1]
            dec_inputs_thermal = all_vq_outs_thermal[::-1][:i + 1]
            target = all_encoded[::-1][i + 1]
            target_thermal = all_encoded_thermal[::-1][i + 1]
            recon, recon_thermal = decoder(dec_inputs, dec_inputs_thermal)
            reconstructions.append(recon)
            reconstructions_thermal.append(recon_thermal)
            # Floating-point targets -> MSE branch of the PyTorch code.
            # TODO(synk): integer-target cross-entropy branch not implemented (never hit here).
            pairs.append((recon, jax.lax.stop_gradient(target)))
            scales.append(1.0 / float(recon.size))
            pairs.append((recon_thermal, jax.lax.stop_gradient(target_thermal)))
            scales.append(1.0 / float(recon_thermal.size))

        # All VQ + reconstruction losses from a single fused Pallas reduction.
        seg_losses = fused_sq_diff_sums(pairs) * jnp.asarray(scales, jnp.float32)
        n_enc = len(self.encoders)
        total_vq_loss = jnp.sum(seg_losses[:n_enc])
        total_recon_loss = jnp.sum(seg_losses[n_enc:])
        losses = [seg_losses[n_enc + 2 * i] for i in range(len(self.decoders))]
        losses_thermal = [seg_losses[n_enc + 2 * i + 1] for i in range(len(self.decoders))]
        return {
            'loss': total_vq_loss + total_recon_loss,
            'losses': losses,
            'losses_thermal': losses_thermal,
            'reconstructions': reconstructions,
            'reconstructions_thermal': reconstructions_thermal,
            'embedded': all_vq_outs,
            'embedded_thermal': all_vq_outs_thermal,
        }

    __call__ = forward


# ----------------------------------------------------------------------------------
# Deterministic parameter construction
# ----------------------------------------------------------------------------------

def _conv_params(key, cin, cout, k=3, scale=0.1):
    kw, kb = jax.random.split(key)
    w = scale * jax.random.normal(kw, (k * k * cin, cout), jnp.float32)
    b = scale * jax.random.normal(kb, (cout,), jnp.float32)
    return w, b


def build_model(key, c_rgb=3, c_th=1, hidden=16, latent=16, codes=32):
    keys = jax.random.split(key, 32)
    ki = iter(range(32))

    enc0 = Encoder({
        "rgb1": _conv_params(keys[next(ki)], c_rgb, hidden),
        "rgb2": _conv_params(keys[next(ki)], hidden, latent),
        "th1": _conv_params(keys[next(ki)], c_th, hidden),
        "th2": _conv_params(keys[next(ki)], hidden, latent),
        "cb_rgb": jax.random.normal(keys[next(ki)], (codes, latent), jnp.float32),
        "cb_th": jax.random.normal(keys[next(ki)], (codes, latent), jnp.float32),
    })
    enc1 = Encoder({
        "rgb1": _conv_params(keys[next(ki)], latent, hidden),
        "rgb2": _conv_params(keys[next(ki)], hidden, latent),
        "th1": _conv_params(keys[next(ki)], latent, hidden),
        "th2": _conv_params(keys[next(ki)], hidden, latent),
        "cb_rgb": jax.random.normal(keys[next(ki)], (codes, latent), jnp.float32),
        "cb_th": jax.random.normal(keys[next(ki)], (codes, latent), jnp.float32),
    })

    dec_top = TopDecoder({
        "rgb1": _conv_params(keys[next(ki)], latent, hidden),
        "rgb2": _conv_params(keys[next(ki)], hidden, latent),
        "th1": _conv_params(keys[next(ki)], latent, hidden),
        "th2": _conv_params(keys[next(ki)], hidden, latent),
    })
    dec_bottom = BottomDecoder({
        "rgb1": _conv_params(keys[next(ki)], 2 * latent, hidden),
        "rgb2": _conv_params(keys[next(ki)], hidden, hidden),
        "rgb3": _conv_params(keys[next(ki)], hidden, c_rgb),
        "th1": _conv_params(keys[next(ki)], 2 * latent, hidden),
        "th2": _conv_params(keys[next(ki)], hidden, hidden),
        "th3": _conv_params(keys[next(ki)], hidden, c_th),
    })

    # Encoders bottom->top, decoders top->bottom (as in the PyTorch module).
    return VQVAE([enc0, enc1], [dec_top, dec_bottom])


# ----------------------------------------------------------------------------------
# Main
# ----------------------------------------------------------------------------------

if __name__ == "__main__":
    key = jax.random.PRNGKey(0)
    k_model, k_rgb, k_th = jax.random.split(key, 3)

    model = build_model(k_model)

    # NHWC inputs (PyTorch would be NCHW): rgb (2,16,16,3), thermal (2,16,16,1)
    inputs = jax.random.normal(k_rgb, (2, 16, 16, 3), jnp.float32)
    inputs_thermal = jax.random.normal(k_th, (2, 16, 16, 1), jnp.float32)

    fwd = jax.jit(functools.partial(model.forward, commitment=0.25))
    out = fwd(inputs, inputs_thermal)

    jax.block_until_ready(out['loss'])
    for r in out['reconstructions'] + out['reconstructions_thermal']:
        jax.block_until_ready(r)

    print("KERNEL_OK")
</pallas_src>

<mosaic_0001>
module attributes {stable_mosaic.version = 11 : i64} {
  func.func @_dual_matmul_kernel(%arg0: i32, %arg1: i32, %arg2: memref<1x128x32xbf16, #tpu.memory_space<vmem>>, %arg3: memref<1x32x128xbf16, #tpu.memory_space<vmem>>, %arg4: memref<1x1x128xf32, #tpu.memory_space<vmem>>, %arg5: memref<1x128x128xbf16, #tpu.memory_space<vmem>>) attributes {dimension_semantics = [#tpu.dimension_semantics<parallel>, #tpu.dimension_semantics<parallel>], iteration_bounds = array<i64: 2, 1>, scalar_prefetch = 0 : i64, scratch_operands = 0 : i64, tpu.core_type = #tpu.core_type<tc>, window_params = [{transform_indices = @transform_0, window_bounds = array<i64: 1, 128, 32>}, {transform_indices = @transform_1, window_bounds = array<i64: 1, 32, 128>}, {transform_indices = @transform_2, window_bounds = array<i64: 1, 1, 128>}, {transform_indices = @transform_3, window_bounds = array<i64: 1, 128, 128>}]} {
    %c0 = arith.constant 0 : index
    %c0_0 = arith.constant 0 : index
    %c0_1 = arith.constant 0 : index
    %0 = vector.load %arg2[%c0, %c0_0, %c0_1] : memref<1x128x32xbf16, #tpu.memory_space<vmem>>, vector<1x128x32xbf16>
    %1 = vector.shape_cast %0 : vector<1x128x32xbf16> to vector<128x32xbf16>
    %c0_2 = arith.constant 0 : index
    %c0_3 = arith.constant 0 : index
    %c0_4 = arith.constant 0 : index
    %2 = vector.load %arg3[%c0_2, %c0_3, %c0_4] : memref<1x32x128xbf16, #tpu.memory_space<vmem>>, vector<1x32x128xbf16>
    %3 = vector.shape_cast %2 : vector<1x32x128xbf16> to vector<32x128xbf16>
    %cst = arith.constant dense<0.000000e+00> : vector<128x128xf32>
    %4 = tpu.matmul %1, %3, %cst {dimension_numbers = #tpu.dot_dimension_numbers<[1], [0], [0], [1], [0, 0, 1, 1], [], []>} : vector<128x32xbf16>, vector<32x128xbf16>, vector<128x128xf32> -> vector<128x128xf32>
    %c0_5 = arith.constant 0 : index
    %c0_6 = arith.constant 0 : index
    %c0_7 = arith.constant 0 : index
    %5 = vector.load %arg4[%c0_5, %c0_6, %c0_7] : memref<1x1x128xf32, #tpu.memory_space<vmem>>, vector<1x1x128xf32>
    %6 = vector.shape_cast %5 : vector<1x1x128xf32> to vector<1x128xf32>
    %7 = vector.broadcast %6 : vector<1x128xf32> to vector<128x128xf32>
    %8 = arith.addf %4, %7 : vector<128x128xf32>
    %cst_8 = arith.constant 0.000000e+00 : f32
    %9 = vector.broadcast %cst_8 : f32 to vector<128x128xf32>
    %10 = arith.maximumf %8, %9 : vector<128x128xf32>
    %11 = arith.truncf %10 : vector<128x128xf32> to vector<128x128xbf16>
    %c0_9 = arith.constant 0 : index
    %c0_10 = arith.constant 0 : index
    %c0_11 = arith.constant 0 : index
    %12 = vector.load %arg5[%c0_9, %c0_10, %c0_11] : memref<1x128x128xbf16, #tpu.memory_space<vmem>>, vector<1x128x128xbf16>
    %13 = vector.shape_cast %12 : vector<1x128x128xbf16> to vector<128x128xbf16>
    %14 = vector.shape_cast %11 : vector<128x128xbf16> to vector<1x128x128xbf16>
    tpu.vector_store %arg5[%c0_9, %c0_10, %c0_11], %14 {strides = array<i32>} : memref<1x128x128xbf16, #tpu.memory_space<vmem>>, vector<1x128x128xbf16>,
    return
  }
  func.func @transform_0(%arg0: i32, %arg1: i32) -> (i32, i32, i32) {
    %c0_i32 = arith.constant 0 : i32
    %c0_i32_0 = arith.constant 0 : i32
    return %arg0, %arg1, %c0_i32 : i32, i32, i32
  }
  func.func @transform_1(%arg0: i32, %arg1: i32) -> (i32, i32, i32) {
    %c0_i32 = arith.constant 0 : i32
    %c0_i32_0 = arith.constant 0 : i32
    %c0_i32_1 = arith.constant 0 : i32
    return %arg0, %c0_i32, %c0_i32_0 : i32, i32, i32
  }
  func.func @transform_2(%arg0: i32, %arg1: i32) -> (i32, i32, i32) {
    %c0_i32 = arith.constant 0 : i32
    %c0_i32_0 = arith.constant 0 : i32
    %c0_i32_1 = arith.constant 0 : i32
    return %arg0, %c0_i32, %c0_i32_0 : i32, i32, i32
  }
  func.func @transform_3(%arg0: i32, %arg1: i32) -> (i32, i32, i32) {
    %c0_i32 = arith.constant 0 : i32
    %c0_i32_0 = arith.constant 0 : i32
    return %arg0, %arg1, %c0_i32 : i32, i32, i32
  }
}

module attributes {stable_mosaic.version = 11 : i64} {
  func.func @_dual_matmul_kernel(%arg0: i32, %arg1: i32, %arg2: memref<1x128x144xbf16, #tpu.memory_space<vmem>>, %arg3: memref<1x144x128xbf16, #tpu.memory_space<vmem>>, %arg4: memref<1x1x128xf32, #tpu.memory_space<vmem>>, %arg5: memref<1x128x128xf32, #tpu.memory_space<vmem>>) attributes {dimension_semantics = [#tpu.dimension_semantics<parallel>, #tpu.dimension_semantics<parallel>], iteration_bounds = array<i64: 2, 1>, scalar_prefetch = 0 : i64, scratch_operands = 0 : i64, tpu.core_type = #tpu.core_type<tc>, window_params = [{transform_indices = @transform_0, window_bounds = array<i64: 1, 128, 144>}, {transform_indices = @transform_1, window_bounds = array<i64: 1, 144, 128>}, {transform_indices = @transform_2, window_bounds = array<i64: 1, 1, 128>}, {transform_indices = @transform_3, window_bounds = array<i64: 1, 128, 128>}]} {
    %c0 = arith.constant 0 : index
    %c0_0 = arith.constant 0 : index
    %c0_1 = arith.constant 0 : index
    %0 = vector.load %arg2[%c0, %c0_0, %c0_1] : memref<1x128x144xbf16, #tpu.memory_space<vmem>>, vector<1x128x144xbf16>
    %1 = vector.shape_cast %0 : vector<1x128x144xbf16> to vector<128x144xbf16>
    %c0_2 = arith.constant 0 : index
    %c0_3 = arith.constant 0 : index
    %c0_4 = arith.constant 0 : index
    %2 = vector.load %arg3[%c0_2, %c0_3, %c0_4] : memref<1x144x128xbf16, #tpu.memory_space<vmem>>, vector<1x144x128xbf16>
    %3 = vector.shape_cast %2 : vector<1x144x128xbf16> to vector<144x128xbf16>
    %cst = arith.constant dense<0.000000e+00> : vector<128x128xf32>
    %4 = tpu.matmul %1, %3, %cst {dimension_numbers = #tpu.dot_dimension_numbers<[1], [0], [0], [1], [0, 0, 1, 1], [], []>} : vector<128x144xbf16>, vector<144x128xbf16>, vector<128x128xf32> -> vector<128x128xf32>
    %c0_5 = arith.constant 0 : index
    %c0_6 = arith.constant 0 : index
    %c0_7 = arith.constant 0 : index
    %5 = vector.load %arg4[%c0_5, %c0_6, %c0_7] : memref<1x1x128xf32, #tpu.memory_space<vmem>>, vector<1x1x128xf32>
    %6 = vector.shape_cast %5 : vector<1x1x128xf32> to vector<1x128xf32>
    %7 = vector.broadcast %6 : vector<1x128xf32> to vector<128x128xf32>
    %8 = arith.addf %4, %7 : vector<128x128xf32>
    %c0_8 = arith.constant 0 : index
    %c0_9 = arith.constant 0 : index
    %c0_10 = arith.constant 0 : index
    %9 = vector.load %arg5[%c0_8, %c0_9, %c0_10] : memref<1x128x128xf32, #tpu.memory_space<vmem>>, vector<1x128x128xf32>
    %10 = vector.shape_cast %9 : vector<1x128x128xf32> to vector<128x128xf32>
    %11 = vector.shape_cast %8 : vector<128x128xf32> to vector<1x128x128xf32>
    tpu.vector_store %arg5[%c0_8, %c0_9, %c0_10], %11 {strides = array<i32>} : memref<1x128x128xf32, #tpu.memory_space<vmem>>, vector<1x128x128xf32>,
    return
  }
  func.func @transform_0(%arg0: i32, %arg1: i32) -> (i32, i32, i32) {
    %c0_i32 = arith.constant 0 : i32
    %c0_i32_0 = arith.constant 0 : i32
    return %arg0, %arg1, %c0_i32 : i32, i32, i32
  }
  func.func @transform_1(%arg0: i32, %arg1: i32) -> (i32, i32, i32) {
    %c0_i32 = arith.constant 0 : i32
    %c0_i32_0 = arith.constant 0 : i32
    %c0_i32_1 = arith.constant 0 : i32
    return %arg0, %c0_i32, %c0_i32_0 : i32, i32, i32
  }
  func.func @transform_2(%arg0: i32, %arg1: i32) -> (i32, i32, i32) {
    %c0_i32 = arith.constant 0 : i32
    %c0_i32_0 = arith.constant 0 : i32
    %c0_i32_1 = arith.constant 0 : i32
    return %arg0, %c0_i32, %c0_i32_0 : i32, i32, i32
  }
  func.func @transform_3(%arg0: i32, %arg1: i32) -> (i32, i32, i32) {
    %c0_i32 = arith.constant 0 : i32
    %c0_i32_0 = arith.constant 0 : i32
    return %arg0, %arg1, %c0_i32 : i32, i32, i32
  }
}

module attributes {stable_mosaic.version = 11 : i64} {
  func.func @_vq_kernel(%arg0: i32, %arg1: i32, %arg2: memref<1x16x128xbf16, #tpu.memory_space<vmem>>, %arg3: memref<1x128x16xf32, #tpu.memory_space<vmem>>, %arg4: memref<1x128x1xf32, #tpu.memory_space<vmem>>, %arg5: memref<1x16x128xf32, #tpu.memory_space<vmem>>) attributes {dimension_semantics = [#tpu.dimension_semantics<parallel>, #tpu.dimension_semantics<parallel>], iteration_bounds = array<i64: 2, 1>, scalar_prefetch = 0 : i64, scratch_operands = 0 : i64, tpu.core_type = #tpu.core_type<tc>, window_params = [{transform_indices = @transform_0, window_bounds = array<i64: 1, 16, 128>}, {transform_indices = @transform_1, window_bounds = array<i64: 1, 128, 16>}, {transform_indices = @transform_2, window_bounds = array<i64: 1, 128, 1>}, {transform_indices = @transform_3, window_bounds = array<i64: 1, 16, 128>}]} {
    %c0 = arith.constant 0 : index
    %c0_0 = arith.constant 0 : index
    %c0_1 = arith.constant 0 : index
    %0 = vector.load %arg2[%c0, %c0_0, %c0_1] : memref<1x16x128xbf16, #tpu.memory_space<vmem>>, vector<1x16x128xbf16>
    %1 = vector.shape_cast %0 : vector<1x16x128xbf16> to vector<16x128xbf16>
    %c0_2 = arith.constant 0 : index
    %c0_3 = arith.constant 0 : index
    %c0_4 = arith.constant 0 : index
    %2 = vector.load %arg3[%c0_2, %c0_3, %c0_4] : memref<1x128x16xf32, #tpu.memory_space<vmem>>, vector<1x128x16xf32>
    %3 = vector.shape_cast %2 : vector<1x128x16xf32> to vector<128x16xf32>
    %4 = arith.truncf %3 : vector<128x16xf32> to vector<128x16xbf16>
    %cst = arith.constant dense<0.000000e+00> : vector<128x128xf32>
    %5 = tpu.matmul %4, %1, %cst {dimension_numbers = #tpu.dot_dimension_numbers<[1], [0], [0], [1], [0, 0, 1, 1], [], []>} : vector<128x16xbf16>, vector<16x128xbf16>, vector<128x128xf32> -> vector<128x128xf32>
    %c0_5 = arith.constant 0 : index
    %c0_6 = arith.constant 0 : index
    %c0_7 = arith.constant 0 : index
    %6 = vector.load %arg4[%c0_5, %c0_6, %c0_7] : memref<1x128x1xf32, #tpu.memory_space<vmem>>, vector<1x128x1xf32>
    %7 = vector.shape_cast %6 : vector<1x128x1xf32> to vector<128x1xf32>
    %cst_8 = arith.constant 2.000000e+00 : f32
    %8 = vector.broadcast %cst_8 : f32 to vector<128x128xf32>
    %9 = arith.mulf %8, %5 : vector<128x128xf32>
    %10 = vector.broadcast %7 : vector<128x1xf32> to vector<128x128xf32>
    %11 = arith.subf %10, %9 : vector<128x128xf32>
    %cst_9 = arith.constant dense<0x7F800000> : vector<128xf32>
    %12 = vector.multi_reduction <minimumf>, %11, %cst_9 [0] : vector<128x128xf32> to vector<128xf32>
    %13 = vector.shape_cast %12 : vector<128xf32> to vector<1x128xf32>
    %14 = tpu.iota {dimensions = array<i32: 0>} : vector<128x128xi32>
    %15 = vector.broadcast %13 : vector<1x128xf32> to vector<128x128xf32>
    %16 = arith.cmpf ole, %11, %15 : vector<128x128xf32>
    %c128_i32 = arith.constant 128 : i32
    %17 = vector.broadcast %c128_i32 : i32 to vector<128x128xi32>
    %18 = arith.select %16, %14, %17 : vector<128x128xi1>, vector<128x128xi32>
    %cst_10 = arith.constant dense<2147483647> : vector<128xi32>
    %19 = vector.multi_reduction <minsi>, %18, %cst_10 [0] : vector<128x128xi32> to vector<128xi32>
    %20 = vector.shape_cast %19 : vector<128xi32> to vector<1x128xi32>
    %21 = vector.broadcast %20 : vector<1x128xi32> to vector<128x128xi32>
    %22 = arith.cmpi eq, %14, %21 : vector<128x128xi32>
    %23 = arith.extui %22 : vector<128x128xi1> to vector<128x128xi32>
    %24 = arith.sitofp %23 : vector<128x128xi32> to vector<128x128xf32>
    %cst_11 = arith.constant dense<0.000000e+00> : vector<16x128xf32>
    %25 = tpu.matmul %3, %24, %cst_11 {dimension_numbers = #tpu.dot_dimension_numbers<[0], [0], [1], [1], [0, 1, 1, 1], [], []>} : vector<128x16xf32>, vector<128x128xf32>, vector<16x128xf32> -> vector<16x128xf32>
    %c0_12 = arith.constant 0 : index
    %c0_13 = arith.constant 0 : index
    %c0_14 = arith.constant 0 : index
    %26 = vector.load %arg5[%c0_12, %c0_13, %c0_14] : memref<1x16x128xf32, #tpu.memory_space<vmem>>, vector<1x16x128xf32>
    %27 = vector.shape_cast %26 : vector<1x16x128xf32> to vector<16x128xf32>
    %28 = vector.shape_cast %25 : vector<16x128xf32> to vector<1x16x128xf32>
    tpu.vector_store %arg5[%c0_12, %c0_13, %c0_14], %28 {strides = array<i32>} : memref<1x16x128xf32, #tpu.memory_space<vmem>>, vector<1x16x128xf32>,
    return
  }
  func.func @transform_0(%arg0: i32, %arg1: i32) -> (i32, i32, i32) {
    %c0_i32 = arith.constant 0 : i32
    %c0_i32_0 = arith.constant 0 : i32
    return %arg0, %c0_i32, %arg1 : i32, i32, i32
  }
  func.func @transform_1(%arg0: i32, %arg1: i32) -> (i32, i32, i32) {
    %c0_i32 = arith.constant 0 : i32
    %c0_i32_0 = arith.constant 0 : i32
    %c0_i32_1 = arith.constant 0 : i32
    return %arg0, %c0_i32, %c0_i32_0 : i32, i32, i32
  }
  func.func @transform_2(%arg0: i32, %arg1: i32) -> (i32, i32, i32) {
    %c0_i32 = arith.constant 0 : i32
    %c0_i32_0 = arith.constant 0 : i32
    %c0_i32_1 = arith.constant 0 : i32
    return %arg0, %c0_i32, %c0_i32_0 : i32, i32, i32
  }
  func.func @transform_3(%arg0: i32, %arg1: i32) -> (i32, i32, i32) {
    %c0_i32 = arith.constant 0 : i32
    %c0_i32_0 = arith.constant 0 : i32
    return %arg0, %c0_i32, %arg1 : i32, i32, i32
  }
}

module attributes {stable_mosaic.version = 11 : i64} {
  func.func @_dual_matmul_kernel(%arg0: i32, %arg1: i32, %arg2: memref<1x32x144xbf16, #tpu.memory_space<vmem>>, %arg3: memref<1x144x128xbf16, #tpu.memory_space<vmem>>, %arg4: memref<1x1x128xf32, #tpu.memory_space<vmem>>, %arg5: memref<1x32x128xbf16, #tpu.memory_space<vmem>>) attributes {dimension_semantics = [#tpu.dimension_semantics<parallel>, #tpu.dimension_semantics<parallel>], iteration_bounds = array<i64: 2, 1>, scalar_prefetch = 0 : i64, scratch_operands = 0 : i64, tpu.core_type = #tpu.core_type<tc>, window_params = [{transform_indices = @transform_0, window_bounds = array<i64: 1, 32, 144>}, {transform_indices = @transform_1, window_bounds = array<i64: 1, 144, 128>}, {transform_indices = @transform_2, window_bounds = array<i64: 1, 1, 128>}, {transform_indices = @transform_3, window_bounds = array<i64: 1, 32, 128>}]} {
    %c0 = arith.constant 0 : index
    %c0_0 = arith.constant 0 : index
    %c0_1 = arith.constant 0 : index
    %0 = vector.load %arg2[%c0, %c0_0, %c0_1] : memref<1x32x144xbf16, #tpu.memory_space<vmem>>, vector<1x32x144xbf16>
    %1 = vector.shape_cast %0 : vector<1x32x144xbf16> to vector<32x144xbf16>
    %c0_2 = arith.constant 0 : index
    %c0_3 = arith.constant 0 : index
    %c0_4 = arith.constant 0 : index
    %2 = vector.load %arg3[%c0_2, %c0_3, %c0_4] : memref<1x144x128xbf16, #tpu.memory_space<vmem>>, vector<1x144x128xbf16>
    %3 = vector.shape_cast %2 : vector<1x144x128xbf16> to vector<144x128xbf16>
    %cst = arith.constant dense<0.000000e+00> : vector<32x128xf32>
    %4 = tpu.matmul %1, %3, %cst {dimension_numbers = #tpu.dot_dimension_numbers<[1], [0], [0], [1], [0, 0, 1, 1], [], []>} : vector<32x144xbf16>, vector<144x128xbf16>, vector<32x128xf32> -> vector<32x128xf32>
    %c0_5 = arith.constant 0 : index
    %c0_6 = arith.constant 0 : index
    %c0_7 = arith.constant 0 : index
    %5 = vector.load %arg4[%c0_5, %c0_6, %c0_7] : memref<1x1x128xf32, #tpu.memory_space<vmem>>, vector<1x1x128xf32>
    %6 = vector.shape_cast %5 : vector<1x1x128xf32> to vector<1x128xf32>
    %7 = vector.broadcast %6 : vector<1x128xf32> to vector<32x128xf32>
    %8 = arith.addf %4, %7 : vector<32x128xf32>
    %cst_8 = arith.constant 0.000000e+00 : f32
    %9 = vector.broadcast %cst_8 : f32 to vector<32x128xf32>
    %10 = arith.maximumf %8, %9 : vector<32x128xf32>
    %11 = arith.truncf %10 : vector<32x128xf32> to vector<32x128xbf16>
    %c0_9 = arith.constant 0 : index
    %c0_10 = arith.constant 0 : index
    %c0_11 = arith.constant 0 : index
    %12 = vector.load %arg5[%c0_9, %c0_10, %c0_11] : memref<1x32x128xbf16, #tpu.memory_space<vmem>>, vector<1x32x128xbf16>
    %13 = vector.shape_cast %12 : vector<1x32x128xbf16> to vector<32x128xbf16>
    %14 = vector.shape_cast %11 : vector<32x128xbf16> to vector<1x32x128xbf16>
    tpu.vector_store %arg5[%c0_9, %c0_10, %c0_11], %14 {strides = array<i32>} : memref<1x32x128xbf16, #tpu.memory_space<vmem>>, vector<1x32x128xbf16>,
    return
  }
  func.func @transform_0(%arg0: i32, %arg1: i32) -> (i32, i32, i32) {
    %c0_i32 = arith.constant 0 : i32
    %c0_i32_0 = arith.constant 0 : i32
    return %arg0, %arg1, %c0_i32 : i32, i32, i32
  }
  func.func @transform_1(%arg0: i32, %arg1: i32) -> (i32, i32, i32) {
    %c0_i32 = arith.constant 0 : i32
    %c0_i32_0 = arith.constant 0 : i32
    %c0_i32_1 = arith.constant 0 : i32
    return %arg0, %c0_i32, %c0_i32_0 : i32, i32, i32
  }
  func.func @transform_2(%arg0: i32, %arg1: i32) -> (i32, i32, i32) {
    %c0_i32 = arith.constant 0 : i32
    %c0_i32_0 = arith.constant 0 : i32
    %c0_i32_1 = arith.constant 0 : i32
    return %arg0, %c0_i32, %c0_i32_0 : i32, i32, i32
  }
  func.func @transform_3(%arg0: i32, %arg1: i32) -> (i32, i32, i32) {
    %c0_i32 = arith.constant 0 : i32
    %c0_i32_0 = arith.constant 0 : i32
    return %arg0, %arg1, %c0_i32 : i32, i32, i32
  }
}

module attributes {stable_mosaic.version = 11 : i64} {
  func.func @_dual_matmul_kernel(%arg0: i32, %arg1: i32, %arg2: memref<1x32x144xbf16, #tpu.memory_space<vmem>>, %arg3: memref<1x144x128xbf16, #tpu.memory_space<vmem>>, %arg4: memref<1x1x128xf32, #tpu.memory_space<vmem>>, %arg5: memref<1x32x128xf32, #tpu.memory_space<vmem>>) attributes {dimension_semantics = [#tpu.dimension_semantics<parallel>, #tpu.dimension_semantics<parallel>], iteration_bounds = array<i64: 2, 1>, scalar_prefetch = 0 : i64, scratch_operands = 0 : i64, tpu.core_type = #tpu.core_type<tc>, window_params = [{transform_indices = @transform_0, window_bounds = array<i64: 1, 32, 144>}, {transform_indices = @transform_1, window_bounds = array<i64: 1, 144, 128>}, {transform_indices = @transform_2, window_bounds = array<i64: 1, 1, 128>}, {transform_indices = @transform_3, window_bounds = array<i64: 1, 32, 128>}]} {
    %c0 = arith.constant 0 : index
    %c0_0 = arith.constant 0 : index
    %c0_1 = arith.constant 0 : index
    %0 = vector.load %arg2[%c0, %c0_0, %c0_1] : memref<1x32x144xbf16, #tpu.memory_space<vmem>>, vector<1x32x144xbf16>
    %1 = vector.shape_cast %0 : vector<1x32x144xbf16> to vector<32x144xbf16>
    %c0_2 = arith.constant 0 : index
    %c0_3 = arith.constant 0 : index
    %c0_4 = arith.constant 0 : index
    %2 = vector.load %arg3[%c0_2, %c0_3, %c0_4] : memref<1x144x128xbf16, #tpu.memory_space<vmem>>, vector<1x144x128xbf16>
    %3 = vector.shape_cast %2 : vector<1x144x128xbf16> to vector<144x128xbf16>
    %cst = arith.constant dense<0.000000e+00> : vector<32x128xf32>
    %4 = tpu.matmul %1, %3, %cst {dimension_numbers = #tpu.dot_dimension_numbers<[1], [0], [0], [1], [0, 0, 1, 1], [], []>} : vector<32x144xbf16>, vector<144x128xbf16>, vector<32x128xf32> -> vector<32x128xf32>
    %c0_5 = arith.constant 0 : index
    %c0_6 = arith.constant 0 : index
    %c0_7 = arith.constant 0 : index
    %5 = vector.load %arg4[%c0_5, %c0_6, %c0_7] : memref<1x1x128xf32, #tpu.memory_space<vmem>>, vector<1x1x128xf32>
    %6 = vector.shape_cast %5 : vector<1x1x128xf32> to vector<1x128xf32>
    %7 = vector.broadcast %6 : vector<1x128xf32> to vector<32x128xf32>
    %8 = arith.addf %4, %7 : vector<32x128xf32>
    %c0_8 = arith.constant 0 : index
    %c0_9 = arith.constant 0 : index
    %c0_10 = arith.constant 0 : index
    %9 = vector.load %arg5[%c0_8, %c0_9, %c0_10] : memref<1x32x128xf32, #tpu.memory_space<vmem>>, vector<1x32x128xf32>
    %10 = vector.shape_cast %9 : vector<1x32x128xf32> to vector<32x128xf32>
    %11 = vector.shape_cast %8 : vector<32x128xf32> to vector<1x32x128xf32>
    tpu.vector_store %arg5[%c0_8, %c0_9, %c0_10], %11 {strides = array<i32>} : memref<1x32x128xf32, #tpu.memory_space<vmem>>, vector<1x32x128xf32>,
    return
  }
  func.func @transform_0(%arg0: i32, %arg1: i32) -> (i32, i32, i32) {
    %c0_i32 = arith.constant 0 : i32
    %c0_i32_0 = arith.constant 0 : i32
    return %arg0, %arg1, %c0_i32 : i32, i32, i32
  }
  func.func @transform_1(%arg0: i32, %arg1: i32) -> (i32, i32, i32) {
    %c0_i32 = arith.constant 0 : i32
    %c0_i32_0 = arith.constant 0 : i32
    %c0_i32_1 = arith.constant 0 : i32
    return %arg0, %c0_i32, %c0_i32_0 : i32, i32, i32
  }
  func.func @transform_2(%arg0: i32, %arg1: i32) -> (i32, i32, i32) {
    %c0_i32 = arith.constant 0 : i32
    %c0_i32_0 = arith.constant 0 : i32
    %c0_i32_1 = arith.constant 0 : i32
    return %arg0, %c0_i32, %c0_i32_0 : i32, i32, i32
  }
  func.func @transform_3(%arg0: i32, %arg1: i32) -> (i32, i32, i32) {
    %c0_i32 = arith.constant 0 : i32
    %c0_i32_0 = arith.constant 0 : i32
    return %arg0, %arg1, %c0_i32 : i32, i32, i32
  }
}

module attributes {stable_mosaic.version = 11 : i64} {
  func.func @_dual_matmul_kernel(%arg0: i32, %arg1: i32, %arg2: memref<1x128x144xbf16, #tpu.memory_space<vmem>>, %arg3: memref<1x144x128xbf16, #tpu.memory_space<vmem>>, %arg4: memref<1x1x128xf32, #tpu.memory_space<vmem>>, %arg5: memref<1x128x128xbf16, #tpu.memory_space<vmem>>) attributes {dimension_semantics = [#tpu.dimension_semantics<parallel>, #tpu.dimension_semantics<parallel>], iteration_bounds = array<i64: 2, 1>, scalar_prefetch = 0 : i64, scratch_operands = 0 : i64, tpu.core_type = #tpu.core_type<tc>, window_params = [{transform_indices = @transform_0, window_bounds = array<i64: 1, 128, 144>}, {transform_indices = @transform_1, window_bounds = array<i64: 1, 144, 128>}, {transform_indices = @transform_2, window_bounds = array<i64: 1, 1, 128>}, {transform_indices = @transform_3, window_bounds = array<i64: 1, 128, 128>}]} {
    %c0 = arith.constant 0 : index
    %c0_0 = arith.constant 0 : index
    %c0_1 = arith.constant 0 : index
    %0 = vector.load %arg2[%c0, %c0_0, %c0_1] : memref<1x128x144xbf16, #tpu.memory_space<vmem>>, vector<1x128x144xbf16>
    %1 = vector.shape_cast %0 : vector<1x128x144xbf16> to vector<128x144xbf16>
    %c0_2 = arith.constant 0 : index
    %c0_3 = arith.constant 0 : index
    %c0_4 = arith.constant 0 : index
    %2 = vector.load %arg3[%c0_2, %c0_3, %c0_4] : memref<1x144x128xbf16, #tpu.memory_space<vmem>>, vector<1x144x128xbf16>
    %3 = vector.shape_cast %2 : vector<1x144x128xbf16> to vector<144x128xbf16>
    %cst = arith.constant dense<0.000000e+00> : vector<128x128xf32>
    %4 = tpu.matmul %1, %3, %cst {dimension_numbers = #tpu.dot_dimension_numbers<[1], [0], [0], [1], [0, 0, 1, 1], [], []>} : vector<128x144xbf16>, vector<144x128xbf16>, vector<128x128xf32> -> vector<128x128xf32>
    %c0_5 = arith.constant 0 : index
    %c0_6 = arith.constant 0 : index
    %c0_7 = arith.constant 0 : index
    %5 = vector.load %arg4[%c0_5, %c0_6, %c0_7] : memref<1x1x128xf32, #tpu.memory_space<vmem>>, vector<1x1x128xf32>
    %6 = vector.shape_cast %5 : vector<1x1x128xf32> to vector<1x128xf32>
    %7 = vector.broadcast %6 : vector<1x128xf32> to vector<128x128xf32>
    %8 = arith.addf %4, %7 : vector<128x128xf32>
    %cst_8 = arith.constant 0.000000e+00 : f32
    %9 = vector.broadcast %cst_8 : f32 to vector<128x128xf32>
    %10 = arith.maximumf %8, %9 : vector<128x128xf32>
    %11 = arith.truncf %10 : vector<128x128xf32> to vector<128x128xbf16>
    %c0_9 = arith.constant 0 : index
    %c0_10 = arith.constant 0 : index
    %c0_11 = arith.constant 0 : index
    %12 = vector.load %arg5[%c0_9, %c0_10, %c0_11] : memref<1x128x128xbf16, #tpu.memory_space<vmem>>, vector<1x128x128xbf16>
    %13 = vector.shape_cast %12 : vector<1x128x128xbf16> to vector<128x128xbf16>
    %14 = vector.shape_cast %11 : vector<128x128xbf16> to vector<1x128x128xbf16>
    tpu.vector_store %arg5[%c0_9, %c0_10, %c0_11], %14 {strides = array<i32>} : memref<1x128x128xbf16, #tpu.memory_space<vmem>>, vector<1x128x128xbf16>,
    return
  }
  func.func @transform_0(%arg0: i32, %arg1: i32) -> (i32, i32, i32) {
    %c0_i32 = arith.constant 0 : i32
    %c0_i32_0 = arith.constant 0 : i32
    return %arg0, %arg1, %c0_i32 : i32, i32, i32
  }
  func.func @transform_1(%arg0: i32, %arg1: i32) -> (i32, i32, i32) {
    %c0_i32 = arith.constant 0 : i32
    %c0_i32_0 = arith.constant 0 : i32
    %c0_i32_1 = arith.constant 0 : i32
    return %arg0, %c0_i32, %c0_i32_0 : i32, i32, i32
  }
  func.func @transform_2(%arg0: i32, %arg1: i32) -> (i32, i32, i32) {
    %c0_i32 = arith.constant 0 : i32
    %c0_i32_0 = arith.constant 0 : i32
    %c0_i32_1 = arith.constant 0 : i32
    return %arg0, %c0_i32, %c0_i32_0 : i32, i32, i32
  }
  func.func @transform_3(%arg0: i32, %arg1: i32) -> (i32, i32, i32) {
    %c0_i32 = arith.constant 0 : i32
    %c0_i32_0 = arith.constant 0 : i32
    return %arg0, %arg1, %c0_i32 : i32, i32, i32
  }
}

module attributes {stable_mosaic.version = 11 : i64} {
  func.func @_dual_matmul_kernel(%arg0: i32, %arg1: i32, %arg2: memref<1x128x288xbf16, #tpu.memory_space<vmem>>, %arg3: memref<1x288x128xbf16, #tpu.memory_space<vmem>>, %arg4: memref<1x1x128xf32, #tpu.memory_space<vmem>>, %arg5: memref<1x128x128xbf16, #tpu.memory_space<vmem>>) attributes {dimension_semantics = [#tpu.dimension_semantics<parallel>, #tpu.dimension_semantics<parallel>], iteration_bounds = array<i64: 2, 1>, scalar_prefetch = 0 : i64, scratch_operands = 0 : i64, tpu.core_type = #tpu.core_type<tc>, window_params = [{transform_indices = @transform_0, window_bounds = array<i64: 1, 128, 288>}, {transform_indices = @transform_1, window_bounds = array<i64: 1, 288, 128>}, {transform_indices = @transform_2, window_bounds = array<i64: 1, 1, 128>}, {transform_indices = @transform_3, window_bounds = array<i64: 1, 128, 128>}]} {
    %c0 = arith.constant 0 : index
    %c0_0 = arith.constant 0 : index
    %c0_1 = arith.constant 0 : index
    %0 = vector.load %arg2[%c0, %c0_0, %c0_1] : memref<1x128x288xbf16, #tpu.memory_space<vmem>>, vector<1x128x288xbf16>
    %1 = vector.shape_cast %0 : vector<1x128x288xbf16> to vector<128x288xbf16>
    %c0_2 = arith.constant 0 : index
    %c0_3 = arith.constant 0 : index
    %c0_4 = arith.constant 0 : index
    %2 = vector.load %arg3[%c0_2, %c0_3, %c0_4] : memref<1x288x128xbf16, #tpu.memory_space<vmem>>, vector<1x288x128xbf16>
    %3 = vector.shape_cast %2 : vector<1x288x128xbf16> to vector<288x128xbf16>
    %cst = arith.constant dense<0.000000e+00> : vector<128x128xf32>
    %4 = tpu.matmul %1, %3, %cst {dimension_numbers = #tpu.dot_dimension_numbers<[1], [0], [0], [1], [0, 0, 1, 1], [], []>} : vector<128x288xbf16>, vector<288x128xbf16>, vector<128x128xf32> -> vector<128x128xf32>
    %c0_5 = arith.constant 0 : index
    %c0_6 = arith.constant 0 : index
    %c0_7 = arith.constant 0 : index
    %5 = vector.load %arg4[%c0_5, %c0_6, %c0_7] : memref<1x1x128xf32, #tpu.memory_space<vmem>>, vector<1x1x128xf32>
    %6 = vector.shape_cast %5 : vector<1x1x128xf32> to vector<1x128xf32>
    %7 = vector.broadcast %6 : vector<1x128xf32> to vector<128x128xf32>
    %8 = arith.addf %4, %7 : vector<128x128xf32>
    %cst_8 = arith.constant 0.000000e+00 : f32
    %9 = vector.broadcast %cst_8 : f32 to vector<128x128xf32>
    %10 = arith.maximumf %8, %9 : vector<128x128xf32>
    %11 = arith.truncf %10 : vector<128x128xf32> to vector<128x128xbf16>
    %c0_9 = arith.constant 0 : index
    %c0_10 = arith.constant 0 : index
    %c0_11 = arith.constant 0 : index
    %12 = vector.load %arg5[%c0_9, %c0_10, %c0_11] : memref<1x128x128xbf16, #tpu.memory_space<vmem>>, vector<1x128x128xbf16>
    %13 = vector.shape_cast %12 : vector<1x128x128xbf16> to vector<128x128xbf16>
    %14 = vector.shape_cast %11 : vector<128x128xbf16> to vector<1x128x128xbf16>
    tpu.vector_store %arg5[%c0_9, %c0_10, %c0_11], %14 {strides = array<i32>} : memref<1x128x128xbf16, #tpu.memory_space<vmem>>, vector<1x128x128xbf16>,
    return
  }
  func.func @transform_0(%arg0: i32, %arg1: i32) -> (i32, i32, i32) {
    %c0_i32 = arith.constant 0 : i32
    %c0_i32_0 = arith.constant 0 : i32
    return %arg0, %arg1, %c0_i32 : i32, i32, i32
  }
  func.func @transform_1(%arg0: i32, %arg1: i32) -> (i32, i32, i32) {
    %c0_i32 = arith.constant 0 : i32
    %c0_i32_0 = arith.constant 0 : i32
    %c0_i32_1 = arith.constant 0 : i32
    return %arg0, %c0_i32, %c0_i32_0 : i32, i32, i32
  }
  func.func @transform_2(%arg0: i32, %arg1: i32) -> (i32, i32, i32) {
    %c0_i32 = arith.constant 0 : i32
    %c0_i32_0 = arith.constant 0 : i32
    %c0_i32_1 = arith.constant 0 : i32
    return %arg0, %c0_i32, %c0_i32_0 : i32, i32, i32
  }
  func.func @transform_3(%arg0: i32, %arg1: i32) -> (i32, i32, i32) {
    %c0_i32 = arith.constant 0 : i32
    %c0_i32_0 = arith.constant 0 : i32
    return %arg0, %arg1, %c0_i32 : i32, i32, i32
  }
}

module attributes {stable_mosaic.version = 11 : i64} {
  func.func @_dual_matmul_kernel(%arg0: i32, %arg1: i32, %arg2: memref<1x256x144xbf16, #tpu.memory_space<vmem>>, %arg3: memref<1x144x128xbf16, #tpu.memory_space<vmem>>, %arg4: memref<1x1x128xf32, #tpu.memory_space<vmem>>, %arg5: memref<1x256x128xbf16, #tpu.memory_space<vmem>>) attributes {dimension_semantics = [#tpu.dimension_semantics<parallel>, #tpu.dimension_semantics<parallel>], iteration_bounds = array<i64: 2, 2>, scalar_prefetch = 0 : i64, scratch_operands = 0 : i64, tpu.core_type = #tpu.core_type<tc>, window_params = [{transform_indices = @transform_0, window_bounds = array<i64: 1, 256, 144>}, {transform_indices = @transform_1, window_bounds = array<i64: 1, 144, 128>}, {transform_indices = @transform_2, window_bounds = array<i64: 1, 1, 128>}, {transform_indices = @transform_3, window_bounds = array<i64: 1, 256, 128>}]} {
    %c0 = arith.constant 0 : index
    %c0_0 = arith.constant 0 : index
    %c0_1 = arith.constant 0 : index
    %0 = vector.load %arg2[%c0, %c0_0, %c0_1] : memref<1x256x144xbf16, #tpu.memory_space<vmem>>, vector<1x256x144xbf16>
    %1 = vector.shape_cast %0 : vector<1x256x144xbf16> to vector<256x144xbf16>
    %c0_2 = arith.constant 0 : index
    %c0_3 = arith.constant 0 : index
    %c0_4 = arith.constant 0 : index
    %2 = vector.load %arg3[%c0_2, %c0_3, %c0_4] : memref<1x144x128xbf16, #tpu.memory_space<vmem>>, vector<1x144x128xbf16>
    %3 = vector.shape_cast %2 : vector<1x144x128xbf16> to vector<144x128xbf16>
    %cst = arith.constant dense<0.000000e+00> : vector<256x128xf32>
    %4 = tpu.matmul %1, %3, %cst {dimension_numbers = #tpu.dot_dimension_numbers<[1], [0], [0], [1], [0, 0, 1, 1], [], []>} : vector<256x144xbf16>, vector<144x128xbf16>, vector<256x128xf32> -> vector<256x128xf32>
    %c0_5 = arith.constant 0 : index
    %c0_6 = arith.constant 0 : index
    %c0_7 = arith.constant 0 : index
    %5 = vector.load %arg4[%c0_5, %c0_6, %c0_7] : memref<1x1x128xf32, #tpu.memory_space<vmem>>, vector<1x1x128xf32>
    %6 = vector.shape_cast %5 : vector<1x1x128xf32> to vector<1x128xf32>
    %7 = vector.broadcast %6 : vector<1x128xf32> to vector<256x128xf32>
    %8 = arith.addf %4, %7 : vector<256x128xf32>
    %cst_8 = arith.constant 0.000000e+00 : f32
    %9 = vector.broadcast %cst_8 : f32 to vector<256x128xf32>
    %10 = arith.maximumf %8, %9 : vector<256x128xf32>
    %11 = arith.truncf %10 : vector<256x128xf32> to vector<256x128xbf16>
    %c0_9 = arith.constant 0 : index
    %c0_10 = arith.constant 0 : index
    %c0_11 = arith.constant 0 : index
    %12 = vector.load %arg5[%c0_9, %c0_10, %c0_11] : memref<1x256x128xbf16, #tpu.memory_space<vmem>>, vector<1x256x128xbf16>
    %13 = vector.shape_cast %12 : vector<1x256x128xbf16> to vector<256x128xbf16>
    %14 = vector.shape_cast %11 : vector<256x128xbf16> to vector<1x256x128xbf16>
    tpu.vector_store %arg5[%c0_9, %c0_10, %c0_11], %14 {strides = array<i32>} : memref<1x256x128xbf16, #tpu.memory_space<vmem>>, vector<1x256x128xbf16>,
    return
  }
  func.func @transform_0(%arg0: i32, %arg1: i32) -> (i32, i32, i32) {
    %c0_i32 = arith.constant 0 : i32
    %c0_i32_0 = arith.constant 0 : i32
    return %arg0, %arg1, %c0_i32 : i32, i32, i32
  }
  func.func @transform_1(%arg0: i32, %arg1: i32) -> (i32, i32, i32) {
    %c0_i32 = arith.constant 0 : i32
    %c0_i32_0 = arith.constant 0 : i32
    %c0_i32_1 = arith.constant 0 : i32
    return %arg0, %c0_i32, %c0_i32_0 : i32, i32, i32
  }
  func.func @transform_2(%arg0: i32, %arg1: i32) -> (i32, i32, i32) {
    %c0_i32 = arith.constant 0 : i32
    %c0_i32_0 = arith.constant 0 : i32
    %c0_i32_1 = arith.constant 0 : i32
    return %arg0, %c0_i32, %c0_i32_0 : i32, i32, i32
  }
  func.func @transform_3(%arg0: i32, %arg1: i32) -> (i32, i32, i32) {
    %c0_i32 = arith.constant 0 : i32
    %c0_i32_0 = arith.constant 0 : i32
    return %arg0, %arg1, %c0_i32 : i32, i32, i32
  }
}

module attributes {stable_mosaic.version = 11 : i64} {
  func.func @_dual_matmul_kernel(%arg0: i32, %arg1: i32, %arg2: memref<1x256x144xbf16, #tpu.memory_space<vmem>>, %arg3: memref<1x144x128xbf16, #tpu.memory_space<vmem>>, %arg4: memref<1x1x128xf32, #tpu.memory_space<vmem>>, %arg5: memref<1x256x128xf32, #tpu.memory_space<vmem>>) attributes {dimension_semantics = [#tpu.dimension_semantics<parallel>, #tpu.dimension_semantics<parallel>], iteration_bounds = array<i64: 2, 2>, scalar_prefetch = 0 : i64, scratch_operands = 0 : i64, tpu.core_type = #tpu.core_type<tc>, window_params = [{transform_indices = @transform_0, window_bounds = array<i64: 1, 256, 144>}, {transform_indices = @transform_1, window_bounds = array<i64: 1, 144, 128>}, {transform_indices = @transform_2, window_bounds = array<i64: 1, 1, 128>}, {transform_indices = @transform_3, window_bounds = array<i64: 1, 256, 128>}]} {
    %c0 = arith.constant 0 : index
    %c0_0 = arith.constant 0 : index
    %c0_1 = arith.constant 0 : index
    %0 = vector.load %arg2[%c0, %c0_0, %c0_1] : memref<1x256x144xbf16, #tpu.memory_space<vmem>>, vector<1x256x144xbf16>
    %1 = vector.shape_cast %0 : vector<1x256x144xbf16> to vector<256x144xbf16>
    %c0_2 = arith.constant 0 : index
    %c0_3 = arith.constant 0 : index
    %c0_4 = arith.constant 0 : index
    %2 = vector.load %arg3[%c0_2, %c0_3, %c0_4] : memref<1x144x128xbf16, #tpu.memory_space<vmem>>, vector<1x144x128xbf16>
    %3 = vector.shape_cast %2 : vector<1x144x128xbf16> to vector<144x128xbf16>
    %cst = arith.constant dense<0.000000e+00> : vector<256x128xf32>
    %4 = tpu.matmul %1, %3, %cst {dimension_numbers = #tpu.dot_dimension_numbers<[1], [0], [0], [1], [0, 0, 1, 1], [], []>} : vector<256x144xbf16>, vector<144x128xbf16>, vector<256x128xf32> -> vector<256x128xf32>
    %c0_5 = arith.constant 0 : index
    %c0_6 = arith.constant 0 : index
    %c0_7 = arith.constant 0 : index
    %5 = vector.load %arg4[%c0_5, %c0_6, %c0_7] : memref<1x1x128xf32, #tpu.memory_space<vmem>>, vector<1x1x128xf32>
    %6 = vector.shape_cast %5 : vector<1x1x128xf32> to vector<1x128xf32>
    %7 = vector.broadcast %6 : vector<1x128xf32> to vector<256x128xf32>
    %8 = arith.addf %4, %7 : vector<256x128xf32>
    %c0_8 = arith.constant 0 : index
    %c0_9 = arith.constant 0 : index
    %c0_10 = arith.constant 0 : index
    %9 = vector.load %arg5[%c0_8, %c0_9, %c0_10] : memref<1x256x128xf32, #tpu.memory_space<vmem>>, vector<1x256x128xf32>
    %10 = vector.shape_cast %9 : vector<1x256x128xf32> to vector<256x128xf32>
    %11 = vector.shape_cast %8 : vector<256x128xf32> to vector<1x256x128xf32>
    tpu.vector_store %arg5[%c0_8, %c0_9, %c0_10], %11 {strides = array<i32>} : memref<1x256x128xf32, #tpu.memory_space<vmem>>, vector<1x256x128xf32>,
    return
  }
  func.func @transform_0(%arg0: i32, %arg1: i32) -> (i32, i32, i32) {
    %c0_i32 = arith.constant 0 : i32
    %c0_i32_0 = arith.constant 0 : i32
    return %arg0, %arg1, %c0_i32 : i32, i32, i32
  }
  func.func @transform_1(%arg0: i32, %arg1: i32) -> (i32, i32, i32) {
    %c0_i32 = arith.constant 0 : i32
    %c0_i32_0 = arith.constant 0 : i32
    %c0_i32_1 = arith.constant 0 : i32
    return %arg0, %c0_i32, %c0_i32_0 : i32, i32, i32
  }
  func.func @transform_2(%arg0: i32, %arg1: i32) -> (i32, i32, i32) {
    %c0_i32 = arith.constant 0 : i32
    %c0_i32_0 = arith.constant 0 : i32
    %c0_i32_1 = arith.constant 0 : i32
    return %arg0, %c0_i32, %c0_i32_0 : i32, i32, i32
  }
  func.func @transform_3(%arg0: i32, %arg1: i32) -> (i32, i32, i32) {
    %c0_i32 = arith.constant 0 : i32
    %c0_i32_0 = arith.constant 0 : i32
    return %arg0, %arg1, %c0_i32 : i32, i32, i32
  }
}

module attributes {stable_mosaic.version = 11 : i64} {
  func.func @_fused_ssq_kernel(%arg0: i32, %arg1: i32, %arg2: memref<1x4x8x128xf32, #tpu.memory_space<vmem>>, %arg3: memref<1x4x8x128xf32, #tpu.memory_space<vmem>>, %arg4: memref<1x8x128xf32, #tpu.memory_space<vmem>>) attributes {dimension_semantics = [#tpu.dimension_semantics<parallel>, #tpu.dimension_semantics<arbitrary>], iteration_bounds = array<i64: 6, 1>, scalar_prefetch = 0 : i64, scratch_operands = 0 : i64, tpu.core_type = #tpu.core_type<tc>, window_params = [{transform_indices = @transform_0, window_bounds = array<i64: 1, 4, 8, 128>}, {transform_indices = @transform_1, window_bounds = array<i64: 1, 4, 8, 128>}, {transform_indices = @transform_2, window_bounds = array<i64: 1, 8, 128>}]} {
    %c0_i32 = arith.constant 0 : i32
    %0 = arith.cmpi eq, %arg1, %c0_i32 : i32
    %1 = arith.extui %0 : i1 to i32
    %c0_i32_0 = arith.constant 0 : i32
    %2 = arith.cmpi ne, %1, %c0_i32_0 : i32
    scf.if %2 {
      %cst_14 = arith.constant 0.000000e+00 : f32
      %16 = vector.broadcast %cst_14 : f32 to vector<8x128xf32>
      %c0_15 = arith.constant 0 : index
      %c0_16 = arith.constant 0 : index
      %c0_17 = arith.constant 0 : index
      %17 = vector.load %arg4[%c0_15, %c0_16, %c0_17] : memref<1x8x128xf32, #tpu.memory_space<vmem>>, vector<1x8x128xf32>
      %18 = vector.shape_cast %17 : vector<1x8x128xf32> to vector<8x128xf32>
      %19 = vector.shape_cast %16 : vector<8x128xf32> to vector<1x8x128xf32>
      tpu.vector_store %arg4[%c0_15, %c0_16, %c0_17], %19 {strides = array<i32>} : memref<1x8x128xf32, #tpu.memory_space<vmem>>, vector<1x8x128xf32>,
    } else {
    }
    %c0 = arith.constant 0 : index
    %c0_1 = arith.constant 0 : index
    %c0_2 = arith.constant 0 : index
    %c0_3 = arith.constant 0 : index
    %3 = vector.load %arg2[%c0, %c0_1, %c0_2, %c0_3] : memref<1x4x8x128xf32, #tpu.memory_space<vmem>>, vector<1x4x8x128xf32>
    %4 = vector.shape_cast %3 : vector<1x4x8x128xf32> to vector<4x8x128xf32>
    %c0_4 = arith.constant 0 : index
    %c0_5 = arith.constant 0 : index
    %c0_6 = arith.constant 0 : index
    %c0_7 = arith.constant 0 : index
    %5 = vector.load %arg3[%c0_4, %c0_5, %c0_6, %c0_7] : memref<1x4x8x128xf32, #tpu.memory_space<vmem>>, vector<1x4x8x128xf32>
    %6 = vector.shape_cast %5 : vector<1x4x8x128xf32> to vector<4x8x128xf32>
    %7 = arith.subf %4, %6 : vector<4x8x128xf32>
    %c0_8 = arith.constant 0 : index
    %c0_9 = arith.constant 0 : index
    %c0_10 = arith.constant 0 : index
    %8 = vector.load %arg4[%c0_8, %c0_9, %c0_10] : memref<1x8x128xf32, #tpu.memory_space<vmem>>, vector<1x8x128xf32>
    %9 = vector.shape_cast %8 : vector<1x8x128xf32> to vector<8x128xf32>
    %10 = arith.mulf %7, %7 : vector<4x8x128xf32>
    %cst = arith.constant dense<0.000000e+00> : vector<8x128xf32>
    %11 = vector.multi_reduction <add>, %10, %cst [0] : vector<4x8x128xf32> to vector<8x128xf32>
    %12 = arith.addf %9, %11 : vector<8x128xf32>
    %c0_11 = arith.constant 0 : index
    %c0_12 = arith.constant 0 : index
    %c0_13 = arith.constant 0 : index
    %13 = vector.load %arg4[%c0_11, %c0_12, %c0_13] : memref<1x8x128xf32, #tpu.memory_space<vmem>>, vector<1x8x128xf32>
    %14 = vector.shape_cast %13 : vector<1x8x128xf32> to vector<8x128xf32>
    %15 = vector.shape_cast %12 : vector<8x128xf32> to vector<1x8x128xf32>
    tpu.vector_store %arg4[%c0_11, %c0_12, %c0_13], %15 {strides = array<i32>} : memref<1x8x128xf32, #tpu.memory_space<vmem>>, vector<1x8x128xf32>,
    return
  }
  func.func @transform_0(%arg0: i32, %arg1: i32) -> (i32, i32, i32, i32) {
    %c0_i32 = arith.constant 0 : i32
    %c0_i32_0 = arith.constant 0 : i32
    %c0_i32_1 = arith.constant 0 : i32
    return %arg0, %arg1, %c0_i32, %c0_i32_0 : i32, i32, i32, i32
  }
  func.func @transform_1(%arg0: i32, %arg1: i32) -> (i32, i32, i32, i32) {
    %c0_i32 = arith.constant 0 : i32
    %c0_i32_0 = arith.constant 0 : i32
    %c0_i32_1 = arith.constant 0 : i32
    return %arg0, %arg1, %c0_i32, %c0_i32_0 : i32, i32, i32, i32
  }
  func.func @transform_2(%arg0: i32, %arg1: i32) -> (i32, i32, i32) {
    %c0_i32 = arith.constant 0 : i32
    %c0_i32_0 = arith.constant 0 : i32
    %c0_i32_1 = arith.constant 0 : i32
    return %arg0, %c0_i32, %c0_i32_0 : i32, i32, i32
  }
}

</mosaic_0001>

<bundles_post_ra>
// kernel: forward.12
= control target key start
LH: loop header
LB: loop body
LE: loop exit
PB: predicated region body
PF: predicated region fallthrough
CT: control target
= control target key end

     0   :  { %s876_s12 = smov 0   ;;  %s878_s13 = smov 0   ;;  %s942_s0 = inlined_call_operand.vmem [shape: bf16[2,128,32], index: 0, kind: input, shape index: {}]   ;;  %s943_s1 = inlined_call_operand.vmem [shape: bf16[2,32,128], index: 1, kind: input, shape index: {}]   ;;  %s944_s2 = inlined_call_operand.vmem [shape: f32[2,1,128], index: 2, kind: input, shape index: {}]   ;;  %s945_s3 = inlined_call_operand.vmem [shape: bf16[2,128,128], index: 3, kind: output, shape index: {}]  }
   0x1   :  { %s880_s14 = smov 0  }
   0x2 LB: > { %s25_s15 = sadd.s32 1, %s850_s13  ;;  %p654_p0 = scmp.ge.s32.totalorder %s854_s14, 1  ;;  %s854_s14 = sphi %s880_s14, %s13_s14   ;;  %s850_s13 = sphi %s878_s13, %s947_s13   ;;  %s846_s12 = sphi %s876_s12, %s946_s12  }
   0x3   : > { %p27_p1 = scmp.ge.s32.totalorder %s25_s15, 2  ;;  %p176_p2 = scmp.lt.s32.totalorder %s854_s14, 3 }
   0x5   : > { %s949_s15 = smov (%p27_p1, %s25_s15), 0  ;;  %p177_p3 = pnand %p654_p0, %p176_p2 }
   0x6   : > { %p217_p4 = scmp.lt.s32.totalorder (!%p177_p3), %s846_s12, 1  ;;  %vm324_vm0 = vcmask (!%p177_p3), 261120  }
   0x7   : > { %180 = sbr.rel (%p177_p3) target bundleno = 256 (0x100), region = 32 }
   0xe   : > { %s951_s12 = smov (!%p217_p4, %s846_s12), 1 }
   0xf   : > { %s698_s16 = sshll.u32 %s951_s12, 6  ;;  %s699_s17 = sshll.u32 %s951_s12, 4 }
  0x10   : > { %s230_s20 = scalar_lea.vmem %s943_s1, %s699_s17  ;;  %s224_s23 = scalar_lea.vmem %s942_s0, %s698_s16 }
  0x11   : > { %v822_v0 = vld [vmem:[%s230_s20] sm:$0xff]   ;;  %v823_v1 = vld [vmem:[%s230_s20 + $0x8] sm:$0xff]   ;;  %v828_v6 = vld [vmem:[%s224_s23 + $0x10] sm:$0xff]   ;;  %s233_s26 = scalar_lea.vmem %s944_s2, %s951_s12  ;;  %s923_s29 = scalar_lea.vmem %s945_s3, %s698_s16 }
  0x12   : > { %774 = vmatprep.subr.bf16.mxu0 %v822_v0  ;;  %794 = vmatprep.subr.bf16.mxu1 %v822_v0  ;;  %v824_v2 = vld [vmem:[%s224_s23] sm:$0xff]   ;;  %v826_v4 = vld [vmem:[%s224_s23 + $0x8] sm:$0xff]   ;;  %v829_v7 = vld [vmem:[%s224_s23 + $0x30] sm:$0xff]  }
  0x13   : > { %775 = vmatpush3.bf16.msra.mxu0 %v822_v0  ;;  %796 = vmatpush3.bf16.msra.mxu1 %v822_v0  ;;  %v825_v3 = vld [vmem:[%s224_s23 + $0x20] sm:$0xff]   ;;  %v827_v5 = vld [vmem:[%s224_s23 + $0x28] sm:$0xff]   ;;  %v830_v8 = vld [vmem:[%s224_s23 + $0x18] sm:$0xff]  }
  0x14   : > { %776 = vmatprep.subr.bf16.mxu0 %v823_v1  ;;  %795 = vmatprep.subr.bf16.mxu1 %v823_v1  ;;  %v831_v9 = vld [vmem:[%s224_s23 + $0x38] sm:$0xff]   ;;  %v661_v10 = vld [vmem:[%s233_s26] ss:$0 sm:$0xff] }
  0x15   : > { %778 = vmatprep.mubr.msk.bf16.mxu0 %vm324_vm0, %v824_v2  ;;  %786 = vmatprep.mubr.msk.bf16.mxu1 %vm324_vm0, %v825_v3 }
  0x17   : > { %777 = vmatpush3.bf16.msra.mxu0 %v823_v1  ;;  %797 = vmatpush3.bf16.msra.mxu1 %v823_v1 }
  0x1a   : > { %779 = vmatmul.mubr.msk.bf16.vlgmr.msra.gmra.mrb[0].mxu0 %vm324_vm0, %v826_v4  ;;  %787 = vmatmul.mubr.msk.bf16.vlgmr.msra.gmra.mrb[0].mxu1 %vm324_vm0, %v827_v5 }
  0x1b   : > { %782 = vmatprep.mubr.msk.bf16.mxu0 %vm324_vm0, %v828_v6  ;;  %790 = vmatprep.mubr.msk.bf16.mxu1 %vm324_vm0, %v829_v7 }
  0x22   : > { %783 = vmatmul.mubr.msk.bf16.gmra.mrb[4].mxu0 %vm324_vm0, %v830_v8  ;;  %791 = vmatmul.mubr.msk.bf16.gmra.mrb[4].mxu1 %vm324_vm0, %v831_v9 }
  0xed   : > { %v780_v11 = vpop.f32.mrb[0].mxu0  ;;  %v788_v12 = vpop.f32.mrb[0].mxu1 }
  0xee   : > { %v392_v13 = vadd.f32 %v780_v11, %v661_v10  ;;  %v424_v14 = vadd.f32 %v788_v12, %v661_v10  ;;  %v383_v15 = vpop.f32.mrb[1].mxu0  ;;  %v415_v16 = vpop.f32.mrb[1].mxu1 }
  0xef   : > { %v384_v17 = vadd.f32 %v661_v10, %v383_v15  ;;  %v416_v18 = vadd.f32 %v661_v10, %v415_v16  ;;  %v781_v19 = vpop.f32.mrb[2].mxu0  ;;  %v789_v20 = vpop.f32.mrb[2].mxu1 }
  0xf0   : > { %v395_v21 = vadd.f32 %v781_v19, %v661_v10  ;;  %v427_v22 = vadd.f32 %v789_v20, %v661_v10  ;;  %v386_v23 = vpop.f32.mrb[3].mxu0  ;;  %v418_v24 = vpop.f32.mrb[3].mxu1  ;;  %v448_v27 = vmax.f32 %v392_v13, 0.0  ;;  %v456_v28 = vmax.f32 %v424_v14, 0.0 }
  0xf1   : > { %v387_v25 = vadd.f32 %v661_v10, %v386_v23  ;;  %v419_v26 = vadd.f32 %v661_v10, %v418_v24  ;;  %v446_v31 = vmax.f32 %v384_v17, 0.0  ;;  %v454_v32 = vmax.f32 %v416_v18, 0.0 }
  0xf2   : > { %v449_v29 = vmax.f32 %v395_v21, 0.0  ;;  %v457_v30 = vmax.f32 %v427_v22, 0.0 }
  0xf3   : > { %v447_v33 = vmax.f32 %v387_v25, 0.0  ;;  %v455_v34 = vmax.f32 %v419_v26, 0.0 }
  0xf4   : > { %v725_v35 = vpack.c.bf16 %v449_v29, %v448_v27  ;;  %v745_v36 = vpack.c.bf16 %v457_v30, %v456_v28 }
  0xf5   : > { %v720_v37 = vpack.c.bf16 %v447_v33, %v446_v31  ;;  %v740_v38 = vpack.c.bf16 %v455_v34, %v454_v32  ;;  %v784_v39 = vpop.f32.mrb[4].mxu0  ;;  %v792_v40 = vpop.f32.mrb[4].mxu1 }
  0xf6   : > { %757 = vst [vmem:[%s923_s29 + $0x8] sm:$0xff] %v725_v35   ;;  %761 = vst [vmem:[%s923_s29 + $0x28] sm:$0xff] %v745_v36   ;;  %v408_v41 = vadd.f32 %v784_v39, %v661_v10  ;;  %v440_v42 = vadd.f32 %v792_v40, %v661_v10  ;;  %v399_v43 = vpop.f32.mrb[5].mxu0  ;;  %v431_v44 = vpop.f32.mrb[5].mxu1 }
  0xf7   : > { %721 = vst [vmem:[%s923_s29] sm:$0xff] %v720_v37   ;;  %760 = vst [vmem:[%s923_s29 + $0x20] sm:$0xff] %v740_v38   ;;  %v400_v45 = vadd.f32 %v661_v10, %v399_v43  ;;  %v432_v46 = vadd.f32 %v661_v10, %v431_v44  ;;  %v785_v47 = vpop.f32.mrb[6].mxu0  ;;  %v793_v48 = vpop.f32.mrb[6].mxu1 }
  0xf8   : > { %v411_v49 = vadd.f32 %v785_v47, %v661_v10  ;;  %v443_v50 = vadd.f32 %v793_v48, %v661_v10  ;;  %v402_v51 = vpop.f32.mrb[7].mxu0  ;;  %v434_v52 = vpop.f32.mrb[7].mxu1  ;;  %v452_v55 = vmax.f32 %v408_v41, 0.0  ;;  %v460_v56 = vmax.f32 %v440_v42, 0.0 }
  0xf9   : > { %v403_v53 = vadd.f32 %v661_v10, %v402_v51  ;;  %v435_v54 = vadd.f32 %v661_v10, %v434_v52  ;;  %v450_v59 = vmax.f32 %v400_v45, 0.0  ;;  %v458_v60 = vmax.f32 %v432_v46, 0.0 }
  0xfa   : > { %v453_v57 = vmax.f32 %v411_v49, 0.0  ;;  %v461_v58 = vmax.f32 %v443_v50, 0.0 }
  0xfb   : > { %v451_v61 = vmax.f32 %v403_v53, 0.0  ;;  %v459_v62 = vmax.f32 %v435_v54, 0.0 }
  0xfc   : > { %v735_v63 = vpack.c.bf16 %v453_v57, %v452_v55  ;;  %v755_v0 = vpack.c.bf16 %v461_v58, %v460_v56 }
  0xfd   : > { %v730_v1 = vpack.c.bf16 %v451_v61, %v450_v59  ;;  %v750_v2 = vpack.c.bf16 %v459_v62, %v458_v60 }
  0xfe   : > { %759 = vst [vmem:[%s923_s29 + $0x18] sm:$0xff] %v735_v63   ;;  %763 = vst [vmem:[%s923_s29 + $0x38] sm:$0xff] %v755_v0  }
  0xff   : > { %758 = vst [vmem:[%s923_s29 + $0x10] sm:$0xff] %v730_v1   ;;  %762 = vst [vmem:[%s923_s29 + $0x30] sm:$0xff] %v750_v2  }
 0x100 PF: > { %s13_s14 = sadd.s32 1, %s854_s14   ;;  %s946_s12 = smov %s850_s13 }
 0x101   : > { %p10_p5 = scmp.ge.s32.totalorder %s13_s14, 4   ;;  %s947_s13 = smov %s949_s15 }
 0x103   :  { %12 = sbr.rel (!%p10_p5) target bundleno = 2 (0x2), region = 68 }

// kernel: squeeze.46
= control target key start
LH: loop header
LB: loop body
LE: loop exit
PB: predicated region body
PF: predicated region fallthrough
CT: control target
= control target key end

     0   :  { %vm4_vm0 = vcmask 1047556   ;;  %s209_s14 = smov 96   ;;  %s210_s19 = smov 112   ;;  %vm6_vm1 = vcmask 130048   ;;  %vm25_vm2 = vcmask 1048448   ;;  %vm46_vm3 = vcmask 917248   ;;  %s388_s0 = inlined_call_operand.vmem [shape: f32[1,128,16], index: 0, kind: input, shape index: {}]   ;;  %s389_s1 = inlined_call_operand.vmem [shape: f32[2048], index: 1, kind: output, shape index: {}]  }
   0x1   :  { %v172_v0 = vld [vmem:[%s388_s0 + $0x6] ss:$8 sm:$0xf]   ;;  %v167_v3 = vld [vmem:[%s388_s0 + $0x7] ss:$8 sm:$0xf]  }
   0x2   :  { %v173_v1 = vld [vmem:[%s388_s0 + $0x6] ss:$8 sm:$0xf0]   ;;  %v168_v4 = vld [vmem:[%s388_s0 + $0x7] ss:$8 sm:$0xf0]  }
   0x3   :  { %v43_v2 = vsel %vm4_vm0, %v173_v1, %v172_v0  ;;  %v22_v5 = vsel %vm4_vm0, %v168_v4, %v167_v3  ;;  %v174_v6 = vld [vmem:[%s388_s0 + $0x46] ss:$8 sm:$0xf]   ;;  %v169_v9 = vld [vmem:[%s388_s0 + $0x47] ss:$8 sm:$0xf]  }
   0x4   :  { %44 = vrot.lane.b32.xlu1 %v43_v2, %s209_s14  ;;  %v175_v7 = vld [vmem:[%s388_s0 + $0x46] ss:$8 sm:$0xf0]   ;;  %23 = vrot.lane.b32.xlu0 %v22_v5, %s210_s19  ;;  %v170_v10 = vld [vmem:[%s388_s0 + $0x47] ss:$8 sm:$0xf0]  }
   0x5   :  { %v53_v8 = vsel %vm4_vm0, %v175_v7, %v174_v6  ;;  %v32_v11 = vsel %vm4_vm0, %v170_v10, %v169_v9  ;;  %v179_v12 = vld [vmem:[%s388_s0 + $0x45] ss:$8 sm:$0xf]   ;;  %v184_v18 = vld [vmem:[%s388_s0 + $0x44] ss:$8 sm:$0xf]  }
   0x6   :  { %v180_v13 = vld [vmem:[%s388_s0 + $0x45] ss:$8 sm:$0xf0]   ;;  %v185_v19 = vld [vmem:[%s388_s0 + $0x44] ss:$8 sm:$0xf0]  }
   0x7   :  { %v177_v14 = vld [vmem:[%s388_s0 + $0x5] ss:$8 sm:$0xf]   ;;  %v74_v16 = vsel %vm4_vm0, %v180_v13, %v179_v12  ;;  %v182_v20 = vld [vmem:[%s388_s0 + $0x4] ss:$8 sm:$0xf]   ;;  %v95_v22 = vsel %vm4_vm0, %v185_v19, %v184_v18 }
   0x8   :  { %54 = vrot.lane.b32.xlu1 %v53_v8, %s209_s14  ;;  %v178_v15 = vld [vmem:[%s388_s0 + $0x5] ss:$8 sm:$0xf0]   ;;  %33 = vrot.lane.b32.xlu0 %v32_v11, %s210_s19  ;;  %v183_v21 = vld [vmem:[%s388_s0 + $0x4] ss:$8 sm:$0xf0]  }
   0x9   :  { %v64_v17 = vsel %vm4_vm0, %v178_v15, %v177_v14  ;;  %s211_s11 = smov 80   ;;  %v85_v23 = vsel %vm4_vm0, %v183_v21, %v182_v20  ;;  %v189_v24 = vld [vmem:[%s388_s0 + $0x43] ss:$8 sm:$0xf]   ;;  %s212_s20 = smov 64   ;;  %vm67_vm4 = vcmask 786048  }
   0xa   :  { %v190_v25 = vld [vmem:[%s388_s0 + $0x43] ss:$8 sm:$0xf0]   ;;  %v194_v28 = vld [vmem:[%s388_s0 + $0x42] ss:$8 sm:$0xf]  }
   0xb   :  { %v187_v26 = vld [vmem:[%s388_s0 + $0x3] ss:$8 sm:$0xf]   ;;  %v195_v29 = vld [vmem:[%s388_s0 + $0x42] ss:$8 sm:$0xf0]   ;;  %v116_v30 = vsel %vm4_vm0, %v190_v25, %v189_v24 }
   0xc   :  { %75 = vrot.lane.b32.xlu1 %v74_v16, %s211_s11  ;;  %65 = vrot.lane.b32.xlu0 %v64_v17, %s211_s11  ;;  %v188_v27 = vld [vmem:[%s388_s0 + $0x3] ss:$8 sm:$0xf0]   ;;  %v192_v31 = vld [vmem:[%s388_s0 + $0x2] ss:$8 sm:$0xf]   ;;  %v137_v40 = vsel %vm4_vm0, %v195_v29, %v194_v28 }
   0xd   :  { %v2_v32 = vld [vmem:[%s388_s0] ss:$8 sm:$0xf]   ;;  %v106_v33 = vsel %vm4_vm0, %v188_v27, %v187_v26  ;;  %v193_v36 = vld [vmem:[%s388_s0 + $0x2] ss:$8 sm:$0xf0]  }
   0xe   :  { %v3_v34 = vld [vmem:[%s388_s0] ss:$8 sm:$0xf0]   ;;  %s213_s8 = smov 48   ;;  %v127_v41 = vsel %vm4_vm0, %v193_v36, %v192_v31  ;;  %s215_s21 = smov 16   ;;  %vm88_vm5 = vcmask 654848  }
   0xf   :  { %v164_v35 = vld [vmem:[%s388_s0 + $0x40] ss:$8 sm:$0xf]   ;;  %v5_v37 = vsel %vm4_vm0, %v3_v34, %v2_v32  ;;  %v199_v42 = vld [vmem:[%s388_s0 + $0x41] ss:$8 sm:$0xf]  }
  0x10   :  { %96 = vrot.lane.b32.xlu1 %v95_v22, %s212_s20  ;;  %86 = vrot.lane.b32.xlu0 %v85_v23, %s212_s20  ;;  %v165_v38 = vld [vmem:[%s388_s0 + $0x40] ss:$8 sm:$0xf0]   ;;  %7 = vst.msk [vmem:[%s389_s1] sm:$0xff] %vm6_vm1, %v5_v37   ;;  %vm109_vm6 = vcmask 523648   ;;  %vm130_vm7 = vcmask 392448  }
  0x11   :  { %v13_v39 = vsel %vm4_vm0, %v165_v38, %v164_v35  ;;  %v200_v43 = vld [vmem:[%s388_s0 + $0x41] ss:$8 sm:$0xf0]   ;;  %vm151_vm8 = vcmask 261248  }
  0x12   :  { %166 = vst.msk [vmem:[%s389_s1 + $0x8] sm:$0xff] %vm6_vm1, %v13_v39   ;;  %v197_v44 = vld [vmem:[%s388_s0 + $0x1] ss:$8 sm:$0xf]   ;;  %v158_v46 = vsel %vm4_vm0, %v200_v43, %v199_v42 }
  0x13   :  { %v198_v45 = vld [vmem:[%s388_s0 + $0x1] ss:$8 sm:$0xf0]   ;;  %s214_s0 = smov 32  }
  0x14   :  { %117 = vrot.lane.b32.xlu1 %v116_v30, %s213_s8  ;;  %107 = vrot.lane.b32.xlu0 %v106_v33, %s213_s8  ;;  %v148_v47 = vsel %vm4_vm0, %v198_v45, %v197_v44 }
  0x18   :  { %138 = vrot.lane.b32.xlu1 %v137_v40, %s214_s0  ;;  %128 = vrot.lane.b32.xlu0 %v127_v41, %s214_s0 }
  0x1c   :  { %159 = vrot.lane.b32.xlu1 %v158_v46, %s215_s21  ;;  %149 = vrot.lane.b32.xlu0 %v148_v47, %s215_s21 }
  0x76   :  { %v45_v48 = vpop.permute.xlu1 %44   ;;  %v24_v49 = vpop.permute.xlu0 %23  }
  0x77   :  { %26 = vst.msk [vmem:[%s389_s1] sm:$0xff] %vm25_vm2, %v24_v49  }
  0x78   :  { %47 = vst.msk [vmem:[%s389_s1] sm:$0xff] %vm46_vm3, %v45_v48  }
  0x7a   :  { %v55_v50 = vpop.permute.xlu1 %54   ;;  %v34_v51 = vpop.permute.xlu0 %33  }
  0x7b   :  { %171 = vst.msk [vmem:[%s389_s1 + $0x8] sm:$0xff] %vm25_vm2, %v34_v51  }
  0x7c   :  { %176 = vst.msk [vmem:[%s389_s1 + $0x8] sm:$0xff] %vm46_vm3, %v55_v50  }
  0x7e   :  { %v76_v52 = vpop.permute.xlu1 %75   ;;  %v66_v53 = vpop.permute.xlu0 %65  }
  0x7f   :  { %181 = vst.msk [vmem:[%s389_s1 + $0x8] sm:$0xff] %vm67_vm4, %v76_v52   ;;  %68 = vst.msk [vmem:[%s389_s1] sm:$0xff] %vm67_vm4, %v66_v53  }
  0x82   :  { %v97_v54 = vpop.permute.xlu1 %96   ;;  %v87_v55 = vpop.permute.xlu0 %86  }
  0x83   :  { %186 = vst.msk [vmem:[%s389_s1 + $0x8] sm:$0xff] %vm88_vm5, %v97_v54   ;;  %89 = vst.msk [vmem:[%s389_s1] sm:$0xff] %vm88_vm5, %v87_v55  }
  0x86   :  { %v118_v56 = vpop.permute.xlu1 %117   ;;  %v108_v57 = vpop.permute.xlu0 %107  }
  0x87   :  { %191 = vst.msk [vmem:[%s389_s1 + $0x8] sm:$0xff] %vm109_vm6, %v118_v56   ;;  %110 = vst.msk [vmem:[%s389_s1] sm:$0xff] %vm109_vm6, %v108_v57  }
  0x8a   :  { %v139_v58 = vpop.permute.xlu1 %138   ;;  %v129_v59 = vpop.permute.xlu0 %128  }
  0x8b   :  { %196 = vst.msk [vmem:[%s389_s1 + $0x8] sm:$0xff] %vm130_vm7, %v139_v58   ;;  %131 = vst.msk [vmem:[%s389_s1] sm:$0xff] %vm130_vm7, %v129_v59  }
  0x8e   :  { %v160_v60 = vpop.permute.xlu1 %159   ;;  %v150_v61 = vpop.permute.xlu0 %149  }
  0x8f   :  { %201 = vst.msk [vmem:[%s389_s1 + $0x8] sm:$0xff] %vm151_vm8, %v160_v60   ;;  %152 = vst.msk [vmem:[%s389_s1] sm:$0xff] %vm151_vm8, %v150_v61  }

// kernel: forward.13
= control target key start
LH: loop header
LB: loop body
LE: loop exit
PB: predicated region body
PF: predicated region fallthrough
CT: control target
= control target key end

     0   :  { %s834_s12 = smov 0   ;;  %s836_s13 = smov 0   ;;  %s937_s0 = inlined_call_operand.vmem [shape: bf16[2,128,144], index: 0, kind: input, shape index: {}]   ;;  %s938_s1 = inlined_call_operand.vmem [shape: bf16[2,144,128], index: 1, kind: input, shape index: {}]   ;;  %s939_s2 = inlined_call_operand.vmem [shape: f32[2,1,128], index: 2, kind: input, shape index: {}]   ;;  %s940_s3 = inlined_call_operand.vmem [shape: f32[2,128,128], index: 3, kind: output, shape index: {}]  }
   0x1   :  { %s838_s14 = smov 0  }
   0x2 LB: > { %s25_s15 = sadd.s32 1, %s807_s13  ;;  %p668_p0 = scmp.ge.s32.totalorder %s811_s14, 1  ;;  %s811_s14 = sphi %s838_s14, %s13_s14   ;;  %s807_s13 = sphi %s836_s13, %s942_s13   ;;  %s803_s12 = sphi %s834_s12, %s941_s12  }
   0x3   : > { %p27_p1 = scmp.ge.s32.totalorder %s25_s15, 2  ;;  %p177_p2 = scmp.lt.s32.totalorder %s811_s14, 3 }
   0x5   : > { %s944_s15 = smov (%p27_p1, %s25_s15), 0  ;;  %p178_p3 = pnand %p668_p0, %p177_p2 }
   0x6   : > { %p219_p4 = scmp.lt.s32.totalorder (!%p178_p3), %s803_s12, 1  ;;  %v813_v0 = vmov (!%p178_p3), 0   ;;  %vm415_vm0 = vcmask (!%p178_p3), 130048  }
   0x7   : > { %181 = sbr.rel (%p178_p3) target bundleno = 295 (0x127), region = 32  ;;  %440 = vmatprep.subr.bf16.mxu0 (!%p178_p3), %v813_v0  ;;  %712 = vmatprep.subr.bf16.mxu1 (!%p178_p3), %v813_v0 }
   0xe   : > { %s946_s12 = smov (!%p219_p4, %s803_s12), 1 }
   0xf   : > { %s730_s16 = smul.u32 72, %s946_s12  ;;  %s710_s17 = sshll.u32 %s946_s12, 7 }
  0x10   : > { %s861_s20 = scalar_lea.vmem %s937_s0, %s710_s17  ;;  %s236_s26 = scalar_lea.vmem %s939_s2, %s946_s12 }
  0x11   : > { %s866_s23 = scalar_lea.vmem %s938_s1, %s730_s16  ;;  %v767_v4 = vld [vmem:[%s861_s20 + $0x4] ss:$8 sps:$4 sm:$0xff]   ;;  %v765_v12 = vld [vmem:[%s861_s20] ss:$8 sps:$4 sm:$0xff]   ;;  %v771_v14 = vld [vmem:[%s861_s20 + $0x14] ss:$8 sps:$4 sm:$0xff]   ;;  %s910_s29 = scalar_lea.vmem %s940_s3, %s710_s17 }
  0x12   : > { %v756_v1 = vld [vmem:[%s866_s23] sm:$0xff]   ;;  %v757_v2 = vld [vmem:[%s866_s23 + $0x8] sm:$0xff]   ;;  %v758_v3 = vld [vmem:[%s866_s23 + $0x10] sm:$0xff]   ;;  %700 = vmatprep.mubr.msk.bf16.mxu0 %vm415_vm0, %v767_v4 }
  0x13   : > { %441 = vmatpush1.bf16.msra.mxu0 %v756_v1  ;;  %721 = vmatpush1.bf16.msra.mxu1 %v756_v1  ;;  %v759_v5 = vld [vmem:[%s866_s23 + $0x18] sm:$0xff]   ;;  %v770_v6 = vld [vmem:[%s861_s20 + $0x44] ss:$8 sps:$4 sm:$0xff]   ;;  %v762_v9 = vld [vmem:[%s866_s23 + $0x30] sm:$0xff]  }
  0x14   : > { %442 = vmatprep.subr.bf16.mxu0 %v813_v0  ;;  %713 = vmatprep.subr.bf16.mxu1 %v813_v0  ;;  %v760_v7 = vld [vmem:[%s866_s23 + $0x20] sm:$0xff]   ;;  %v761_v8 = vld [vmem:[%s866_s23 + $0x28] sm:$0xff]   ;;  %v763_v10 = vld [vmem:[%s866_s23 + $0x38] sm:$0xff]  }
  0x15   : > { %704 = vmatprep.mubr.msk.bf16.mxu1 %vm415_vm0, %v770_v6  ;;  %v764_v11 = vld [vmem:[%s866_s23 + $0x40] sm:$0xff]   ;;  %v773_v15 = vld [vmem:[%s861_s20 + $0x54] ss:$8 sps:$4 sm:$0xff]   ;;  %v775_v16 = vld [vmem:[%s861_s20 + $0x10] ss:$8 sps:$4 sm:$0xff]  }
  0x16   : > { %v768_v13 = vld [vmem:[%s861_s20 + $0x40] ss:$8 sps:$4 sm:$0xff]   ;;  %v776_v17 = vld [vmem:[%s861_s20 + $0x50] ss:$8 sps:$4 sm:$0xff]   ;;  %v777_v18 = vld [vmem:[%s861_s20 + $0x24] ss:$8 sps:$4 sm:$0xff]  }
  0x17   : > { %443 = vmatpush1.bf16.msra.mxu0 %v757_v2  ;;  %722 = vmatpush1.bf16.msra.mxu1 %v757_v2  ;;  %v779_v19 = vld [vmem:[%s861_s20 + $0x64] ss:$8 sps:$4 sm:$0xff]   ;;  %v781_v20 = vld [vmem:[%s861_s20 + $0x20] ss:$8 sps:$4 sm:$0xff]   ;;  %v783_v22 = vld [vmem:[%s861_s20 + $0x34] ss:$8 sps:$4 sm:$0xff]  }
  0x18   : > { %444 = vmatprep.subr.bf16.mxu0 %v813_v0  ;;  %714 = vmatprep.subr.bf16.mxu1 %v813_v0  ;;  %v782_v21 = vld [vmem:[%s861_s20 + $0x60] ss:$8 sps:$4 sm:$0xff]   ;;  %v785_v23 = vld [vmem:[%s861_s20 + $0x74] ss:$8 sps:$4 sm:$0xff]   ;;  %v787_v24 = vld [vmem:[%s861_s20 + $0x30] ss:$8 sps:$4 sm:$0xff]  }
  0x19   : > { %v788_v25 = vld [vmem:[%s861_s20 + $0x70] ss:$8 sps:$4 sm:$0xff]   ;;  %v674_v26 = vld [vmem:[%s236_s26] ss:$0 sm:$0xff] }
  0x1b   : > { %445 = vmatpush1.bf16.msra.mxu0 %v758_v3  ;;  %723 = vmatpush1.bf16.msra.mxu1 %v758_v3 }
  0x1c   : > { %446 = vmatprep.subr.bf16.mxu0 %v813_v0  ;;  %715 = vmatprep.subr.bf16.mxu1 %v813_v0 }
  0x1f   : > { %447 = vmatpush1.bf16.msra.mxu0 %v759_v5  ;;  %724 = vmatpush1.bf16.msra.mxu1 %v759_v5 }
  0x20   : > { %448 = vmatprep.subr.bf16.mxu0 %v813_v0  ;;  %716 = vmatprep.subr.bf16.mxu1 %v813_v0 }
  0x23   : > { %449 = vmatpush1.bf16.msra.mxu0 %v760_v7  ;;  %725 = vmatpush1.bf16.msra.mxu1 %v760_v7 }
  0x24   : > { %450 = vmatprep.subr.bf16.mxu0 %v813_v0  ;;  %717 = vmatprep.subr.bf16.mxu1 %v813_v0 }
  0x27   : > { %451 = vmatpush1.bf16.msra.mxu0 %v761_v8  ;;  %726 = vmatpush1.bf16.msra.mxu1 %v761_v8 }
  0x28   : > { %452 = vmatprep.subr.bf16.mxu0 %v813_v0  ;;  %718 = vmatprep.subr.bf16.mxu1 %v813_v0 }
  0x2b   : > { %453 = vmatpush1.bf16.msra.mxu0 %v762_v9  ;;  %727 = vmatpush1.bf16.msra.mxu1 %v762_v9 }
  0x2c   : > { %454 = vmatprep.subr.bf16.mxu0 %v813_v0  ;;  %719 = vmatprep.subr.bf16.mxu1 %v813_v0 }
  0x2f   : > { %455 = vmatpush1.bf16.msra.mxu0 %v763_v10  ;;  %728 = vmatpush1.bf16.msra.mxu1 %v763_v10 }
  0x30   : > { %456 = vmatprep.subr.bf16.mxu0 %v813_v0  ;;  %720 = vmatprep.subr.bf16.mxu1 %v813_v0 }
  0x33   : > { %457 = vmatpush1.bf16.msra.mxu0 %v764_v11  ;;  %729 = vmatpush1.bf16.msra.mxu1 %v764_v11 }
  0x36   : > { %473 = vmatmul.mubr.bf16.vlgmr.msra.gmra.mrb[0].mxu0 %v765_v12  ;;  %505 = vmatmul.mubr.bf16.vlgmr.msra.gmra.mrb[0].mxu1 %v768_v13 }
  0x37   : > { %701 = vmatprep.mubr.msk.bf16.mxu0 %vm415_vm0, %v771_v14  ;;  %705 = vmatprep.mubr.msk.bf16.mxu1 %vm415_vm0, %v773_v15 }
  0x3e   : > { %481 = vmatmul.mubr.bf16.gmra.mrb[4].mxu0 %v775_v16  ;;  %513 = vmatmul.mubr.bf16.gmra.mrb[4].mxu1 %v776_v17 }
  0x3f   : > { %702 = vmatprep.mubr.msk.bf16.mxu0 %vm415_vm0, %v777_v18  ;;  %706 = vmatprep.mubr.msk.bf16.mxu1 %vm415_vm0, %v779_v19 }
  0x46   : > { %489 = vmatmul.mubr.bf16.gmra.mrb[8].mxu0 %v781_v20  ;;  %521 = vmatmul.mubr.bf16.gmra.mrb[8].mxu1 %v782_v21 }
  0x47   : > { %703 = vmatprep.mubr.msk.bf16.mxu0 %vm415_vm0, %v783_v22  ;;  %707 = vmatprep.mubr.msk.bf16.mxu1 %vm415_vm0, %v785_v23 }
  0x4e   : > { %497 = vmatmul.mubr.bf16.gmra.mrb[12].mxu0 %v787_v24  ;;  %529 = vmatmul.mubr.bf16.gmra.mrb[12].mxu1 %v788_v25 }
 0x109   : > { %v474_v27 = vpop.f32.mrb[0].mxu0  ;;  %v506_v28 = vpop.f32.mrb[0].mxu1 }
 0x10a   : > { %v475_v29 = vadd.f32 %v674_v26, %v474_v27  ;;  %v507_v30 = vadd.f32 %v674_v26, %v506_v28  ;;  %v476_v31 = vpop.f32.mrb[1].mxu0  ;;  %v508_v32 = vpop.f32.mrb[1].mxu1 }
 0x10b   : > { %v477_v33 = vpop.f32.mrb[2].mxu0  ;;  %v509_v34 = vpop.f32.mrb[2].mxu1 }
 0x10c   : > { %537 = vst [vmem:[%s910_s29] sm:$0xff] %v475_v29  ;;  %545 = vst [vmem:[%s910_s29 + $0x40] sm:$0xff] %v507_v30  ;;  %v478_v35 = vadd.f32 %v674_v26, %v477_v33  ;;  %v510_v36 = vadd.f32 %v674_v26, %v509_v34  ;;  %v479_v37 = vpop.f32.mrb[3].mxu0  ;;  %v511_v38 = vpop.f32.mrb[3].mxu1 }
 0x10e   : > { %538 = vst [vmem:[%s910_s29 + $0x8] sm:$0xff] %v478_v35  ;;  %546 = vst [vmem:[%s910_s29 + $0x48] sm:$0xff] %v510_v36 }
 0x111   : > { %v482_v39 = vpop.f32.mrb[4].mxu0  ;;  %v514_v40 = vpop.f32.mrb[4].mxu1 }
 0x112   : > { %v483_v41 = vadd.f32 %v674_v26, %v482_v39  ;;  %v515_v42 = vadd.f32 %v674_v26, %v514_v40  ;;  %v484_v43 = vpop.f32.mrb[5].mxu0  ;;  %v516_v44 = vpop.f32.mrb[5].mxu1 }
 0x113   : > { %v485_v45 = vpop.f32.mrb[6].mxu0  ;;  %v517_v46 = vpop.f32.mrb[6].mxu1 }
 0x114   : > { %539 = vst [vmem:[%s910_s29 + $0x10] sm:$0xff] %v483_v41  ;;  %547 = vst [vmem:[%s910_s29 + $0x50] sm:$0xff] %v515_v42  ;;  %v486_v47 = vadd.f32 %v674_v26, %v485_v45  ;;  %v518_v48 = vadd.f32 %v674_v26, %v517_v46  ;;  %v487_v49 = vpop.f32.mrb[7].mxu0  ;;  %v519_v50 = vpop.f32.mrb[7].mxu1 }
 0x116   : > { %540 = vst [vmem:[%s910_s29 + $0x18] sm:$0xff] %v486_v47  ;;  %548 = vst [vmem:[%s910_s29 + $0x58] sm:$0xff] %v518_v48 }
 0x119   : > { %v490_v51 = vpop.f32.mrb[8].mxu0  ;;  %v522_v52 = vpop.f32.mrb[8].mxu1 }
 0x11a   : > { %v491_v53 = vadd.f32 %v674_v26, %v490_v51  ;;  %v523_v54 = vadd.f32 %v674_v26, %v522_v52  ;;  %v492_v55 = vpop.f32.mrb[9].mxu0  ;;  %v524_v56 = vpop.f32.mrb[9].mxu1 }
 0x11b   : > { %v493_v57 = vpop.f32.mrb[10].mxu0  ;;  %v525_v58 = vpop.f32.mrb[10].mxu1 }
 0x11c   : > { %541 = vst [vmem:[%s910_s29 + $0x20] sm:$0xff] %v491_v53  ;;  %549 = vst [vmem:[%s910_s29 + $0x60] sm:$0xff] %v523_v54  ;;  %v494_v59 = vadd.f32 %v674_v26, %v493_v57  ;;  %v526_v60 = vadd.f32 %v674_v26, %v525_v58  ;;  %v495_v61 = vpop.f32.mrb[11].mxu0  ;;  %v527_v62 = vpop.f32.mrb[11].mxu1 }
 0x11e   : > { %542 = vst [vmem:[%s910_s29 + $0x28] sm:$0xff] %v494_v59  ;;  %550 = vst [vmem:[%s910_s29 + $0x68] sm:$0xff] %v526_v60 }
 0x121   : > { %v498_v63 = vpop.f32.mrb[12].mxu0  ;;  %v530_v0 = vpop.f32.mrb[12].mxu1 }
 0x122   : > { %v499_v1 = vadd.f32 %v674_v26, %v498_v63  ;;  %v531_v2 = vadd.f32 %v674_v26, %v530_v0  ;;  %v500_v3 = vpop.f32.mrb[13].mxu0  ;;  %v532_v4 = vpop.f32.mrb[13].mxu1 }
 0x123   : > { %v501_v5 = vpop.f32.mrb[14].mxu0  ;;  %v533_v6 = vpop.f32.mrb[14].mxu1 }
 0x124   : > { %543 = vst [vmem:[%s910_s29 + $0x30] sm:$0xff] %v499_v1  ;;  %551 = vst [vmem:[%s910_s29 + $0x70] sm:$0xff] %v531_v2  ;;  %v502_v7 = vadd.f32 %v674_v26, %v501_v5  ;;  %v534_v8 = vadd.f32 %v674_v26, %v533_v6  ;;  %v503_v9 = vpop.f32.mrb[15].mxu0  ;;  %v535_v10 = vpop.f32.mrb[15].mxu1 }
 0x126   : > { %544 = vst [vmem:[%s910_s29 + $0x38] sm:$0xff] %v502_v7  ;;  %552 = vst [vmem:[%s910_s29 + $0x78] sm:$0xff] %v534_v8 }
 0x127 PF: > { %s13_s14 = sadd.s32 1, %s811_s14   ;;  %s941_s12 = smov %s807_s13 }
 0x128   : > { %p10_p5 = scmp.ge.s32.totalorder %s13_s14, 4   ;;  %s942_s13 = smov %s944_s15 }
 0x12a   :  { %12 = sbr.rel (!%p10_p5) target bundleno = 2 (0x2), region = 68 }

// kernel: forward.14
= control target key start
LH: loop header
LB: loop body
LE: loop exit
PB: predicated region body
PF: predicated region fallthrough
CT: control target
= control target key end

     0   :  { %s1145_s12 = smov 0   ;;  %s1147_s13 = smov 0   ;;  %s1405_s0 = inlined_call_operand.vmem [shape: bf16[2,16,128], index: 0, kind: input, shape index: {}]   ;;  %s1406_s1 = inlined_call_operand.vmem [shape: f32[2,128,16], index: 1, kind: input, shape index: {}]   ;;  %s1407_s2 = inlined_call_operand.vmem [shape: f32[2,128,1], index: 2, kind: input, shape index: {}]   ;;  %s1408_s3 = inlined_call_operand.vmem [shape: f32[2,16,128], index: 3, kind: output, shape index: {}]  }
   0x1   :  { %s1149_s14 = smov 0  }
   0x2 LB: > { %s25_s15 = sadd.s32 1, %s1117_s13  ;;  %p902_p0 = scmp.ge.s32.totalorder %s1121_s14, 1  ;;  %s1121_s14 = sphi %s1149_s14, %s13_s14   ;;  %s1117_s13 = sphi %s1147_s13, %s1410_s13   ;;  %s1113_s12 = sphi %s1145_s12, %s1409_s12  }
   0x3   : > { %p27_p1 = scmp.ge.s32.totalorder %s25_s15, 2  ;;  %p176_p2 = scmp.lt.s32.totalorder %s1121_s14, 3 }
   0x5   : > { %s1412_s15 = smov (%p27_p1, %s25_s15), 0  ;;  %p177_p3 = pnand %p902_p0, %p176_p2 }
   0x6   : > { %p216_p4 = scmp.lt.s32.totalorder (!%p177_p3), %s1113_s12, 1  ;;  %v1123_v0 = vmov (!%p177_p3), 0   ;;  %vm275_vm0 = vcmask (!%p177_p3), 130048  }
   0x7   : > { %180 = sbr.rel (%p177_p3) target bundleno = 561 (0x231), region = 32  ;;  %1097 = vset.pattern.permute.xlu1 (!%p177_p3), %v1123_v0  ;;  %1096 = vset.pattern.permute.xlu0 (!%p177_p3), %v1123_v0 }
   0xe   : > { %s1414_s12 = smov (!%p216_p4, %s1113_s12), 1 }
   0xf   : > { %s954_s16 = sshll.u32 %s1414_s12, 3  ;;  %s955_s17 = sshll.u32 %s1414_s12, 7 }
  0x10   : > { %s223_s20 = scalar_lea.vmem %s1405_s0, %s954_s16  ;;  %s1173_s23 = scalar_lea.vmem %s1406_s1, %s955_s17 }
  0x11   : > { %v1098_v1 = vld [vmem:[%s223_s20] sm:$0xff]   ;;  %v1179_v3 = vld [vmem:[%s1173_s23 + $0x8] sm:$0xff]  ;;  %v1182_v4 = vld [vmem:[%s1173_s23 + $0x10] sm:$0xff]  ;;  %s1198_s26 = scalar_lea.vmem %s1407_s2, %s955_s17  ;;  %s957_s27 = sshll.u32 %s1414_s12, 4 }
  0x12   : > { %v1176_v2 = vld [vmem:[%s1173_s23] sm:$0xff]  ;;  %985 = vmatprep.subr.bf16.mxu0 %v1098_v1  ;;  %v1187_v6 = vld [vmem:[%s1173_s23 + $0x18] sm:$0xff]  ;;  %v1193_v8 = vld [vmem:[%s1173_s23 + $0x28] sm:$0xff]  ;;  %s241_s30 = scalar_lea.vmem %s1408_s3, %s957_s27 }
  0x13   : > { %v261_v5 = vpack.c.bf16 %v1179_v3, %v1176_v2  ;;  %v1190_v7 = vld [vmem:[%s1173_s23 + $0x20] sm:$0xff]  ;;  %986 = vmatpush3.bf16.msra.mxu0 %v1098_v1  ;;  %v262_v9 = vpack.c.bf16 %v1187_v6, %v1182_v4  ;;  %v399_v11 = vld [vmem:[%s1198_s26 + $0x10] sm:$0xff]  ;;  %v252_v14 = vld [vmem:[%s1173_s23 + $0x38] sm:$0xff] }
  0x14   : > { %v263_v10 = vpack.c.bf16 %v1193_v8, %v1190_v7  ;;  %v397_v12 = vld [vmem:[%s1198_s26] sm:$0xff]  ;;  %v251_v13 = vld [vmem:[%s1173_s23 + $0x30] sm:$0xff]  ;;  %441 = vperm.xlu1 %1097, %v399_v11   ;;  %v254_v16 = vld [vmem:[%s1173_s23 + $0x48] sm:$0xff] }
  0x15   : > { %987 = vmatprep.mubr.msk.bf16.mxu0 %vm275_vm0, %v261_v5  ;;  %v253_v15 = vld [vmem:[%s1173_s23 + $0x40] sm:$0xff]  ;;  %431 = vperm.xlu0 %1096, %v397_v12   ;;  %v400_v17 = vld [vmem:[%s1198_s26 + $0x18] sm:$0xff]  ;;  %v398_v18 = vld [vmem:[%s1198_s26 + $0x8] sm:$0xff]  ;;  %v264_v19 = vpack.c.bf16 %v252_v14, %v251_v13 }
  0x16   : > { %988 = vmatmul.mubr.msk.bf16.vlgmr.msra.gmra.mrb[0].mxu0 %vm275_vm0, %v262_v9  ;;  %v265_v20 = vpack.c.bf16 %v254_v16, %v253_v15  ;;  %v402_v21 = vld [vmem:[%s1198_s26 + $0x28] sm:$0xff]  ;;  %v401_v22 = vld [vmem:[%s1198_s26 + $0x20] sm:$0xff]  ;;  %v255_v23 = vld [vmem:[%s1173_s23 + $0x50] sm:$0xff] }
  0x17   : > { %991 = vmatprep.mubr.msk.bf16.mxu0 %vm275_vm0, %v263_v10  ;;  %v256_v24 = vld [vmem:[%s1173_s23 + $0x58] sm:$0xff]  ;;  %v257_v25 = vld [vmem:[%s1173_s23 + $0x60] sm:$0xff]  ;;  %v258_v26 = vld [vmem:[%s1173_s23 + $0x68] sm:$0xff] }
  0x18   : > { %446 = vperm.xlu1 %1097, %v400_v17   ;;  %v404_v27 = vld [vmem:[%s1198_s26 + $0x38] sm:$0xff]  ;;  %v403_v28 = vld [vmem:[%s1198_s26 + $0x30] sm:$0xff]  ;;  %v266_v29 = vpack.c.bf16 %v256_v24, %v255_v23  ;;  %v267_v30 = vpack.c.bf16 %v258_v26, %v257_v25  ;;  %v406_v31 = vld [vmem:[%s1198_s26 + $0x48] sm:$0xff] }
  0x19   : > { %436 = vperm.xlu0 %1096, %v398_v18   ;;  %v405_v32 = vld [vmem:[%s1198_s26 + $0x40] sm:$0xff]  ;;  %v259_v33 = vld [vmem:[%s1173_s23 + $0x70] sm:$0xff]  ;;  %v260_v34 = vld [vmem:[%s1173_s23 + $0x78] sm:$0xff] }
  0x1a   : > { %v408_v35 = vld [vmem:[%s1198_s26 + $0x58] sm:$0xff]  ;;  %v407_v36 = vld [vmem:[%s1198_s26 + $0x50] sm:$0xff]  ;;  %v268_v37 = vpack.c.bf16 %v260_v34, %v259_v33  ;;  %v410_v38 = vld [vmem:[%s1198_s26 + $0x68] sm:$0xff] }
  0x1b   : > { %v409_v39 = vld [vmem:[%s1198_s26 + $0x60] sm:$0xff]  ;;  %v412_v40 = vld [vmem:[%s1198_s26 + $0x78] sm:$0xff]  ;;  %v411_v41 = vld [vmem:[%s1198_s26 + $0x70] sm:$0xff] }
  0x1c   : > { %456 = vperm.xlu1 %1097, %v402_v21  }
  0x1d   : > { %451 = vperm.xlu0 %1096, %v401_v22  }
  0x1e   : > { %992 = vmatmul.mubr.msk.bf16.gmra.mrb[4].mxu0 %vm275_vm0, %v264_v19 }
  0x1f   : > { %995 = vmatprep.mubr.msk.bf16.mxu0 %vm275_vm0, %v265_v20 }
  0x20   : > { %466 = vperm.xlu1 %1097, %v404_v27  }
  0x21   : > { %461 = vperm.xlu0 %1096, %v403_v28  }
  0x24   : > { %476 = vperm.xlu1 %1097, %v406_v31  }
  0x25   : > { %471 = vperm.xlu0 %1096, %v405_v32  }
  0x26   : > { %996 = vmatmul.mubr.msk.bf16.gmra.mrb[8].mxu0 %vm275_vm0, %v266_v29 }
  0x27   : > { %999 = vmatprep.mubr.msk.bf16.mxu0 %vm275_vm0, %v267_v30 }
  0x28   : > { %486 = vperm.xlu1 %1097, %v408_v35  }
  0x29   : > { %481 = vperm.xlu0 %1096, %v407_v36  }
  0x2c   : > { %496 = vperm.xlu1 %1097, %v410_v38  }
  0x2d   : > { %491 = vperm.xlu0 %1096, %v409_v39  }
  0x2e   : > { %1000 = vmatmul.mubr.msk.bf16.gmra.mrb[12].mxu0 %vm275_vm0, %v268_v37 }
  0x30   : > { %506 = vperm.xlu1 %1097, %v412_v40  }
  0x31   : > { %501 = vperm.xlu0 %1096, %v411_v41  }
  0x4f   : > { %682 = vxpose.xlu0.b32.start [1/16] (narrow) %v1176_v2, 16 }
  0x53   : > { %683 = vxpose.xlu0.b32.cont [2/16] (narrow) %v1179_v3, 16 }
  0x57   : > { %684 = vxpose.xlu0.b32.cont [3/16] (narrow) %v1182_v4, 16 }
  0x5b   : > { %685 = vxpose.xlu0.b32.cont [4/16] (narrow) %v1187_v6, 16 }
  0x5f   : > { %686 = vxpose.xlu0.b32.cont [5/16] (narrow) %v1190_v7, 16 }
  0x63   : > { %687 = vxpose.xlu0.b32.cont [6/16] (narrow) %v1193_v8, 16 }
  0x67   : > { %688 = vxpose.xlu0.b32.cont [7/16] (narrow) %v251_v13, 16 }
  0x6b   : > { %689 = vxpose.xlu0.b32.cont [8/16] (narrow) %v252_v14, 16 }
  0x6f   : > { %690 = vxpose.xlu0.b32.cont [9/16] (narrow) %v253_v15, 16 }
  0x73   : > { %691 = vxpose.xlu0.b32.cont [10/16] (narrow) %v254_v16, 16 }
  0x77   : > { %692 = vxpose.xlu0.b32.cont [11/16] (narrow) %v255_v23, 16 }
  0x7b   : > { %693 = vxpose.xlu0.b32.cont [12/16] (narrow) %v256_v24, 16 }
  0x7f   : > { %694 = vxpose.xlu0.b32.cont [13/16] (narrow) %v257_v25, 16 }
  0x83   : > { %695 = vxpose.xlu0.b32.cont [14/16] (narrow) %v258_v26, 16 }
  0x87   : > { %696 = vxpose.xlu0.b32.cont [15/16] (narrow) %v259_v33, 16 }
  0x8b   : > { %697 = vxpose.xlu0.b32.end [16/16] (narrow) %v260_v34, 16 }
  0x93   : > { %v442_v51 = vpop.permute.xlu1 %441 }
  0x94   : > { %v432_v42 = vpop.permute.xlu0 %431 }
  0x97   : > { %v447_v52 = vpop.permute.xlu1 %446 }
  0x98   : > { %v437_v43 = vpop.permute.xlu0 %436 }
  0x9b   : > { %v457_v53 = vpop.permute.xlu1 %456 }
  0x9c   : > { %v452_v44 = vpop.permute.xlu0 %451 }
  0x9f   : > { %v467_v58 = vpop.permute.xlu1 %466 }
  0xa0   : > { %v462_v45 = vpop.permute.xlu0 %461 }
  0xa3   : > { %v477_v1 = vpop.permute.xlu1 %476 }
  0xa4   : > { %v472_v46 = vpop.permute.xlu0 %471 }
  0xa7   : > { %v487_v19 = vpop.permute.xlu1 %486 }
  0xa8   : > { %v482_v47 = vpop.permute.xlu0 %481 }
  0xab   : > { %v497_v33 = vpop.permute.xlu1 %496 }
  0xac   : > { %v1244_v48 = vpop.permute.xlu0 %491 }
  0xb0   : > { %v502_v49 = vpop.permute.xlu0 %501 }
  0xcf   : > { %v698_v50 = vpop.trf.xlu0 }
  0xd0   : > { %1035 = vmatprep.mubr.f32.mxu1 %v698_v50 }
  0xe9   : > { %v989_v54 = vpop.f32.mrb[0].mxu0 }
  0xea   : > { %v334_v55 = vpop.f32.mrb[1].mxu0  ;;  %v415_v59 = vmul.f32 2.0, %v989_v54 }
  0xeb   : > { %v990_v56 = vpop.f32.mrb[2].mxu0  ;;  %v413_v60 = vmul.f32 2.0, %v334_v55 }
  0xec   : > { %v337_v57 = vpop.f32.mrb[3].mxu0  ;;  %v416_v62 = vmul.f32 2.0, %v990_v56  ;;  %v1246_v5 = vsub.f32 %v442_v51, %v415_v59  ;;  %v546_v59 = vlaneseq }
  0xed   : > { %v414_v2 = vmul.f32 2.0, %v337_v57  ;;  %v1250_v9 = vsub.f32 %v432_v42, %v413_v60 }
  0xee   : > { %v1254_v12 = vsub.f32 %v447_v52, %v416_v62  ;;  %v1292_v62 = vshrl.u32 %v546_v59, 7 }
  0xef   : > { %v1260_v15 = vsub.f32 %v437_v43, %v414_v2 }
  0xf0   : > { %v1298_v2 = vadd.s32 8, %v1292_v62 }
  0xf1   : > { %v993_v61 = vpop.f32.mrb[4].mxu0 }
  0xf2   : > { %v419_v63 = vmul.f32 2.0, %v993_v61  ;;  %v350_v0 = vpop.f32.mrb[5].mxu0 }
  0xf3   : > { %v417_v3 = vmul.f32 2.0, %v350_v0  ;;  %v994_v4 = vpop.f32.mrb[6].mxu0  ;;  %v1295_v0 = vadd.s32 104, %v1292_v62 }
  0xf4   : > { %v1248_v6 = vsub.f32 %v462_v45, %v419_v63  ;;  %v420_v7 = vmul.f32 2.0, %v994_v4  ;;  %v353_v8 = vpop.f32.mrb[7].mxu0  ;;  %v1304_v4 = vadd.s32 24, %v1292_v62 }
  0xf5   : > { %v1252_v10 = vsub.f32 %v452_v44, %v417_v3  ;;  %v418_v11 = vmul.f32 2.0, %v353_v8  ;;  %v1301_v3 = vadd.s32 16, %v1292_v62  ;;  %v1310_v8 = vadd.s32 40, %v1292_v62 }
  0xf6   : > { %v527_v13 = vmin.f32 %v1246_v5, %v1248_v6  ;;  %v1258_v14 = vsub.f32 %v467_v58, %v420_v7  ;;  %v1307_v7 = vadd.s32 32, %v1292_v62 }
  0xf7   : > { %v525_v16 = vmin.f32 %v1250_v9, %v1252_v10  ;;  %v1264_v17 = vsub.f32 %v457_v53, %v418_v11  ;;  %v1313_v11 = vadd.s32 48, %v1292_v62 }
  0xf8   : > { %v528_v18 = vmin.f32 %v1254_v12, %v1258_v14 }
  0xf9   : > { %v526_v20 = vmin.f32 %v1260_v15, %v1264_v17  ;;  %v997_v21 = vpop.f32.mrb[8].mxu0 }
  0xfa   : > { %v423_v22 = vmul.f32 2.0, %v997_v21  ;;  %v366_v23 = vpop.f32.mrb[9].mxu0  ;;  %v1328_v21 = vadd.s32 88, %v1292_v62 }
  0xfb   : > { %v421_v24 = vmul.f32 2.0, %v366_v23  ;;  %v998_v25 = vpop.f32.mrb[10].mxu0  ;;  %v1334_v23 = vadd.s32 112, %v1292_v62 }
  0xfc   : > { %v1270_v26 = vsub.f32 %v482_v47, %v423_v22  ;;  %v424_v27 = vmul.f32 2.0, %v998_v25  ;;  %v369_v28 = vpop.f32.mrb[11].mxu0  ;;  %v1331_v22 = vadd.s32 96, %v1292_v62 }
  0xfd   : > { %v1272_v29 = vsub.f32 %v472_v46, %v421_v24  ;;  %v422_v30 = vmul.f32 2.0, %v369_v28  ;;  %v507_v46 = vpop.permute.xlu1 %506  ;;  %v1337_v24 = vadd.s32 120, %v1292_v62 }
  0xfe   : > { %v531_v31 = vmin.f32 %v527_v13, %v1270_v26  ;;  %v1275_v32 = vsub.f32 %v487_v19, %v424_v27  ;;  %v1316_v13 = vadd.s32 56, %v1292_v62  ;;  %v1322_v19 = vadd.s32 72, %v1292_v62 }
  0xff   : > { %v529_v34 = vmin.f32 %v525_v16, %v1272_v29  ;;  %v1278_v35 = vsub.f32 %v477_v1, %v422_v30 }
 0x100   : > { %v532_v36 = vmin.f32 %v528_v18, %v1275_v32  ;;  %v1319_v18 = vadd.s32 64, %v1292_v62 }
 0x101   : > { %v530_v37 = vmin.f32 %v526_v20, %v1278_v35  ;;  %v1001_v38 = vpop.f32.mrb[12].mxu0  ;;  %v1325_v20 = vadd.s32 80, %v1292_v62 }
 0x102   : > { %v427_v39 = vmul.f32 2.0, %v1001_v38  ;;  %v382_v40 = vpop.f32.mrb[13].mxu0 }
 0x103   : > { %v425_v41 = vmul.f32 2.0, %v382_v40  ;;  %v1002_v42 = vpop.f32.mrb[14].mxu0 }
 0x104   : > { %v1282_v43 = vsub.f32 %v502_v49, %v427_v39  ;;  %v428_v44 = vmul.f32 2.0, %v1002_v42  ;;  %v385_v45 = vpop.f32.mrb[15].mxu0 }
 0x105   : > { %v1285_v47 = vsub.f32 %v1244_v48, %v425_v41  ;;  %v426_v50 = vmul.f32 2.0, %v385_v45 }
 0x106   : > { %v535_v51 = vmin.f32 %v531_v31, %v1282_v43  ;;  %v1288_v52 = vsub.f32 %v507_v46, %v428_v44 }
 0x107   : > { %v533_v53 = vmin.f32 %v529_v34, %v1285_v47  ;;  %v522_v54 = vsub.f32 %v497_v33, %v426_v50 }
 0x108   : > { %v536_v55 = vmin.f32 %v532_v36, %v1288_v52 }
 0x109   : > { %v534_v56 = vmin.f32 %v530_v37, %v522_v54 }
 0x10a   : > { %v538_v57 = vmin.f32 %v535_v51, %v536_v55 }
 0x10b   : > { %v537_v49 = vmin.f32 %v533_v53, %v534_v56  ;;  %v1124_v56 = vmov 1.0|1.0  }
 0x10d   : > { %v539_v58 = vmin.f32 %v537_v49, %v538_v57  ;;  %v699_v57 = vpop.trf.xlu0 }
 0x10f   : > { %v540_v60 = vrot.slane %v539_v58, 4 }
 0x111   : > { %v541_v61 = vmin.f32 %v539_v58, %v540_v60 }
 0x113   : > { %v542_v48 = vrot.slane %v541_v61, 2 }
 0x115   : > { %v543_v63 = vmin.f32 %v541_v61, %v542_v48 }
 0x117   : > { %v544_v1 = vrot.slane %v543_v63, 1 }
 0x119   : > { %v545_v16 = vmin.f32 %v543_v63, %v544_v1 }
 0x11b   : > { %vm576_vm1 = vcmp.le.f32.partialorder %v522_v54, %v545_v16  ;;  %vm563_vm2 = vcmp.le.f32.partialorder %v1250_v9, %v545_v16  ;;  %vm564_vm3 = vcmp.le.f32.partialorder %v1260_v15, %v545_v16  ;;  %vm565_vm4 = vcmp.le.f32.partialorder %v1246_v5, %v545_v16 }
 0x11c   : > { %v592_v25 = vsel %vm576_vm1, %v1295_v0, 128  ;;  %vm566_vm5 = vcmp.le.f32.partialorder %v1254_v12, %v545_v16  ;;  %vm567_vm6 = vcmp.le.f32.partialorder %v1252_v10, %v545_v16  ;;  %vm568_vm7 = vcmp.le.f32.partialorder %v1264_v17, %v545_v16 }
 0x11d   : > { %vm569_vm8 = vcmp.le.f32.partialorder %v1248_v6, %v545_v16  ;;  %vm570_vm9 = vcmp.le.f32.partialorder %v1258_v14, %v545_v16  ;;  %vm571_vm10 = vcmp.le.f32.partialorder %v1272_v29, %v545_v16  ;;  %vm572_vm11 = vcmp.le.f32.partialorder %v1278_v35, %v545_v16 }
 0x11e   : > { %vm573_vm12 = vcmp.le.f32.partialorder %v1270_v26, %v545_v16  ;;  %vm574_vm13 = vcmp.le.f32.partialorder %v1275_v32, %v545_v16  ;;  %vm575_vm14 = vcmp.le.f32.partialorder %v1285_v47, %v545_v16  ;;  %vm577_vm15 = vcmp.le.f32.partialorder %v1282_v43, %v545_v16 }
 0x11f   : > { %vm578_vm0 = vcmp.le.f32.partialorder %v1288_v52, %v545_v16  ;;  %v579_v6 = vsel %vm563_vm2, %v1292_v62, 128  ;;  %v580_v10 = vsel %vm564_vm3, %v1298_v2, 128  ;;  %v581_v12 = vsel %vm565_vm4, %v1301_v3, 128 }
 0x120   : > { %v582_v14 = vsel %vm566_vm5, %v1304_v4, 128  ;;  %v583_v17 = vsel %vm567_vm6, %v1307_v7, 128  ;;  %v584_v26 = vsel %vm568_vm7, %v1310_v8, 128  ;;  %v585_v27 = vsel %vm569_vm8, %v1313_v11, 128 }
 0x121   : > { %v586_v28 = vsel %vm570_vm9, %v1316_v13, 128  ;;  %v587_v9 = vsel %vm571_vm10, %v1319_v18, 128  ;;  %v588_v29 = vsel %vm572_vm11, %v1322_v19, 128  ;;  %v589_v15 = vsel %vm573_vm12, %v1325_v20, 128 }
 0x122   : > { %v590_v30 = vsel %vm574_vm13, %v1328_v21, 128  ;;  %v591_v5 = vsel %vm575_vm14, %v1331_v22, 128  ;;  %v593_v31 = vsel %vm577_vm15, %v1334_v23, 128  ;;  %v594_v32 = vsel %vm578_vm0, %v1337_v24, 128 }
 0x123   : > { %vm595_vm1 = vcmp.lt.s32.totalorder %v579_v6, %v583_v17  ;;  %vm597_vm2 = vcmp.lt.s32.totalorder %v580_v10, %v584_v26  ;;  %vm599_vm3 = vcmp.lt.s32.totalorder %v581_v12, %v585_v27  ;;  %vm601_vm4 = vcmp.lt.s32.totalorder %v582_v14, %v586_v28 }
 0x124   : > { %v596_v33 = vsel %vm595_vm1, %v579_v6, %v583_v17  ;;  %v598_v34 = vsel %vm597_vm2, %v580_v10, %v584_v26  ;;  %v600_v35 = vsel %vm599_vm3, %v581_v12, %v585_v27  ;;  %v602_v36 = vsel %vm601_vm4, %v582_v14, %v586_v28 }
 0x125   : > { %vm603_vm5 = vcmp.lt.s32.totalorder %v596_v33, %v587_v9  ;;  %vm605_vm6 = vcmp.lt.s32.totalorder %v598_v34, %v588_v29  ;;  %vm607_vm7 = vcmp.lt.s32.totalorder %v600_v35, %v589_v15  ;;  %vm609_vm8 = vcmp.lt.s32.totalorder %v602_v36, %v590_v30 }
 0x126   : > { %v604_v37 = vsel %vm603_vm5, %v596_v33, %v587_v9  ;;  %v606_v38 = vsel %vm605_vm6, %v598_v34, %v588_v29  ;;  %v608_v39 = vsel %vm607_vm7, %v600_v35, %v589_v15  ;;  %v610_v40 = vsel %vm609_vm8, %v602_v36, %v590_v30 }
 0x127   : > { %vm611_vm9 = vcmp.lt.s32.totalorder %v604_v37, %v591_v5  ;;  %vm613_vm10 = vcmp.lt.s32.totalorder %v606_v38, %v592_v25  ;;  %vm615_vm11 = vcmp.lt.s32.totalorder %v608_v39, %v593_v31  ;;  %vm617_vm12 = vcmp.lt.s32.totalorder %v610_v40, %v594_v32 }
 0x128   : > { %v612_v41 = vsel %vm611_vm9, %v604_v37, %v591_v5  ;;  %v614_v42 = vsel %vm613_vm10, %v606_v38, %v592_v25  ;;  %v616_v43 = vsel %vm615_vm11, %v608_v39, %v593_v31  ;;  %v618_v44 = vsel %vm617_vm12, %v610_v40, %v594_v32 }
 0x129   : > { %vm619_vm13 = vcmp.lt.s32.totalorder %v612_v41, %v614_v42  ;;  %vm621_vm14 = vcmp.lt.s32.totalorder %v616_v43, %v618_v44 }
 0x12a   : > { %v620_v45 = vsel %vm619_vm13, %v612_v41, %v614_v42  ;;  %v622_v46 = vsel %vm621_vm14, %v616_v43, %v618_v44 }
 0x12b   : > { %vm623_vm15 = vcmp.lt.s32.totalorder %v620_v45, %v622_v46 }
 0x12c   : > { %v624_v47 = vsel %vm623_vm15, %v620_v45, %v622_v46 }
 0x12d   : > { %v625_v50 = vrot.slane %v624_v47, 4 }
 0x12f   : > { %vm626_vm0 = vcmp.lt.s32.totalorder %v624_v47, %v625_v50 }
 0x130   : > { %v627_v51 = vsel %vm626_vm0, %v624_v47, %v625_v50 }
 0x131   : > { %v628_v52 = vrot.slane %v627_v51, 2 }
 0x133   : > { %vm629_vm1 = vcmp.lt.s32.totalorder %v627_v51, %v628_v52 }
 0x134   : > { %v630_v53 = vsel %vm629_vm1, %v627_v51, %v628_v52 }
 0x135   : > { %v631_v54 = vrot.slane %v630_v53, 1 }
 0x137   : > { %vm632_vm2 = vcmp.lt.s32.totalorder %v630_v53, %v631_v54 }
 0x138   : > { %v633_v55 = vsel %vm632_vm2, %v630_v53, %v631_v54 }
 0x139   : > { %vm634_vm3 = vcmp.eq.s32.totalorder %v1292_v62, %v633_v55  ;;  %vm635_vm4 = vcmp.eq.s32.totalorder %v1298_v2, %v633_v55  ;;  %vm636_vm5 = vcmp.eq.s32.totalorder %v1301_v3, %v633_v55  ;;  %vm637_vm6 = vcmp.eq.s32.totalorder %v1304_v4, %v633_v55 }
 0x13a   : > { %vm1038_vm7 = vmpackc.low %vm635_vm4, %vm634_vm3  ;;  %vm638_vm9 = vcmp.eq.s32.totalorder %v1307_v7, %v633_v55  ;;  %vm639_vm10 = vcmp.eq.s32.totalorder %v1310_v8, %v633_v55  ;;  %vm640_vm12 = vcmp.eq.s32.totalorder %v1313_v11, %v633_v55  ;;  %vm641_vm13 = vcmp.eq.s32.totalorder %v1316_v13, %v633_v55 }
 0x13b   : > { %1039 = vmatprep.subr.msk.bf16.mxu1 %vm1038_vm7, %v1124_v56  ;;  %vm1042_vm8 = vmpackc.low %vm637_vm6, %vm636_vm5  ;;  %vm642_vm15 = vcmp.eq.s32.totalorder %v1319_v18, %v633_v55  ;;  %vm643_vm0 = vcmp.eq.s32.totalorder %v1322_v19, %v633_v55  ;;  %vm644_vm2 = vcmp.eq.s32.totalorder %v1325_v20, %v633_v55  ;;  %vm645_vm3 = vcmp.eq.s32.totalorder %v1328_v21, %v633_v55 }
 0x13c   : > { %1041 = vmatpush3.bf16.msk.msra.mxu1 %vm1038_vm7, %v1124_v56  ;;  %vm1046_vm11 = vmpackc.low %vm639_vm10, %vm638_vm9  ;;  %vm646_vm5 = vcmp.eq.s32.totalorder %v1331_v22, %v633_v55  ;;  %vm647_vm6 = vcmp.eq.s32.totalorder %v1295_v0, %v633_v55  ;;  %vm649_vm9 = vcmp.eq.s32.totalorder %v1337_v24, %v633_v55 }
 0x13d   : > { %1043 = vmatprep.subr.msk.bf16.mxu1 %vm1042_vm8, %v1124_v56  ;;  %vm1050_vm14 = vmpackc.low %vm641_vm13, %vm640_vm12 }
 0x13e   : > { %vm1054_vm1 = vmpackc.low %vm643_vm0, %vm642_vm15 }
 0x13f   : > { %vm1058_vm4 = vmpackc.low %vm645_vm3, %vm644_vm2 }
 0x140   : > { %1045 = vmatpush3.bf16.msk.msra.mxu1 %vm1042_vm8, %v1124_v56  ;;  %vm1062_vm7 = vmpackc.low %vm647_vm6, %vm646_vm5  ;;  %vm648_vm8 = vcmp.eq.s32.totalorder %v1334_v23, %v633_v55 }
 0x141   : > { %1047 = vmatprep.subr.msk.bf16.mxu1 %vm1046_vm11, %v1124_v56  ;;  %vm1066_vm10 = vmpackc.low %vm649_vm9, %vm648_vm8 }
 0x144   : > { %1049 = vmatpush3.bf16.msk.msra.mxu1 %vm1046_vm11, %v1124_v56 }
 0x145   : > { %1051 = vmatprep.subr.msk.bf16.mxu1 %vm1050_vm14, %v1124_v56 }
 0x148   : > { %1053 = vmatpush3.bf16.msk.msra.mxu1 %vm1050_vm14, %v1124_v56 }
 0x149   : > { %1055 = vmatprep.subr.msk.bf16.mxu1 %vm1054_vm1, %v1124_v56 }
 0x14c   : > { %1057 = vmatpush3.bf16.msk.msra.mxu1 %vm1054_vm1, %v1124_v56 }
 0x14d   : > { %1059 = vmatprep.subr.msk.bf16.mxu1 %vm1058_vm4, %v1124_v56 }
 0x150   : > { %1061 = vmatpush3.bf16.msk.msra.mxu1 %vm1058_vm4, %v1124_v56 }
 0x151   : > { %1063 = vmatprep.subr.msk.bf16.mxu1 %vm1062_vm7, %v1124_v56 }
 0x154   : > { %1065 = vmatpush3.bf16.msk.msra.mxu1 %vm1062_vm7, %v1124_v56 }
 0x155   : > { %1067 = vmatprep.subr.msk.bf16.mxu1 %vm1066_vm10, %v1124_v56 }
 0x158   : > { %1069 = vmatpush3.bf16.msk.msra.mxu1 %vm1066_vm10, %v1124_v56 }
 0x15b   : > { %1036 = vmatmul.mubr.f32.vlgmr.msra.gmra.mrb[0].mxu1 %v699_v57 }
 0x22e   : > { %v1037_v49 = vpop.f32.mrb[0].mxu1 }
 0x22f   : > { %790 = vst [vmem:[%s241_s30 + $0x8] sm:$0xff] %v1037_v49  ;;  %v780_v58 = vpop.f32.mrb[1].mxu1 }
 0x230   : > { %789 = vst [vmem:[%s241_s30] sm:$0xff] %v780_v58 }
 0x231 PF: > { %s13_s14 = sadd.s32 1, %s1121_s14   ;;  %s1409_s12 = smov %s1117_s13 }
 0x232   : > { %p10_p5 = scmp.ge.s32.totalorder %s13_s14, 4   ;;  %s1410_s13 = smov %s1412_s15 }
 0x234   :  { %12 = sbr.rel (!%p10_p5) target bundleno = 2 (0x2), region = 68 }

// kernel: squeeze.57
= control target key start
LH: loop header
LB: loop body
LE: loop exit
PB: predicated region body
PF: predicated region fallthrough
CT: control target
= control target key end

     0   :  { %s67_s8 = smov 112   ;;  %s68_s11 = smov 80   ;;  %vm3_vm0 = vcmask 130048   ;;  %vm9_vm1 = vcmask 1048448   ;;  %vm15_vm2 = vcmask 917248   ;;  %vm21_vm3 = vcmask 786048   ;;  %s111_s0 = inlined_call_operand.vmem [shape: f32[1,32,16], index: 0, kind: input, shape index: {}]   ;;  %s112_s1 = inlined_call_operand.vmem [shape: f32[512], index: 1, kind: output, shape index: {}]  }
   0x1   :  { %v53_v0 = vld [vmem:[%s111_s0 + $0x7] ss:$8 sm:$0xf]   ;;  %v55_v1 = vld [vmem:[%s111_s0 + $0x5] ss:$8 sm:$0xf]  }
   0x2   :  { %7 = vrot.lane.b32.xlu0 %v53_v0, %s67_s8  ;;  %19 = vrot.lane.b32.xlu1 %v55_v1, %s68_s11  ;;  %v54_v2 = vld [vmem:[%s111_s0 + $0x6] ss:$8 sm:$0xf]   ;;  %v56_v3 = vld [vmem:[%s111_s0 + $0x4] ss:$8 sm:$0xf]  }
   0x3   :  { %s69_s16 = smov 96   ;;  %v2_v4 = vld [vmem:[%s111_s0] ss:$8 sm:$0xf]   ;;  %s70_s19 = smov 64   ;;  %vm27_vm4 = vcmask 654848  }
   0x4   :  { %v57_v5 = vld [vmem:[%s111_s0 + $0x3] ss:$8 sm:$0xf]   ;;  %4 = vst.msk [vmem:[#allocation0] sm:$0xf] %vm3_vm0, %v2_v4   ;;  %s71_s24 = smov 48  }
   0x5   :  { %v58_v6 = vld [vmem:[%s111_s0 + $0x2] ss:$8 sm:$0xf]   ;;  %s72_s25 = smov 32   ;;  %vm33_vm5 = vcmask 523648   ;;  %vm39_vm6 = vcmask 392448  }
   0x6   :  { %13 = vrot.lane.b32.xlu0 %v54_v2, %s69_s16  ;;  %25 = vrot.lane.b32.xlu1 %v56_v3, %s70_s19  ;;  %v59_v7 = vld [vmem:[%s111_s0 + $0x1] ss:$8 sm:$0xf]   ;;  %s73_s0 = smov 16   ;;  %vm45_vm7 = vcmask 261248  }
   0xa   :  { %31 = vrot.lane.b32.xlu0 %v57_v5, %s71_s24  ;;  %37 = vrot.lane.b32.xlu1 %v58_v6, %s72_s25 }
   0xe   :  { %43 = vrot.lane.b32.xlu0 %v59_v7, %s73_s0 }
  0x74   :  { %v8_v8 = vpop.permute.xlu0 %7   ;;  %v20_v9 = vpop.permute.xlu1 %19  }
  0x75   :  { %10 = vst.msk [vmem:[#allocation0] sm:$0xf] %vm9_vm1, %v8_v8  }
  0x78   :  { %v14_v10 = vpop.permute.xlu0 %13   ;;  %v26_v11 = vpop.permute.xlu1 %25  }
  0x79   :  { %16 = vst.msk [vmem:[#allocation0] sm:$0xf] %vm15_vm2, %v14_v10  }
  0x7a   :  { %22 = vst.msk [vmem:[#allocation0] sm:$0xf] %vm21_vm3, %v20_v9  }
  0x7b   :  { %28 = vst.msk [vmem:[#allocation0] sm:$0xf] %vm27_vm4, %v26_v11  }
  0x7c   :  { %v32_v12 = vpop.permute.xlu0 %31   ;;  %v38_v13 = vpop.permute.xlu1 %37  }
  0x7d   :  { %34 = vst.msk [vmem:[#allocation0] sm:$0xf] %vm33_vm5, %v32_v12  }
  0x7e   :  { %40 = vst.msk [vmem:[#allocation0] sm:$0xf] %vm39_vm6, %v38_v13  }
  0x80   :  { %v44_v14 = vpop.permute.xlu0 %43  }
  0x81   :  { %46 = vst.msk [vmem:[#allocation0] sm:$0xf] %vm45_vm7, %v44_v14  }
  0x88   :  { %v50_v15 = vld [vmem:[#allocation0] sm:$0xf] }
  0x89   :  { %52 = vst [vmem:[%s112_s1] sm:$0xf] %v50_v15 }

// kernel: forward.16
= control target key start
LH: loop header
LB: loop body
LE: loop exit
PB: predicated region body
PF: predicated region fallthrough
CT: control target
= control target key end

     0   :  { %s654_s12 = smov 0   ;;  %s656_s13 = smov 0   ;;  %s719_s0 = inlined_call_operand.vmem [shape: bf16[2,32,144], index: 0, kind: input, shape index: {}]   ;;  %s720_s1 = inlined_call_operand.vmem [shape: bf16[2,144,128], index: 1, kind: input, shape index: {}]   ;;  %s721_s2 = inlined_call_operand.vmem [shape: f32[2,1,128], index: 2, kind: input, shape index: {}]   ;;  %s722_s3 = inlined_call_operand.vmem [shape: f32[2,32,128], index: 3, kind: output, shape index: {}]  }
   0x1   :  { %s658_s14 = smov 0  }
   0x2 LB: > { %s25_s15 = sadd.s32 1, %s627_s13  ;;  %p524_p0 = scmp.ge.s32.totalorder %s631_s14, 1  ;;  %s631_s14 = sphi %s658_s14, %s13_s14   ;;  %s627_s13 = sphi %s656_s13, %s724_s13   ;;  %s623_s12 = sphi %s654_s12, %s723_s12  }
   0x3   : > { %p27_p1 = scmp.ge.s32.totalorder %s25_s15, 2  ;;  %p177_p2 = scmp.lt.s32.totalorder %s631_s14, 3 }
   0x5   : > { %s726_s15 = smov (%p27_p1, %s25_s15), 0  ;;  %p178_p3 = pnand %p524_p0, %p177_p2 }
   0x6   : > { %p219_p4 = scmp.lt.s32.totalorder (!%p178_p3), %s623_s12, 1  ;;  %v633_v0 = vmov (!%p178_p3), 0   ;;  %vm349_vm0 = vcmask (!%p178_p3), 130048  }
   0x7   : > { %181 = sbr.rel (%p178_p3) target bundleno = 271 (0x10f), region = 32  ;;  %356 = vmatprep.subr.bf16.mxu0 (!%p178_p3), %v633_v0  ;;  %550 = vmatprep.subr.bf16.mxu1 (!%p178_p3), %v633_v0 }
   0xe   : > { %s728_s12 = smov (!%p219_p4, %s623_s12), 1 }
   0xf   : > { %s568_s16 = smul.u32 72, %s728_s12  ;;  %s548_s17 = sshll.u32 %s728_s12, 5 }
  0x10   : > { %s681_s20 = scalar_lea.vmem %s719_s0, %s548_s17  ;;  %s236_s26 = scalar_lea.vmem %s721_s2, %s728_s12 }
  0x11   : > { %s686_s23 = scalar_lea.vmem %s720_s1, %s568_s16  ;;  %v605_v4 = vld [vmem:[%s681_s20 + $0x4] ss:$8 sps:$4 sm:$0xff]   ;;  %v608_v6 = vld [vmem:[%s681_s20 + $0x14] ss:$8 sps:$4 sm:$0xff]   ;;  %v603_v12 = vld [vmem:[%s681_s20] ss:$8 sps:$4 sm:$0xff]   ;;  %s245_s29 = scalar_lea.vmem %s722_s3, %s548_s17 }
  0x12   : > { %v594_v1 = vld [vmem:[%s686_s23] sm:$0xff]   ;;  %v595_v2 = vld [vmem:[%s686_s23 + $0x8] sm:$0xff]   ;;  %v596_v3 = vld [vmem:[%s686_s23 + $0x10] sm:$0xff]   ;;  %544 = vmatprep.mubr.msk.bf16.mxu0 %vm349_vm0, %v605_v4  ;;  %545 = vmatprep.mubr.msk.bf16.mxu1 %vm349_vm0, %v608_v6 }
  0x13   : > { %357 = vmatpush1.bf16.msra.mxu0 %v594_v1  ;;  %559 = vmatpush1.bf16.msra.mxu1 %v594_v1  ;;  %v597_v5 = vld [vmem:[%s686_s23 + $0x18] sm:$0xff]   ;;  %v598_v7 = vld [vmem:[%s686_s23 + $0x20] sm:$0xff]   ;;  %v599_v8 = vld [vmem:[%s686_s23 + $0x28] sm:$0xff]  }
  0x14   : > { %358 = vmatprep.subr.bf16.mxu0 %v633_v0  ;;  %551 = vmatprep.subr.bf16.mxu1 %v633_v0  ;;  %v600_v9 = vld [vmem:[%s686_s23 + $0x30] sm:$0xff]   ;;  %v601_v10 = vld [vmem:[%s686_s23 + $0x38] sm:$0xff]   ;;  %v602_v11 = vld [vmem:[%s686_s23 + $0x40] sm:$0xff]  }
  0x15   : > { %v606_v13 = vld [vmem:[%s681_s20 + $0x10] ss:$8 sps:$4 sm:$0xff]   ;;  %v530_v14 = vld [vmem:[%s236_s26] ss:$0 sm:$0xff] }
  0x17   : > { %359 = vmatpush1.bf16.msra.mxu0 %v595_v2  ;;  %560 = vmatpush1.bf16.msra.mxu1 %v595_v2 }
  0x18   : > { %360 = vmatprep.subr.bf16.mxu0 %v633_v0  ;;  %552 = vmatprep.subr.bf16.mxu1 %v633_v0 }
  0x1b   : > { %361 = vmatpush1.bf16.msra.mxu0 %v596_v3  ;;  %561 = vmatpush1.bf16.msra.mxu1 %v596_v3 }
  0x1c   : > { %362 = vmatprep.subr.bf16.mxu0 %v633_v0  ;;  %553 = vmatprep.subr.bf16.mxu1 %v633_v0 }
  0x1f   : > { %363 = vmatpush1.bf16.msra.mxu0 %v597_v5  ;;  %562 = vmatpush1.bf16.msra.mxu1 %v597_v5 }
  0x20   : > { %364 = vmatprep.subr.bf16.mxu0 %v633_v0  ;;  %554 = vmatprep.subr.bf16.mxu1 %v633_v0 }
  0x23   : > { %365 = vmatpush1.bf16.msra.mxu0 %v598_v7  ;;  %563 = vmatpush1.bf16.msra.mxu1 %v598_v7 }
  0x24   : > { %366 = vmatprep.subr.bf16.mxu0 %v633_v0  ;;  %555 = vmatprep.subr.bf16.mxu1 %v633_v0 }
  0x27   : > { %367 = vmatpush1.bf16.msra.mxu0 %v599_v8  ;;  %564 = vmatpush1.bf16.msra.mxu1 %v599_v8 }
  0x28   : > { %368 = vmatprep.subr.bf16.mxu0 %v633_v0  ;;  %556 = vmatprep.subr.bf16.mxu1 %v633_v0 }
  0x2b   : > { %369 = vmatpush1.bf16.msra.mxu0 %v600_v9  ;;  %565 = vmatpush1.bf16.msra.mxu1 %v600_v9 }
  0x2c   : > { %370 = vmatprep.subr.bf16.mxu0 %v633_v0  ;;  %557 = vmatprep.subr.bf16.mxu1 %v633_v0 }
  0x2f   : > { %371 = vmatpush1.bf16.msra.mxu0 %v601_v10  ;;  %566 = vmatpush1.bf16.msra.mxu1 %v601_v10 }
  0x30   : > { %372 = vmatprep.subr.bf16.mxu0 %v633_v0  ;;  %558 = vmatprep.subr.bf16.mxu1 %v633_v0 }
  0x33   : > { %373 = vmatpush1.bf16.msra.mxu0 %v602_v11  ;;  %567 = vmatpush1.bf16.msra.mxu1 %v602_v11 }
  0x36   : > { %389 = vmatmul.mubr.bf16.vlgmr.msra.gmra.mrb[0].mxu0 %v603_v12  ;;  %397 = vmatmul.mubr.bf16.vlgmr.msra.gmra.mrb[0].mxu1 %v606_v13 }
 0x109   : > { %v390_v15 = vpop.f32.mrb[0].mxu0  ;;  %v398_v16 = vpop.f32.mrb[0].mxu1 }
 0x10a   : > { %v391_v17 = vadd.f32 %v530_v14, %v390_v15  ;;  %v399_v18 = vadd.f32 %v530_v14, %v398_v16  ;;  %v392_v19 = vpop.f32.mrb[1].mxu0  ;;  %v400_v20 = vpop.f32.mrb[1].mxu1 }
 0x10b   : > { %v393_v21 = vpop.f32.mrb[2].mxu0  ;;  %v401_v22 = vpop.f32.mrb[2].mxu1 }
 0x10c   : > { %405 = vst [vmem:[%s245_s29] sm:$0xff] %v391_v17  ;;  %407 = vst [vmem:[%s245_s29 + $0x10] sm:$0xff] %v399_v18  ;;  %v394_v23 = vadd.f32 %v530_v14, %v393_v21  ;;  %v402_v24 = vadd.f32 %v530_v14, %v401_v22  ;;  %v395_v25 = vpop.f32.mrb[3].mxu0  ;;  %v403_v26 = vpop.f32.mrb[3].mxu1 }
 0x10e   : > { %406 = vst [vmem:[%s245_s29 + $0x8] sm:$0xff] %v394_v23  ;;  %408 = vst [vmem:[%s245_s29 + $0x18] sm:$0xff] %v402_v24 }
 0x10f PF: > { %s13_s14 = sadd.s32 1, %s631_s14   ;;  %s723_s12 = smov %s627_s13 }
 0x110   : > { %p10_p5 = scmp.ge.s32.totalorder %s13_s14, 4   ;;  %s724_s13 = smov %s726_s15 }
 0x112   :  { %12 = sbr.rel (!%p10_p5) target bundleno = 2 (0x2), region = 68 }

// kernel: forward.15
= control target key start
LH: loop header
LB: loop body
LE: loop exit
PB: predicated region body
PF: predicated region fallthrough
CT: control target
= control target key end

     0   :  { %s693_s12 = smov 0   ;;  %s695_s13 = smov 0   ;;  %s755_s0 = inlined_call_operand.vmem [shape: bf16[2,32,144], index: 0, kind: input, shape index: {}]   ;;  %s756_s1 = inlined_call_operand.vmem [shape: bf16[2,144,128], index: 1, kind: input, shape index: {}]   ;;  %s757_s2 = inlined_call_operand.vmem [shape: f32[2,1,128], index: 2, kind: input, shape index: {}]   ;;  %s758_s3 = inlined_call_operand.vmem [shape: bf16[2,32,128], index: 3, kind: output, shape index: {}]  }
   0x1   :  { %s697_s14 = smov 0  }
   0x2 LB: > { %s25_s15 = sadd.s32 1, %s666_s13  ;;  %p544_p0 = scmp.ge.s32.totalorder %s670_s14, 1  ;;  %s670_s14 = sphi %s697_s14, %s13_s14   ;;  %s666_s13 = sphi %s695_s13, %s760_s13   ;;  %s662_s12 = sphi %s693_s12, %s759_s12  }
   0x3   : > { %p27_p1 = scmp.ge.s32.totalorder %s25_s15, 2  ;;  %p177_p2 = scmp.lt.s32.totalorder %s670_s14, 3 }
   0x5   : > { %s762_s15 = smov (%p27_p1, %s25_s15), 0  ;;  %p178_p3 = pnand %p544_p0, %p177_p2 }
   0x6   : > { %p219_p4 = scmp.lt.s32.totalorder (!%p178_p3), %s662_s12, 1  ;;  %v672_v0 = vmov (!%p178_p3), 0   ;;  %vm349_vm0 = vcmask (!%p178_p3), 130048  }
   0x7   : > { %181 = sbr.rel (%p178_p3) target bundleno = 275 (0x113), region = 32  ;;  %356 = vmatprep.subr.bf16.mxu0 (!%p178_p3), %v672_v0  ;;  %589 = vmatprep.subr.bf16.mxu1 (!%p178_p3), %v672_v0 }
   0xe   : > { %s764_s12 = smov (!%p219_p4, %s662_s12), 1 }
   0xf   : > { %s607_s16 = smul.u32 72, %s764_s12  ;;  %s572_s17 = sshll.u32 %s764_s12, 5 }
  0x10   : > { %s718_s20 = scalar_lea.vmem %s755_s0, %s572_s17  ;;  %s236_s26 = scalar_lea.vmem %s757_s2, %s764_s12 }
  0x11   : > { %s723_s23 = scalar_lea.vmem %s756_s1, %s607_s16  ;;  %v644_v4 = vld [vmem:[%s718_s20 + $0x4] ss:$8 sps:$4 sm:$0xff]   ;;  %v647_v6 = vld [vmem:[%s718_s20 + $0x14] ss:$8 sps:$4 sm:$0xff]   ;;  %v642_v12 = vld [vmem:[%s718_s20] ss:$8 sps:$4 sm:$0xff]  }
  0x12   : > { %v633_v1 = vld [vmem:[%s723_s23] sm:$0xff]   ;;  %v634_v2 = vld [vmem:[%s723_s23 + $0x8] sm:$0xff]   ;;  %v635_v3 = vld [vmem:[%s723_s23 + $0x10] sm:$0xff]   ;;  %564 = vmatprep.mubr.msk.bf16.mxu0 %vm349_vm0, %v644_v4  ;;  %565 = vmatprep.mubr.msk.bf16.mxu1 %vm349_vm0, %v647_v6  ;;  %s573_s27 = sshll.u32 %s764_s12, 4 }
  0x13   : > { %357 = vmatpush1.bf16.msra.mxu0 %v633_v1  ;;  %598 = vmatpush1.bf16.msra.mxu1 %v633_v1  ;;  %v636_v5 = vld [vmem:[%s723_s23 + $0x18] sm:$0xff]   ;;  %v637_v7 = vld [vmem:[%s723_s23 + $0x20] sm:$0xff]   ;;  %v638_v8 = vld [vmem:[%s723_s23 + $0x28] sm:$0xff]   ;;  %s245_s30 = scalar_lea.vmem %s758_s3, %s573_s27 }
  0x14   : > { %358 = vmatprep.subr.bf16.mxu0 %v672_v0  ;;  %590 = vmatprep.subr.bf16.mxu1 %v672_v0  ;;  %v639_v9 = vld [vmem:[%s723_s23 + $0x30] sm:$0xff]   ;;  %v640_v10 = vld [vmem:[%s723_s23 + $0x38] sm:$0xff]   ;;  %v641_v11 = vld [vmem:[%s723_s23 + $0x40] sm:$0xff]  }
  0x15   : > { %v645_v13 = vld [vmem:[%s718_s20 + $0x10] ss:$8 sps:$4 sm:$0xff]   ;;  %v550_v14 = vld [vmem:[%s236_s26] ss:$0 sm:$0xff] }
  0x17   : > { %359 = vmatpush1.bf16.msra.mxu0 %v634_v2  ;;  %599 = vmatpush1.bf16.msra.mxu1 %v634_v2 }
  0x18   : > { %360 = vmatprep.subr.bf16.mxu0 %v672_v0  ;;  %591 = vmatprep.subr.bf16.mxu1 %v672_v0 }
  0x1b   : > { %361 = vmatpush1.bf16.msra.mxu0 %v635_v3  ;;  %600 = vmatpush1.bf16.msra.mxu1 %v635_v3 }
  0x1c   : > { %362 = vmatprep.subr.bf16.mxu0 %v672_v0  ;;  %592 = vmatprep.subr.bf16.mxu1 %v672_v0 }
  0x1f   : > { %363 = vmatpush1.bf16.msra.mxu0 %v636_v5  ;;  %601 = vmatpush1.bf16.msra.mxu1 %v636_v5 }
  0x20   : > { %364 = vmatprep.subr.bf16.mxu0 %v672_v0  ;;  %593 = vmatprep.subr.bf16.mxu1 %v672_v0 }
  0x23   : > { %365 = vmatpush1.bf16.msra.mxu0 %v637_v7  ;;  %602 = vmatpush1.bf16.msra.mxu1 %v637_v7 }
  0x24   : > { %366 = vmatprep.subr.bf16.mxu0 %v672_v0  ;;  %594 = vmatprep.subr.bf16.mxu1 %v672_v0 }
  0x27   : > { %367 = vmatpush1.bf16.msra.mxu0 %v638_v8  ;;  %603 = vmatpush1.bf16.msra.mxu1 %v638_v8 }
  0x28   : > { %368 = vmatprep.subr.bf16.mxu0 %v672_v0  ;;  %595 = vmatprep.subr.bf16.mxu1 %v672_v0 }
  0x2b   : > { %369 = vmatpush1.bf16.msra.mxu0 %v639_v9  ;;  %604 = vmatpush1.bf16.msra.mxu1 %v639_v9 }
  0x2c   : > { %370 = vmatprep.subr.bf16.mxu0 %v672_v0  ;;  %596 = vmatprep.subr.bf16.mxu1 %v672_v0 }
  0x2f   : > { %371 = vmatpush1.bf16.msra.mxu0 %v640_v10  ;;  %605 = vmatpush1.bf16.msra.mxu1 %v640_v10 }
  0x30   : > { %372 = vmatprep.subr.bf16.mxu0 %v672_v0  ;;  %597 = vmatprep.subr.bf16.mxu1 %v672_v0 }
  0x33   : > { %373 = vmatpush1.bf16.msra.mxu0 %v641_v11  ;;  %606 = vmatpush1.bf16.msra.mxu1 %v641_v11 }
  0x36   : > { %389 = vmatmul.mubr.bf16.vlgmr.msra.gmra.mrb[0].mxu0 %v642_v12  ;;  %397 = vmatmul.mubr.bf16.vlgmr.msra.gmra.mrb[0].mxu1 %v645_v13 }
 0x109   : > { %v390_v15 = vpop.f32.mrb[0].mxu0  ;;  %v398_v16 = vpop.f32.mrb[0].mxu1 }
 0x10a   : > { %v391_v17 = vadd.f32 %v550_v14, %v390_v15  ;;  %v399_v18 = vadd.f32 %v550_v14, %v398_v16  ;;  %v392_v19 = vpop.f32.mrb[1].mxu0  ;;  %v400_v20 = vpop.f32.mrb[1].mxu1 }
 0x10b   : > { %v393_v21 = vpop.f32.mrb[2].mxu0  ;;  %v401_v22 = vpop.f32.mrb[2].mxu1 }
 0x10c   : > { %v394_v23 = vadd.f32 %v550_v14, %v393_v21  ;;  %v402_v24 = vadd.f32 %v550_v14, %v401_v22  ;;  %v395_v25 = vpop.f32.mrb[3].mxu0  ;;  %v403_v26 = vpop.f32.mrb[3].mxu1  ;;  %v405_v27 = vmax.f32 %v391_v17, 0.0  ;;  %v407_v28 = vmax.f32 %v399_v18, 0.0 }
 0x10e   : > { %v406_v29 = vmax.f32 %v394_v23, 0.0  ;;  %v408_v30 = vmax.f32 %v402_v24, 0.0 }
 0x110   : > { %v581_v31 = vpack.c.bf16 %v406_v29, %v405_v27  ;;  %v586_v32 = vpack.c.bf16 %v408_v30, %v407_v28 }
 0x112   : > { %582 = vst [vmem:[%s245_s30] sm:$0xff] %v581_v31   ;;  %588 = vst [vmem:[%s245_s30 + $0x8] sm:$0xff] %v586_v32  }
 0x113 PF: > { %s13_s14 = sadd.s32 1, %s670_s14   ;;  %s759_s12 = smov %s666_s13 }
 0x114   : > { %p10_p5 = scmp.ge.s32.totalorder %s13_s14, 4   ;;  %s760_s13 = smov %s762_s15 }
 0x116   :  { %12 = sbr.rel (!%p10_p5) target bundleno = 2 (0x2), region = 68 }

// kernel: forward.18
= control target key start
LH: loop header
LB: loop body
LE: loop exit
PB: predicated region body
PF: predicated region fallthrough
CT: control target
= control target key end

     0   :  { %s993_s12 = smov 0   ;;  %s995_s13 = smov 0   ;;  %s1103_s0 = inlined_call_operand.vmem [shape: bf16[2,128,144], index: 0, kind: input, shape index: {}]   ;;  %s1104_s1 = inlined_call_operand.vmem [shape: bf16[2,144,128], index: 1, kind: input, shape index: {}]   ;;  %s1105_s2 = inlined_call_operand.vmem [shape: f32[2,1,128], index: 2, kind: input, shape index: {}]   ;;  %s1106_s3 = inlined_call_operand.vmem [shape: bf16[2,128,128], index: 3, kind: output, shape index: {}]  }
   0x1   :  { %s997_s14 = smov 0  }
   0x2 LB: > { %s25_s15 = sadd.s32 1, %s966_s13  ;;  %p748_p0 = scmp.ge.s32.totalorder %s970_s14, 1  ;;  %s970_s14 = sphi %s997_s14, %s13_s14   ;;  %s966_s13 = sphi %s995_s13, %s1108_s13   ;;  %s962_s12 = sphi %s993_s12, %s1107_s12  }
   0x3   : > { %p27_p1 = scmp.ge.s32.totalorder %s25_s15, 2  ;;  %p177_p2 = scmp.lt.s32.totalorder %s970_s14, 3 }
   0x5   : > { %s1110_s15 = smov (%p27_p1, %s25_s15), 0  ;;  %p178_p3 = pnand %p748_p0, %p177_p2 }
   0x6   : > { %p219_p4 = scmp.lt.s32.totalorder (!%p178_p3), %s962_s12, 1  ;;  %v972_v0 = vmov (!%p178_p3), 0   ;;  %vm415_vm0 = vcmask (!%p178_p3), 130048  }
   0x7   : > { %181 = sbr.rel (%p178_p3) target bundleno = 299 (0x12b), region = 32  ;;  %440 = vmatprep.subr.bf16.mxu0 (!%p178_p3), %v972_v0  ;;  %871 = vmatprep.subr.bf16.mxu1 (!%p178_p3), %v972_v0 }
   0xe   : > { %s1112_s12 = smov (!%p219_p4, %s962_s12), 1 }
   0xf   : > { %s889_s16 = smul.u32 72, %s1112_s12  ;;  %s806_s17 = sshll.u32 %s1112_s12, 7 }
  0x10   : > { %s1018_s20 = scalar_lea.vmem %s1103_s0, %s806_s17  ;;  %s236_s26 = scalar_lea.vmem %s1105_s2, %s1112_s12 }
  0x11   : > { %s1023_s23 = scalar_lea.vmem %s1104_s1, %s889_s16  ;;  %v926_v4 = vld [vmem:[%s1018_s20 + $0x4] ss:$8 sps:$4 sm:$0xff]   ;;  %v924_v12 = vld [vmem:[%s1018_s20] ss:$8 sps:$4 sm:$0xff]   ;;  %v930_v14 = vld [vmem:[%s1018_s20 + $0x14] ss:$8 sps:$4 sm:$0xff]  }
  0x12   : > { %v915_v1 = vld [vmem:[%s1023_s23] sm:$0xff]   ;;  %v916_v2 = vld [vmem:[%s1023_s23 + $0x8] sm:$0xff]   ;;  %v917_v3 = vld [vmem:[%s1023_s23 + $0x10] sm:$0xff]   ;;  %780 = vmatprep.mubr.msk.bf16.mxu0 %vm415_vm0, %v926_v4  ;;  %s807_s27 = sshll.u32 %s1112_s12, 6 }
  0x13   : > { %441 = vmatpush1.bf16.msra.mxu0 %v915_v1  ;;  %880 = vmatpush1.bf16.msra.mxu1 %v915_v1  ;;  %v918_v5 = vld [vmem:[%s1023_s23 + $0x18] sm:$0xff]   ;;  %v929_v6 = vld [vmem:[%s1018_s20 + $0x44] ss:$8 sps:$4 sm:$0xff]   ;;  %v921_v9 = vld [vmem:[%s1023_s23 + $0x30] sm:$0xff]   ;;  %s1072_s30 = scalar_lea.vmem %s1106_s3, %s807_s27 }
  0x14   : > { %442 = vmatprep.subr.bf16.mxu0 %v972_v0  ;;  %872 = vmatprep.subr.bf16.mxu1 %v972_v0  ;;  %v919_v7 = vld [vmem:[%s1023_s23 + $0x20] sm:$0xff]   ;;  %v920_v8 = vld [vmem:[%s1023_s23 + $0x28] sm:$0xff]   ;;  %v922_v10 = vld [vmem:[%s1023_s23 + $0x38] sm:$0xff]  }
  0x15   : > { %784 = vmatprep.mubr.msk.bf16.mxu1 %vm415_vm0, %v929_v6  ;;  %v923_v11 = vld [vmem:[%s1023_s23 + $0x40] sm:$0xff]   ;;  %v932_v15 = vld [vmem:[%s1018_s20 + $0x54] ss:$8 sps:$4 sm:$0xff]   ;;  %v934_v16 = vld [vmem:[%s1018_s20 + $0x10] ss:$8 sps:$4 sm:$0xff]  }
  0x16   : > { %v927_v13 = vld [vmem:[%s1018_s20 + $0x40] ss:$8 sps:$4 sm:$0xff]   ;;  %v935_v17 = vld [vmem:[%s1018_s20 + $0x50] ss:$8 sps:$4 sm:$0xff]   ;;  %v936_v18 = vld [vmem:[%s1018_s20 + $0x24] ss:$8 sps:$4 sm:$0xff]  }
  0x17   : > { %443 = vmatpush1.bf16.msra.mxu0 %v916_v2  ;;  %881 = vmatpush1.bf16.msra.mxu1 %v916_v2  ;;  %v938_v19 = vld [vmem:[%s1018_s20 + $0x64] ss:$8 sps:$4 sm:$0xff]   ;;  %v940_v20 = vld [vmem:[%s1018_s20 + $0x20] ss:$8 sps:$4 sm:$0xff]   ;;  %v942_v22 = vld [vmem:[%s1018_s20 + $0x34] ss:$8 sps:$4 sm:$0xff]  }
  0x18   : > { %444 = vmatprep.subr.bf16.mxu0 %v972_v0  ;;  %873 = vmatprep.subr.bf16.mxu1 %v972_v0  ;;  %v941_v21 = vld [vmem:[%s1018_s20 + $0x60] ss:$8 sps:$4 sm:$0xff]   ;;  %v944_v23 = vld [vmem:[%s1018_s20 + $0x74] ss:$8 sps:$4 sm:$0xff]   ;;  %v946_v24 = vld [vmem:[%s1018_s20 + $0x30] ss:$8 sps:$4 sm:$0xff]  }
  0x19   : > { %v947_v25 = vld [vmem:[%s1018_s20 + $0x70] ss:$8 sps:$4 sm:$0xff]   ;;  %v1062_v26 = vld [vmem:[%s236_s26] ss:$0 sm:$0xff] }
  0x1b   : > { %445 = vmatpush1.bf16.msra.mxu0 %v917_v3  ;;  %882 = vmatpush1.bf16.msra.mxu1 %v917_v3 }
  0x1c   : > { %446 = vmatprep.subr.bf16.mxu0 %v972_v0  ;;  %874 = vmatprep.subr.bf16.mxu1 %v972_v0 }
  0x1f   : > { %447 = vmatpush1.bf16.msra.mxu0 %v918_v5  ;;  %883 = vmatpush1.bf16.msra.mxu1 %v918_v5 }
  0x20   : > { %448 = vmatprep.subr.bf16.mxu0 %v972_v0  ;;  %875 = vmatprep.subr.bf16.mxu1 %v972_v0 }
  0x23   : > { %449 = vmatpush1.bf16.msra.mxu0 %v919_v7  ;;  %884 = vmatpush1.bf16.msra.mxu1 %v919_v7 }
  0x24   : > { %450 = vmatprep.subr.bf16.mxu0 %v972_v0  ;;  %876 = vmatprep.subr.bf16.mxu1 %v972_v0 }
  0x27   : > { %451 = vmatpush1.bf16.msra.mxu0 %v920_v8  ;;  %885 = vmatpush1.bf16.msra.mxu1 %v920_v8 }
  0x28   : > { %452 = vmatprep.subr.bf16.mxu0 %v972_v0  ;;  %877 = vmatprep.subr.bf16.mxu1 %v972_v0 }
  0x2b   : > { %453 = vmatpush1.bf16.msra.mxu0 %v921_v9  ;;  %886 = vmatpush1.bf16.msra.mxu1 %v921_v9 }
  0x2c   : > { %454 = vmatprep.subr.bf16.mxu0 %v972_v0  ;;  %878 = vmatprep.subr.bf16.mxu1 %v972_v0 }
  0x2f   : > { %455 = vmatpush1.bf16.msra.mxu0 %v922_v10  ;;  %887 = vmatpush1.bf16.msra.mxu1 %v922_v10 }
  0x30   : > { %456 = vmatprep.subr.bf16.mxu0 %v972_v0  ;;  %879 = vmatprep.subr.bf16.mxu1 %v972_v0 }
  0x33   : > { %457 = vmatpush1.bf16.msra.mxu0 %v923_v11  ;;  %888 = vmatpush1.bf16.msra.mxu1 %v923_v11 }
  0x36   : > { %473 = vmatmul.mubr.bf16.vlgmr.msra.gmra.mrb[0].mxu0 %v924_v12  ;;  %505 = vmatmul.mubr.bf16.vlgmr.msra.gmra.mrb[0].mxu1 %v927_v13 }
  0x37   : > { %781 = vmatprep.mubr.msk.bf16.mxu0 %vm415_vm0, %v930_v14  ;;  %785 = vmatprep.mubr.msk.bf16.mxu1 %vm415_vm0, %v932_v15 }
  0x3e   : > { %481 = vmatmul.mubr.bf16.gmra.mrb[4].mxu0 %v934_v16  ;;  %513 = vmatmul.mubr.bf16.gmra.mrb[4].mxu1 %v935_v17 }
  0x3f   : > { %782 = vmatprep.mubr.msk.bf16.mxu0 %vm415_vm0, %v936_v18  ;;  %786 = vmatprep.mubr.msk.bf16.mxu1 %vm415_vm0, %v938_v19 }
  0x46   : > { %489 = vmatmul.mubr.bf16.gmra.mrb[8].mxu0 %v940_v20  ;;  %521 = vmatmul.mubr.bf16.gmra.mrb[8].mxu1 %v941_v21 }
  0x47   : > { %783 = vmatprep.mubr.msk.bf16.mxu0 %vm415_vm0, %v942_v22  ;;  %787 = vmatprep.mubr.msk.bf16.mxu1 %vm415_vm0, %v944_v23 }
  0x4e   : > { %497 = vmatmul.mubr.bf16.gmra.mrb[12].mxu0 %v946_v24  ;;  %529 = vmatmul.mubr.bf16.gmra.mrb[12].mxu1 %v947_v25 }
 0x109   : > { %v474_v27 = vpop.f32.mrb[0].mxu0  ;;  %v506_v28 = vpop.f32.mrb[0].mxu1 }
 0x10a   : > { %v475_v29 = vadd.f32 %v1062_v26, %v474_v27  ;;  %v507_v30 = vadd.f32 %v1062_v26, %v506_v28  ;;  %v476_v31 = vpop.f32.mrb[1].mxu0  ;;  %v508_v32 = vpop.f32.mrb[1].mxu1 }
 0x10b   : > { %v477_v33 = vpop.f32.mrb[2].mxu0  ;;  %v509_v34 = vpop.f32.mrb[2].mxu1 }
 0x10c   : > { %v478_v35 = vadd.f32 %v1062_v26, %v477_v33  ;;  %v510_v36 = vadd.f32 %v1062_v26, %v509_v34  ;;  %v479_v37 = vpop.f32.mrb[3].mxu0  ;;  %v511_v38 = vpop.f32.mrb[3].mxu1  ;;  %v537_v39 = vmax.f32 %v475_v29, 0.0  ;;  %v545_v40 = vmax.f32 %v507_v30, 0.0 }
 0x10e   : > { %v538_v41 = vmax.f32 %v478_v35, 0.0  ;;  %v546_v42 = vmax.f32 %v510_v36, 0.0 }
 0x110   : > { %v827_v43 = vpack.c.bf16 %v538_v41, %v537_v39  ;;  %v847_v44 = vpack.c.bf16 %v546_v42, %v545_v40 }
 0x111   : > { %v482_v45 = vpop.f32.mrb[4].mxu0  ;;  %v514_v46 = vpop.f32.mrb[4].mxu1 }
 0x112   : > { %828 = vst [vmem:[%s1072_s30] sm:$0xff] %v827_v43   ;;  %867 = vst [vmem:[%s1072_s30 + $0x20] sm:$0xff] %v847_v44   ;;  %v483_v47 = vadd.f32 %v1062_v26, %v482_v45  ;;  %v515_v48 = vadd.f32 %v1062_v26, %v514_v46  ;;  %v484_v49 = vpop.f32.mrb[5].mxu0  ;;  %v516_v50 = vpop.f32.mrb[5].mxu1 }
 0x113   : > { %v485_v51 = vpop.f32.mrb[6].mxu0  ;;  %v517_v52 = vpop.f32.mrb[6].mxu1 }
 0x114   : > { %v486_v53 = vadd.f32 %v1062_v26, %v485_v51  ;;  %v518_v54 = vadd.f32 %v1062_v26, %v517_v52  ;;  %v487_v55 = vpop.f32.mrb[7].mxu0  ;;  %v519_v56 = vpop.f32.mrb[7].mxu1  ;;  %v539_v57 = vmax.f32 %v483_v47, 0.0  ;;  %v547_v58 = vmax.f32 %v515_v48, 0.0 }
 0x116   : > { %v540_v59 = vmax.f32 %v486_v53, 0.0  ;;  %v548_v60 = vmax.f32 %v518_v54, 0.0 }
 0x118   : > { %v832_v61 = vpack.c.bf16 %v540_v59, %v539_v57  ;;  %v852_v62 = vpack.c.bf16 %v548_v60, %v547_v58 }
 0x119   : > { %v490_v63 = vpop.f32.mrb[8].mxu0  ;;  %v522_v0 = vpop.f32.mrb[8].mxu1 }
 0x11a   : > { %864 = vst [vmem:[%s1072_s30 + $0x8] sm:$0xff] %v832_v61   ;;  %868 = vst [vmem:[%s1072_s30 + $0x28] sm:$0xff] %v852_v62   ;;  %v491_v1 = vadd.f32 %v1062_v26, %v490_v63  ;;  %v523_v2 = vadd.f32 %v1062_v26, %v522_v0  ;;  %v492_v3 = vpop.f32.mrb[9].mxu0  ;;  %v524_v4 = vpop.f32.mrb[9].mxu1 }
 0x11b   : > { %v493_v5 = vpop.f32.mrb[10].mxu0  ;;  %v525_v6 = vpop.f32.mrb[10].mxu1 }
 0x11c   : > { %v494_v7 = vadd.f32 %v1062_v26, %v493_v5  ;;  %v526_v8 = vadd.f32 %v1062_v26, %v525_v6  ;;  %v495_v9 = vpop.f32.mrb[11].mxu0  ;;  %v527_v10 = vpop.f32.mrb[11].mxu1  ;;  %v541_v11 = vmax.f32 %v491_v1, 0.0  ;;  %v549_v12 = vmax.f32 %v523_v2, 0.0 }
 0x11e   : > { %v542_v13 = vmax.f32 %v494_v7, 0.0  ;;  %v550_v14 = vmax.f32 %v526_v8, 0.0 }
 0x120   : > { %v837_v15 = vpack.c.bf16 %v542_v13, %v541_v11  ;;  %v857_v16 = vpack.c.bf16 %v550_v14, %v549_v12 }
 0x121   : > { %v498_v17 = vpop.f32.mrb[12].mxu0  ;;  %v530_v18 = vpop.f32.mrb[12].mxu1 }
 0x122   : > { %865 = vst [vmem:[%s1072_s30 + $0x10] sm:$0xff] %v837_v15   ;;  %869 = vst [vmem:[%s1072_s30 + $0x30] sm:$0xff] %v857_v16   ;;  %v499_v19 = vadd.f32 %v1062_v26, %v498_v17  ;;  %v531_v20 = vadd.f32 %v1062_v26, %v530_v18  ;;  %v500_v21 = vpop.f32.mrb[13].mxu0  ;;  %v532_v22 = vpop.f32.mrb[13].mxu1 }
 0x123   : > { %v501_v23 = vpop.f32.mrb[14].mxu0  ;;  %v533_v24 = vpop.f32.mrb[14].mxu1 }
 0x124   : > { %v502_v25 = vadd.f32 %v1062_v26, %v501_v23  ;;  %v534_v27 = vadd.f32 %v1062_v26, %v533_v24  ;;  %v503_v28 = vpop.f32.mrb[15].mxu0  ;;  %v535_v29 = vpop.f32.mrb[15].mxu1  ;;  %v543_v30 = vmax.f32 %v499_v19, 0.0  ;;  %v551_v31 = vmax.f32 %v531_v20, 0.0 }
 0x126   : > { %v544_v32 = vmax.f32 %v502_v25, 0.0  ;;  %v552_v33 = vmax.f32 %v534_v27, 0.0 }
 0x128   : > { %v842_v34 = vpack.c.bf16 %v544_v32, %v543_v30  ;;  %v862_v35 = vpack.c.bf16 %v552_v33, %v551_v31 }
 0x12a   : > { %866 = vst [vmem:[%s1072_s30 + $0x18] sm:$0xff] %v842_v34   ;;  %870 = vst [vmem:[%s1072_s30 + $0x38] sm:$0xff] %v862_v35  }
 0x12b PF: > { %s13_s14 = sadd.s32 1, %s970_s14   ;;  %s1107_s12 = smov %s966_s13 }
 0x12c   : > { %p10_p5 = scmp.ge.s32.totalorder %s13_s14, 4   ;;  %s1108_s13 = smov %s1110_s15 }
 0x12e   :  { %12 = sbr.rel (!%p10_p5) target bundleno = 2 (0x2), region = 68 }

// kernel: forward.20
= control target key start
LH: loop header
LB: loop body
LE: loop exit
PB: predicated region body
PF: predicated region fallthrough
CT: control target
= control target key end

     0   :  { %s1349_s12 = smov 0   ;;  %s1351_s13 = smov 0   ;;  %s1488_s0 = inlined_call_operand.vmem [shape: bf16[2,128,288], index: 0, kind: input, shape index: {}]   ;;  %s1489_s1 = inlined_call_operand.vmem [shape: bf16[2,288,128], index: 1, kind: input, shape index: {}]   ;;  %s1490_s2 = inlined_call_operand.vmem [shape: f32[2,1,128], index: 2, kind: input, shape index: {}]   ;;  %s1491_s3 = inlined_call_operand.vmem [shape: bf16[2,128,128], index: 3, kind: output, shape index: {}]  }
   0x1   :  { %s1353_s14 = smov 0  }
   0x2 LB: > { %s25_s15 = sadd.s32 1, %s1323_s13  ;;  %p981_p0 = scmp.ge.s32.totalorder %s1327_s14, 1  ;;  %s1327_s14 = sphi %s1353_s14, %s13_s14   ;;  %s1323_s13 = sphi %s1351_s13, %s1493_s13   ;;  %s1319_s12 = sphi %s1349_s12, %s1492_s12  }
   0x3   : > { %p27_p1 = scmp.ge.s32.totalorder %s25_s15, 2  ;;  %p177_p2 = scmp.lt.s32.totalorder %s1327_s14, 3 }
   0x5   : > { %s1495_s15 = smov (%p27_p1, %s25_s15), 0  ;;  %p178_p3 = pnand %p981_p0, %p177_p2 }
   0x6   : > { %p219_p4 = scmp.lt.s32.totalorder (!%p178_p3), %s1319_s12, 1  ;;  %vm551_vm0 = vcmask (!%p178_p3), 261120  }
   0x7   : > { %181 = sbr.rel (%p178_p3) target bundleno = 317 (0x13d), region = 32 }
   0xe   : > { %s1497_s12 = smov (!%p219_p4, %s1319_s12), 1 }
   0xf   : > { %s1230_s16 = smul.u32 144, %s1497_s12  ;;  %s236_s26 = scalar_lea.vmem %s1490_s2, %s1497_s12 }
  0x10   : > { %s1229_s20 = smul.u32 192, %s1497_s12  ;;  %s1055_s27 = sshll.u32 %s1497_s12, 6 }
  0x11   : > { %s1373_s19 = scalar_lea.vmem %s1489_s1, %s1230_s16  ;;  %s1453_s30 = scalar_lea.vmem %s1491_s3, %s1055_s27 }
  0x12   : > { %v1255_v0 = vld [vmem:[%s1373_s19 + $0x40] sm:$0xff]   ;;  %v1257_v2 = vld [vmem:[%s1373_s19 + $0x48] sm:$0xff]   ;;  %v1259_v4 = vld [vmem:[%s1373_s19 + $0x50] sm:$0xff]   ;;  %s1388_s23 = scalar_lea.vmem %s1488_s0, %s1229_s20 }
  0x13   : > { %v1256_v1 = vld [vmem:[%s1373_s19] sm:$0xff]   ;;  %1119 = vmatprep.subr.bf16.mxu0 %v1255_v0  ;;  %1213 = vmatprep.subr.bf16.mxu1 %v1255_v0  ;;  %v1258_v3 = vld [vmem:[%s1373_s19 + $0x8] sm:$0xff]   ;;  %v1260_v5 = vld [vmem:[%s1373_s19 + $0x10] sm:$0xff]  }
  0x14   : > { %1120 = vmatpush3.bf16.msra.mxu0 %v1256_v1  ;;  %1221 = vmatpush3.bf16.msra.mxu1 %v1256_v1  ;;  %v1261_v6 = vld [vmem:[%s1373_s19 + $0x58] sm:$0xff]   ;;  %v1263_v8 = vld [vmem:[%s1373_s19 + $0x60] sm:$0xff]   ;;  %v1265_v10 = vld [vmem:[%s1373_s19 + $0x68] sm:$0xff]  }
  0x15   : > { %1121 = vmatprep.subr.bf16.mxu0 %v1257_v2  ;;  %1214 = vmatprep.subr.bf16.mxu1 %v1257_v2  ;;  %v1262_v7 = vld [vmem:[%s1373_s19 + $0x18] sm:$0xff]   ;;  %v1264_v9 = vld [vmem:[%s1373_s19 + $0x20] sm:$0xff]   ;;  %v1266_v13 = vld [vmem:[%s1373_s19 + $0x28] sm:$0xff]  }
  0x16   : > { %v1273_v11 = vld [vmem:[%s1388_s23 + $0x4] ss:$12 sps:$4 sm:$0xff]   ;;  %v1276_v12 = vld [vmem:[%s1388_s23 + $0x94] ss:$12 sps:$4 sm:$0xff]   ;;  %v1269_v16 = vld [vmem:[%s1373_s19 + $0x78] sm:$0xff]  }
  0x17   : > { %v1267_v14 = vld [vmem:[%s1373_s19 + $0x70] sm:$0xff]   ;;  %608 = vmatprep.mubr.bf16.mxu0 %v1273_v11  ;;  %656 = vmatprep.mubr.bf16.mxu1 %v1276_v12  ;;  %v1270_v17 = vld [vmem:[%s1373_s19 + $0x38] sm:$0xff]   ;;  %v1271_v18 = vld [vmem:[%s1388_s23] ss:$12 sps:$4 sm:$0xff]  }
  0x18   : > { %1122 = vmatpush3.bf16.msra.mxu0 %v1258_v3  ;;  %1222 = vmatpush3.bf16.msra.mxu1 %v1258_v3  ;;  %v1268_v15 = vld [vmem:[%s1373_s19 + $0x30] sm:$0xff]   ;;  %v1277_v19 = vld [vmem:[%s1373_s19 + $0x80] sm:$0xff]   ;;  %v1278_v21 = vld [vmem:[%s1388_s23 + $0x1c] ss:$12 sps:$4 sm:$0xff]  }
  0x19   : > { %1123 = vmatprep.subr.bf16.mxu0 %v1259_v4  ;;  %1215 = vmatprep.subr.bf16.mxu1 %v1259_v4  ;;  %v1274_v20 = vld [vmem:[%s1388_s23 + $0x90] ss:$12 sps:$4 sm:$0xff]   ;;  %v1280_v22 = vld [vmem:[%s1388_s23 + $0xac] ss:$12 sps:$4 sm:$0xff]   ;;  %v1283_v25 = vld [vmem:[%s1388_s23 + $0xa8] ss:$12 sps:$4 sm:$0xff]  }
  0x1a   : > { %v1284_v23 = vld [vmem:[%s1373_s19 + $0x88] sm:$0xff]   ;;  %v1282_v24 = vld [vmem:[%s1388_s23 + $0x18] ss:$12 sps:$4 sm:$0xff]   ;;  %v1285_v26 = vld [vmem:[%s1388_s23 + $0x34] ss:$12 sps:$4 sm:$0xff]  }
  0x1b   : > { %v1287_v27 = vld [vmem:[%s1388_s23 + $0x8] ss:$12 sps:$4 sm:$0xff]   ;;  %v1288_v28 = vld [vmem:[%s1388_s23 + $0x30] ss:$12 sps:$4 sm:$0xff]   ;;  %v1289_v29 = vld [vmem:[%s1388_s23 + $0x20] ss:$12 sps:$4 sm:$0xff]  }
  0x1c   : > { %1124 = vmatpush3.bf16.msra.mxu0 %v1260_v5  ;;  %1223 = vmatpush3.bf16.msra.mxu1 %v1260_v5  ;;  %v1290_v30 = vld [vmem:[%s1388_s23 + $0x4c] ss:$12 sps:$4 sm:$0xff]   ;;  %v1293_v32 = vld [vmem:[%s1388_s23 + $0x48] ss:$12 sps:$4 sm:$0xff]   ;;  %v1294_v33 = vld [vmem:[%s1388_s23 + $0x50] ss:$12 sps:$4 sm:$0xff]  }
  0x1d   : > { %1125 = vmatprep.subr.bf16.mxu0 %v1261_v6  ;;  %1216 = vmatprep.subr.bf16.mxu1 %v1261_v6  ;;  %v1292_v31 = vld [vmem:[%s1388_s23 + $0x38] ss:$12 sps:$4 sm:$0xff]   ;;  %v1297_v35 = vld [vmem:[%s1388_s23 + $0x68] ss:$12 sps:$4 sm:$0xff]   ;;  %v1298_v36 = vld [vmem:[%s1388_s23 + $0x60] ss:$12 sps:$4 sm:$0xff]  }
  0x1e   : > { %v1295_v34 = vld [vmem:[%s1388_s23 + $0x64] ss:$12 sps:$4 sm:$0xff]   ;;  %v1299_v37 = vld [vmem:[%s1388_s23 + $0x80] ss:$12 sps:$4 sm:$0xff]   ;;  %v1300_v38 = vld [vmem:[%s1388_s23 + $0x7c] ss:$12 sps:$4 sm:$0xff]  }
  0x1f   : > { %v1302_v39 = vld [vmem:[%s1388_s23 + $0x98] ss:$12 sps:$4 sm:$0xff]   ;;  %v1304_v41 = vld [vmem:[%s1388_s23 + $0xb0] ss:$12 sps:$4 sm:$0xff]   ;;  %v1443_v2 = vld [vmem:[%s236_s26] ss:$0 sm:$0xff] }
  0x20   : > { %1126 = vmatpush3.bf16.msra.mxu0 %v1262_v7  ;;  %1224 = vmatpush3.bf16.msra.mxu1 %v1262_v7  ;;  %v1303_v40 = vld [vmem:[%s1388_s23 + $0x78] ss:$12 sps:$4 sm:$0xff]  }
  0x21   : > { %1127 = vmatprep.subr.bf16.mxu0 %v1263_v8  ;;  %1217 = vmatprep.subr.bf16.mxu1 %v1263_v8 }
  0x24   : > { %1128 = vmatpush3.bf16.msra.mxu0 %v1264_v9  ;;  %1225 = vmatpush3.bf16.msra.mxu1 %v1264_v9 }
  0x25   : > { %1129 = vmatprep.subr.bf16.mxu0 %v1265_v10  ;;  %1218 = vmatprep.subr.bf16.mxu1 %v1265_v10 }
  0x28   : > { %1130 = vmatpush3.bf16.msra.mxu0 %v1266_v13  ;;  %1226 = vmatpush3.bf16.msra.mxu1 %v1266_v13 }
  0x29   : > { %1131 = vmatprep.subr.bf16.mxu0 %v1267_v14  ;;  %1219 = vmatprep.subr.bf16.mxu1 %v1267_v14 }
  0x2c   : > { %1132 = vmatpush3.bf16.msra.mxu0 %v1268_v15  ;;  %1227 = vmatpush3.bf16.msra.mxu1 %v1268_v15 }
  0x2d   : > { %1133 = vmatprep.subr.bf16.mxu0 %v1269_v16  ;;  %1220 = vmatprep.subr.bf16.mxu1 %v1269_v16 }
  0x30   : > { %1134 = vmatpush3.bf16.msra.mxu0 %v1270_v17  ;;  %1228 = vmatpush3.bf16.msra.mxu1 %v1270_v17 }
  0x31   : > { %1193 = vmatprep.subr.bf16.mxu1 %v1277_v19 }
  0x33   : > { %609 = vmatmul.mubr.bf16.vlgmr.msra.gmra.mrb[0].mxu0 %v1271_v18  ;;  %657 = vmatmul.mubr.bf16.vlgmr.msra.gmra.mrb[0].mxu1 %v1274_v20 }
  0x34   : > { %1194 = vmatpush3.bf16.msra.mxu1 %v1277_v19  ;;  %616 = vmatprep.mubr.bf16.mxu0 %v1278_v21 }
  0x35   : > { %664 = vmatprep.mubr.bf16.mxu1 %v1280_v22  ;;  %1195 = vmatprep.subr.bf16.mxu1 %v1284_v23 }
  0x38   : > { %1196 = vmatpush3.bf16.msra.mxu1 %v1284_v23 }
  0x3b   : > { %617 = vmatmul.mubr.bf16.gmra.mrb[4].mxu0 %v1282_v24  ;;  %665 = vmatmul.mubr.bf16.gmra.mrb[4].mxu1 %v1283_v25 }
  0x3c   : > { %624 = vmatprep.mubr.bf16.mxu0 %v1285_v26  ;;  %1197 = vmatprep.mubr.msk.bf16.mxu1 %vm551_vm0, %v1287_v27 }
  0x43   : > { %625 = vmatmul.mubr.bf16.gmra.mrb[8].mxu0 %v1288_v28  ;;  %1198 = vmatmul.mubr.msk.bf16.vlgmr.msra.gmra.mrb[8].mxu1 %vm551_vm0, %v1289_v29 }
  0x44   : > { %632 = vmatprep.mubr.bf16.mxu0 %v1290_v30  ;;  %1201 = vmatprep.mubr.msk.bf16.mxu1 %vm551_vm0, %v1292_v31 }
  0x4b   : > { %633 = vmatmul.mubr.bf16.gmra.mrb[12].mxu0 %v1293_v32  ;;  %1202 = vmatmul.mubr.msk.bf16.gmra.mrb[12].mxu1 %vm551_vm0, %v1294_v33 }
  0x4c   : > { %640 = vmatprep.mubr.bf16.mxu0 %v1295_v34  ;;  %1205 = vmatprep.mubr.msk.bf16.mxu1 %vm551_vm0, %v1297_v35 }
  0x53   : > { %641 = vmatmul.mubr.bf16.gmra.mrb[16].mxu0 %v1298_v36  ;;  %1206 = vmatmul.mubr.msk.bf16.gmra.mrb[16].mxu1 %vm551_vm0, %v1299_v37 }
  0x54   : > { %648 = vmatprep.mubr.bf16.mxu0 %v1300_v38  ;;  %1209 = vmatprep.mubr.msk.bf16.mxu1 %vm551_vm0, %v1302_v39 }
  0x5b   : > { %649 = vmatmul.mubr.bf16.gmra.mrb[20].mxu0 %v1303_v40  ;;  %1210 = vmatmul.mubr.msk.bf16.gmra.mrb[20].mxu1 %vm551_vm0, %v1304_v41 }
 0x106   : > { %v1135_v42 = vpop.f32.mrb[0].mxu0  ;;  %v1171_v43 = vpop.f32.mrb[0].mxu1 }
 0x107   : > { %v1136_v44 = vpop.f32.mrb[1].mxu0  ;;  %v1172_v45 = vpop.f32.mrb[1].mxu1 }
 0x108   : > { %v1137_v46 = vadd.f32 %v1136_v44, %v1135_v42  ;;  %v1138_v47 = vpop.f32.mrb[2].mxu0  ;;  %v1431_v48 = vadd.f32 %v1172_v45, %v1171_v43  ;;  %v1174_v49 = vpop.f32.mrb[2].mxu1 }
 0x109   : > { %v1139_v50 = vpop.f32.mrb[3].mxu0  ;;  %v1175_v51 = vpop.f32.mrb[3].mxu1 }
 0x10a   : > { %v1140_v52 = vadd.f32 %v1139_v50, %v1138_v47  ;;  %v1433_v53 = vadd.f32 %v1175_v51, %v1174_v49  ;;  %v611_v6 = vadd.f32 %v1137_v46, %v1443_v2 }
 0x10c   : > { %v614_v15 = vadd.f32 %v1140_v52, %v1443_v2 }
 0x10e   : > { %v1141_v54 = vpop.f32.mrb[4].mxu0  ;;  %v1177_v55 = vpop.f32.mrb[4].mxu1 }
 0x10f   : > { %v1142_v56 = vpop.f32.mrb[5].mxu0  ;;  %v1178_v57 = vpop.f32.mrb[5].mxu1 }
 0x110   : > { %v1143_v58 = vadd.f32 %v1142_v56, %v1141_v54  ;;  %v1144_v59 = vpop.f32.mrb[6].mxu0  ;;  %v1435_v60 = vadd.f32 %v1178_v57, %v1177_v55  ;;  %v1180_v61 = vpop.f32.mrb[6].mxu1 }
 0x111   : > { %v1145_v62 = vpop.f32.mrb[7].mxu0  ;;  %v1181_v63 = vpop.f32.mrb[7].mxu1 }
 0x112   : > { %v1146_v0 = vadd.f32 %v1145_v62, %v1144_v59  ;;  %v1441_v1 = vadd.f32 %v1181_v63, %v1180_v61  ;;  %v619_v3 = vadd.f32 %v1143_v58, %v1443_v2 }
 0x114   : > { %v622_v10 = vadd.f32 %v1146_v0, %v1443_v2 }
 0x116   : > { %v1147_v4 = vpop.f32.mrb[8].mxu0  ;;  %v1199_v5 = vpop.f32.mrb[8].mxu1 }
 0x117   : > { %v716_v7 = vadd.f32 %v1199_v5, %v619_v3  ;;  %v1148_v8 = vpop.f32.mrb[9].mxu0  ;;  %v707_v9 = vpop.f32.mrb[9].mxu1  ;;  %v667_v5 = vadd.f32 %v1435_v60, %v1443_v2 }
 0x118   : > { %v1149_v11 = vadd.f32 %v1148_v8, %v1147_v4  ;;  %v708_v12 = vadd.f32 %v707_v9, %v611_v6  ;;  %v1150_v13 = vpop.f32.mrb[10].mxu0  ;;  %v1200_v14 = vpop.f32.mrb[10].mxu1  ;;  %v659_v9 = vadd.f32 %v1431_v48, %v1443_v2 }
 0x119   : > { %v719_v16 = vadd.f32 %v1200_v14, %v622_v10  ;;  %v1151_v17 = vpop.f32.mrb[11].mxu0  ;;  %v710_v18 = vpop.f32.mrb[11].mxu1  ;;  %v772_v21 = vmax.f32 %v716_v7, 0.0 }
 0x11a   : > { %v1152_v19 = vadd.f32 %v1151_v17, %v1150_v13  ;;  %v711_v20 = vadd.f32 %v710_v18, %v614_v15  ;;  %v770_v23 = vmax.f32 %v708_v12, 0.0  ;;  %v627_v29 = vadd.f32 %v1149_v11, %v1443_v2 }
 0x11b   : > { %v773_v22 = vmax.f32 %v719_v16, 0.0  ;;  %v670_v13 = vadd.f32 %v1441_v1, %v1443_v2 }
 0x11c   : > { %v771_v24 = vmax.f32 %v711_v20, 0.0  ;;  %v630_v36 = vadd.f32 %v1152_v19, %v1443_v2 }
 0x11d   : > { %v1080_v25 = vpack.c.bf16 %v773_v22, %v772_v21  ;;  %v662_v21 = vadd.f32 %v1433_v53, %v1443_v2 }
 0x11e   : > { %v1075_v26 = vpack.c.bf16 %v771_v24, %v770_v23  ;;  %v1153_v27 = vpop.f32.mrb[12].mxu0  ;;  %v1203_v28 = vpop.f32.mrb[12].mxu1 }
 0x11f   : > { %1112 = vst [vmem:[%s1453_s30 + $0x8] sm:$0xff] %v1080_v25   ;;  %v1154_v30 = vpop.f32.mrb[13].mxu0  ;;  %v723_v31 = vpop.f32.mrb[13].mxu1 }
 0x120   : > { %1076 = vst [vmem:[%s1453_s30] sm:$0xff] %v1075_v26   ;;  %v1155_v32 = vadd.f32 %v1154_v30, %v1153_v27  ;;  %v724_v33 = vadd.f32 %v723_v31, %v627_v29  ;;  %v1156_v34 = vpop.f32.mrb[14].mxu0  ;;  %v1204_v35 = vpop.f32.mrb[14].mxu1 }
 0x121   : > { %v1157_v37 = vpop.f32.mrb[15].mxu0  ;;  %v726_v38 = vpop.f32.mrb[15].mxu1 }
 0x122   : > { %v635_v39 = vadd.f32 %v1155_v32, %v1443_v2  ;;  %v1158_v40 = vadd.f32 %v1157_v37, %v1156_v34  ;;  %v727_v41 = vadd.f32 %v726_v38, %v630_v36  ;;  %v774_v43 = vmax.f32 %v724_v33, 0.0 }
 0x124   : > { %v732_v42 = vadd.f32 %v1203_v28, %v635_v39  ;;  %v638_v44 = vadd.f32 %v1158_v40, %v1443_v2  ;;  %v775_v45 = vmax.f32 %v727_v41, 0.0 }
 0x126   : > { %v735_v46 = vadd.f32 %v1204_v35, %v638_v44  ;;  %v1085_v47 = vpack.c.bf16 %v775_v45, %v774_v43  ;;  %v1159_v49 = vpop.f32.mrb[16].mxu0  ;;  %v1207_v50 = vpop.f32.mrb[16].mxu1  ;;  %v776_v54 = vmax.f32 %v732_v42, 0.0 }
 0x127   : > { %v1160_v51 = vpop.f32.mrb[17].mxu0  ;;  %v739_v52 = vpop.f32.mrb[17].mxu1 }
 0x128   : > { %v777_v55 = vmax.f32 %v735_v46, 0.0  ;;  %1113 = vst [vmem:[%s1453_s30 + $0x10] sm:$0xff] %v1085_v47   ;;  %v1161_v56 = vadd.f32 %v1160_v51, %v1159_v49  ;;  %v1162_v57 = vpop.f32.mrb[18].mxu0  ;;  %v1208_v58 = vpop.f32.mrb[18].mxu1 }
 0x129   : > { %v1163_v59 = vpop.f32.mrb[19].mxu0  ;;  %v742_v61 = vpop.f32.mrb[19].mxu1 }
 0x12a   : > { %v1090_v62 = vpack.c.bf16 %v777_v55, %v776_v54  ;;  %v643_v63 = vadd.f32 %v1161_v56, %v1443_v2  ;;  %v1164_v0 = vadd.f32 %v1163_v59, %v1162_v57 }
 0x12c   : > { %1114 = vst [vmem:[%s1453_s30 + $0x18] sm:$0xff] %v1090_v62   ;;  %v740_v3 = vadd.f32 %v739_v52, %v643_v63  ;;  %v646_v4 = vadd.f32 %v1164_v0, %v1443_v2 }
 0x12e   : > { %v743_v6 = vadd.f32 %v742_v61, %v646_v4  ;;  %v1165_v7 = vpop.f32.mrb[20].mxu0  ;;  %v1211_v8 = vpop.f32.mrb[20].mxu1  ;;  %v778_v14 = vmax.f32 %v740_v3, 0.0 }
 0x12f   : > { %v764_v10 = vadd.f32 %v1211_v8, %v667_v5  ;;  %v1166_v11 = vpop.f32.mrb[21].mxu0  ;;  %v755_v12 = vpop.f32.mrb[21].mxu1 }
 0x130   : > { %v779_v15 = vmax.f32 %v743_v6, 0.0  ;;  %v1167_v16 = vadd.f32 %v1166_v11, %v1165_v7  ;;  %v756_v17 = vadd.f32 %v755_v12, %v659_v9  ;;  %v1168_v18 = vpop.f32.mrb[22].mxu0  ;;  %v1212_v19 = vpop.f32.mrb[22].mxu1 }
 0x131   : > { %v767_v60 = vadd.f32 %v1212_v19, %v670_v13  ;;  %v1169_v20 = vpop.f32.mrb[23].mxu0  ;;  %v758_v48 = vpop.f32.mrb[23].mxu1  ;;  %v784_v1 = vmax.f32 %v764_v10, 0.0 }
 0x132   : > { %v1095_v22 = vpack.c.bf16 %v779_v15, %v778_v14  ;;  %v651_v23 = vadd.f32 %v1167_v16, %v1443_v2  ;;  %v1170_v24 = vadd.f32 %v1169_v20, %v1168_v18  ;;  %v759_v26 = vadd.f32 %v758_v48, %v662_v21 }
 0x133   : > { %v785_v25 = vmax.f32 %v767_v60, 0.0  ;;  %v782_v29 = vmax.f32 %v756_v17, 0.0 }
 0x134   : > { %1115 = vst [vmem:[%s1453_s30 + $0x20] sm:$0xff] %v1095_v22   ;;  %v748_v27 = vadd.f32 %v1207_v50, %v651_v23  ;;  %v654_v28 = vadd.f32 %v1170_v24, %v1443_v2  ;;  %v783_v31 = vmax.f32 %v759_v26, 0.0 }
 0x135   : > { %v1110_v30 = vpack.c.bf16 %v785_v25, %v784_v1 }
 0x136   : > { %v751_v32 = vadd.f32 %v1208_v58, %v654_v28  ;;  %v1105_v53 = vpack.c.bf16 %v783_v31, %v782_v29  ;;  %v780_v33 = vmax.f32 %v748_v27, 0.0 }
 0x137   : > { %1118 = vst [vmem:[%s1453_s30 + $0x38] sm:$0xff] %v1110_v30  }
 0x138   : > { %v781_v34 = vmax.f32 %v751_v32, 0.0  ;;  %1117 = vst [vmem:[%s1453_s30 + $0x30] sm:$0xff] %v1105_v53  }
 0x13a   : > { %v1100_v35 = vpack.c.bf16 %v781_v34, %v780_v33 }
 0x13c   : > { %1116 = vst [vmem:[%s1453_s30 + $0x28] sm:$0xff] %v1100_v35  }
 0x13d PF: > { %s13_s14 = sadd.s32 1, %s1327_s14   ;;  %s1492_s12 = smov %s1323_s13 }
 0x13e   : > { %p10_p5 = scmp.ge.s32.totalorder %s13_s14, 4   ;;  %s1493_s13 = smov %s1495_s15 }
 0x140   :  { %12 = sbr.rel (!%p10_p5) target bundleno = 2 (0x2), region = 68 }

// kernel: forward.21
= control target key start
LH: loop header
LB: loop body
LE: loop exit
PB: predicated region body
PF: predicated region fallthrough
CT: control target
= control target key end

     0   :  { %s1429_s12 = smov 0   ;;  %s1431_s13 = smov 0   ;;  %s1609_s0 = inlined_call_operand.vmem [shape: bf16[2,512,144], index: 0, kind: input, shape index: {}]   ;;  %s1610_s1 = inlined_call_operand.vmem [shape: bf16[2,144,128], index: 1, kind: input, shape index: {}]   ;;  %s1611_s2 = inlined_call_operand.vmem [shape: f32[2,1,128], index: 2, kind: input, shape index: {}]   ;;  %s1612_s3 = inlined_call_operand.vmem [shape: bf16[2,512,128], index: 3, kind: output, shape index: {}]  }
   0x1   :  { %s1433_s14 = smov 0   ;;  %s1435_s15 = smov 0  }
   0x2   :  { %s1437_s16 = smov 0  }
   0x3 LB: > { %s22_s17 = sadd.s32 1, %s1398_s14  ;;  %s25_s18 = sadd.s32 1, %s1402_s15  ;;  %s1406_s16 = sphi %s1437_s16, %s13_s16   ;;  %s1402_s15 = sphi %s1435_s15, %s1616_s15   ;;  %s1398_s14 = sphi %s1433_s14, %s1615_s14   ;;  %s1394_s13 = sphi %s1431_s13, %s1614_s13   ;;  %s1390_s12 = sphi %s1429_s12, %s1613_s12  }
   0x4   : > { %p23_p0 = scmp.ge.s32.totalorder %s22_s17, 2  ;;  %p1023_p1 = scmp.ge.s32.totalorder %s1406_s16, 1 }
   0x5   : > { %p177_p2 = scmp.lt.s32.totalorder %s1406_s16, 5 }
   0x6   : > { %s1618_s17 = smov (%p23_p0, %s22_s17), 0  ;;  %s1620_s18 = smov (!%p23_p0, %s25_s18), %s1402_s15 }
   0x7   : > { %p178_p3 = pnand %p1023_p1, %p177_p2  ;;  %p27_p4 = scmp.ge.s32.totalorder %s1620_s18, 2 }
   0x8   : > { %s1024_s19 = sshll.u32 (!%p178_p3), %s1390_s12, 5  ;;  %p219_p5 = scmp.lt.s32.totalorder (!%p178_p3), %s1394_s13, 1  ;;  %v1408_v0 = vmov (!%p178_p3), 0   ;;  %vm503_vm0 = vcmask (!%p178_p3), 130048  }
   0x9   : > { %s1622_s18 = smov (%p27_p4, %s1620_s18), 0  ;;  %181 = sbr.rel (%p178_p3) target bundleno = 333 (0x14d), region = 32 }
   0xa   : > { %552 = vmatprep.subr.bf16.mxu0 (!%p178_p3), %v1408_v0  ;;  %1251 = vmatprep.subr.bf16.mxu1 (!%p178_p3), %v1408_v0  ;;  %p221_p6 = scmp.lt.s32.totalorder (!%p178_p3), %s1024_s19, 63 }
  0x10   : > { %s1624_s13 = smov (!%p219_p5, %s1394_s13), 1  ;;  %s1626_s19 = smov (!%p221_p6, %s1024_s19), 63 }
  0x11   : > { %s1269_s20 = smul.u32 72, %s1624_s13  ;;  %s1025_s21 = sshll.u32 %s1626_s19, 1 }
  0x12   : > { %s1026_s22 = sshll.u32 %s1624_s13, 7  ;;  %s236_s6 = scalar_lea.vmem %s1611_s2, %s1624_s13 }
  0x13   : > { %s1469_s25 = scalar_lea.vmem %s1610_s1, %s1269_s20  ;;  %s225_s26 = sadd.s32 %s1026_s22, %s1025_s21  ;;  %v1538_v42 = vld [vmem:[%s236_s6] ss:$0 sm:$0xff] }
  0x14   : > { %v1311_v1 = vld [vmem:[%s1469_s25] sm:$0xff]   ;;  %v1312_v2 = vld [vmem:[%s1469_s25 + $0x8] sm:$0xff]   ;;  %s1027_s27 = sshll.u32 %s225_s26, 2  ;;  %v1313_v3 = vld [vmem:[%s1469_s25 + $0x10] sm:$0xff]   ;;  %s1030_s7 = sshll.u32 %s1624_s13, 6 }
  0x15   : > { %553 = vmatpush1.bf16.msra.mxu0 %v1311_v1  ;;  %1260 = vmatpush1.bf16.msra.mxu1 %v1311_v1  ;;  %s1477_s30 = scalar_lea.vmem %s1609_s0, %s1027_s27  ;;  %v1314_v4 = vld [vmem:[%s1469_s25 + $0x18] sm:$0xff]   ;;  %v1315_v7 = vld [vmem:[%s1469_s25 + $0x20] sm:$0xff]   ;;  %v1316_v8 = vld [vmem:[%s1469_s25 + $0x28] sm:$0xff]   ;;  %s243_s8 = sadd.s32 %s1030_s7, %s1626_s19 }
  0x16   : > { %554 = vmatprep.subr.bf16.mxu0 %v1408_v0  ;;  %1252 = vmatprep.subr.bf16.mxu1 %v1408_v0  ;;  %v1322_v5 = vld [vmem:[%s1477_s30 + $0x4] ss:$8 sps:$4 sm:$0xff]   ;;  %v1317_v9 = vld [vmem:[%s1469_s25 + $0x30] sm:$0xff]   ;;  %v1318_v10 = vld [vmem:[%s1469_s25 + $0x38] sm:$0xff]   ;;  %s1031_s9 = sshll.u32 %s243_s8, 2 }
  0x17   : > { %v1325_v6 = vld [vmem:[%s1477_s30 + $0x84] ss:$8 sps:$4 sm:$0xff]   ;;  %1074 = vmatprep.mubr.msk.bf16.mxu0 %vm503_vm0, %v1322_v5  ;;  %v1320_v12 = vld [vmem:[%s1477_s30] ss:$8 sps:$4 sm:$0xff]   ;;  %v1326_v14 = vld [vmem:[%s1477_s30 + $0x14] ss:$8 sps:$4 sm:$0xff]   ;;  %s1548_s12 = scalar_lea.vmem %s1612_s3, %s1031_s9 }
  0x18   : > { %1082 = vmatprep.mubr.msk.bf16.mxu1 %vm503_vm0, %v1325_v6  ;;  %v1319_v11 = vld [vmem:[%s1469_s25 + $0x40] sm:$0xff]   ;;  %v1328_v15 = vld [vmem:[%s1477_s30 + $0x94] ss:$8 sps:$4 sm:$0xff]   ;;  %v1330_v16 = vld [vmem:[%s1477_s30 + $0x10] ss:$8 sps:$4 sm:$0xff]  }
  0x19   : > { %555 = vmatpush1.bf16.msra.mxu0 %v1312_v2  ;;  %1261 = vmatpush1.bf16.msra.mxu1 %v1312_v2  ;;  %v1323_v13 = vld [vmem:[%s1477_s30 + $0x80] ss:$8 sps:$4 sm:$0xff]   ;;  %v1331_v17 = vld [vmem:[%s1477_s30 + $0x90] ss:$8 sps:$4 sm:$0xff]   ;;  %v1332_v18 = vld [vmem:[%s1477_s30 + $0x24] ss:$8 sps:$4 sm:$0xff]  }
  0x1a   : > { %556 = vmatprep.subr.bf16.mxu0 %v1408_v0  ;;  %1253 = vmatprep.subr.bf16.mxu1 %v1408_v0  ;;  %v1334_v19 = vld [vmem:[%s1477_s30 + $0xa4] ss:$8 sps:$4 sm:$0xff]   ;;  %v1336_v20 = vld [vmem:[%s1477_s30 + $0x20] ss:$8 sps:$4 sm:$0xff]   ;;  %v1338_v22 = vld [vmem:[%s1477_s30 + $0x34] ss:$8 sps:$4 sm:$0xff]  }
  0x1b   : > { %v1337_v21 = vld [vmem:[%s1477_s30 + $0xa0] ss:$8 sps:$4 sm:$0xff]   ;;  %v1340_v23 = vld [vmem:[%s1477_s30 + $0xb4] ss:$8 sps:$4 sm:$0xff]   ;;  %v1342_v24 = vld [vmem:[%s1477_s30 + $0x30] ss:$8 sps:$4 sm:$0xff]  }
  0x1c   : > { %v1343_v25 = vld [vmem:[%s1477_s30 + $0xb0] ss:$8 sps:$4 sm:$0xff]   ;;  %v1344_v26 = vld [vmem:[%s1477_s30 + $0x44] ss:$8 sps:$4 sm:$0xff]   ;;  %v1348_v28 = vld [vmem:[%s1477_s30 + $0x40] ss:$8 sps:$4 sm:$0xff]  }
  0x1d   : > { %557 = vmatpush1.bf16.msra.mxu0 %v1313_v3  ;;  %1262 = vmatpush1.bf16.msra.mxu1 %v1313_v3  ;;  %v1346_v27 = vld [vmem:[%s1477_s30 + $0xc4] ss:$8 sps:$4 sm:$0xff]   ;;  %v1349_v29 = vld [vmem:[%s1477_s30 + $0xc0] ss:$8 sps:$4 sm:$0xff]   ;;  %v1350_v30 = vld [vmem:[%s1477_s30 + $0x54] ss:$8 sps:$4 sm:$0xff]  }
  0x1e   : > { %558 = vmatprep.subr.bf16.mxu0 %v1408_v0  ;;  %1254 = vmatprep.subr.bf16.mxu1 %v1408_v0  ;;  %v1352_v31 = vld [vmem:[%s1477_s30 + $0xd4] ss:$8 sps:$4 sm:$0xff]   ;;  %v1354_v32 = vld [vmem:[%s1477_s30 + $0x50] ss:$8 sps:$4 sm:$0xff]   ;;  %v1356_v34 = vld [vmem:[%s1477_s30 + $0x64] ss:$8 sps:$4 sm:$0xff]  }
  0x1f   : > { %v1355_v33 = vld [vmem:[%s1477_s30 + $0xd0] ss:$8 sps:$4 sm:$0xff]   ;;  %v1358_v35 = vld [vmem:[%s1477_s30 + $0xe4] ss:$8 sps:$4 sm:$0xff]   ;;  %v1360_v36 = vld [vmem:[%s1477_s30 + $0x60] ss:$8 sps:$4 sm:$0xff]  }
  0x20   : > { %v1361_v37 = vld [vmem:[%s1477_s30 + $0xe0] ss:$8 sps:$4 sm:$0xff]   ;;  %v1362_v38 = vld [vmem:[%s1477_s30 + $0x74] ss:$8 sps:$4 sm:$0xff]   ;;  %v1366_v40 = vld [vmem:[%s1477_s30 + $0x70] ss:$8 sps:$4 sm:$0xff]  }
  0x21   : > { %559 = vmatpush1.bf16.msra.mxu0 %v1314_v4  ;;  %1263 = vmatpush1.bf16.msra.mxu1 %v1314_v4  ;;  %v1364_v39 = vld [vmem:[%s1477_s30 + $0xf4] ss:$8 sps:$4 sm:$0xff]   ;;  %v1367_v41 = vld [vmem:[%s1477_s30 + $0xf0] ss:$8 sps:$4 sm:$0xff]  }
  0x22   : > { %560 = vmatprep.subr.bf16.mxu0 %v1408_v0  ;;  %1255 = vmatprep.subr.bf16.mxu1 %v1408_v0 }
  0x25   : > { %561 = vmatpush1.bf16.msra.mxu0 %v1315_v7  ;;  %1264 = vmatpush1.bf16.msra.mxu1 %v1315_v7 }
  0x26   : > { %562 = vmatprep.subr.bf16.mxu0 %v1408_v0  ;;  %1256 = vmatprep.subr.bf16.mxu1 %v1408_v0 }
  0x29   : > { %563 = vmatpush1.bf16.msra.mxu0 %v1316_v8  ;;  %1265 = vmatpush1.bf16.msra.mxu1 %v1316_v8 }
  0x2a   : > { %564 = vmatprep.subr.bf16.mxu0 %v1408_v0  ;;  %1257 = vmatprep.subr.bf16.mxu1 %v1408_v0 }
  0x2d   : > { %565 = vmatpush1.bf16.msra.mxu0 %v1317_v9  ;;  %1266 = vmatpush1.bf16.msra.mxu1 %v1317_v9 }
  0x2e   : > { %566 = vmatprep.subr.bf16.mxu0 %v1408_v0  ;;  %1258 = vmatprep.subr.bf16.mxu1 %v1408_v0 }
  0x31   : > { %567 = vmatpush1.bf16.msra.mxu0 %v1318_v10  ;;  %1267 = vmatpush1.bf16.msra.mxu1 %v1318_v10 }
  0x32   : > { %568 = vmatprep.subr.bf16.mxu0 %v1408_v0  ;;  %1259 = vmatprep.subr.bf16.mxu1 %v1408_v0 }
  0x35   : > { %569 = vmatpush1.bf16.msra.mxu0 %v1319_v11  ;;  %1268 = vmatpush1.bf16.msra.mxu1 %v1319_v11 }
  0x38   : > { %585 = vmatmul.mubr.bf16.vlgmr.msra.gmra.mrb[0].mxu0 %v1320_v12  ;;  %649 = vmatmul.mubr.bf16.vlgmr.msra.gmra.mrb[0].mxu1 %v1323_v13 }
  0x39   : > { %1075 = vmatprep.mubr.msk.bf16.mxu0 %vm503_vm0, %v1326_v14  ;;  %1083 = vmatprep.mubr.msk.bf16.mxu1 %vm503_vm0, %v1328_v15 }
  0x40   : > { %593 = vmatmul.mubr.bf16.gmra.mrb[4].mxu0 %v1330_v16  ;;  %657 = vmatmul.mubr.bf16.gmra.mrb[4].mxu1 %v1331_v17 }
  0x41   : > { %1076 = vmatprep.mubr.msk.bf16.mxu0 %vm503_vm0, %v1332_v18  ;;  %1084 = vmatprep.mubr.msk.bf16.mxu1 %vm503_vm0, %v1334_v19 }
  0x48   : > { %601 = vmatmul.mubr.bf16.gmra.mrb[8].mxu0 %v1336_v20  ;;  %665 = vmatmul.mubr.bf16.gmra.mrb[8].mxu1 %v1337_v21 }
  0x49   : > { %1077 = vmatprep.mubr.msk.bf16.mxu0 %vm503_vm0, %v1338_v22  ;;  %1085 = vmatprep.mubr.msk.bf16.mxu1 %vm503_vm0, %v1340_v23 }
  0x50   : > { %609 = vmatmul.mubr.bf16.gmra.mrb[12].mxu0 %v1342_v24  ;;  %673 = vmatmul.mubr.bf16.gmra.mrb[12].mxu1 %v1343_v25 }
  0x51   : > { %1078 = vmatprep.mubr.msk.bf16.mxu0 %vm503_vm0, %v1344_v26  ;;  %1086 = vmatprep.mubr.msk.bf16.mxu1 %vm503_vm0, %v1346_v27 }
  0x58   : > { %617 = vmatmul.mubr.bf16.gmra.mrb[16].mxu0 %v1348_v28  ;;  %681 = vmatmul.mubr.bf16.gmra.mrb[16].mxu1 %v1349_v29 }
  0x59   : > { %1079 = vmatprep.mubr.msk.bf16.mxu0 %vm503_vm0, %v1350_v30  ;;  %1087 = vmatprep.mubr.msk.bf16.mxu1 %vm503_vm0, %v1352_v31 }
  0x60   : > { %625 = vmatmul.mubr.bf16.gmra.mrb[20].mxu0 %v1354_v32  ;;  %689 = vmatmul.mubr.bf16.gmra.mrb[20].mxu1 %v1355_v33 }
  0x61   : > { %1080 = vmatprep.mubr.msk.bf16.mxu0 %vm503_vm0, %v1356_v34  ;;  %1088 = vmatprep.mubr.msk.bf16.mxu1 %vm503_vm0, %v1358_v35 }
  0x68   : > { %633 = vmatmul.mubr.bf16.gmra.mrb[24].mxu0 %v1360_v36  ;;  %697 = vmatmul.mubr.bf16.gmra.mrb[24].mxu1 %v1361_v37 }
  0x69   : > { %1081 = vmatprep.mubr.msk.bf16.mxu0 %vm503_vm0, %v1362_v38  ;;  %1089 = vmatprep.mubr.msk.bf16.mxu1 %vm503_vm0, %v1364_v39 }
  0x70   : > { %641 = vmatmul.mubr.bf16.gmra.mrb[28].mxu0 %v1366_v40  ;;  %705 = vmatmul.mubr.bf16.gmra.mrb[28].mxu1 %v1367_v41 }
 0x10b   : > { %v586_v43 = vpop.f32.mrb[0].mxu0  ;;  %v650_v44 = vpop.f32.mrb[0].mxu1 }
 0x10c   : > { %v587_v45 = vadd.f32 %v1538_v42, %v586_v43  ;;  %v651_v46 = vadd.f32 %v1538_v42, %v650_v44  ;;  %v588_v47 = vpop.f32.mrb[1].mxu0  ;;  %v652_v48 = vpop.f32.mrb[1].mxu1 }
 0x10d   : > { %v589_v49 = vpop.f32.mrb[2].mxu0  ;;  %v653_v50 = vpop.f32.mrb[2].mxu1 }
 0x10e   : > { %v590_v51 = vadd.f32 %v1538_v42, %v589_v49  ;;  %v654_v52 = vadd.f32 %v1538_v42, %v653_v50  ;;  %v591_v53 = vpop.f32.mrb[3].mxu0  ;;  %v655_v54 = vpop.f32.mrb[3].mxu1  ;;  %v713_v55 = vmax.f32 %v587_v45, 0.0  ;;  %v729_v56 = vmax.f32 %v651_v46, 0.0 }
 0x110   : > { %v714_v57 = vmax.f32 %v590_v51, 0.0  ;;  %v730_v58 = vmax.f32 %v654_v52, 0.0 }
 0x112   : > { %v1159_v59 = vpack.c.bf16 %v714_v57, %v713_v55  ;;  %v1199_v60 = vpack.c.bf16 %v730_v58, %v729_v56 }
 0x113   : > { %v594_v61 = vpop.f32.mrb[4].mxu0  ;;  %v658_v62 = vpop.f32.mrb[4].mxu1 }
 0x114   : > { %1160 = vst [vmem:[%s1548_s12] sm:$0xff] %v1159_v59   ;;  %1243 = vst [vmem:[%s1548_s12 + $0x40] sm:$0xff] %v1199_v60   ;;  %v595_v63 = vadd.f32 %v1538_v42, %v594_v61  ;;  %v659_v0 = vadd.f32 %v1538_v42, %v658_v62  ;;  %v596_v1 = vpop.f32.mrb[5].mxu0  ;;  %v660_v2 = vpop.f32.mrb[5].mxu1 }
 0x115   : > { %v597_v3 = vpop.f32.mrb[6].mxu0  ;;  %v661_v4 = vpop.f32.mrb[6].mxu1 }
 0x116   : > { %v598_v5 = vadd.f32 %v1538_v42, %v597_v3  ;;  %v662_v6 = vadd.f32 %v1538_v42, %v661_v4  ;;  %v599_v7 = vpop.f32.mrb[7].mxu0  ;;  %v663_v8 = vpop.f32.mrb[7].mxu1  ;;  %v715_v9 = vmax.f32 %v595_v63, 0.0  ;;  %v731_v10 = vmax.f32 %v659_v0, 0.0 }
 0x118   : > { %v716_v11 = vmax.f32 %v598_v5, 0.0  ;;  %v732_v12 = vmax.f32 %v662_v6, 0.0 }
 0x11a   : > { %v1164_v13 = vpack.c.bf16 %v716_v11, %v715_v9  ;;  %v1204_v14 = vpack.c.bf16 %v732_v12, %v731_v10 }
 0x11b   : > { %v602_v15 = vpop.f32.mrb[8].mxu0  ;;  %v666_v16 = vpop.f32.mrb[8].mxu1 }
 0x11c   : > { %1236 = vst [vmem:[%s1548_s12 + $0x8] sm:$0xff] %v1164_v13   ;;  %1244 = vst [vmem:[%s1548_s12 + $0x48] sm:$0xff] %v1204_v14   ;;  %v603_v17 = vadd.f32 %v1538_v42, %v602_v15  ;;  %v667_v18 = vadd.f32 %v1538_v42, %v666_v16  ;;  %v604_v19 = vpop.f32.mrb[9].mxu0  ;;  %v668_v20 = vpop.f32.mrb[9].mxu1 }
 0x11d   : > { %v605_v21 = vpop.f32.mrb[10].mxu0  ;;  %v669_v22 = vpop.f32.mrb[10].mxu1 }
 0x11e   : > { %v606_v23 = vadd.f32 %v1538_v42, %v605_v21  ;;  %v670_v24 = vadd.f32 %v1538_v42, %v669_v22  ;;  %v607_v25 = vpop.f32.mrb[11].mxu0  ;;  %v671_v26 = vpop.f32.mrb[11].mxu1  ;;  %v717_v27 = vmax.f32 %v603_v17, 0.0  ;;  %v733_v28 = vmax.f32 %v667_v18, 0.0 }
 0x120   : > { %v718_v29 = vmax.f32 %v606_v23, 0.0  ;;  %v734_v30 = vmax.f32 %v670_v24, 0.0 }
 0x122   : > { %v1169_v31 = vpack.c.bf16 %v718_v29, %v717_v27  ;;  %v1209_v32 = vpack.c.bf16 %v734_v30, %v733_v28 }
 0x123   : > { %v610_v33 = vpop.f32.mrb[12].mxu0  ;;  %v674_v34 = vpop.f32.mrb[12].mxu1 }
 0x124   : > { %1237 = vst [vmem:[%s1548_s12 + $0x10] sm:$0xff] %v1169_v31   ;;  %1245 = vst [vmem:[%s1548_s12 + $0x50] sm:$0xff] %v1209_v32   ;;  %v611_v35 = vadd.f32 %v1538_v42, %v610_v33  ;;  %v675_v36 = vadd.f32 %v1538_v42, %v674_v34  ;;  %v612_v37 = vpop.f32.mrb[13].mxu0  ;;  %v676_v38 = vpop.f32.mrb[13].mxu1 }
 0x125   : > { %v613_v39 = vpop.f32.mrb[14].mxu0  ;;  %v677_v40 = vpop.f32.mrb[14].mxu1 }
 0x126   : > { %v614_v41 = vadd.f32 %v1538_v42, %v613_v39  ;;  %v678_v43 = vadd.f32 %v1538_v42, %v677_v40  ;;  %v615_v44 = vpop.f32.mrb[15].mxu0  ;;  %v679_v45 = vpop.f32.mrb[15].mxu1  ;;  %v719_v46 = vmax.f32 %v611_v35, 0.0  ;;  %v735_v47 = vmax.f32 %v675_v36, 0.0 }
 0x128   : > { %v720_v48 = vmax.f32 %v614_v41, 0.0  ;;  %v736_v49 = vmax.f32 %v678_v43, 0.0 }
 0x12a   : > { %v1174_v50 = vpack.c.bf16 %v720_v48, %v719_v46  ;;  %v1214_v51 = vpack.c.bf16 %v736_v49, %v735_v47 }
 0x12b   : > { %v618_v52 = vpop.f32.mrb[16].mxu0  ;;  %v682_v53 = vpop.f32.mrb[16].mxu1 }
 0x12c   : > { %1238 = vst [vmem:[%s1548_s12 + $0x18] sm:$0xff] %v1174_v50   ;;  %1246 = vst [vmem:[%s1548_s12 + $0x58] sm:$0xff] %v1214_v51   ;;  %v619_v54 = vadd.f32 %v1538_v42, %v618_v52  ;;  %v683_v55 = vadd.f32 %v1538_v42, %v682_v53  ;;  %v620_v56 = vpop.f32.mrb[17].mxu0  ;;  %v684_v57 = vpop.f32.mrb[17].mxu1 }
 0x12d   : > { %v621_v58 = vpop.f32.mrb[18].mxu0  ;;  %v685_v59 = vpop.f32.mrb[18].mxu1 }
 0x12e   : > { %v622_v60 = vadd.f32 %v1538_v42, %v621_v58  ;;  %v686_v61 = vadd.f32 %v1538_v42, %v685_v59  ;;  %v623_v62 = vpop.f32.mrb[19].mxu0  ;;  %v687_v63 = vpop.f32.mrb[19].mxu1  ;;  %v721_v0 = vmax.f32 %v619_v54, 0.0  ;;  %v737_v1 = vmax.f32 %v683_v55, 0.0 }
 0x130   : > { %v722_v2 = vmax.f32 %v622_v60, 0.0  ;;  %v738_v3 = vmax.f32 %v686_v61, 0.0 }
 0x132   : > { %v1179_v4 = vpack.c.bf16 %v722_v2, %v721_v0  ;;  %v1219_v5 = vpack.c.bf16 %v738_v3, %v737_v1 }
 0x133   : > { %v626_v6 = vpop.f32.mrb[20].mxu0  ;;  %v690_v7 = vpop.f32.mrb[20].mxu1 }
 0x134   : > { %1239 = vst [vmem:[%s1548_s12 + $0x20] sm:$0xff] %v1179_v4   ;;  %1247 = vst [vmem:[%s1548_s12 + $0x60] sm:$0xff] %v1219_v5   ;;  %v627_v8 = vadd.f32 %v1538_v42, %v626_v6  ;;  %v691_v9 = vadd.f32 %v1538_v42, %v690_v7  ;;  %v628_v10 = vpop.f32.mrb[21].mxu0  ;;  %v692_v11 = vpop.f32.mrb[21].mxu1 }
 0x135   : > { %v629_v12 = vpop.f32.mrb[22].mxu0  ;;  %v693_v13 = vpop.f32.mrb[22].mxu1 }
 0x136   : > { %v630_v14 = vadd.f32 %v1538_v42, %v629_v12  ;;  %v694_v15 = vadd.f32 %v1538_v42, %v693_v13  ;;  %v631_v16 = vpop.f32.mrb[23].mxu0  ;;  %v695_v17 = vpop.f32.mrb[23].mxu1  ;;  %v723_v18 = vmax.f32 %v627_v8, 0.0  ;;  %v739_v19 = vmax.f32 %v691_v9, 0.0 }
 0x138   : > { %v724_v20 = vmax.f32 %v630_v14, 0.0  ;;  %v740_v21 = vmax.f32 %v694_v15, 0.0 }
 0x13a   : > { %v1184_v22 = vpack.c.bf16 %v724_v20, %v723_v18  ;;  %v1224_v23 = vpack.c.bf16 %v740_v21, %v739_v19 }
 0x13b   : > { %v634_v24 = vpop.f32.mrb[24].mxu0  ;;  %v698_v25 = vpop.f32.mrb[24].mxu1 }
 0x13c   : > { %1240 = vst [vmem:[%s1548_s12 + $0x28] sm:$0xff] %v1184_v22   ;;  %1248 = vst [vmem:[%s1548_s12 + $0x68] sm:$0xff] %v1224_v23   ;;  %v635_v26 = vadd.f32 %v1538_v42, %v634_v24  ;;  %v699_v27 = vadd.f32 %v1538_v42, %v698_v25  ;;  %v636_v28 = vpop.f32.mrb[25].mxu0  ;;  %v700_v29 = vpop.f32.mrb[25].mxu1 }
 0x13d   : > { %v637_v30 = vpop.f32.mrb[26].mxu0  ;;  %v701_v31 = vpop.f32.mrb[26].mxu1 }
 0x13e   : > { %v638_v32 = vadd.f32 %v1538_v42, %v637_v30  ;;  %v702_v33 = vadd.f32 %v1538_v42, %v701_v31  ;;  %v639_v34 = vpop.f32.mrb[27].mxu0  ;;  %v703_v35 = vpop.f32.mrb[27].mxu1  ;;  %v725_v36 = vmax.f32 %v635_v26, 0.0  ;;  %v741_v37 = vmax.f32 %v699_v27, 0.0 }
 0x140   : > { %v726_v38 = vmax.f32 %v638_v32, 0.0  ;;  %v742_v39 = vmax.f32 %v702_v33, 0.0 }
 0x142   : > { %v1189_v40 = vpack.c.bf16 %v726_v38, %v725_v36  ;;  %v1229_v41 = vpack.c.bf16 %v742_v39, %v741_v37 }
 0x143   : > { %v642_v43 = vpop.f32.mrb[28].mxu0  ;;  %v706_v44 = vpop.f32.mrb[28].mxu1 }
 0x144   : > { %1241 = vst [vmem:[%s1548_s12 + $0x30] sm:$0xff] %v1189_v40   ;;  %1249 = vst [vmem:[%s1548_s12 + $0x70] sm:$0xff] %v1229_v41   ;;  %v643_v45 = vadd.f32 %v1538_v42, %v642_v43  ;;  %v707_v46 = vadd.f32 %v1538_v42, %v706_v44  ;;  %v644_v47 = vpop.f32.mrb[29].mxu0  ;;  %v708_v48 = vpop.f32.mrb[29].mxu1 }
 0x145   : > { %v645_v49 = vpop.f32.mrb[30].mxu0  ;;  %v709_v50 = vpop.f32.mrb[30].mxu1 }
 0x146   : > { %v646_v51 = vadd.f32 %v1538_v42, %v645_v49  ;;  %v710_v52 = vadd.f32 %v1538_v42, %v709_v50  ;;  %v647_v53 = vpop.f32.mrb[31].mxu0  ;;  %v711_v54 = vpop.f32.mrb[31].mxu1  ;;  %v727_v55 = vmax.f32 %v643_v45, 0.0  ;;  %v743_v56 = vmax.f32 %v707_v46, 0.0 }
 0x148   : > { %v728_v57 = vmax.f32 %v646_v51, 0.0  ;;  %v744_v58 = vmax.f32 %v710_v52, 0.0 }
 0x14a   : > { %v1194_v59 = vpack.c.bf16 %v728_v57, %v727_v55  ;;  %v1234_v60 = vpack.c.bf16 %v744_v58, %v743_v56 }
 0x14c   : > { %1242 = vst [vmem:[%s1548_s12 + $0x38] sm:$0xff] %v1194_v59   ;;  %1250 = vst [vmem:[%s1548_s12 + $0x78] sm:$0xff] %v1234_v60  }
 0x14d PF: > { %s13_s16 = sadd.s32 1, %s1406_s16   ;;  %s1613_s12 = smov %s1398_s14 }
 0x14e   : > { %p10_p7 = scmp.ge.s32.totalorder %s13_s16, 6   ;;  %s1614_s13 = smov %s1402_s15 }
 0x14f   : > { %s1615_s14 = smov %s1618_s17  ;;  %s1616_s15 = smov %s1622_s18 }
 0x150   :  { %12 = sbr.rel (!%p10_p7) target bundleno = 3 (0x3), region = 68 }

// kernel: forward.22
= control target key start
LH: loop header
LB: loop body
LE: loop exit
PB: predicated region body
PF: predicated region fallthrough
CT: control target
= control target key end

     0   :  { %s1110_s12 = smov 0   ;;  %s1112_s13 = smov 0   ;;  %s1305_s0 = inlined_call_operand.vmem [shape: bf16[2,512,144], index: 0, kind: input, shape index: {}]   ;;  %s1306_s1 = inlined_call_operand.vmem [shape: bf16[2,144,128], index: 1, kind: input, shape index: {}]   ;;  %s1307_s2 = inlined_call_operand.vmem [shape: f32[2,1,128], index: 2, kind: input, shape index: {}]   ;;  %s1308_s3 = inlined_call_operand.vmem [shape: f32[2,512,128], index: 3, kind: output, shape index: {}]  }
   0x1   :  { %s1114_s14 = smov 0   ;;  %s1116_s15 = smov 0  }
   0x2   :  { %s1118_s16 = smov 0  }
   0x3 LB: > { %s22_s17 = sadd.s32 1, %s1079_s14  ;;  %s25_s18 = sadd.s32 1, %s1083_s15  ;;  %s1087_s16 = sphi %s1118_s16, %s13_s16   ;;  %s1083_s15 = sphi %s1116_s15, %s1312_s15   ;;  %s1079_s14 = sphi %s1114_s14, %s1311_s14   ;;  %s1075_s13 = sphi %s1112_s13, %s1310_s13   ;;  %s1071_s12 = sphi %s1110_s12, %s1309_s12  }
   0x4   : > { %p23_p0 = scmp.ge.s32.totalorder %s22_s17, 2  ;;  %p863_p1 = scmp.ge.s32.totalorder %s1087_s16, 1 }
   0x5   : > { %p177_p2 = scmp.lt.s32.totalorder %s1087_s16, 5 }
   0x6   : > { %s1314_s17 = smov (%p23_p0, %s22_s17), 0  ;;  %s1316_s18 = smov (!%p23_p0, %s25_s18), %s1083_s15 }
   0x7   : > { %p178_p3 = pnand %p863_p1, %p177_p2  ;;  %p27_p4 = scmp.ge.s32.totalorder %s1316_s18, 2 }
   0x8   : > { %p219_p5 = scmp.lt.s32.totalorder (!%p178_p3), %s1075_s13, 1  ;;  %s864_s19 = sshll.u32 (!%p178_p3), %s1071_s12, 5  ;;  %v1089_v0 = vmov (!%p178_p3), 0   ;;  %vm503_vm0 = vcmask (!%p178_p3), 130048  }
   0x9   : > { %s1318_s18 = smov (%p27_p4, %s1316_s18), 0  ;;  %181 = sbr.rel (%p178_p3) target bundleno = 329 (0x149), region = 32 }
   0xa   : > { %552 = vmatprep.subr.bf16.mxu0 (!%p178_p3), %v1089_v0  ;;  %932 = vmatprep.subr.bf16.mxu1 (!%p178_p3), %v1089_v0  ;;  %p221_p6 = scmp.lt.s32.totalorder (!%p178_p3), %s864_s19, 63 }
  0x10   : > { %s1320_s13 = smov (!%p219_p5, %s1075_s13), 1  ;;  %s1322_s19 = smov (!%p221_p6, %s864_s19), 63 }
  0x11   : > { %s950_s20 = smul.u32 72, %s1320_s13  ;;  %s865_s21 = sshll.u32 %s1322_s19, 1 }
  0x12   : > { %s866_s22 = sshll.u32 %s1320_s13, 7  ;;  %s870_s27 = sshll.u32 %s1320_s13, 6 }
  0x13   : > { %s1147_s25 = scalar_lea.vmem %s1306_s1, %s950_s20  ;;  %s225_s26 = sadd.s32 %s866_s22, %s865_s21 }
  0x14   : > { %v992_v1 = vld [vmem:[%s1147_s25] sm:$0xff]   ;;  %v993_v2 = vld [vmem:[%s1147_s25 + $0x8] sm:$0xff]   ;;  %s1152_s28 = sadd.s32 %s870_s27, %s1322_s19  ;;  %s867_s29 = sshll.u32 %s225_s26, 2  ;;  %v994_v3 = vld [vmem:[%s1147_s25 + $0x10] sm:$0xff]  }
  0x15   : > { %553 = vmatpush1.bf16.msra.mxu0 %v992_v1  ;;  %941 = vmatpush1.bf16.msra.mxu1 %v992_v1  ;;  %s1158_s5 = scalar_lea.vmem %s1305_s0, %s867_s29  ;;  %v995_v4 = vld [vmem:[%s1147_s25 + $0x18] sm:$0xff]   ;;  %v996_v7 = vld [vmem:[%s1147_s25 + $0x20] sm:$0xff]   ;;  %v997_v8 = vld [vmem:[%s1147_s25 + $0x28] sm:$0xff]   ;;  %s236_s8 = scalar_lea.vmem %s1307_s2, %s1320_s13 }
  0x16   : > { %554 = vmatprep.subr.bf16.mxu0 %v1089_v0  ;;  %933 = vmatprep.subr.bf16.mxu1 %v1089_v0  ;;  %v1003_v5 = vld [vmem:[%s1158_s5 + $0x4] ss:$8 sps:$4 sm:$0xff]   ;;  %v998_v9 = vld [vmem:[%s1147_s25 + $0x30] sm:$0xff]   ;;  %v999_v10 = vld [vmem:[%s1147_s25 + $0x38] sm:$0xff]   ;;  %s871_s9 = sshll.u32 %s1152_s28, 3 }
  0x17   : > { %v1006_v6 = vld [vmem:[%s1158_s5 + $0x84] ss:$8 sps:$4 sm:$0xff]   ;;  %914 = vmatprep.mubr.msk.bf16.mxu0 %vm503_vm0, %v1003_v5  ;;  %v1001_v12 = vld [vmem:[%s1158_s5] ss:$8 sps:$4 sm:$0xff]   ;;  %v1007_v14 = vld [vmem:[%s1158_s5 + $0x14] ss:$8 sps:$4 sm:$0xff]   ;;  %s1224_s12 = scalar_lea.vmem %s1308_s3, %s871_s9 }
  0x18   : > { %922 = vmatprep.mubr.msk.bf16.mxu1 %vm503_vm0, %v1006_v6  ;;  %v1000_v11 = vld [vmem:[%s1147_s25 + $0x40] sm:$0xff]   ;;  %v1009_v15 = vld [vmem:[%s1158_s5 + $0x94] ss:$8 sps:$4 sm:$0xff]   ;;  %v1011_v16 = vld [vmem:[%s1158_s5 + $0x10] ss:$8 sps:$4 sm:$0xff]  }
  0x19   : > { %555 = vmatpush1.bf16.msra.mxu0 %v993_v2  ;;  %942 = vmatpush1.bf16.msra.mxu1 %v993_v2  ;;  %v1004_v13 = vld [vmem:[%s1158_s5 + $0x80] ss:$8 sps:$4 sm:$0xff]   ;;  %v1012_v17 = vld [vmem:[%s1158_s5 + $0x90] ss:$8 sps:$4 sm:$0xff]   ;;  %v1013_v18 = vld [vmem:[%s1158_s5 + $0x24] ss:$8 sps:$4 sm:$0xff]  }
  0x1a   : > { %556 = vmatprep.subr.bf16.mxu0 %v1089_v0  ;;  %934 = vmatprep.subr.bf16.mxu1 %v1089_v0  ;;  %v1015_v19 = vld [vmem:[%s1158_s5 + $0xa4] ss:$8 sps:$4 sm:$0xff]   ;;  %v1017_v20 = vld [vmem:[%s1158_s5 + $0x20] ss:$8 sps:$4 sm:$0xff]   ;;  %v1019_v22 = vld [vmem:[%s1158_s5 + $0x34] ss:$8 sps:$4 sm:$0xff]  }
  0x1b   : > { %v1018_v21 = vld [vmem:[%s1158_s5 + $0xa0] ss:$8 sps:$4 sm:$0xff]   ;;  %v1021_v23 = vld [vmem:[%s1158_s5 + $0xb4] ss:$8 sps:$4 sm:$0xff]   ;;  %v1023_v24 = vld [vmem:[%s1158_s5 + $0x30] ss:$8 sps:$4 sm:$0xff]  }
  0x1c   : > { %v1024_v25 = vld [vmem:[%s1158_s5 + $0xb0] ss:$8 sps:$4 sm:$0xff]   ;;  %v1025_v26 = vld [vmem:[%s1158_s5 + $0x44] ss:$8 sps:$4 sm:$0xff]   ;;  %v1029_v28 = vld [vmem:[%s1158_s5 + $0x40] ss:$8 sps:$4 sm:$0xff]  }
  0x1d   : > { %557 = vmatpush1.bf16.msra.mxu0 %v994_v3  ;;  %943 = vmatpush1.bf16.msra.mxu1 %v994_v3  ;;  %v1027_v27 = vld [vmem:[%s1158_s5 + $0xc4] ss:$8 sps:$4 sm:$0xff]   ;;  %v1030_v29 = vld [vmem:[%s1158_s5 + $0xc0] ss:$8 sps:$4 sm:$0xff]   ;;  %v1031_v30 = vld [vmem:[%s1158_s5 + $0x54] ss:$8 sps:$4 sm:$0xff]  }
  0x1e   : > { %558 = vmatprep.subr.bf16.mxu0 %v1089_v0  ;;  %935 = vmatprep.subr.bf16.mxu1 %v1089_v0  ;;  %v1033_v31 = vld [vmem:[%s1158_s5 + $0xd4] ss:$8 sps:$4 sm:$0xff]   ;;  %v1035_v32 = vld [vmem:[%s1158_s5 + $0x50] ss:$8 sps:$4 sm:$0xff]   ;;  %v1037_v34 = vld [vmem:[%s1158_s5 + $0x64] ss:$8 sps:$4 sm:$0xff]  }
  0x1f   : > { %v1036_v33 = vld [vmem:[%s1158_s5 + $0xd0] ss:$8 sps:$4 sm:$0xff]   ;;  %v1039_v35 = vld [vmem:[%s1158_s5 + $0xe4] ss:$8 sps:$4 sm:$0xff]   ;;  %v1041_v36 = vld [vmem:[%s1158_s5 + $0x60] ss:$8 sps:$4 sm:$0xff]  }
  0x20   : > { %v1042_v37 = vld [vmem:[%s1158_s5 + $0xe0] ss:$8 sps:$4 sm:$0xff]   ;;  %v1043_v38 = vld [vmem:[%s1158_s5 + $0x74] ss:$8 sps:$4 sm:$0xff]   ;;  %v1047_v40 = vld [vmem:[%s1158_s5 + $0x70] ss:$8 sps:$4 sm:$0xff]  }
  0x21   : > { %559 = vmatpush1.bf16.msra.mxu0 %v995_v4  ;;  %944 = vmatpush1.bf16.msra.mxu1 %v995_v4  ;;  %v1045_v39 = vld [vmem:[%s1158_s5 + $0xf4] ss:$8 sps:$4 sm:$0xff]   ;;  %v1048_v41 = vld [vmem:[%s1158_s5 + $0xf0] ss:$8 sps:$4 sm:$0xff]   ;;  %v1219_v42 = vld [vmem:[%s236_s8] ss:$0 sm:$0xff] }
  0x22   : > { %560 = vmatprep.subr.bf16.mxu0 %v1089_v0  ;;  %936 = vmatprep.subr.bf16.mxu1 %v1089_v0 }
  0x25   : > { %561 = vmatpush1.bf16.msra.mxu0 %v996_v7  ;;  %945 = vmatpush1.bf16.msra.mxu1 %v996_v7 }
  0x26   : > { %562 = vmatprep.subr.bf16.mxu0 %v1089_v0  ;;  %937 = vmatprep.subr.bf16.mxu1 %v1089_v0 }
  0x29   : > { %563 = vmatpush1.bf16.msra.mxu0 %v997_v8  ;;  %946 = vmatpush1.bf16.msra.mxu1 %v997_v8 }
  0x2a   : > { %564 = vmatprep.subr.bf16.mxu0 %v1089_v0  ;;  %938 = vmatprep.subr.bf16.mxu1 %v1089_v0 }
  0x2d   : > { %565 = vmatpush1.bf16.msra.mxu0 %v998_v9  ;;  %947 = vmatpush1.bf16.msra.mxu1 %v998_v9 }
  0x2e   : > { %566 = vmatprep.subr.bf16.mxu0 %v1089_v0  ;;  %939 = vmatprep.subr.bf16.mxu1 %v1089_v0 }
  0x31   : > { %567 = vmatpush1.bf16.msra.mxu0 %v999_v10  ;;  %948 = vmatpush1.bf16.msra.mxu1 %v999_v10 }
  0x32   : > { %568 = vmatprep.subr.bf16.mxu0 %v1089_v0  ;;  %940 = vmatprep.subr.bf16.mxu1 %v1089_v0 }
  0x35   : > { %569 = vmatpush1.bf16.msra.mxu0 %v1000_v11  ;;  %949 = vmatpush1.bf16.msra.mxu1 %v1000_v11 }
  0x38   : > { %585 = vmatmul.mubr.bf16.vlgmr.msra.gmra.mrb[0].mxu0 %v1001_v12  ;;  %649 = vmatmul.mubr.bf16.vlgmr.msra.gmra.mrb[0].mxu1 %v1004_v13 }
  0x39   : > { %915 = vmatprep.mubr.msk.bf16.mxu0 %vm503_vm0, %v1007_v14  ;;  %923 = vmatprep.mubr.msk.bf16.mxu1 %vm503_vm0, %v1009_v15 }
  0x40   : > { %593 = vmatmul.mubr.bf16.gmra.mrb[4].mxu0 %v1011_v16  ;;  %657 = vmatmul.mubr.bf16.gmra.mrb[4].mxu1 %v1012_v17 }
  0x41   : > { %916 = vmatprep.mubr.msk.bf16.mxu0 %vm503_vm0, %v1013_v18  ;;  %924 = vmatprep.mubr.msk.bf16.mxu1 %vm503_vm0, %v1015_v19 }
  0x48   : > { %601 = vmatmul.mubr.bf16.gmra.mrb[8].mxu0 %v1017_v20  ;;  %665 = vmatmul.mubr.bf16.gmra.mrb[8].mxu1 %v1018_v21 }
  0x49   : > { %917 = vmatprep.mubr.msk.bf16.mxu0 %vm503_vm0, %v1019_v22  ;;  %925 = vmatprep.mubr.msk.bf16.mxu1 %vm503_vm0, %v1021_v23 }
  0x50   : > { %609 = vmatmul.mubr.bf16.gmra.mrb[12].mxu0 %v1023_v24  ;;  %673 = vmatmul.mubr.bf16.gmra.mrb[12].mxu1 %v1024_v25 }
  0x51   : > { %918 = vmatprep.mubr.msk.bf16.mxu0 %vm503_vm0, %v1025_v26  ;;  %926 = vmatprep.mubr.msk.bf16.mxu1 %vm503_vm0, %v1027_v27 }
  0x58   : > { %617 = vmatmul.mubr.bf16.gmra.mrb[16].mxu0 %v1029_v28  ;;  %681 = vmatmul.mubr.bf16.gmra.mrb[16].mxu1 %v1030_v29 }
  0x59   : > { %919 = vmatprep.mubr.msk.bf16.mxu0 %vm503_vm0, %v1031_v30  ;;  %927 = vmatprep.mubr.msk.bf16.mxu1 %vm503_vm0, %v1033_v31 }
  0x60   : > { %625 = vmatmul.mubr.bf16.gmra.mrb[20].mxu0 %v1035_v32  ;;  %689 = vmatmul.mubr.bf16.gmra.mrb[20].mxu1 %v1036_v33 }
  0x61   : > { %920 = vmatprep.mubr.msk.bf16.mxu0 %vm503_vm0, %v1037_v34  ;;  %928 = vmatprep.mubr.msk.bf16.mxu1 %vm503_vm0, %v1039_v35 }
  0x68   : > { %633 = vmatmul.mubr.bf16.gmra.mrb[24].mxu0 %v1041_v36  ;;  %697 = vmatmul.mubr.bf16.gmra.mrb[24].mxu1 %v1042_v37 }
  0x69   : > { %921 = vmatprep.mubr.msk.bf16.mxu0 %vm503_vm0, %v1043_v38  ;;  %929 = vmatprep.mubr.msk.bf16.mxu1 %vm503_vm0, %v1045_v39 }
  0x70   : > { %641 = vmatmul.mubr.bf16.gmra.mrb[28].mxu0 %v1047_v40  ;;  %705 = vmatmul.mubr.bf16.gmra.mrb[28].mxu1 %v1048_v41 }
 0x10b   : > { %v586_v43 = vpop.f32.mrb[0].mxu0  ;;  %v650_v44 = vpop.f32.mrb[0].mxu1 }
 0x10c   : > { %v587_v45 = vadd.f32 %v1219_v42, %v586_v43  ;;  %v651_v46 = vadd.f32 %v1219_v42, %v650_v44  ;;  %v588_v47 = vpop.f32.mrb[1].mxu0  ;;  %v652_v48 = vpop.f32.mrb[1].mxu1 }
 0x10d   : > { %v589_v49 = vpop.f32.mrb[2].mxu0  ;;  %v653_v50 = vpop.f32.mrb[2].mxu1 }
 0x10e   : > { %713 = vst [vmem:[%s1224_s12] sm:$0xff] %v587_v45  ;;  %729 = vst [vmem:[%s1224_s12 + $0x80] sm:$0xff] %v651_v46  ;;  %v590_v51 = vadd.f32 %v1219_v42, %v589_v49  ;;  %v654_v52 = vadd.f32 %v1219_v42, %v653_v50  ;;  %v591_v53 = vpop.f32.mrb[3].mxu0  ;;  %v655_v54 = vpop.f32.mrb[3].mxu1 }
 0x110   : > { %714 = vst [vmem:[%s1224_s12 + $0x8] sm:$0xff] %v590_v51  ;;  %730 = vst [vmem:[%s1224_s12 + $0x88] sm:$0xff] %v654_v52 }
 0x113   : > { %v594_v55 = vpop.f32.mrb[4].mxu0  ;;  %v658_v56 = vpop.f32.mrb[4].mxu1 }
 0x114   : > { %v595_v57 = vadd.f32 %v1219_v42, %v594_v55  ;;  %v659_v58 = vadd.f32 %v1219_v42, %v658_v56  ;;  %v596_v59 = vpop.f32.mrb[5].mxu0  ;;  %v660_v60 = vpop.f32.mrb[5].mxu1 }
 0x115   : > { %v597_v61 = vpop.f32.mrb[6].mxu0  ;;  %v661_v62 = vpop.f32.mrb[6].mxu1 }
 0x116   : > { %715 = vst [vmem:[%s1224_s12 + $0x10] sm:$0xff] %v595_v57  ;;  %731 = vst [vmem:[%s1224_s12 + $0x90] sm:$0xff] %v659_v58  ;;  %v598_v63 = vadd.f32 %v1219_v42, %v597_v61  ;;  %v662_v0 = vadd.f32 %v1219_v42, %v661_v62  ;;  %v599_v1 = vpop.f32.mrb[7].mxu0  ;;  %v663_v2 = vpop.f32.mrb[7].mxu1 }
 0x118   : > { %716 = vst [vmem:[%s1224_s12 + $0x18] sm:$0xff] %v598_v63  ;;  %732 = vst [vmem:[%s1224_s12 + $0x98] sm:$0xff] %v662_v0 }
 0x11b   : > { %v602_v3 = vpop.f32.mrb[8].mxu0  ;;  %v666_v4 = vpop.f32.mrb[8].mxu1 }
 0x11c   : > { %v603_v5 = vadd.f32 %v1219_v42, %v602_v3  ;;  %v667_v6 = vadd.f32 %v1219_v42, %v666_v4  ;;  %v604_v7 = vpop.f32.mrb[9].mxu0  ;;  %v668_v8 = vpop.f32.mrb[9].mxu1 }
 0x11d   : > { %v605_v9 = vpop.f32.mrb[10].mxu0  ;;  %v669_v10 = vpop.f32.mrb[10].mxu1 }
 0x11e   : > { %717 = vst [vmem:[%s1224_s12 + $0x20] sm:$0xff] %v603_v5  ;;  %733 = vst [vmem:[%s1224_s12 + $0xa0] sm:$0xff] %v667_v6  ;;  %v606_v11 = vadd.f32 %v1219_v42, %v605_v9  ;;  %v670_v12 = vadd.f32 %v1219_v42, %v669_v10  ;;  %v607_v13 = vpop.f32.mrb[11].mxu0  ;;  %v671_v14 = vpop.f32.mrb[11].mxu1 }
 0x120   : > { %718 = vst [vmem:[%s1224_s12 + $0x28] sm:$0xff] %v606_v11  ;;  %734 = vst [vmem:[%s1224_s12 + $0xa8] sm:$0xff] %v670_v12 }
 0x123   : > { %v610_v15 = vpop.f32.mrb[12].mxu0  ;;  %v674_v16 = vpop.f32.mrb[12].mxu1 }
 0x124   : > { %v611_v17 = vadd.f32 %v1219_v42, %v610_v15  ;;  %v675_v18 = vadd.f32 %v1219_v42, %v674_v16  ;;  %v612_v19 = vpop.f32.mrb[13].mxu0  ;;  %v676_v20 = vpop.f32.mrb[13].mxu1 }
 0x125   : > { %v613_v21 = vpop.f32.mrb[14].mxu0  ;;  %v677_v22 = vpop.f32.mrb[14].mxu1 }
 0x126   : > { %719 = vst [vmem:[%s1224_s12 + $0x30] sm:$0xff] %v611_v17  ;;  %735 = vst [vmem:[%s1224_s12 + $0xb0] sm:$0xff] %v675_v18  ;;  %v614_v23 = vadd.f32 %v1219_v42, %v613_v21  ;;  %v678_v24 = vadd.f32 %v1219_v42, %v677_v22  ;;  %v615_v25 = vpop.f32.mrb[15].mxu0  ;;  %v679_v26 = vpop.f32.mrb[15].mxu1 }
 0x128   : > { %720 = vst [vmem:[%s1224_s12 + $0x38] sm:$0xff] %v614_v23  ;;  %736 = vst [vmem:[%s1224_s12 + $0xb8] sm:$0xff] %v678_v24 }
 0x12b   : > { %v618_v27 = vpop.f32.mrb[16].mxu0  ;;  %v682_v28 = vpop.f32.mrb[16].mxu1 }
 0x12c   : > { %v619_v29 = vadd.f32 %v1219_v42, %v618_v27  ;;  %v683_v30 = vadd.f32 %v1219_v42, %v682_v28  ;;  %v620_v31 = vpop.f32.mrb[17].mxu0  ;;  %v684_v32 = vpop.f32.mrb[17].mxu1 }
 0x12d   : > { %v621_v33 = vpop.f32.mrb[18].mxu0  ;;  %v685_v34 = vpop.f32.mrb[18].mxu1 }
 0x12e   : > { %721 = vst [vmem:[%s1224_s12 + $0x40] sm:$0xff] %v619_v29  ;;  %737 = vst [vmem:[%s1224_s12 + $0xc0] sm:$0xff] %v683_v30  ;;  %v622_v35 = vadd.f32 %v1219_v42, %v621_v33  ;;  %v686_v36 = vadd.f32 %v1219_v42, %v685_v34  ;;  %v623_v37 = vpop.f32.mrb[19].mxu0  ;;  %v687_v38 = vpop.f32.mrb[19].mxu1 }
 0x130   : > { %722 = vst [vmem:[%s1224_s12 + $0x48] sm:$0xff] %v622_v35  ;;  %738 = vst [vmem:[%s1224_s12 + $0xc8] sm:$0xff] %v686_v36 }
 0x133   : > { %v626_v39 = vpop.f32.mrb[20].mxu0  ;;  %v690_v40 = vpop.f32.mrb[20].mxu1 }
 0x134   : > { %v627_v41 = vadd.f32 %v1219_v42, %v626_v39  ;;  %v691_v43 = vadd.f32 %v1219_v42, %v690_v40  ;;  %v628_v44 = vpop.f32.mrb[21].mxu0  ;;  %v692_v45 = vpop.f32.mrb[21].mxu1 }
 0x135   : > { %v629_v46 = vpop.f32.mrb[22].mxu0  ;;  %v693_v47 = vpop.f32.mrb[22].mxu1 }
 0x136   : > { %723 = vst [vmem:[%s1224_s12 + $0x50] sm:$0xff] %v627_v41  ;;  %739 = vst [vmem:[%s1224_s12 + $0xd0] sm:$0xff] %v691_v43  ;;  %v630_v48 = vadd.f32 %v1219_v42, %v629_v46  ;;  %v694_v49 = vadd.f32 %v1219_v42, %v693_v47  ;;  %v631_v50 = vpop.f32.mrb[23].mxu0  ;;  %v695_v51 = vpop.f32.mrb[23].mxu1 }
 0x138   : > { %724 = vst [vmem:[%s1224_s12 + $0x58] sm:$0xff] %v630_v48  ;;  %740 = vst [vmem:[%s1224_s12 + $0xd8] sm:$0xff] %v694_v49 }
 0x13b   : > { %v634_v52 = vpop.f32.mrb[24].mxu0  ;;  %v698_v53 = vpop.f32.mrb[24].mxu1 }
 0x13c   : > { %v635_v54 = vadd.f32 %v1219_v42, %v634_v52  ;;  %v699_v55 = vadd.f32 %v1219_v42, %v698_v53  ;;  %v636_v56 = vpop.f32.mrb[25].mxu0  ;;  %v700_v57 = vpop.f32.mrb[25].mxu1 }
 0x13d   : > { %v637_v58 = vpop.f32.mrb[26].mxu0  ;;  %v701_v59 = vpop.f32.mrb[26].mxu1 }
 0x13e   : > { %725 = vst [vmem:[%s1224_s12 + $0x60] sm:$0xff] %v635_v54  ;;  %741 = vst [vmem:[%s1224_s12 + $0xe0] sm:$0xff] %v699_v55  ;;  %v638_v60 = vadd.f32 %v1219_v42, %v637_v58  ;;  %v702_v61 = vadd.f32 %v1219_v42, %v701_v59  ;;  %v639_v62 = vpop.f32.mrb[27].mxu0  ;;  %v703_v63 = vpop.f32.mrb[27].mxu1 }
 0x140   : > { %726 = vst [vmem:[%s1224_s12 + $0x68] sm:$0xff] %v638_v60  ;;  %742 = vst [vmem:[%s1224_s12 + $0xe8] sm:$0xff] %v702_v61 }
 0x143   : > { %v642_v0 = vpop.f32.mrb[28].mxu0  ;;  %v706_v1 = vpop.f32.mrb[28].mxu1 }
 0x144   : > { %v643_v2 = vadd.f32 %v1219_v42, %v642_v0  ;;  %v707_v3 = vadd.f32 %v1219_v42, %v706_v1  ;;  %v644_v4 = vpop.f32.mrb[29].mxu0  ;;  %v708_v5 = vpop.f32.mrb[29].mxu1 }
 0x145   : > { %v645_v6 = vpop.f32.mrb[30].mxu0  ;;  %v709_v7 = vpop.f32.mrb[30].mxu1 }
 0x146   : > { %727 = vst [vmem:[%s1224_s12 + $0x70] sm:$0xff] %v643_v2  ;;  %743 = vst [vmem:[%s1224_s12 + $0xf0] sm:$0xff] %v707_v3  ;;  %v646_v8 = vadd.f32 %v1219_v42, %v645_v6  ;;  %v710_v9 = vadd.f32 %v1219_v42, %v709_v7  ;;  %v647_v10 = vpop.f32.mrb[31].mxu0  ;;  %v711_v11 = vpop.f32.mrb[31].mxu1 }
 0x148   : > { %728 = vst [vmem:[%s1224_s12 + $0x78] sm:$0xff] %v646_v8  ;;  %744 = vst [vmem:[%s1224_s12 + $0xf8] sm:$0xff] %v710_v9 }
 0x149 PF: > { %s13_s16 = sadd.s32 1, %s1087_s16   ;;  %s1309_s12 = smov %s1079_s14 }
 0x14a   : > { %p10_p7 = scmp.ge.s32.totalorder %s13_s16, 6   ;;  %s1310_s13 = smov %s1083_s15 }
 0x14b   : > { %s1311_s14 = smov %s1314_s17  ;;  %s1312_s15 = smov %s1318_s18 }
 0x14c   :  { %12 = sbr.rel (!%p10_p7) target bundleno = 3 (0x3), region = 68 }

// kernel: squeeze.74
= control target key start
LH: loop header
LB: loop body
LE: loop exit
PB: predicated region body
PF: predicated region fallthrough
CT: control target
= control target key end

     0   :  { %vm5_vm0 = vcmask 1041409   ;;  %vm9_vm1 = vcmask 1042434   ;;  %vm13_vm2 = vcmask 1043459   ;;  %vm45_vm3 = vcmask 7168   ;;  %s3159_s11 = smov 127   ;;  %s3160_s18 = smov 125   ;;  %s5644_s0 = inlined_call_operand.vmem [shape: f32[1,512,3], index: 0, kind: input, shape index: {}]   ;;  %s5645_s1 = inlined_call_operand.vmem [shape: f32[1536], index: 1, kind: output, shape index: {}]  }
   0x1   :  { %v2429_v0 = vld [vmem:[%s5644_s0 + $0x55] sm:$0x1]   ;;  %v2448_v11 = vld [vmem:[%s5644_s0 + $0x7f] sm:$0x1]   ;;  %vm49_vm4 = vcmask 15360   ;;  %s3161_s12 = smov 126  }
   0x2   :  { %v2430_v1 = vld [vmem:[%s5644_s0 + $0xd4] sm:$0x2]   ;;  %v2449_v14 = vld [vmem:[%s5644_s0 + $0xfe] sm:$0x2]   ;;  %v2439_v19 = vld [vmem:[%s5644_s0 + $0x2a] sm:$0x1]  }
   0x3   :  { %v2431_v2 = vld [vmem:[%s5644_s0 + $0x153] sm:$0x4]   ;;  %v22_v3 = vsel %vm5_vm0, %v2430_v1, %v2429_v0  ;;  %v2450_v15 = vld [vmem:[%s5644_s0 + $0x17d] sm:$0x4]   ;;  %v97_v18 = vsel %vm5_vm0, %v2449_v14, %v2448_v11  ;;  %v2440_v20 = vld [vmem:[%s5644_s0 + $0xa9] sm:$0x2]  }
   0x4   :  { %v2432_v4 = vld [vmem:[%s5644_s0 + $0x1d2] sm:$0x8]   ;;  %v26_v7 = vsel %vm9_vm1, %v2431_v2, %v22_v3  ;;  %v2451_v16 = vld [vmem:[%s5644_s0 + $0x1fc] sm:$0x8]   ;;  %v101_v22 = vsel %vm9_vm1, %v2450_v15, %v97_v18  ;;  %v60_v23 = vsel %vm5_vm0, %v2440_v20, %v2439_v19  ;;  %v2441_v24 = vld [vmem:[%s5644_s0 + $0x128] sm:$0x4]  }
   0x5   :  { %v2433_v5 = vld [vmem:[%s5644_s0 + $0x55] sm:$0x1]   ;;  %v30_v12 = vsel %vm13_vm2, %v2432_v4, %v26_v7  ;;  %v2442_v25 = vld [vmem:[%s5644_s0 + $0x1a7] sm:$0x8]   ;;  %v105_v27 = vsel %vm13_vm2, %v2451_v16, %v101_v22  ;;  %v64_v28 = vsel %vm9_vm1, %v2441_v24, %v60_v23  ;;  %v2453_v34 = vld [vmem:[%s5644_s0 + $0x54] sm:$0x1]  }
   0x6   :  { %v2434_v6 = vld [vmem:[%s5644_s0 + $0xd4] sm:$0x2]   ;;  %v2443_v26 = vld [vmem:[%s5644_s0 + $0x2a] sm:$0x1]   ;;  %106 = vrot.lane.b32.xlu1 %v105_v27, %s3160_s18  ;;  %v68_v32 = vsel %vm13_vm2, %v2442_v25, %v64_v28  ;;  %v2454_v35 = vld [vmem:[%s5644_s0 + $0xd3] sm:$0x2]  }
   0x7   :  { %v36_v8 = vsel %vm5_vm0, %v2434_v6, %v2433_v5  ;;  %v2435_v9 = vld [vmem:[%s5644_s0 + $0x153] sm:$0x4]   ;;  %v2444_v29 = vld [vmem:[%s5644_s0 + $0xa9] sm:$0x2]   ;;  %v2455_v36 = vld [vmem:[%s5644_s0 + $0x152] sm:$0x4]   ;;  %v116_v38 = vsel %vm5_vm0, %v2454_v35, %v2453_v34 }
   0x8   :  { %v2436_v10 = vld [vmem:[%s5644_s0 + $0x1d2] sm:$0x8]   ;;  %v40_v13 = vsel %vm9_vm1, %v2435_v9, %v36_v8  ;;  %v2445_v30 = vld [vmem:[%s5644_s0 + $0x128] sm:$0x4]   ;;  %v74_v33 = vsel %vm5_vm0, %v2444_v29, %v2443_v26  ;;  %v2456_v39 = vld [vmem:[%s5644_s0 + $0x1d1] sm:$0x8]   ;;  %v120_v42 = vsel %vm9_vm1, %v2455_v36, %v116_v38 }
   0x9   :  { %v44_v17 = vsel %vm13_vm2, %v2436_v10, %v40_v13  ;;  %v2446_v31 = vld [vmem:[%s5644_s0 + $0x1a7] sm:$0x8]   ;;  %v78_v37 = vsel %vm9_vm1, %v2445_v30, %v74_v33  ;;  %v2458_v40 = vld [vmem:[%s5644_s0 + $0x29] sm:$0x1]   ;;  %v124_v47 = vsel %vm13_vm2, %v2456_v39, %v120_v42  ;;  %v2462_v49 = vld [vmem:[%s5644_s0 + $0x7e] sm:$0x1]  }
   0xa   :  { %v46_v21 = vsel %vm45_vm3, %v44_v17, %v30_v12  ;;  %v82_v41 = vsel %vm13_vm2, %v2446_v31, %v78_v37  ;;  %v2459_v43 = vld [vmem:[%s5644_s0 + $0xa8] sm:$0x2]   ;;  %v2463_v50 = vld [vmem:[%s5644_s0 + $0xfd] sm:$0x2]   ;;  %s3162_s13 = smov 124   ;;  %s3163_s5 = smov 123  }
   0xb   :  { %47 = vrot.lane.b32.xlu0 %v46_v21, %s3159_s11  ;;  %v2460_v44 = vld [vmem:[%s5644_s0 + $0x127] sm:$0x4]   ;;  %v84_v46 = vsel %vm49_vm4, %v82_v41, %v68_v32  ;;  %v135_v48 = vsel %vm5_vm0, %v2459_v43, %v2458_v40  ;;  %v2464_v51 = vld [vmem:[%s5644_s0 + $0x17c] sm:$0x4]   ;;  %125 = vrot.lane.b32.xlu1 %v124_v47, %s3162_s13  ;;  %v153_v53 = vsel %vm5_vm0, %v2463_v50, %v2462_v49  ;;  %s3164_s6 = smov 122   ;;  %s3165_s27 = smov 121  }
   0xc   :  { %v2461_v45 = vld [vmem:[%s5644_s0 + $0x1a6] sm:$0x8]   ;;  %v139_v52 = vsel %vm9_vm1, %v2460_v44, %v135_v48  ;;  %v2465_v54 = vld [vmem:[%s5644_s0 + $0x1fb] sm:$0x8]   ;;  %v2467_v55 = vld [vmem:[%s5644_s0 + $0x53] sm:$0x1]   ;;  %v157_v57 = vsel %vm9_vm1, %v2464_v51, %v153_v53 }
   0xd   :  { %v143_v56 = vsel %vm13_vm2, %v2461_v45, %v139_v52  ;;  %v2468_v58 = vld [vmem:[%s5644_s0 + $0xd2] sm:$0x2]   ;;  %v161_v61 = vsel %vm13_vm2, %v2465_v54, %v157_v57  ;;  %v2472_v63 = vld [vmem:[%s5644_s0 + $0x28] sm:$0x1]   ;;  %v2476_v5 = vld [vmem:[%s5644_s0 + $0x7d] sm:$0x1]  }
   0xe   :  { %v2469_v59 = vld [vmem:[%s5644_s0 + $0x151] sm:$0x4]   ;;  %v172_v62 = vsel %vm5_vm0, %v2468_v58, %v2467_v55  ;;  %v2473_v0 = vld [vmem:[%s5644_s0 + $0xa7] sm:$0x2]   ;;  %v2477_v7 = vld [vmem:[%s5644_s0 + $0xfc] sm:$0x2]  }
   0xf   :  { %85 = vrot.lane.b32.xlu0 %v84_v46, %s3161_s12  ;;  %v2470_v60 = vld [vmem:[%s5644_s0 + $0x1d0] sm:$0x8]   ;;  %v2474_v1 = vld [vmem:[%s5644_s0 + $0x126] sm:$0x4]   ;;  %v176_v2 = vsel %vm9_vm1, %v2469_v59, %v172_v62  ;;  %v191_v3 = vsel %vm5_vm0, %v2473_v0, %v2472_v63  ;;  %162 = vrot.lane.b32.xlu1 %v161_v61, %s3164_s6  ;;  %v209_v11 = vsel %vm5_vm0, %v2477_v7, %v2476_v5  ;;  %s3166_s28 = smov 120   ;;  %s3167_s22 = smov 119  }
  0x10   :  { %v2475_v4 = vld [vmem:[%s5644_s0 + $0x1a5] sm:$0x8]   ;;  %v195_v6 = vsel %vm9_vm1, %v2474_v1, %v191_v3  ;;  %v2478_v8 = vld [vmem:[%s5644_s0 + $0x17b] sm:$0x4]   ;;  %v180_v9 = vsel %vm13_vm2, %v2470_v60, %v176_v2  ;;  %v2481_v13 = vld [vmem:[%s5644_s0 + $0x52] sm:$0x1]  }
  0x11   :  { %v199_v10 = vsel %vm13_vm2, %v2475_v4, %v195_v6  ;;  %v2479_v12 = vld [vmem:[%s5644_s0 + $0x1fa] sm:$0x8]   ;;  %v2482_v14 = vld [vmem:[%s5644_s0 + $0xd1] sm:$0x2]   ;;  %v213_v15 = vsel %vm9_vm1, %v2478_v8, %v209_v11  ;;  %v2486_v19 = vld [vmem:[%s5644_s0 + $0x27] sm:$0x1]  }
  0x12   :  { %v228_v16 = vsel %vm5_vm0, %v2482_v14, %v2481_v13  ;;  %v2483_v17 = vld [vmem:[%s5644_s0 + $0x150] sm:$0x4]   ;;  %v2487_v21 = vld [vmem:[%s5644_s0 + $0xa6] sm:$0x2]   ;;  %v2490_v24 = vld [vmem:[%s5644_s0 + $0x7c] sm:$0x1]   ;;  %v217_v26 = vsel %vm13_vm2, %v2479_v12, %v213_v15 }
  0x13   :  { %144 = vrot.lane.b32.xlu0 %v143_v56, %s3163_s5  ;;  %v2484_v18 = vld [vmem:[%s5644_s0 + $0x1cf] sm:$0x8]   ;;  %v232_v20 = vsel %vm9_vm1, %v2483_v17, %v228_v16  ;;  %v2488_v22 = vld [vmem:[%s5644_s0 + $0x125] sm:$0x4]   ;;  %200 = vrot.lane.b32.xlu1 %v199_v10, %s3166_s28  ;;  %v247_v23 = vsel %vm5_vm0, %v2487_v21, %v2486_v19  ;;  %s3168_s23 = smov 118   ;;  %s3169_s11 = smov 117  }
  0x14   :  { %v2491_v25 = vld [vmem:[%s5644_s0 + $0xfb] sm:$0x2]   ;;  %v236_v27 = vsel %vm13_vm2, %v2484_v18, %v232_v20  ;;  %v2489_v28 = vld [vmem:[%s5644_s0 + $0x1a4] sm:$0x8]   ;;  %v2495_v31 = vld [vmem:[%s5644_s0 + $0x51] sm:$0x1]   ;;  %v251_v32 = vsel %vm9_vm1, %v2488_v22, %v247_v23 }
  0x15   :  { %v265_v29 = vsel %vm5_vm0, %v2491_v25, %v2490_v24  ;;  %v2492_v30 = vld [vmem:[%s5644_s0 + $0x17a] sm:$0x4]   ;;  %v2496_v35 = vld [vmem:[%s5644_s0 + $0xd0] sm:$0x2]   ;;  %v2500_v38 = vld [vmem:[%s5644_s0 + $0x26] sm:$0x1]   ;;  %v255_v43 = vsel %vm13_vm2, %v2489_v28, %v251_v32 }
  0x16   :  { %v269_v33 = vsel %vm9_vm1, %v2492_v30, %v265_v29  ;;  %v2493_v34 = vld [vmem:[%s5644_s0 + $0x1f9] sm:$0x8]   ;;  %v2497_v36 = vld [vmem:[%s5644_s0 + $0x14f] sm:$0x4]   ;;  %v284_v37 = vsel %vm5_vm0, %v2496_v35, %v2495_v31  ;;  %v2501_v39 = vld [vmem:[%s5644_s0 + $0xa5] sm:$0x2]  }
  0x17   :  { %181 = vrot.lane.b32.xlu0 %v180_v9, %s3165_s27  ;;  %v2502_v40 = vld [vmem:[%s5644_s0 + $0x124] sm:$0x4]   ;;  %237 = vrot.lane.b32.xlu1 %v236_v27, %s3168_s23  ;;  %v303_v41 = vsel %vm5_vm0, %v2501_v39, %v2500_v38  ;;  %v2504_v42 = vld [vmem:[%s5644_s0 + $0x7b] sm:$0x1]   ;;  %v273_v44 = vsel %vm13_vm2, %v2493_v34, %v269_v33  ;;  %v288_v47 = vsel %vm9_vm1, %v2497_v36, %v284_v37  ;;  %s3170_s12 = smov 116   ;;  %s3171_s4 = smov 115  }
  0x18   :  { %v2498_v45 = vld [vmem:[%s5644_s0 + $0x1ce] sm:$0x8]   ;;  %v2505_v46 = vld [vmem:[%s5644_s0 + $0xfa] sm:$0x2]   ;;  %v307_v48 = vsel %vm9_vm1, %v2502_v40, %v303_v41  ;;  %v2503_v49 = vld [vmem:[%s5644_s0 + $0x1a3] sm:$0x8]  }
  0x19   :  { %v2509_v50 = vld [vmem:[%s5644_s0 + $0x50] sm:$0x1]   ;;  %v321_v52 = vsel %vm5_vm0, %v2505_v46, %v2504_v42  ;;  %v2506_v53 = vld [vmem:[%s5644_s0 + $0x179] sm:$0x4]   ;;  %v2514_v56 = vld [vmem:[%s5644_s0 + $0x25] sm:$0x1]   ;;  %v292_v58 = vsel %vm13_vm2, %v2498_v45, %v288_v47  ;;  %v311_v59 = vsel %vm13_vm2, %v2503_v49, %v307_v48 }
  0x1a   :  { %v2510_v51 = vld [vmem:[%s5644_s0 + $0xcf] sm:$0x2]   ;;  %v2515_v57 = vld [vmem:[%s5644_s0 + $0xa4] sm:$0x2]   ;;  %v2518_v60 = vld [vmem:[%s5644_s0 + $0x7a] sm:$0x1]   ;;  %v325_v62 = vsel %vm9_vm1, %v2506_v53, %v321_v52 }
  0x1b   :  { %218 = vrot.lane.b32.xlu0 %v217_v26, %s3167_s22  ;;  %v340_v54 = vsel %vm5_vm0, %v2510_v51, %v2509_v50  ;;  %v2511_v55 = vld [vmem:[%s5644_s0 + $0x14e] sm:$0x4]   ;;  %274 = vrot.lane.b32.xlu1 %v273_v44, %s3170_s12  ;;  %v2519_v61 = vld [vmem:[%s5644_s0 + $0xf9] sm:$0x2]   ;;  %v359_v3 = vsel %vm5_vm0, %v2515_v57, %v2514_v56  ;;  %s3172_s5 = smov 114   ;;  %s3173_s22 = smov 113  }
  0x1c   :  { %v2507_v63 = vld [vmem:[%s5644_s0 + $0x1f8] sm:$0x8]   ;;  %v344_v0 = vsel %vm9_vm1, %v2511_v55, %v340_v54  ;;  %v2512_v1 = vld [vmem:[%s5644_s0 + $0x1cd] sm:$0x8]   ;;  %v2516_v2 = vld [vmem:[%s5644_s0 + $0x123] sm:$0x4]   ;;  %v377_v4 = vsel %vm5_vm0, %v2519_v61, %v2518_v60 }
  0x1d   :  { %v2520_v5 = vld [vmem:[%s5644_s0 + $0x178] sm:$0x4]   ;;  %v2523_v6 = vld [vmem:[%s5644_s0 + $0x4f] sm:$0x1]   ;;  %v2528_v8 = vld [vmem:[%s5644_s0 + $0x24] sm:$0x1]   ;;  %v329_v10 = vsel %vm13_vm2, %v2507_v63, %v325_v62  ;;  %v348_v11 = vsel %vm13_vm2, %v2512_v1, %v344_v0  ;;  %v363_v12 = vsel %vm9_vm1, %v2516_v2, %v359_v3 }
  0x1e   :  { %v2524_v7 = vld [vmem:[%s5644_s0 + $0xce] sm:$0x2]   ;;  %v2529_v9 = vld [vmem:[%s5644_s0 + $0xa3] sm:$0x2]   ;;  %v2517_v13 = vld [vmem:[%s5644_s0 + $0x1a2] sm:$0x8]   ;;  %v381_v14 = vsel %vm9_vm1, %v2520_v5, %v377_v4 }
  0x1f   :  { %256 = vrot.lane.b32.xlu0 %v255_v43, %s3169_s11  ;;  %312 = vrot.lane.b32.xlu1 %v311_v59, %s3172_s5  ;;  %v2521_v15 = vld [vmem:[%s5644_s0 + $0x1f7] sm:$0x8]   ;;  %v2525_v16 = vld [vmem:[%s5644_s0 + $0x14d] sm:$0x4]   ;;  %v396_v17 = vsel %vm5_vm0, %v2524_v7, %v2523_v6  ;;  %v415_v18 = vsel %vm5_vm0, %v2529_v9, %v2528_v8  ;;  %s3174_s23 = smov 112   ;;  %v367_v24 = vsel %vm13_vm2, %v2517_v13, %v363_v12  ;;  %s3175_s11 = smov 111  }
  0x20   :  { %v2530_v19 = vld [vmem:[%s5644_s0 + $0x122] sm:$0x4]   ;;  %v2532_v20 = vld [vmem:[%s5644_s0 + $0x79] sm:$0x1]   ;;  %v2537_v22 = vld [vmem:[%s5644_s0 + $0x4e] sm:$0x1]   ;;  %v385_v25 = vsel %vm13_vm2, %v2521_v15, %v381_v14  ;;  %v400_v26 = vsel %vm9_vm1, %v2525_v16, %v396_v17 }
  0x21   :  { %v2533_v21 = vld [vmem:[%s5644_s0 + $0xf8] sm:$0x2]   ;;  %v2538_v23 = vld [vmem:[%s5644_s0 + $0xcd] sm:$0x2]   ;;  %v2526_v27 = vld [vmem:[%s5644_s0 + $0x1cc] sm:$0x8]   ;;  %v419_v28 = vsel %vm9_vm1, %v2530_v19, %v415_v18 }
  0x22   :  { %v2531_v29 = vld [vmem:[%s5644_s0 + $0x1a1] sm:$0x8]   ;;  %v2534_v30 = vld [vmem:[%s5644_s0 + $0x177] sm:$0x4]   ;;  %v433_v31 = vsel %vm5_vm0, %v2533_v21, %v2532_v20  ;;  %v452_v32 = vsel %vm5_vm0, %v2538_v23, %v2537_v22  ;;  %v2539_v33 = vld [vmem:[%s5644_s0 + $0x14c] sm:$0x4]   ;;  %v404_v38 = vsel %vm13_vm2, %v2526_v27, %v400_v26 }
  0x23   :  { %293 = vrot.lane.b32.xlu0 %v292_v58, %s3171_s4  ;;  %349 = vrot.lane.b32.xlu1 %v348_v11, %s3174_s23  ;;  %v2542_v34 = vld [vmem:[%s5644_s0 + $0x23] sm:$0x1]   ;;  %s3176_s12 = smov 110   ;;  %v2546_v36 = vld [vmem:[%s5644_s0 + $0x78] sm:$0x1]   ;;  %v423_v39 = vsel %vm13_vm2, %v2531_v29, %v419_v28  ;;  %v437_v40 = vsel %vm9_vm1, %v2534_v30, %v433_v31  ;;  %v456_v42 = vsel %vm9_vm1, %v2539_v33, %v452_v32  ;;  %s3177_s29 = smov 109  }
  0x24   :  { %v2543_v35 = vld [vmem:[%s5644_s0 + $0xa2] sm:$0x2]   ;;  %v2547_v37 = vld [vmem:[%s5644_s0 + $0xf7] sm:$0x2]   ;;  %v2535_v41 = vld [vmem:[%s5644_s0 + $0x1f6] sm:$0x8]  }
  0x25   :  { %v2540_v43 = vld [vmem:[%s5644_s0 + $0x1cb] sm:$0x8]   ;;  %v2544_v44 = vld [vmem:[%s5644_s0 + $0x121] sm:$0x4]   ;;  %v471_v45 = vsel %vm5_vm0, %v2543_v35, %v2542_v34  ;;  %v489_v46 = vsel %vm5_vm0, %v2547_v37, %v2546_v36  ;;  %v2548_v47 = vld [vmem:[%s5644_s0 + $0x176] sm:$0x4]   ;;  %v441_v52 = vsel %vm13_vm2, %v2535_v41, %v437_v40 }
  0x26   :  { %v2551_v48 = vld [vmem:[%s5644_s0 + $0x4d] sm:$0x1]   ;;  %s3178_s30 = smov 108   ;;  %v2556_v50 = vld [vmem:[%s5644_s0 + $0x22] sm:$0x1]   ;;  %v460_v53 = vsel %vm13_vm2, %v2540_v43, %v456_v42  ;;  %v475_v54 = vsel %vm9_vm1, %v2544_v44, %v471_v45  ;;  %v493_v56 = vsel %vm9_vm1, %v2548_v47, %v489_v46  ;;  %s3179_s18 = smov 107  }
  0x27   :  { %330 = vrot.lane.b32.xlu0 %v329_v10, %s3173_s22  ;;  %386 = vrot.lane.b32.xlu1 %v385_v25, %s3176_s12  ;;  %v2552_v49 = vld [vmem:[%s5644_s0 + $0xcc] sm:$0x2]   ;;  %v2557_v51 = vld [vmem:[%s5644_s0 + $0xa1] sm:$0x2]   ;;  %s3180_s19 = smov 106   ;;  %s3181_s7 = smov 105  }
  0x28   :  { %v2545_v55 = vld [vmem:[%s5644_s0 + $0x1a0] sm:$0x8]   ;;  %v2549_v57 = vld [vmem:[%s5644_s0 + $0x1f5] sm:$0x8]   ;;  %v2553_v58 = vld [vmem:[%s5644_s0 + $0x14b] sm:$0x4]   ;;  %v508_v59 = vsel %vm5_vm0, %v2552_v49, %v2551_v48  ;;  %v527_v60 = vsel %vm5_vm0, %v2557_v51, %v2556_v50 }
  0x29   :  { %v2558_v61 = vld [vmem:[%s5644_s0 + $0x120] sm:$0x4]   ;;  %v2560_v62 = vld [vmem:[%s5644_s0 + $0x77] sm:$0x1]   ;;  %v2565_v0 = vld [vmem:[%s5644_s0 + $0x4c] sm:$0x1]   ;;  %v479_v2 = vsel %vm13_vm2, %v2545_v55, %v475_v54  ;;  %v497_v3 = vsel %vm13_vm2, %v2549_v57, %v493_v56  ;;  %v512_v4 = vsel %vm9_vm1, %v2553_v58, %v508_v59 }
  0x2a   :  { %v2561_v63 = vld [vmem:[%s5644_s0 + $0xf6] sm:$0x2]   ;;  %v2566_v1 = vld [vmem:[%s5644_s0 + $0xcb] sm:$0x2]   ;;  %v2554_v5 = vld [vmem:[%s5644_s0 + $0x1ca] sm:$0x8]   ;;  %v531_v6 = vsel %vm9_vm1, %v2558_v61, %v527_v60 }
  0x2b   :  { %368 = vrot.lane.b32.xlu0 %v367_v24, %s3175_s11  ;;  %424 = vrot.lane.b32.xlu1 %v423_v39, %s3178_s30  ;;  %v2559_v7 = vld [vmem:[%s5644_s0 + $0x19f] sm:$0x8]   ;;  %v2562_v8 = vld [vmem:[%s5644_s0 + $0x175] sm:$0x4]   ;;  %v545_v9 = vsel %vm5_vm0, %v2561_v63, %v2560_v62  ;;  %v564_v10 = vsel %vm5_vm0, %v2566_v1, %v2565_v0  ;;  %s3182_s8 = smov 104   ;;  %v516_v16 = vsel %vm13_vm2, %v2554_v5, %v512_v4  ;;  %s3183_s25 = smov 103  }
  0x2c   :  { %v2567_v11 = vld [vmem:[%s5644_s0 + $0x14a] sm:$0x4]   ;;  %v2570_v12 = vld [vmem:[%s5644_s0 + $0x21] sm:$0x1]   ;;  %v2574_v14 = vld [vmem:[%s5644_s0 + $0x76] sm:$0x1]   ;;  %v535_v17 = vsel %vm13_vm2, %v2559_v7, %v531_v6  ;;  %v549_v18 = vsel %vm9_vm1, %v2562_v8, %v545_v9 }
  0x2d   :  { %v2571_v13 = vld [vmem:[%s5644_s0 + $0xa0] sm:$0x2]   ;;  %v2575_v15 = vld [vmem:[%s5644_s0 + $0xf5] sm:$0x2]   ;;  %v2563_v19 = vld [vmem:[%s5644_s0 + $0x1f4] sm:$0x8]   ;;  %v568_v20 = vsel %vm9_vm1, %v2567_v11, %v564_v10 }
  0x2e   :  { %v2568_v21 = vld [vmem:[%s5644_s0 + $0x1c9] sm:$0x8]   ;;  %v2572_v22 = vld [vmem:[%s5644_s0 + $0x11f] sm:$0x4]   ;;  %v583_v23 = vsel %vm5_vm0, %v2571_v13, %v2570_v12  ;;  %v601_v24 = vsel %vm5_vm0, %v2575_v15, %v2574_v14  ;;  %v2576_v25 = vld [vmem:[%s5644_s0 + $0x174] sm:$0x4]   ;;  %v553_v30 = vsel %vm13_vm2, %v2563_v19, %v549_v18 }
  0x2f   :  { %405 = vrot.lane.b32.xlu0 %v404_v38, %s3177_s29  ;;  %461 = vrot.lane.b32.xlu1 %v460_v53, %s3180_s19  ;;  %v2579_v26 = vld [vmem:[%s5644_s0 + $0x4b] sm:$0x1]   ;;  %s3184_s26 = smov 102   ;;  %v2584_v28 = vld [vmem:[%s5644_s0 + $0x20] sm:$0x1]   ;;  %v572_v31 = vsel %vm13_vm2, %v2568_v21, %v568_v20  ;;  %v587_v32 = vsel %vm9_vm1, %v2572_v22, %v583_v23  ;;  %v605_v34 = vsel %vm9_vm1, %v2576_v25, %v601_v24  ;;  %s3185_s14 = smov 101  }
  0x30   :  { %v2580_v27 = vld [vmem:[%s5644_s0 + $0xca] sm:$0x2]   ;;  %v2585_v29 = vld [vmem:[%s5644_s0 + $0x9f] sm:$0x2]   ;;  %v2573_v33 = vld [vmem:[%s5644_s0 + $0x19e] sm:$0x8]  }
  0x31   :  { %v2577_v35 = vld [vmem:[%s5644_s0 + $0x1f3] sm:$0x8]   ;;  %v2581_v36 = vld [vmem:[%s5644_s0 + $0x149] sm:$0x4]   ;;  %v620_v37 = vsel %vm5_vm0, %v2580_v27, %v2579_v26  ;;  %v639_v38 = vsel %vm5_vm0, %v2585_v29, %v2584_v28  ;;  %v2586_v39 = vld [vmem:[%s5644_s0 + $0x11e] sm:$0x4]   ;;  %v591_v44 = vsel %vm13_vm2, %v2573_v33, %v587_v32 }
  0x32   :  { %v2588_v40 = vld [vmem:[%s5644_s0 + $0x75] sm:$0x1]   ;;  %s3186_s15 = smov 100   ;;  %v2593_v42 = vld [vmem:[%s5644_s0 + $0x4a] sm:$0x1]   ;;  %v609_v45 = vsel %vm13_vm2, %v2577_v35, %v605_v34  ;;  %v624_v46 = vsel %vm9_vm1, %v2581_v36, %v620_v37  ;;  %v643_v48 = vsel %vm9_vm1, %v2586_v39, %v639_v38  ;;  %s3187_s3 = smov 99  }
  0x33   :  { %442 = vrot.lane.b32.xlu0 %v441_v52, %s3179_s18  ;;  %498 = vrot.lane.b32.xlu1 %v497_v3, %s3182_s8  ;;  %v2589_v41 = vld [vmem:[%s5644_s0 + $0xf4] sm:$0x2]   ;;  %v2594_v43 = vld [vmem:[%s5644_s0 + $0xc9] sm:$0x2]   ;;  %s3188_s4 = smov 98   ;;  %s3189_s21 = smov 97  }
  0x34   :  { %v2582_v47 = vld [vmem:[%s5644_s0 + $0x1c8] sm:$0x8]   ;;  %v2587_v49 = vld [vmem:[%s5644_s0 + $0x19d] sm:$0x8]   ;;  %v2590_v50 = vld [vmem:[%s5644_s0 + $0x173] sm:$0x4]   ;;  %v657_v51 = vsel %vm5_vm0, %v2589_v41, %v2588_v40  ;;  %v676_v52 = vsel %vm5_vm0, %v2594_v43, %v2593_v42 }
  0x35   :  { %v2595_v53 = vld [vmem:[%s5644_s0 + $0x148] sm:$0x4]   ;;  %v2598_v54 = vld [vmem:[%s5644_s0 + $0x1f] sm:$0x1]   ;;  %v2602_v56 = vld [vmem:[%s5644_s0 + $0x74] sm:$0x1]   ;;  %v628_v58 = vsel %vm13_vm2, %v2582_v47, %v624_v46  ;;  %v647_v59 = vsel %vm13_vm2, %v2587_v49, %v643_v48  ;;  %v661_v60 = vsel %vm9_vm1, %v2590_v50, %v657_v51 }
  0x36   :  { %v2599_v55 = vld [vmem:[%s5644_s0 + $0x9e] sm:$0x2]   ;;  %v2603_v57 = vld [vmem:[%s5644_s0 + $0xf3] sm:$0x2]   ;;  %v2591_v61 = vld [vmem:[%s5644_s0 + $0x1f2] sm:$0x8]   ;;  %v680_v62 = vsel %vm9_vm1, %v2595_v53, %v676_v52 }
  0x37   :  { %480 = vrot.lane.b32.xlu0 %v479_v2, %s3181_s7  ;;  %536 = vrot.lane.b32.xlu1 %v535_v17, %s3184_s26  ;;  %v2596_v63 = vld [vmem:[%s5644_s0 + $0x1c7] sm:$0x8]   ;;  %v2600_v0 = vld [vmem:[%s5644_s0 + $0x11d] sm:$0x4]   ;;  %v695_v1 = vsel %vm5_vm0, %v2599_v55, %v2598_v54  ;;  %v713_v2 = vsel %vm5_vm0, %v2603_v57, %v2602_v56  ;;  %s3190_s22 = smov 96   ;;  %v665_v8 = vsel %vm13_vm2, %v2591_v61, %v661_v60  ;;  %s3191_s10 = smov 95  }
  0x38   :  { %v2604_v3 = vld [vmem:[%s5644_s0 + $0x172] sm:$0x4]   ;;  %v2607_v4 = vld [vmem:[%s5644_s0 + $0x49] sm:$0x1]   ;;  %v2612_v6 = vld [vmem:[%s5644_s0 + $0x1e] sm:$0x1]   ;;  %v684_v9 = vsel %vm13_vm2, %v2596_v63, %v680_v62  ;;  %v699_v10 = vsel %vm9_vm1, %v2600_v0, %v695_v1 }
  0x39   :  { %v2608_v5 = vld [vmem:[%s5644_s0 + $0xc8] sm:$0x2]   ;;  %v2613_v7 = vld [vmem:[%s5644_s0 + $0x9d] sm:$0x2]   ;;  %v2601_v11 = vld [vmem:[%s5644_s0 + $0x19c] sm:$0x8]   ;;  %v717_v12 = vsel %vm9_vm1, %v2604_v3, %v713_v2 }
  0x3a   :  { %v2605_v13 = vld [vmem:[%s5644_s0 + $0x1f1] sm:$0x8]   ;;  %v2609_v14 = vld [vmem:[%s5644_s0 + $0x147] sm:$0x4]   ;;  %v732_v15 = vsel %vm5_vm0, %v2608_v5, %v2607_v4  ;;  %v2614_v17 = vld [vmem:[%s5644_s0 + $0x11c] sm:$0x4]   ;;  %v703_v22 = vsel %vm13_vm2, %v2601_v11, %v699_v10 }
  0x3b   :  { %517 = vrot.lane.b32.xlu0 %v516_v16, %s3183_s25  ;;  %573 = vrot.lane.b32.xlu1 %v572_v31, %s3186_s15  ;;  %v751_v16 = vsel %vm5_vm0, %v2613_v7, %v2612_v6  ;;  %v2616_v18 = vld [vmem:[%s5644_s0 + $0x73] sm:$0x1]   ;;  %s3192_s11 = smov 94   ;;  %v2621_v20 = vld [vmem:[%s5644_s0 + $0x48] sm:$0x1]   ;;  %v721_v23 = vsel %vm13_vm2, %v2605_v13, %v717_v12  ;;  %v736_v24 = vsel %vm9_vm1, %v2609_v14, %v732_v15  ;;  %s3193_s28 = smov 93  }
  0x3c   :  { %v2617_v19 = vld [vmem:[%s5644_s0 + $0xf2] sm:$0x2]   ;;  %v2622_v21 = vld [vmem:[%s5644_s0 + $0xc7] sm:$0x2]   ;;  %v2610_v25 = vld [vmem:[%s5644_s0 + $0x1c6] sm:$0x8]   ;;  %v755_v26 = vsel %vm9_vm1, %v2614_v17, %v751_v16 }
  0x3d   :  { %v2615_v27 = vld [vmem:[%s5644_s0 + $0x19b] sm:$0x8]   ;;  %v2618_v28 = vld [vmem:[%s5644_s0 + $0x171] sm:$0x4]   ;;  %v769_v29 = vsel %vm5_vm0, %v2617_v19, %v2616_v18  ;;  %v2623_v31 = vld [vmem:[%s5644_s0 + $0x146] sm:$0x4]   ;;  %v740_v36 = vsel %vm13_vm2, %v2610_v25, %v736_v24 }
  0x3e   :  { %v2626_v32 = vld [vmem:[%s5644_s0 + $0x1d] sm:$0x1]   ;;  %s3194_s29 = smov 92   ;;  %v2630_v34 = vld [vmem:[%s5644_s0 + $0x72] sm:$0x1]   ;;  %v759_v37 = vsel %vm13_vm2, %v2615_v27, %v755_v26  ;;  %v773_v38 = vsel %vm9_vm1, %v2618_v28, %v769_v29  ;;  %s3195_s17 = smov 91  }
  0x3f   :  { %554 = vrot.lane.b32.xlu0 %v553_v30, %s3185_s14  ;;  %610 = vrot.lane.b32.xlu1 %v609_v45, %s3188_s4  ;;  %v788_v30 = vsel %vm5_vm0, %v2622_v21, %v2621_v20  ;;  %v2627_v33 = vld [vmem:[%s5644_s0 + $0x9c] sm:$0x2]   ;;  %v2631_v35 = vld [vmem:[%s5644_s0 + $0xf1] sm:$0x2]   ;;  %s3196_s18 = smov 90   ;;  %s3197_s6 = smov 89  }
  0x40   :  { %v2619_v39 = vld [vmem:[%s5644_s0 + $0x1f0] sm:$0x8]   ;;  %v792_v40 = vsel %vm9_vm1, %v2623_v31, %v788_v30  ;;  %v2624_v41 = vld [vmem:[%s5644_s0 + $0x1c5] sm:$0x8]   ;;  %v2628_v42 = vld [vmem:[%s5644_s0 + $0x11b] sm:$0x4]   ;;  %v807_v43 = vsel %vm5_vm0, %v2627_v33, %v2626_v32 }
  0x41   :  { %v2632_v45 = vld [vmem:[%s5644_s0 + $0x170] sm:$0x4]   ;;  %v2635_v46 = vld [vmem:[%s5644_s0 + $0x47] sm:$0x1]   ;;  %v2640_v48 = vld [vmem:[%s5644_s0 + $0x1c] sm:$0x1]   ;;  %v777_v50 = vsel %vm13_vm2, %v2619_v39, %v773_v38  ;;  %v796_v51 = vsel %vm13_vm2, %v2624_v41, %v792_v40  ;;  %v811_v52 = vsel %vm9_vm1, %v2628_v42, %v807_v43 }
  0x42   :  { %v2636_v47 = vld [vmem:[%s5644_s0 + $0xc6] sm:$0x2]   ;;  %v2641_v49 = vld [vmem:[%s5644_s0 + $0x9b] sm:$0x2]   ;;  %v2629_v53 = vld [vmem:[%s5644_s0 + $0x19a] sm:$0x8]  }
  0x43   :  { %592 = vrot.lane.b32.xlu0 %v591_v44, %s3187_s3  ;;  %648 = vrot.lane.b32.xlu1 %v647_v59, %s3190_s22  ;;  %v825_v44 = vsel %vm5_vm0, %v2631_v35, %v2630_v34  ;;  %v2633_v55 = vld [vmem:[%s5644_s0 + $0x1ef] sm:$0x8]   ;;  %v2637_v56 = vld [vmem:[%s5644_s0 + $0x145] sm:$0x4]   ;;  %v844_v57 = vsel %vm5_vm0, %v2636_v47, %v2635_v46  ;;  %s3198_s7 = smov 88   ;;  %v815_v0 = vsel %vm13_vm2, %v2629_v53, %v811_v52  ;;  %s3199_s24 = smov 87  }
  0x44   :  { %v829_v54 = vsel %vm9_vm1, %v2632_v45, %v825_v44  ;;  %v2642_v59 = vld [vmem:[%s5644_s0 + $0x11a] sm:$0x4]   ;;  %v2644_v60 = vld [vmem:[%s5644_s0 + $0x71] sm:$0x1]   ;;  %v2649_v62 = vld [vmem:[%s5644_s0 + $0x46] sm:$0x1]   ;;  %v848_v2 = vsel %vm9_vm1, %v2637_v56, %v844_v57 }
  0x45   :  { %v2645_v61 = vld [vmem:[%s5644_s0 + $0xf0] sm:$0x2]   ;;  %v2650_v63 = vld [vmem:[%s5644_s0 + $0xc5] sm:$0x2]   ;;  %v833_v1 = vsel %vm13_vm2, %v2633_v55, %v829_v54  ;;  %v2638_v3 = vld [vmem:[%s5644_s0 + $0x1c4] sm:$0x8]  }
  0x46   :  { %v2643_v5 = vld [vmem:[%s5644_s0 + $0x199] sm:$0x8]   ;;  %v2646_v6 = vld [vmem:[%s5644_s0 + $0x16f] sm:$0x4]   ;;  %v881_v7 = vsel %vm5_vm0, %v2645_v61, %v2644_v60  ;;  %v2654_v10 = vld [vmem:[%s5644_s0 + $0x1b] sm:$0x1]   ;;  %v852_v14 = vsel %vm13_vm2, %v2638_v3, %v848_v2 }
  0x47   :  { %629 = vrot.lane.b32.xlu0 %v628_v58, %s3189_s21  ;;  %685 = vrot.lane.b32.xlu1 %v684_v9, %s3192_s11  ;;  %v863_v58 = vsel %vm5_vm0, %v2641_v49, %v2640_v48  ;;  %v2651_v9 = vld [vmem:[%s5644_s0 + $0x144] sm:$0x4]   ;;  %v2655_v11 = vld [vmem:[%s5644_s0 + $0x9a] sm:$0x2]   ;;  %s3200_s25 = smov 86   ;;  %v885_v17 = vsel %vm9_vm1, %v2646_v6, %v881_v7  ;;  %s3201_s15 = smov 85  }
  0x48   :  { %v867_v4 = vsel %vm9_vm1, %v2642_v59, %v863_v58  ;;  %v2658_v12 = vld [vmem:[%s5644_s0 + $0x70] sm:$0x1]   ;;  %v2647_v16 = vld [vmem:[%s5644_s0 + $0x1ee] sm:$0x8]   ;;  %v2652_v19 = vld [vmem:[%s5644_s0 + $0x1c3] sm:$0x8]  }
  0x49   :  { %v2659_v13 = vld [vmem:[%s5644_s0 + $0xef] sm:$0x2]   ;;  %v871_v15 = vsel %vm13_vm2, %v2643_v5, %v867_v4  ;;  %v2656_v20 = vld [vmem:[%s5644_s0 + $0x119] sm:$0x4]   ;;  %v2663_v24 = vld [vmem:[%s5644_s0 + $0x45] sm:$0x1]   ;;  %v889_v30 = vsel %vm13_vm2, %v2647_v16, %v885_v17 }
  0x4a   :  { %v2660_v21 = vld [vmem:[%s5644_s0 + $0x16e] sm:$0x4]   ;;  %v2664_v25 = vld [vmem:[%s5644_s0 + $0xc4] sm:$0x2]   ;;  %v2668_v26 = vld [vmem:[%s5644_s0 + $0x1a] sm:$0x1]  }
  0x4b   :  { %666 = vrot.lane.b32.xlu0 %v665_v8, %s3191_s10  ;;  %722 = vrot.lane.b32.xlu1 %v721_v23, %s3194_s29  ;;  %v900_v8 = vsel %vm5_vm0, %v2650_v63, %v2649_v62  ;;  %v937_v23 = vsel %vm5_vm0, %v2659_v13, %v2658_v12  ;;  %s3202_s16 = smov 84   ;;  %v2657_v27 = vld [vmem:[%s5644_s0 + $0x198] sm:$0x8]   ;;  %v2669_v28 = vld [vmem:[%s5644_s0 + $0x99] sm:$0x2]   ;;  %vm15_vm5 = vcmask 23552   ;;  %v956_v40 = vsel %vm5_vm0, %v2664_v25, %v2663_v24 }
  0x4c   :  { %v904_v18 = vsel %vm9_vm1, %v2651_v9, %v900_v8  ;;  %v2_v29 = vld [vmem:[%s5644_s0] sm:$0x1]   ;;  %v2661_v32 = vld [vmem:[%s5644_s0 + $0x1ed] sm:$0x8]   ;;  %v975_v41 = vsel %vm5_vm0, %v2669_v28, %v2668_v26  ;;  %v2670_v42 = vld [vmem:[%s5644_s0 + $0x118] sm:$0x4]  }
  0x4d   :  { %v908_v31 = vsel %vm13_vm2, %v2652_v19, %v904_v18  ;;  %v2426_v33 = vld [vmem:[%s5644_s0 + $0x7f] sm:$0x2]   ;;  %v2672_v43 = vld [vmem:[%s5644_s0 + $0x6f] sm:$0x1]   ;;  %s3203_s10 = smov 83   ;;  %s3204_s11 = smov 82   ;;  %v979_v53 = vsel %vm9_vm1, %v2670_v42, %v975_v41 }
  0x4e   :  { %v2427_v34 = vld [vmem:[%s5644_s0 + $0xfe] sm:$0x4]   ;;  %v6_v38 = vsel %vm5_vm0, %v2426_v33, %v2_v29  ;;  %v2673_v44 = vld [vmem:[%s5644_s0 + $0xee] sm:$0x2]   ;;  %v2677_v46 = vld [vmem:[%s5644_s0 + $0x44] sm:$0x1]  }
  0x4f   :  { %704 = vrot.lane.b32.xlu0 %v703_v22, %s3193_s28  ;;  %760 = vrot.lane.b32.xlu1 %v759_v37, %s3196_s18  ;;  %v919_v22 = vsel %vm5_vm0, %v2655_v11, %v2654_v10  ;;  %v2665_v37 = vld [vmem:[%s5644_s0 + $0x143] sm:$0x4]   ;;  %v2428_v39 = vld [vmem:[%s5644_s0 + $0x17d] sm:$0x8]   ;;  %v10_v45 = vsel %vm9_vm1, %v2427_v34, %v6_v38  ;;  %v993_v56 = vsel %vm5_vm0, %v2673_v44, %v2672_v43  ;;  %s3205_s30 = smov 81   ;;  %s3206_s2 = smov 80  }
  0x50   :  { %v923_v35 = vsel %vm9_vm1, %v2656_v20, %v919_v22  ;;  %v2678_v47 = vld [vmem:[%s5644_s0 + $0xc3] sm:$0x2]   ;;  %v14_v48 = vsel %vm13_vm2, %v2428_v39, %v10_v45  ;;  %v2666_v52 = vld [vmem:[%s5644_s0 + $0x1c2] sm:$0x8]   ;;  %v2671_v54 = vld [vmem:[%s5644_s0 + $0x197] sm:$0x8]  }
  0x51   :  { %v927_v49 = vsel %vm13_vm2, %v2657_v27, %v923_v35  ;;  %16 = vst.msk [vmem:[%s5645_s1] ss:$3 sm:$0xf] %vm15_vm5, %v14_v48   ;;  %v2674_v55 = vld [vmem:[%s5644_s0 + $0x16d] sm:$0x4]   ;;  %v1012_v57 = vsel %vm5_vm0, %v2678_v47, %v2677_v46  ;;  %s3207_s19 = smov 79  }
  0x52   :  { %v2679_v58 = vld [vmem:[%s5644_s0 + $0x142] sm:$0x4]   ;;  %v2682_v59 = vld [vmem:[%s5644_s0 + $0x19] sm:$0x1]   ;;  %v2686_v61 = vld [vmem:[%s5644_s0 + $0x6e] sm:$0x1]  }
  0x53   :  { %741 = vrot.lane.b32.xlu0 %v740_v36, %s3195_s17  ;;  %797 = vrot.lane.b32.xlu1 %v796_v51, %s3198_s7  ;;  %v941_v36 = vsel %vm9_vm1, %v2660_v21, %v937_v23  ;;  %v960_v51 = vsel %vm9_vm1, %v2665_v37, %v956_v40  ;;  %v2683_v60 = vld [vmem:[%s5644_s0 + $0x98] sm:$0x2]   ;;  %v2687_v62 = vld [vmem:[%s5644_s0 + $0xed] sm:$0x2]   ;;  %v1016_v3 = vsel %vm9_vm1, %v2679_v58, %v1012_v57  ;;  %s3208_s20 = smov 78   ;;  %s3209_s8 = smov 77  }
  0x54   :  { %v964_v63 = vsel %vm13_vm2, %v2666_v52, %v960_v51  ;;  %v2675_v2 = vld [vmem:[%s5644_s0 + $0x1ec] sm:$0x8]   ;;  %v2680_v4 = vld [vmem:[%s5644_s0 + $0x1c1] sm:$0x8]   ;;  %v2684_v5 = vld [vmem:[%s5644_s0 + $0x117] sm:$0x4]   ;;  %v1031_v6 = vsel %vm5_vm0, %v2683_v60, %v2682_v59  ;;  %v1049_v7 = vsel %vm5_vm0, %v2687_v62, %v2686_v61 }
  0x55   :  { %v2688_v8 = vld [vmem:[%s5644_s0 + $0x16c] sm:$0x4]   ;;  %v2691_v9 = vld [vmem:[%s5644_s0 + $0x43] sm:$0x1]   ;;  %v2696_v11 = vld [vmem:[%s5644_s0 + $0x18] sm:$0x1]  }
  0x56   :  { %v2692_v10 = vld [vmem:[%s5644_s0 + $0xc2] sm:$0x2]   ;;  %v2697_v12 = vld [vmem:[%s5644_s0 + $0x97] sm:$0x2]   ;;  %v2685_v16 = vld [vmem:[%s5644_s0 + $0x196] sm:$0x8]   ;;  %v1053_v17 = vsel %vm9_vm1, %v2688_v8, %v1049_v7 }
  0x57   :  { %778 = vrot.lane.b32.xlu0 %v777_v50, %s3197_s6  ;;  %834 = vrot.lane.b32.xlu1 %v833_v1, %s3200_s25  ;;  %v945_v50 = vsel %vm13_vm2, %v2661_v32, %v941_v36  ;;  %v997_v1 = vsel %vm9_vm1, %v2674_v55, %v993_v56  ;;  %v2689_v18 = vld [vmem:[%s5644_s0 + $0x1eb] sm:$0x8]   ;;  %v2693_v19 = vld [vmem:[%s5644_s0 + $0x141] sm:$0x4]   ;;  %v1068_v20 = vsel %vm5_vm0, %v2692_v10, %v2691_v9  ;;  %s3210_s9 = smov 76   ;;  %s3211_s26 = smov 75  }
  0x58   :  { %v1001_v13 = vsel %vm13_vm2, %v2675_v2, %v997_v1  ;;  %v1087_v21 = vsel %vm5_vm0, %v2697_v12, %v2696_v11  ;;  %v2698_v22 = vld [vmem:[%s5644_s0 + $0x116] sm:$0x4]   ;;  %v2700_v23 = vld [vmem:[%s5644_s0 + $0x6d] sm:$0x1]   ;;  %v2705_v25 = vld [vmem:[%s5644_s0 + $0x42] sm:$0x1]   ;;  %v1057_v28 = vsel %vm13_vm2, %v2689_v18, %v1053_v17  ;;  %v1072_v29 = vsel %vm9_vm1, %v2693_v19, %v1068_v20 }
  0x59   :  { %v2701_v24 = vld [vmem:[%s5644_s0 + $0xec] sm:$0x2]   ;;  %v2706_v26 = vld [vmem:[%s5644_s0 + $0xc1] sm:$0x2]   ;;  %v2699_v32 = vld [vmem:[%s5644_s0 + $0x195] sm:$0x8]  }
  0x5a   :  { %v2702_v33 = vld [vmem:[%s5644_s0 + $0x16b] sm:$0x4]   ;;  %v1105_v34 = vsel %vm5_vm0, %v2701_v24, %v2700_v23  ;;  %v1124_v35 = vsel %vm5_vm0, %v2706_v26, %v2705_v25  ;;  %v2707_v36 = vld [vmem:[%s5644_s0 + $0x140] sm:$0x4]   ;;  %v2710_v37 = vld [vmem:[%s5644_s0 + $0x17] sm:$0x1]  }
  0x5b   :  { %816 = vrot.lane.b32.xlu0 %v815_v0, %s3199_s24  ;;  %872 = vrot.lane.b32.xlu1 %v871_v15, %s3202_s16  ;;  %v983_v0 = vsel %vm13_vm2, %v2671_v54, %v979_v53  ;;  %v1035_v15 = vsel %vm9_vm1, %v2684_v5, %v1031_v6  ;;  %v2711_v38 = vld [vmem:[%s5644_s0 + $0x96] sm:$0x2]   ;;  %s3212_s27 = smov 74   ;;  %v2714_v39 = vld [vmem:[%s5644_s0 + $0x6c] sm:$0x1]   ;;  %v1109_v43 = vsel %vm9_vm1, %v2702_v33, %v1105_v34  ;;  %s3214_s16 = smov 72  }
  0x5c   :  { %v1039_v27 = vsel %vm13_vm2, %v2685_v16, %v1035_v15  ;;  %v2715_v40 = vld [vmem:[%s5644_s0 + $0xeb] sm:$0x2]   ;;  %v2703_v44 = vld [vmem:[%s5644_s0 + $0x1ea] sm:$0x8]   ;;  %v1128_v45 = vsel %vm9_vm1, %v2707_v36, %v1124_v35  ;;  %v2708_v46 = vld [vmem:[%s5644_s0 + $0x1bf] sm:$0x8]   ;;  %v1143_v48 = vsel %vm5_vm0, %v2711_v38, %v2710_v37 }
  0x5d   :  { %v2712_v47 = vld [vmem:[%s5644_s0 + $0x115] sm:$0x4]   ;;  %v2719_v51 = vld [vmem:[%s5644_s0 + $0x41] sm:$0x1]   ;;  %v2724_v53 = vld [vmem:[%s5644_s0 + $0x16] sm:$0x1]   ;;  %v1113_v55 = vsel %vm13_vm2, %v2703_v44, %v1109_v43  ;;  %v1132_v56 = vsel %vm13_vm2, %v2708_v46, %v1128_v45 }
  0x5e   :  { %v2720_v52 = vld [vmem:[%s5644_s0 + $0xc0] sm:$0x2]   ;;  %v2725_v54 = vld [vmem:[%s5644_s0 + $0x95] sm:$0x2]   ;;  %vm52_vm6 = vcmask 1048568   ;;  %v1147_v57 = vsel %vm9_vm1, %v2712_v47, %v1143_v48  ;;  %s3215_s4 = smov 71  }
  0x5f   :  { %853 = vrot.lane.b32.xlu0 %v852_v14, %s3201_s15  ;;  %909 = vrot.lane.b32.xlu1 %v908_v31, %s3204_s11  ;;  %v1020_v14 = vsel %vm13_vm2, %v2680_v4, %v1016_v3  ;;  %v1091_v31 = vsel %vm9_vm1, %v2698_v22, %v1087_v21  ;;  %s3213_s15 = smov 73   ;;  %v2713_v58 = vld [vmem:[%s5644_s0 + $0x194] sm:$0x8]   ;;  %v2717_v60 = vld [vmem:[%s5644_s0 + $0x1e9] sm:$0x8]   ;;  %v1180_v62 = vsel %vm5_vm0, %v2720_v52, %v2719_v51  ;;  %s3216_s5 = smov 70  }
  0x60   :  { %v1095_v42 = vsel %vm13_vm2, %v2699_v32, %v1091_v31  ;;  %v2721_v61 = vld [vmem:[%s5644_s0 + $0x13f] sm:$0x4]   ;;  %v2728_v1 = vld [vmem:[%s5644_s0 + $0x6b] sm:$0x1]   ;;  %vm108_vm7 = vcmask 1048552   ;;  %v1151_v6 = vsel %vm13_vm2, %v2713_v58, %v1147_v57  ;;  %s3217_s28 = smov 69  }
  0x61   :  { %v2729_v2 = vld [vmem:[%s5644_s0 + $0xea] sm:$0x2]   ;;  %v2733_v3 = vld [vmem:[%s5644_s0 + $0x40] sm:$0x1]   ;;  %v1184_v9 = vsel %vm9_vm1, %v2721_v61, %v1180_v62  ;;  %v2722_v10 = vld [vmem:[%s5644_s0 + $0x1be] sm:$0x8]  }
  0x62   :  { %v2734_v4 = vld [vmem:[%s5644_s0 + $0xbf] sm:$0x2]   ;;  %v2727_v12 = vld [vmem:[%s5644_s0 + $0x193] sm:$0x8]   ;;  %v2738_v17 = vld [vmem:[%s5644_s0 + $0x15] sm:$0x1]   ;;  %v1188_v21 = vsel %vm13_vm2, %v2722_v10, %v1184_v9 }
  0x63   :  { %890 = vrot.lane.b32.xlu0 %v889_v30, %s3203_s10  ;;  %946 = vrot.lane.b32.xlu1 %v945_v50, %s3206_s2  ;;  %v2694_v30 = vld [vmem:[%s5644_s0 + $0x1c0] sm:$0x8]   ;;  %v2716_v50 = vld [vmem:[%s5644_s0 + $0x16a] sm:$0x4]   ;;  %v1236_v15 = vsel %vm5_vm0, %v2734_v4, %v2733_v3  ;;  %vm90_vm8 = vcmask 1048560   ;;  %s3218_s29 = smov 68  }
  0x64   :  { %v1076_v41 = vsel %vm13_vm2, %v2694_v30, %v1072_v29  ;;  %v2735_v16 = vld [vmem:[%s5644_s0 + $0x13e] sm:$0x4]   ;;  %v2739_v18 = vld [vmem:[%s5644_s0 + $0x94] sm:$0x2]   ;;  %v2742_v19 = vld [vmem:[%s5644_s0 + $0x6a] sm:$0x1]  }
  0x65   :  { %v2743_v20 = vld [vmem:[%s5644_s0 + $0xe9] sm:$0x2]   ;;  %vm127_vm9 = vcmask 1040352   ;;  %v2731_v26 = vld [vmem:[%s5644_s0 + $0x1e8] sm:$0x8]   ;;  %v1255_v30 = vsel %vm5_vm0, %v2739_v18, %v2738_v17  ;;  %s3219_s21 = smov 67  }
  0x66   :  { %v2740_v29 = vld [vmem:[%s5644_s0 + $0x113] sm:$0x4]   ;;  %v1273_v31 = vsel %vm5_vm0, %v2743_v20, %v2742_v19  ;;  %v2744_v32 = vld [vmem:[%s5644_s0 + $0x168] sm:$0x4]   ;;  %v2747_v33 = vld [vmem:[%s5644_s0 + $0x3f] sm:$0x1]  }
  0x67   :  { %928 = vrot.lane.b32.xlu0 %v927_v49, %s3205_s30  ;;  %984 = vrot.lane.b32.xlu1 %v983_v0, %s3208_s20  ;;  %v1161_v49 = vsel %vm5_vm0, %v2715_v40, %v2714_v39  ;;  %v2726_v0 = vld [vmem:[%s5644_s0 + $0x114] sm:$0x4]   ;;  %v2748_v34 = vld [vmem:[%s5644_s0 + $0xbe] sm:$0x2]   ;;  %vm146_vm10 = vcmask 1032152   ;;  %s3220_s24 = smov 66   ;;  %v1277_v43 = vsel %vm9_vm1, %v2744_v32, %v1273_v31 }
  0x68   :  { %v1165_v59 = vsel %vm9_vm1, %v2716_v50, %v1161_v49  ;;  %vm164_vm11 = vcmask 1023952   ;;  %v2752_v35 = vld [vmem:[%s5644_s0 + $0x14] sm:$0x1]   ;;  %v2745_v44 = vld [vmem:[%s5644_s0 + $0x1e7] sm:$0x8]   ;;  %v1292_v46 = vsel %vm5_vm0, %v2748_v34, %v2747_v33  ;;  %vm183_vm12 = vcmask 1015752  }
  0x69   :  { %v1169_v7 = vsel %vm13_vm2, %v2717_v60, %v1165_v59  ;;  %v2753_v36 = vld [vmem:[%s5644_s0 + $0x93] sm:$0x2]   ;;  %v2749_v45 = vld [vmem:[%s5644_s0 + $0x13d] sm:$0x4]   ;;  %v2756_v49 = vld [vmem:[%s5644_s0 + $0x69] sm:$0x1]  }
  0x6a   :  { %v1311_v47 = vsel %vm5_vm0, %v2753_v36, %v2752_v35  ;;  %v2754_v48 = vld [vmem:[%s5644_s0 + $0x112] sm:$0x4]   ;;  %v2757_v50 = vld [vmem:[%s5644_s0 + $0xe8] sm:$0x2]   ;;  %s3222_s17 = smov 64   ;;  %vm202_vm13 = vcmask 1007552   ;;  %v1296_v57 = vsel %vm9_vm1, %v2749_v45, %v1292_v46 }
  0x6b   :  { %965 = vrot.lane.b32.xlu0 %v964_v63, %s3207_s19  ;;  %1021 = vrot.lane.b32.xlu1 %v1020_v14, %s3210_s9  ;;  %v1199_v63 = vsel %vm5_vm0, %v2725_v54, %v2724_v53  ;;  %v1217_v14 = vsel %vm5_vm0, %v2729_v2, %v2728_v1  ;;  %v2761_v51 = vld [vmem:[%s5644_s0 + $0x3e] sm:$0x1]   ;;  %v1281_v54 = vsel %vm13_vm2, %v2745_v44, %v1277_v43  ;;  %v2750_v58 = vld [vmem:[%s5644_s0 + $0x1bc] sm:$0x8]   ;;  %s3223_s9 = smov 63   ;;  %vm220_vm14 = vcmask 999352  }
  0x6c   :  { %v1203_v11 = vsel %vm9_vm1, %v2726_v0, %v1199_v63  ;;  %v2762_v52 = vld [vmem:[%s5644_s0 + $0xbd] sm:$0x2]   ;;  %v1315_v59 = vsel %vm9_vm1, %v2754_v48, %v1311_v47  ;;  %v2755_v60 = vld [vmem:[%s5644_s0 + $0x191] sm:$0x8]   ;;  %v2758_v61 = vld [vmem:[%s5644_s0 + $0x167] sm:$0x4]   ;;  %v1329_v62 = vsel %vm5_vm0, %v2757_v50, %v2756_v49 }
  0x6d   :  { %v1207_v22 = vsel %vm13_vm2, %v2727_v12, %v1203_v11  ;;  %v1348_v63 = vsel %vm5_vm0, %v2762_v52, %v2761_v51  ;;  %v2763_v0 = vld [vmem:[%s5644_s0 + $0x13c] sm:$0x4]   ;;  %v2766_v1 = vld [vmem:[%s5644_s0 + $0x13] sm:$0x1]   ;;  %s3224_s10 = smov 62   ;;  %vm239_vm15 = vcmask 991152   ;;  %v1333_v9 = vsel %vm9_vm1, %v2758_v61, %v1329_v62 }
  0x6e   :  { %v2767_v2 = vld [vmem:[%s5644_s0 + $0x92] sm:$0x2]   ;;  %v2770_v3 = vld [vmem:[%s5644_s0 + $0x68] sm:$0x1]   ;;  %v2759_v10 = vld [vmem:[%s5644_s0 + $0x1e6] sm:$0x8]   ;;  %v1352_v11 = vsel %vm9_vm1, %v2763_v0, %v1348_v63 }
  0x6f   :  { %1002 = vrot.lane.b32.xlu0 %v1001_v13, %s3209_s8  ;;  %1058 = vrot.lane.b32.xlu1 %v1057_v28, %s3212_s27  ;;  %v2730_v13 = vld [vmem:[%s5644_s0 + $0x169] sm:$0x4]   ;;  %v2736_v28 = vld [vmem:[%s5644_s0 + $0x1bd] sm:$0x8]   ;;  %s3225_s2 = smov 61   ;;  %s3226_s3 = smov 60  }
  0x70   :  { %v1221_v25 = vsel %vm9_vm1, %v2730_v13, %v1217_v14  ;;  %v2771_v4 = vld [vmem:[%s5644_s0 + $0xe7] sm:$0x2]   ;;  %v2764_v12 = vld [vmem:[%s5644_s0 + $0x1bb] sm:$0x8]   ;;  %v2768_v13 = vld [vmem:[%s5644_s0 + $0x111] sm:$0x4]   ;;  %v1367_v14 = vsel %vm5_vm0, %v2767_v2, %v2766_v1 }
  0x71   :  { %v1225_v37 = vsel %vm13_vm2, %v2731_v26, %v1221_v25  ;;  %v2775_v17 = vld [vmem:[%s5644_s0 + $0x3d] sm:$0x1]   ;;  %v2780_v19 = vld [vmem:[%s5644_s0 + $0x12] sm:$0x1]   ;;  %v1371_v25 = vsel %vm9_vm1, %v2768_v13, %v1367_v14  ;;  %v2769_v26 = vld [vmem:[%s5644_s0 + $0x190] sm:$0x8]  }
  0x72   :  { %v2776_v18 = vld [vmem:[%s5644_s0 + $0xbc] sm:$0x2]   ;;  %v2781_v20 = vld [vmem:[%s5644_s0 + $0x91] sm:$0x2]   ;;  %v2784_v33 = vld [vmem:[%s5644_s0 + $0x67] sm:$0x1]  }
  0x73   :  { %1040 = vrot.lane.b32.xlu0 %v1039_v27, %s3211_s26  ;;  %1096 = vrot.lane.b32.xlu1 %v1095_v42, %s3214_s16  ;;  %v1240_v27 = vsel %vm9_vm1, %v2735_v16, %v1236_v15  ;;  %v2741_v42 = vld [vmem:[%s5644_s0 + $0x192] sm:$0x8]   ;;  %s3221_s16 = smov 65   ;;  %v1385_v15 = vsel %vm5_vm0, %v2771_v4, %v2770_v3  ;;  %v2772_v16 = vld [vmem:[%s5644_s0 + $0x166] sm:$0x4]   ;;  %v1423_v31 = vsel %vm5_vm0, %v2781_v20, %v2780_v19  ;;  %vm295_vm5 = vcmask 966552  }
  0x74   :  { %v1244_v38 = vsel %vm13_vm2, %v2736_v28, %v1240_v27  ;;  %v1389_v27 = vsel %vm9_vm1, %v2772_v16, %v1385_v15  ;;  %v2773_v28 = vld [vmem:[%s5644_s0 + $0x1e5] sm:$0x8]   ;;  %v2782_v32 = vld [vmem:[%s5644_s0 + $0x110] sm:$0x4]   ;;  %v2785_v34 = vld [vmem:[%s5644_s0 + $0xe6] sm:$0x2]  }
  0x75   :  { %s3228_s25 = smov 58   ;;  %v2789_v35 = vld [vmem:[%s5644_s0 + $0x3c] sm:$0x1]   ;;  %v1427_v43 = vsel %vm9_vm1, %v2782_v32, %v1423_v31  ;;  %v2783_v44 = vld [vmem:[%s5644_s0 + $0x18f] sm:$0x8]   ;;  %v1441_v46 = vsel %vm5_vm0, %v2785_v34, %v2784_v33  ;;  %s3230_s18 = smov 56  }
  0x76   :  { %v2790_v36 = vld [vmem:[%s5644_s0 + $0xbb] sm:$0x2]   ;;  %v2786_v45 = vld [vmem:[%s5644_s0 + $0x165] sm:$0x4]   ;;  %v2794_v49 = vld [vmem:[%s5644_s0 + $0x11] sm:$0x1]  }
  0x77   :  { %1077 = vrot.lane.b32.xlu0 %v1076_v41, %s3213_s15  ;;  %1133 = vrot.lane.b32.xlu1 %v1132_v56, %s3216_s5  ;;  %v1259_v41 = vsel %vm9_vm1, %v2740_v29, %v1255_v30  ;;  %v2777_v29 = vld [vmem:[%s5644_s0 + $0x13b] sm:$0x4]   ;;  %v1404_v30 = vsel %vm5_vm0, %v2776_v18, %v2775_v17  ;;  %v1460_v47 = vsel %vm5_vm0, %v2790_v36, %v2789_v35  ;;  %v2791_v48 = vld [vmem:[%s5644_s0 + $0x13a] sm:$0x4]   ;;  %s3232_s11 = smov 54   ;;  %s3236_s26 = smov 50  }
  0x78   :  { %v107_v8 = vpop.permute.xlu1 %106   ;;  %v1263_v53 = vsel %vm13_vm2, %v2741_v42, %v1259_v41  ;;  %v1408_v41 = vsel %vm9_vm1, %v2777_v29, %v1404_v30  ;;  %v2778_v42 = vld [vmem:[%s5644_s0 + $0x1ba] sm:$0x8]   ;;  %v2795_v50 = vld [vmem:[%s5644_s0 + $0x90] sm:$0x2]   ;;  %v2798_v51 = vld [vmem:[%s5644_s0 + $0x66] sm:$0x1]  }
  0x79   :  { %v2799_v52 = vld [vmem:[%s5644_s0 + $0xe5] sm:$0x2]   ;;  %v2796_v61 = vld [vmem:[%s5644_s0 + $0x10f] sm:$0x4]   ;;  %v1479_v62 = vsel %vm5_vm0, %v2795_v50, %v2794_v49  ;;  %v2803_v1 = vld [vmem:[%s5644_s0 + $0x3b] sm:$0x1]  }
  0x7a   :  { %v1497_v63 = vsel %vm5_vm0, %v2799_v52, %v2798_v51  ;;  %v2800_v0 = vld [vmem:[%s5644_s0 + $0x164] sm:$0x4]   ;;  %v2804_v2 = vld [vmem:[%s5644_s0 + $0xba] sm:$0x2]   ;;  %v2808_v3 = vld [vmem:[%s5644_s0 + $0x10] sm:$0x1]  }
  0x7b   :  { %1114 = vrot.lane.b32.xlu0 %v1113_v55, %s3215_s4  ;;  %1170 = vrot.lane.b32.xlu1 %v1169_v7, %s3218_s29  ;;  %v2809_v4 = vld [vmem:[%s5644_s0 + $0x8f] sm:$0x2]   ;;  %v2805_v13 = vld [vmem:[%s5644_s0 + $0x139] sm:$0x4]   ;;  %v1516_v14 = vsel %vm5_vm0, %v2804_v2, %v2803_v1  ;;  %s3234_s4 = smov 52   ;;  %s3238_s19 = smov 48  }
  0x7c   :  { %v1535_v15 = vsel %vm5_vm0, %v2809_v4, %v2808_v3  ;;  %v2810_v16 = vld [vmem:[%s5644_s0 + $0x10e] sm:$0x4]   ;;  %v2812_v17 = vld [vmem:[%s5644_s0 + $0x65] sm:$0x1]   ;;  %v2817_v19 = vld [vmem:[%s5644_s0 + $0x3a] sm:$0x1]  }
  0x7d   :  { %v48_v5 = vpop.permute.xlu0 %47   ;;  %v126_v24 = vpop.permute.xlu1 %125   ;;  %v2813_v18 = vld [vmem:[%s5644_s0 + $0xe4] sm:$0x2]   ;;  %v2818_v20 = vld [vmem:[%s5644_s0 + $0xb9] sm:$0x2]   ;;  %v2822_v33 = vld [vmem:[%s5644_s0 + $0xf] sm:$0x1]  }
  0x7e   :  { %2437 = vst.msk [vmem:[%s5645_s1 + $0x2] ss:$3 sm:$0xf] %vm49_vm4, %v48_v5   ;;  %vm276_vm4 = vcmask 974752   ;;  %v2814_v29 = vld [vmem:[%s5644_s0 + $0x163] sm:$0x4]   ;;  %v1553_v30 = vsel %vm5_vm0, %v2813_v18, %v2812_v17  ;;  %v1572_v31 = vsel %vm5_vm0, %v2818_v20, %v2817_v19 }
  0x7f   :  { %2438 = vst.msk [vmem:[%s5645_s1 + $0x1] ss:$3 sm:$0xf] %vm52_vm6, %v48_v5   ;;  %1152 = vrot.lane.b32.xlu0 %v1151_v6, %s3217_s28  ;;  %1208 = vrot.lane.b32.xlu1 %v1207_v22, %s3220_s24  ;;  %v1300_v5 = vsel %vm13_vm2, %v2750_v58, %v1296_v57  ;;  %v1319_v6 = vsel %vm13_vm2, %v2755_v60, %v1315_v59  ;;  %s3227_s24 = smov 59   ;;  %vm314_vm6 = vcmask 958352   ;;  %s3240_s12 = smov 46  }
  0x80   :  { %2452 = vst.msk [vmem:[%s5645_s1 + $0x2] ss:$3 sm:$0xf] %vm108_vm7, %v107_v8   ;;  %v1356_v22 = vsel %vm13_vm2, %v2764_v12, %v1352_v11  ;;  %vm332_vm7 = vcmask 950152   ;;  %v1445_v57 = vsel %vm9_vm1, %v2786_v45, %v1441_v46  ;;  %v2787_v58 = vld [vmem:[%s5644_s0 + $0x1e4] sm:$0x8]   ;;  %v1464_v59 = vsel %vm9_vm1, %v2791_v48, %v1460_v47 }
  0x81   :  { %v86_v23 = vpop.permute.xlu0 %85   ;;  %v163_v40 = vpop.permute.xlu1 %162   ;;  %v2792_v60 = vld [vmem:[%s5644_s0 + $0x1b9] sm:$0x8]   ;;  %v1501_v11 = vsel %vm9_vm1, %v2800_v0, %v1497_v63  ;;  %v2801_v12 = vld [vmem:[%s5644_s0 + $0x1e3] sm:$0x8]   ;;  %v2819_v32 = vld [vmem:[%s5644_s0 + $0x138] sm:$0x4]  }
  0x82   :  { %2447 = vst.msk [vmem:[%s5645_s1 + $0x1] ss:$3 sm:$0xf] %vm45_vm3, %v86_v23   ;;  %vm258_vm3 = vcmask 982952   ;;  %v2823_v34 = vld [vmem:[%s5644_s0 + $0x8e] sm:$0x2]  }
  0x83   :  { %91 = vst.msk [vmem:[%s5645_s1] ss:$3 sm:$0xf] %vm90_vm8, %v86_v23   ;;  %1189 = vrot.lane.b32.xlu0 %v1188_v21, %s3219_s21  ;;  %1245 = vrot.lane.b32.xlu1 %v1244_v38, %s3222_s17  ;;  %v1337_v21 = vsel %vm13_vm2, %v2759_v10, %v1333_v9  ;;  %v1393_v38 = vsel %vm13_vm2, %v2773_v28, %v1389_v27  ;;  %s3229_s17 = smov 57   ;;  %vm351_vm8 = vcmask 941952   ;;  %s3242_s5 = smov 44  }
  0x84   :  { %2457 = vst.msk [vmem:[%s5645_s1 + $0x1] ss:$3 sm:$0xf] %vm127_vm9, %v126_v24   ;;  %vm370_vm9 = vcmask 933752   ;;  %v1483_v9 = vsel %vm9_vm1, %v2796_v61, %v1479_v62  ;;  %v2797_v10 = vld [vmem:[%s5644_s0 + $0x18e] sm:$0x8]   ;;  %v1539_v27 = vsel %vm9_vm1, %v2810_v16, %v1535_v15  ;;  %v1591_v46 = vsel %vm5_vm0, %v2823_v34, %v2822_v33 }
  0x85   :  { %v145_v39 = vpop.permute.xlu0 %144   ;;  %2466 = vst.msk [vmem:[%s5645_s1 + $0x2] ss:$3 sm:$0xf] %vm164_vm11, %v163_v40   ;;  %v201_v56 = vpop.permute.xlu1 %200   ;;  %vm407_vm11 = vcmask 917352   ;;  %v2811_v28 = vld [vmem:[%s5644_s0 + $0x18d] sm:$0x8]  }
  0x86   :  { %147 = vst.msk [vmem:[%s5645_s1] ss:$3 sm:$0xf] %vm146_vm10, %v145_v39   ;;  %vm388_vm10 = vcmask 925552   ;;  %v2826_v35 = vld [vmem:[%s5644_s0 + $0x64] sm:$0x1]  }
  0x87   :  { %1226 = vrot.lane.b32.xlu0 %v1225_v37, %s3221_s16  ;;  %203 = vst.msk [vmem:[%s5645_s1] ss:$3 sm:$0xf] %vm202_vm13, %v201_v56   ;;  %1282 = vrot.lane.b32.xlu1 %v1281_v54, %s3224_s10  ;;  %v1375_v37 = vsel %vm13_vm2, %v2769_v26, %v1371_v25  ;;  %v1431_v54 = vsel %vm13_vm2, %v2783_v44, %v1427_v43  ;;  %s3231_s10 = smov 55   ;;  %v2806_v26 = vld [vmem:[%s5644_s0 + $0x1b8] sm:$0x8]  }
  0x88   :  { %v1520_v25 = vsel %vm9_vm1, %v2805_v13, %v1516_v14  ;;  %vm444_vm13 = vcmask 900952   ;;  %v2827_v36 = vld [vmem:[%s5644_s0 + $0xe3] sm:$0x2]   ;;  %v1576_v43 = vsel %vm9_vm1, %v2819_v32, %v1572_v31  ;;  %v2820_v44 = vld [vmem:[%s5644_s0 + $0x1b7] sm:$0x8]   ;;  %s3244_s27 = smov 42  }
  0x89   :  { %v182_v55 = vpop.permute.xlu0 %181   ;;  %v238_v8 = vpop.permute.xlu1 %237   ;;  %v2824_v45 = vld [vmem:[%s5644_s0 + $0x10d] sm:$0x4]   ;;  %v1609_v47 = vsel %vm5_vm0, %v2827_v36, %v2826_v35  ;;  %v2828_v48 = vld [vmem:[%s5644_s0 + $0x162] sm:$0x4]   ;;  %v2831_v49 = vld [vmem:[%s5644_s0 + $0x39] sm:$0x1]  }
  0x8a   :  { %2471 = vst.msk [vmem:[%s5645_s1 + $0x1] ss:$3 sm:$0xf] %vm183_vm12, %v182_v55   ;;  %vm426_vm12 = vcmask 909152   ;;  %v2832_v50 = vld [vmem:[%s5644_s0 + $0xb8] sm:$0x2]  }
  0x8b   :  { %1264 = vrot.lane.b32.xlu0 %v1263_v53, %s3223_s9  ;;  %2485 = vst.msk [vmem:[%s5645_s1 + $0x1] ss:$3 sm:$0xf] %vm239_vm15, %v238_v8   ;;  %1320 = vrot.lane.b32.xlu1 %v1319_v6, %s3226_s3  ;;  %v1412_v53 = vsel %vm13_vm2, %v2778_v42, %v1408_v41  ;;  %v1468_v6 = vsel %vm13_vm2, %v2792_v60, %v1464_v59  ;;  %s3233_s3 = smov 53   ;;  %v2815_v42 = vld [vmem:[%s5644_s0 + $0x1e2] sm:$0x8]  }
  0x8c   :  { %v1557_v41 = vsel %vm9_vm1, %v2814_v29, %v1553_v30  ;;  %vm482_vm15 = vcmask 884552   ;;  %v2836_v51 = vld [vmem:[%s5644_s0 + $0xe] sm:$0x1]   ;;  %v1613_v59 = vsel %vm9_vm1, %v2828_v48, %v1609_v47  ;;  %v2829_v60 = vld [vmem:[%s5644_s0 + $0x1e1] sm:$0x8]   ;;  %v1628_v62 = vsel %vm5_vm0, %v2832_v50, %v2831_v49  ;;  %s3246_s20 = smov 40  }
  0x8d   :  { %v219_v7 = vpop.permute.xlu0 %218   ;;  %v275_v24 = vpop.permute.xlu1 %274   ;;  %v2837_v52 = vld [vmem:[%s5644_s0 + $0x8d] sm:$0x2]   ;;  %v2833_v61 = vld [vmem:[%s5644_s0 + $0x137] sm:$0x4]   ;;  %v2840_v1 = vld [vmem:[%s5644_s0 + $0x63] sm:$0x1]  }
  0x8e   :  { %2480 = vst.msk [vmem:[%s5645_s1 + $0x2] ss:$3 sm:$0xf] %vm220_vm14, %v219_v7   ;;  %vm463_vm14 = vcmask 892752   ;;  %v1647_v63 = vsel %vm5_vm0, %v2837_v52, %v2836_v51  ;;  %v2838_v0 = vld [vmem:[%s5644_s0 + $0x10c] sm:$0x4]  }
  0x8f   :  { %1301 = vrot.lane.b32.xlu0 %v1300_v5, %s3225_s2  ;;  %2494 = vst.msk [vmem:[%s5645_s1 + $0x2] ss:$3 sm:$0xf] %vm276_vm4, %v275_v24   ;;  %1357 = vrot.lane.b32.xlu1 %v1356_v22, %s3228_s25  ;;  %v1449_v5 = vsel %vm13_vm2, %v2787_v58, %v1445_v57  ;;  %v1505_v22 = vsel %vm13_vm2, %v2801_v12, %v1501_v11  ;;  %s3235_s25 = smov 51   ;;  %v2825_v58 = vld [vmem:[%s5644_s0 + $0x18c] sm:$0x8]  }
  0x90   :  { %v1595_v57 = vsel %vm9_vm1, %v2824_v45, %v1591_v46  ;;  %v2841_v2 = vld [vmem:[%s5644_s0 + $0xe2] sm:$0x2]   ;;  %vm519_vm4 = vcmask 868152   ;;  %v2845_v3 = vld [vmem:[%s5644_s0 + $0x38] sm:$0x1]   ;;  %v1651_v11 = vsel %vm9_vm1, %v2838_v0, %v1647_v63  ;;  %s3248_s13 = smov 38  }
  0x91   :  { %v257_v23 = vpop.permute.xlu0 %256   ;;  %v313_v40 = vpop.permute.xlu1 %312   ;;  %v2846_v4 = vld [vmem:[%s5644_s0 + $0xb7] sm:$0x2]   ;;  %v2839_v12 = vld [vmem:[%s5644_s0 + $0x18b] sm:$0x8]   ;;  %v2842_v13 = vld [vmem:[%s5644_s0 + $0x161] sm:$0x4]   ;;  %v1665_v14 = vsel %vm5_vm0, %v2841_v2, %v2840_v1 }
  0x92   :  { %259 = vst.msk [vmem:[%s5645_s1] ss:$3 sm:$0xf] %vm258_vm3, %v257_v23   ;;  %vm500_vm3 = vcmask 876352   ;;  %v1684_v15 = vsel %vm5_vm0, %v2846_v4, %v2845_v3  ;;  %v2847_v16 = vld [vmem:[%s5644_s0 + $0x136] sm:$0x4]  }
  0x93   :  { %1338 = vrot.lane.b32.xlu0 %v1337_v21, %s3227_s24  ;;  %315 = vst.msk [vmem:[%s5645_s1] ss:$3 sm:$0xf] %vm314_vm6, %v313_v40   ;;  %1394 = vrot.lane.b32.xlu1 %v1393_v38, %s3230_s18  ;;  %v1487_v21 = vsel %vm13_vm2, %v2797_v10, %v1483_v9  ;;  %v1543_v38 = vsel %vm13_vm2, %v2811_v28, %v1539_v27  ;;  %s3237_s18 = smov 49   ;;  %v2834_v10 = vld [vmem:[%s5644_s0 + $0x1b6] sm:$0x8]  }
  0x94   :  { %v1632_v9 = vsel %vm9_vm1, %v2833_v61, %v1628_v62  ;;  %v2850_v17 = vld [vmem:[%s5644_s0 + $0xd] sm:$0x1]   ;;  %vm556_vm6 = vcmask 851752   ;;  %v2854_v19 = vld [vmem:[%s5644_s0 + $0x62] sm:$0x1]   ;;  %v1688_v27 = vsel %vm9_vm1, %v2847_v16, %v1684_v15  ;;  %s3250_s6 = smov 36  }
  0x95   :  { %v294_v39 = vpop.permute.xlu0 %293   ;;  %v350_v56 = vpop.permute.xlu1 %349   ;;  %v2851_v18 = vld [vmem:[%s5644_s0 + $0x8c] sm:$0x2]   ;;  %v2855_v20 = vld [vmem:[%s5644_s0 + $0xe1] sm:$0x2]   ;;  %v2848_v28 = vld [vmem:[%s5644_s0 + $0x1b5] sm:$0x8]  }
  0x96   :  { %2499 = vst.msk [vmem:[%s5645_s1 + $0x1] ss:$3 sm:$0xf] %vm295_vm5, %v294_v39   ;;  %vm538_vm5 = vcmask 859952   ;;  %v2852_v29 = vld [vmem:[%s5644_s0 + $0x10b] sm:$0x4]   ;;  %v1703_v30 = vsel %vm5_vm0, %v2851_v18, %v2850_v17  ;;  %v1721_v31 = vsel %vm5_vm0, %v2855_v20, %v2854_v19 }
  0x97   :  { %1376 = vrot.lane.b32.xlu0 %v1375_v37, %s3229_s17  ;;  %2513 = vst.msk [vmem:[%s5645_s1 + $0x1] ss:$3 sm:$0xf] %vm351_vm8, %v350_v56   ;;  %1432 = vrot.lane.b32.xlu1 %v1431_v54, %s3232_s11  ;;  %v1524_v37 = vsel %vm13_vm2, %v2806_v26, %v1520_v25  ;;  %v1580_v54 = vsel %vm13_vm2, %v2820_v44, %v1576_v43  ;;  %s3239_s11 = smov 47   ;;  %v2843_v26 = vld [vmem:[%s5644_s0 + $0x1e0] sm:$0x8]  }
  0x98   :  { %v1669_v25 = vsel %vm9_vm1, %v2842_v13, %v1665_v14  ;;  %v2856_v32 = vld [vmem:[%s5644_s0 + $0x160] sm:$0x4]   ;;  %v2859_v33 = vld [vmem:[%s5644_s0 + $0x37] sm:$0x1]   ;;  %vm594_vm8 = vcmask 835352   ;;  %s3252_s28 = smov 34  }
  0x99   :  { %v331_v55 = vpop.permute.xlu0 %330   ;;  %v387_v8 = vpop.permute.xlu1 %386   ;;  %v2860_v34 = vld [vmem:[%s5644_s0 + $0xb6] sm:$0x2]   ;;  %v2864_v35 = vld [vmem:[%s5644_s0 + $0xc] sm:$0x1]   ;;  %v1725_v43 = vsel %vm9_vm1, %v2856_v32, %v1721_v31  ;;  %v2857_v44 = vld [vmem:[%s5644_s0 + $0x1df] sm:$0x8]  }
  0x9a   :  { %2508 = vst.msk [vmem:[%s5645_s1 + $0x2] ss:$3 sm:$0xf] %vm332_vm7, %v331_v55   ;;  %vm575_vm7 = vcmask 843552   ;;  %v2865_v36 = vld [vmem:[%s5644_s0 + $0x8b] sm:$0x2]   ;;  %v1740_v46 = vsel %vm5_vm0, %v2860_v34, %v2859_v33 }
  0x9b   :  { %1413 = vrot.lane.b32.xlu0 %v1412_v53, %s3231_s10  ;;  %2522 = vst.msk [vmem:[%s5645_s1 + $0x2] ss:$3 sm:$0xf] %vm388_vm10, %v387_v8   ;;  %1469 = vrot.lane.b32.xlu1 %v1468_v6, %s3234_s4  ;;  %v1561_v53 = vsel %vm13_vm2, %v2815_v42, %v1557_v41  ;;  %v1617_v6 = vsel %vm13_vm2, %v2829_v60, %v1613_v59  ;;  %s3241_s4 = smov 45   ;;  %v2853_v42 = vld [vmem:[%s5644_s0 + $0x18a] sm:$0x8]  }
  0x9c   :  { %v1707_v41 = vsel %vm9_vm1, %v2852_v29, %v1703_v30  ;;  %v2861_v45 = vld [vmem:[%s5644_s0 + $0x135] sm:$0x4]   ;;  %v1759_v47 = vsel %vm5_vm0, %v2865_v36, %v2864_v35  ;;  %v2866_v48 = vld [vmem:[%s5644_s0 + $0x10a] sm:$0x4]   ;;  %v2868_v49 = vld [vmem:[%s5644_s0 + $0x61] sm:$0x1]  }
  0x9d   :  { %v369_v7 = vpop.permute.xlu0 %368   ;;  %v425_v24 = vpop.permute.xlu1 %424   ;;  %v2869_v50 = vld [vmem:[%s5644_s0 + $0xe0] sm:$0x2]   ;;  %vm631_vm10 = vcmask 818952   ;;  %v2873_v51 = vld [vmem:[%s5644_s0 + $0x36] sm:$0x1]   ;;  %v1763_v59 = vsel %vm9_vm1, %v2866_v48, %v1759_v47  ;;  %s3254_s21 = smov 32  }
  0x9e   :  { %371 = vst.msk [vmem:[%s5645_s1] ss:$3 sm:$0xf] %vm370_vm9, %v369_v7   ;;  %vm612_vm9 = vcmask 827152   ;;  %v2874_v52 = vld [vmem:[%s5644_s0 + $0xb5] sm:$0x2]   ;;  %v1777_v62 = vsel %vm5_vm0, %v2869_v50, %v2868_v49 }
  0x9f   :  { %1450 = vrot.lane.b32.xlu0 %v1449_v5, %s3233_s3  ;;  %427 = vst.msk [vmem:[%s5645_s1] ss:$3 sm:$0xf] %vm426_vm12, %v425_v24   ;;  %1506 = vrot.lane.b32.xlu1 %v1505_v22, %s3236_s26  ;;  %v1599_v5 = vsel %vm13_vm2, %v2825_v58, %v1595_v57  ;;  %v1655_v22 = vsel %vm13_vm2, %v2839_v12, %v1651_v11  ;;  %s3243_s26 = smov 43   ;;  %v2862_v58 = vld [vmem:[%s5644_s0 + $0x1b4] sm:$0x8]  }
  0xa0   :  { %v1744_v57 = vsel %vm9_vm1, %v2861_v45, %v1740_v46  ;;  %v2867_v60 = vld [vmem:[%s5644_s0 + $0x189] sm:$0x8]   ;;  %v2870_v61 = vld [vmem:[%s5644_s0 + $0x15f] sm:$0x4]   ;;  %v1796_v63 = vsel %vm5_vm0, %v2874_v52, %v2873_v51  ;;  %v2875_v0 = vld [vmem:[%s5644_s0 + $0x134] sm:$0x4]  }
  0xa1   :  { %v406_v23 = vpop.permute.xlu0 %405   ;;  %v462_v40 = vpop.permute.xlu1 %461   ;;  %v2878_v1 = vld [vmem:[%s5644_s0 + $0xb] sm:$0x1]   ;;  %vm668_vm12 = vcmask 802552   ;;  %v2882_v3 = vld [vmem:[%s5644_s0 + $0x60] sm:$0x1]   ;;  %v1800_v11 = vsel %vm9_vm1, %v2875_v0, %v1796_v63  ;;  %s3256_s14 = smov 30  }
  0xa2   :  { %2527 = vst.msk [vmem:[%s5645_s1 + $0x1] ss:$3 sm:$0xf] %vm407_vm11, %v406_v23   ;;  %vm650_vm11 = vcmask 810752   ;;  %v2879_v2 = vld [vmem:[%s5644_s0 + $0x8a] sm:$0x2]  }
  0xa3   :  { %1488 = vrot.lane.b32.xlu0 %v1487_v21, %s3235_s25  ;;  %2541 = vst.msk [vmem:[%s5645_s1 + $0x1] ss:$3 sm:$0xf] %vm463_vm14, %v462_v40   ;;  %1544 = vrot.lane.b32.xlu1 %v1543_v38, %s3238_s19  ;;  %v1636_v21 = vsel %vm13_vm2, %v2834_v10, %v1632_v9  ;;  %v1692_v38 = vsel %vm13_vm2, %v2848_v28, %v1688_v27  ;;  %s3245_s19 = smov 41   ;;  %v2883_v4 = vld [vmem:[%s5644_s0 + $0xdf] sm:$0x2]  }
  0xa4   :  { %v1781_v9 = vsel %vm9_vm1, %v2870_v61, %v1777_v62  ;;  %v2871_v10 = vld [vmem:[%s5644_s0 + $0x1de] sm:$0x8]   ;;  %v2876_v12 = vld [vmem:[%s5644_s0 + $0x1b3] sm:$0x8]   ;;  %v2880_v13 = vld [vmem:[%s5644_s0 + $0x109] sm:$0x4]   ;;  %v1815_v14 = vsel %vm5_vm0, %v2879_v2, %v2878_v1  ;;  %v1833_v15 = vsel %vm5_vm0, %v2883_v4, %v2882_v3 }
  0xa5   :  { %v443_v39 = vpop.permute.xlu0 %442   ;;  %v499_v56 = vpop.permute.xlu1 %498   ;;  %v2884_v16 = vld [vmem:[%s5644_s0 + $0x15e] sm:$0x4]   ;;  %v2887_v17 = vld [vmem:[%s5644_s0 + $0x35] sm:$0x1]   ;;  %vm706_vm14 = vcmask 786152   ;;  %s3258_s7 = smov 28  }
  0xa6   :  { %2536 = vst.msk [vmem:[%s5645_s1 + $0x2] ss:$3 sm:$0xf] %vm444_vm13, %v443_v39   ;;  %vm687_vm13 = vcmask 794352   ;;  %v2888_v18 = vld [vmem:[%s5644_s0 + $0xb4] sm:$0x2]   ;;  %v1837_v27 = vsel %vm9_vm1, %v2884_v16, %v1833_v15 }
  0xa7   :  { %1525 = vrot.lane.b32.xlu0 %v1524_v37, %s3237_s18  ;;  %2550 = vst.msk [vmem:[%s5645_s1 + $0x2] ss:$3 sm:$0xf] %vm500_vm3, %v499_v56   ;;  %1581 = vrot.lane.b32.xlu1 %v1580_v54, %s3240_s12  ;;  %v1673_v37 = vsel %vm13_vm2, %v2843_v26, %v1669_v25  ;;  %v1729_v54 = vsel %vm13_vm2, %v2857_v44, %v1725_v43  ;;  %s3247_s12 = smov 39   ;;  %v2892_v19 = vld [vmem:[%s5644_s0 + $0xa] sm:$0x1]  }
  0xa8   :  { %v2893_v20 = vld [vmem:[%s5644_s0 + $0x89] sm:$0x2]   ;;  %v1819_v25 = vsel %vm9_vm1, %v2880_v13, %v1815_v14  ;;  %v2881_v26 = vld [vmem:[%s5644_s0 + $0x188] sm:$0x8]   ;;  %v2885_v28 = vld [vmem:[%s5644_s0 + $0x1dd] sm:$0x8]   ;;  %v1852_v30 = vsel %vm5_vm0, %v2888_v18, %v2887_v17 }
  0xa9   :  { %v481_v55 = vpop.permute.xlu0 %480   ;;  %v537_v8 = vpop.permute.xlu1 %536   ;;  %v2889_v29 = vld [vmem:[%s5644_s0 + $0x133] sm:$0x4]   ;;  %v1871_v31 = vsel %vm5_vm0, %v2893_v20, %v2892_v19  ;;  %v2894_v32 = vld [vmem:[%s5644_s0 + $0x108] sm:$0x4]   ;;  %v2896_v33 = vld [vmem:[%s5644_s0 + $0x5f] sm:$0x1]  }
  0xaa   :  { %483 = vst.msk [vmem:[%s5645_s1] ss:$3 sm:$0xf] %vm482_vm15, %v481_v55   ;;  %vm724_vm15 = vcmask 777952   ;;  %v2897_v34 = vld [vmem:[%s5644_s0 + $0xde] sm:$0x2]   ;;  %v1875_v43 = vsel %vm9_vm1, %v2894_v32, %v1871_v31 }
  0xab   :  { %1562 = vrot.lane.b32.xlu0 %v1561_v53, %s3239_s11  ;;  %539 = vst.msk [vmem:[%s5645_s1] ss:$3 sm:$0xf] %vm538_vm5, %v537_v8   ;;  %1618 = vrot.lane.b32.xlu1 %v1617_v6, %s3242_s5  ;;  %v1711_v53 = vsel %vm13_vm2, %v2853_v42, %v1707_v41  ;;  %v1767_v6 = vsel %vm13_vm2, %v2867_v60, %v1763_v59  ;;  %s3249_s5 = smov 37   ;;  %vm743_vm3 = vcmask 769752   ;;  %vm780_vm5 = vcmask 753352  }
  0xac   :  { %v2901_v35 = vld [vmem:[%s5644_s0 + $0x34] sm:$0x1]   ;;  %v1856_v41 = vsel %vm9_vm1, %v2889_v29, %v1852_v30  ;;  %v2890_v42 = vld [vmem:[%s5644_s0 + $0x1b2] sm:$0x8]   ;;  %v2895_v44 = vld [vmem:[%s5644_s0 + $0x187] sm:$0x8]   ;;  %v1889_v46 = vsel %vm5_vm0, %v2897_v34, %v2896_v33 }
  0xad   :  { %v518_v7 = vpop.permute.xlu0 %517   ;;  %v574_v24 = vpop.permute.xlu1 %573   ;;  %v2902_v36 = vld [vmem:[%s5644_s0 + $0xb3] sm:$0x2]   ;;  %v2898_v45 = vld [vmem:[%s5644_s0 + $0x15d] sm:$0x4]   ;;  %v2906_v49 = vld [vmem:[%s5644_s0 + $0x9] sm:$0x1]  }
  0xae   :  { %2555 = vst.msk [vmem:[%s5645_s1 + $0x1] ss:$3 sm:$0xf] %vm519_vm4, %v518_v7   ;;  %vm762_vm4 = vcmask 761552   ;;  %v1908_v47 = vsel %vm5_vm0, %v2902_v36, %v2901_v35  ;;  %v2903_v48 = vld [vmem:[%s5644_s0 + $0x132] sm:$0x4]  }
  0xaf   :  { %1600 = vrot.lane.b32.xlu0 %v1599_v5, %s3241_s4  ;;  %2569 = vst.msk [vmem:[%s5645_s1 + $0x1] ss:$3 sm:$0xf] %vm575_vm7, %v574_v24   ;;  %1656 = vrot.lane.b32.xlu1 %v1655_v22, %s3244_s27  ;;  %v1748_v5 = vsel %vm13_vm2, %v2862_v58, %v1744_v57  ;;  %v1804_v22 = vsel %vm13_vm2, %v2876_v12, %v1800_v11  ;;  %s3251_s27 = smov 35   ;;  %v2907_v50 = vld [vmem:[%s5644_s0 + $0x88] sm:$0x2]  }
  0xb0   :  { %v2910_v51 = vld [vmem:[%s5644_s0 + $0x5e] sm:$0x1]   ;;  %v1893_v57 = vsel %vm9_vm1, %v2898_v45, %v1889_v46  ;;  %v2899_v58 = vld [vmem:[%s5644_s0 + $0x1dc] sm:$0x8]   ;;  %v1912_v59 = vsel %vm9_vm1, %v2903_v48, %v1908_v47  ;;  %v2904_v60 = vld [vmem:[%s5644_s0 + $0x1b1] sm:$0x8]   ;;  %v1927_v62 = vsel %vm5_vm0, %v2907_v50, %v2906_v49 }
  0xb1   :  { %v555_v23 = vpop.permute.xlu0 %554   ;;  %v611_v40 = vpop.permute.xlu1 %610   ;;  %v2911_v52 = vld [vmem:[%s5644_s0 + $0xdd] sm:$0x2]   ;;  %v2908_v61 = vld [vmem:[%s5644_s0 + $0x107] sm:$0x4]   ;;  %v2915_v1 = vld [vmem:[%s5644_s0 + $0x33] sm:$0x1]  }
  0xb2   :  { %2564 = vst.msk [vmem:[%s5645_s1 + $0x2] ss:$3 sm:$0xf] %vm556_vm6, %v555_v23   ;;  %vm799_vm6 = vcmask 745152   ;;  %v1945_v63 = vsel %vm5_vm0, %v2911_v52, %v2910_v51  ;;  %v2912_v0 = vld [vmem:[%s5644_s0 + $0x15c] sm:$0x4]  }
  0xb3   :  { %1637 = vrot.lane.b32.xlu0 %v1636_v21, %s3243_s26  ;;  %2578 = vst.msk [vmem:[%s5645_s1 + $0x2] ss:$3 sm:$0xf] %vm612_vm9, %v611_v40   ;;  %1693 = vrot.lane.b32.xlu1 %v1692_v38, %s3246_s20  ;;  %v1785_v21 = vsel %vm13_vm2, %v2871_v10, %v1781_v9  ;;  %v1841_v38 = vsel %vm13_vm2, %v2885_v28, %v1837_v27  ;;  %s3253_s20 = smov 33   ;;  %v2916_v2 = vld [vmem:[%s5644_s0 + $0xb2] sm:$0x2]  }
  0xb4   :  { %vm818_vm7 = vcmask 736952   ;;  %v2920_v3 = vld [vmem:[%s5644_s0 + $0x8] sm:$0x1]   ;;  %v1931_v9 = vsel %vm9_vm1, %v2908_v61, %v1927_v62  ;;  %v2909_v10 = vld [vmem:[%s5644_s0 + $0x186] sm:$0x8]   ;;  %v1949_v11 = vsel %vm9_vm1, %v2912_v0, %v1945_v63  ;;  %v1964_v14 = vsel %vm5_vm0, %v2916_v2, %v2915_v1  ;;  %s3260_s29 = smov 26  }
  0xb5   :  { %v593_v39 = vpop.permute.xlu0 %592   ;;  %v649_v56 = vpop.permute.xlu1 %648   ;;  %v2921_v4 = vld [vmem:[%s5644_s0 + $0x87] sm:$0x2]   ;;  %v2913_v12 = vld [vmem:[%s5644_s0 + $0x1db] sm:$0x8]   ;;  %v2917_v13 = vld [vmem:[%s5644_s0 + $0x131] sm:$0x4]  }
  0xb6   :  { %595 = vst.msk [vmem:[%s5645_s1] ss:$3 sm:$0xf] %vm594_vm8, %v593_v39   ;;  %vm836_vm8 = vcmask 728752   ;;  %v1983_v15 = vsel %vm5_vm0, %v2921_v4, %v2920_v3  ;;  %v2922_v16 = vld [vmem:[%s5644_s0 + $0x106] sm:$0x4]  }
  0xb7   :  { %1674 = vrot.lane.b32.xlu0 %v1673_v37, %s3245_s19  ;;  %651 = vst.msk [vmem:[%s5645_s1] ss:$3 sm:$0xf] %vm650_vm11, %v649_v56   ;;  %1730 = vrot.lane.b32.xlu1 %v1729_v54, %s3248_s13  ;;  %v1823_v37 = vsel %vm13_vm2, %v2881_v26, %v1819_v25  ;;  %v1879_v54 = vsel %vm13_vm2, %v2895_v44, %v1875_v43  ;;  %s3255_s13 = smov 31   ;;  %v2924_v17 = vld [vmem:[%s5644_s0 + $0x5d] sm:$0x1]  }
  0xb8   :  { %v2925_v18 = vld [vmem:[%s5644_s0 + $0xdc] sm:$0x2]   ;;  %vm855_vm9 = vcmask 720552   ;;  %v2929_v19 = vld [vmem:[%s5644_s0 + $0x32] sm:$0x1]   ;;  %v1968_v25 = vsel %vm9_vm1, %v2917_v13, %v1964_v14  ;;  %v1987_v27 = vsel %vm9_vm1, %v2922_v16, %v1983_v15  ;;  %vm892_vm11 = vcmask 704152  }
  0xb9   :  { %v630_v55 = vpop.permute.xlu0 %629   ;;  %v686_v8 = vpop.permute.xlu1 %685   ;;  %v2930_v20 = vld [vmem:[%s5644_s0 + $0xb1] sm:$0x2]   ;;  %v2918_v26 = vld [vmem:[%s5644_s0 + $0x1b0] sm:$0x8]   ;;  %v2923_v28 = vld [vmem:[%s5644_s0 + $0x185] sm:$0x8]   ;;  %v2001_v30 = vsel %vm5_vm0, %v2925_v18, %v2924_v17 }
  0xba   :  { %2583 = vst.msk [vmem:[%s5645_s1 + $0x1] ss:$3 sm:$0xf] %vm631_vm10, %v630_v55   ;;  %vm874_vm10 = vcmask 712352   ;;  %v2926_v29 = vld [vmem:[%s5644_s0 + $0x15b] sm:$0x4]   ;;  %v2020_v31 = vsel %vm5_vm0, %v2930_v20, %v2929_v19 }
  0xbb   :  { %1712 = vrot.lane.b32.xlu0 %v1711_v53, %s3247_s12  ;;  %2597 = vst.msk [vmem:[%s5645_s1 + $0x1] ss:$3 sm:$0xf] %vm687_vm13, %v686_v8   ;;  %1768 = vrot.lane.b32.xlu1 %v1767_v6, %s3250_s6  ;;  %v1860_v53 = vsel %vm13_vm2, %v2890_v42, %v1856_v41  ;;  %v1916_v6 = vsel %vm13_vm2, %v2904_v60, %v1912_v59  ;;  %s3257_s6 = smov 29   ;;  %v2931_v32 = vld [vmem:[%s5644_s0 + $0x130] sm:$0x4]  }
  0xbc   :  { %v2934_v33 = vld [vmem:[%s5644_s0 + $0x7] sm:$0x1]   ;;  %v2938_v35 = vld [vmem:[%s5644_s0 + $0x5c] sm:$0x1]   ;;  %v2005_v41 = vsel %vm9_vm1, %v2926_v29, %v2001_v30  ;;  %v2927_v42 = vld [vmem:[%s5644_s0 + $0x1da] sm:$0x8]   ;;  %v2024_v43 = vsel %vm9_vm1, %v2931_v32, %v2020_v31 }
  0xbd   :  { %v667_v7 = vpop.permute.xlu0 %666   ;;  %v723_v24 = vpop.permute.xlu1 %722   ;;  %v2935_v34 = vld [vmem:[%s5644_s0 + $0x86] sm:$0x2]   ;;  %v2939_v36 = vld [vmem:[%s5644_s0 + $0xdb] sm:$0x2]   ;;  %v2932_v44 = vld [vmem:[%s5644_s0 + $0x1af] sm:$0x8]  }
  0xbe   :  { %2592 = vst.msk [vmem:[%s5645_s1 + $0x2] ss:$3 sm:$0xf] %vm668_vm12, %v667_v7   ;;  %vm911_vm12 = vcmask 695952   ;;  %v2936_v45 = vld [vmem:[%s5644_s0 + $0x105] sm:$0x4]   ;;  %v2039_v46 = vsel %vm5_vm0, %v2935_v34, %v2934_v33  ;;  %v2057_v47 = vsel %vm5_vm0, %v2939_v36, %v2938_v35 }
  0xbf   :  { %1749 = vrot.lane.b32.xlu0 %v1748_v5, %s3249_s5  ;;  %2606 = vst.msk [vmem:[%s5645_s1 + $0x2] ss:$3 sm:$0xf] %vm724_vm15, %v723_v24   ;;  %1805 = vrot.lane.b32.xlu1 %v1804_v22, %s3252_s28  ;;  %v1897_v5 = vsel %vm13_vm2, %v2899_v58, %v1893_v57  ;;  %v1953_v22 = vsel %vm13_vm2, %v2913_v12, %v1949_v11  ;;  %s3259_s28 = smov 27   ;;  %v2940_v48 = vld [vmem:[%s5644_s0 + $0x15a] sm:$0x4]  }
  0xc0   :  { %v2943_v49 = vld [vmem:[%s5644_s0 + $0x31] sm:$0x1]   ;;  %vm930_vm13 = vcmask 687752   ;;  %s3262_s22 = smov 24   ;;  %v2948_v51 = vld [vmem:[%s5644_s0 + $0x6] sm:$0x1]   ;;  %v2043_v57 = vsel %vm9_vm1, %v2936_v45, %v2039_v46  ;;  %v2061_v59 = vsel %vm9_vm1, %v2940_v48, %v2057_v47 }
  0xc1   :  { %v705_v23 = vpop.permute.xlu0 %704   ;;  %v761_v40 = vpop.permute.xlu1 %760   ;;  %v2944_v50 = vld [vmem:[%s5644_s0 + $0xb0] sm:$0x2]   ;;  %v2949_v52 = vld [vmem:[%s5644_s0 + $0x85] sm:$0x2]   ;;  %v2937_v58 = vld [vmem:[%s5644_s0 + $0x184] sm:$0x8]  }
  0xc2   :  { %707 = vst.msk [vmem:[%s5645_s1] ss:$3 sm:$0xf] %vm706_vm14, %v705_v23   ;;  %vm948_vm14 = vcmask 679552   ;;  %v2941_v60 = vld [vmem:[%s5644_s0 + $0x1d9] sm:$0x8]   ;;  %v2076_v62 = vsel %vm5_vm0, %v2944_v50, %v2943_v49  ;;  %v2095_v63 = vsel %vm5_vm0, %v2949_v52, %v2948_v51 }
  0xc3   :  { %1786 = vrot.lane.b32.xlu0 %v1785_v21, %s3251_s27  ;;  %763 = vst.msk [vmem:[%s5645_s1] ss:$3 sm:$0xf] %vm762_vm4, %v761_v40   ;;  %1842 = vrot.lane.b32.xlu1 %v1841_v38, %s3254_s21  ;;  %v1935_v21 = vsel %vm13_vm2, %v2909_v10, %v1931_v9  ;;  %v1991_v38 = vsel %vm13_vm2, %v2923_v28, %v1987_v27  ;;  %s3261_s21 = smov 25   ;;  %v2945_v61 = vld [vmem:[%s5644_s0 + $0x12f] sm:$0x4]  }
  0xc4   :  { %v2950_v0 = vld [vmem:[%s5644_s0 + $0x104] sm:$0x4]   ;;  %v2952_v1 = vld [vmem:[%s5644_s0 + $0x5b] sm:$0x1]   ;;  %vm967_vm15 = vcmask 671352   ;;  %s3264_s15 = smov 22   ;;  %v2080_v9 = vsel %vm9_vm1, %v2945_v61, %v2076_v62 }
  0xc5   :  { %v742_v39 = vpop.permute.xlu0 %741   ;;  %v798_v56 = vpop.permute.xlu1 %797   ;;  %v2953_v2 = vld [vmem:[%s5644_s0 + $0xda] sm:$0x2]   ;;  %v2957_v3 = vld [vmem:[%s5644_s0 + $0x30] sm:$0x1]   ;;  %v2946_v10 = vld [vmem:[%s5644_s0 + $0x1ae] sm:$0x8]   ;;  %v2099_v11 = vsel %vm9_vm1, %v2950_v0, %v2095_v63 }
  0xc6   :  { %2611 = vst.msk [vmem:[%s5645_s1 + $0x1] ss:$3 sm:$0xf] %vm743_vm3, %v742_v39   ;;  %vm986_vm3 = vcmask 663152   ;;  %v2958_v4 = vld [vmem:[%s5644_s0 + $0xaf] sm:$0x2]   ;;  %v2113_v14 = vsel %vm5_vm0, %v2953_v2, %v2952_v1 }
  0xc7   :  { %1824 = vrot.lane.b32.xlu0 %v1823_v37, %s3253_s20  ;;  %2625 = vst.msk [vmem:[%s5645_s1 + $0x1] ss:$3 sm:$0xf] %vm799_vm6, %v798_v56   ;;  %1880 = vrot.lane.b32.xlu1 %v1879_v54, %s3256_s14  ;;  %v1972_v37 = vsel %vm13_vm2, %v2918_v26, %v1968_v25  ;;  %v2028_v54 = vsel %vm13_vm2, %v2932_v44, %v2024_v43  ;;  %s3263_s14 = smov 23   ;;  %v2951_v12 = vld [vmem:[%s5644_s0 + $0x183] sm:$0x8]  }
  0xc8   :  { %v2954_v13 = vld [vmem:[%s5644_s0 + $0x159] sm:$0x4]   ;;  %v2132_v15 = vsel %vm5_vm0, %v2958_v4, %v2957_v3  ;;  %v2959_v16 = vld [vmem:[%s5644_s0 + $0x12e] sm:$0x4]   ;;  %v2962_v17 = vld [vmem:[%s5644_s0 + $0x5] sm:$0x1]  }
  0xc9   :  { %v779_v55 = vpop.permute.xlu0 %778   ;;  %v835_v8 = vpop.permute.xlu1 %834   ;;  %v2963_v18 = vld [vmem:[%s5644_s0 + $0x84] sm:$0x2]   ;;  %vm1004_vm4 = vcmask 654952   ;;  %s3266_s8 = smov 20   ;;  %v2966_v19 = vld [vmem:[%s5644_s0 + $0x5a] sm:$0x1]   ;;  %v2117_v25 = vsel %vm9_vm1, %v2954_v13, %v2113_v14  ;;  %v2136_v27 = vsel %vm9_vm1, %v2959_v16, %v2132_v15 }
  0xca   :  { %2620 = vst.msk [vmem:[%s5645_s1 + $0x2] ss:$3 sm:$0xf] %vm780_vm5, %v779_v55   ;;  %vm1023_vm5 = vcmask 646752   ;;  %v2967_v20 = vld [vmem:[%s5644_s0 + $0xd9] sm:$0x2]   ;;  %v2151_v30 = vsel %vm5_vm0, %v2963_v18, %v2962_v17 }
  0xcb   :  { %1861 = vrot.lane.b32.xlu0 %v1860_v53, %s3255_s13  ;;  %2634 = vst.msk [vmem:[%s5645_s1 + $0x2] ss:$3 sm:$0xf] %vm836_vm8, %v835_v8   ;;  %1917 = vrot.lane.b32.xlu1 %v1916_v6, %s3258_s7  ;;  %v2009_v53 = vsel %vm13_vm2, %v2927_v42, %v2005_v41  ;;  %v2065_v6 = vsel %vm13_vm2, %v2941_v60, %v2061_v59  ;;  %s3265_s7 = smov 21   ;;  %v2955_v26 = vld [vmem:[%s5644_s0 + $0x1d8] sm:$0x8]  }
  0xcc   :  { %v2960_v28 = vld [vmem:[%s5644_s0 + $0x1ad] sm:$0x8]   ;;  %v2964_v29 = vld [vmem:[%s5644_s0 + $0x103] sm:$0x4]   ;;  %v2169_v31 = vsel %vm5_vm0, %v2967_v20, %v2966_v19  ;;  %v2968_v32 = vld [vmem:[%s5644_s0 + $0x158] sm:$0x4]  }
  0xcd   :  { %v817_v7 = vpop.permute.xlu0 %816   ;;  %v873_v24 = vpop.permute.xlu1 %872   ;;  %v2971_v33 = vld [vmem:[%s5644_s0 + $0x2f] sm:$0x1]   ;;  %vm1042_vm6 = vcmask 638552   ;;  %s3268_s30 = smov 18   ;;  %v2976_v35 = vld [vmem:[%s5644_s0 + $0x4] sm:$0x1]   ;;  %v2155_v41 = vsel %vm9_vm1, %v2964_v29, %v2151_v30  ;;  %v2173_v43 = vsel %vm9_vm1, %v2968_v32, %v2169_v31 }
  0xce   :  { %819 = vst.msk [vmem:[%s5645_s1] ss:$3 sm:$0xf] %vm818_vm7, %v817_v7   ;;  %v2972_v34 = vld [vmem:[%s5644_s0 + $0xae] sm:$0x2]   ;;  %vm1060_vm7 = vcmask 630352  }
  0xcf   :  { %1898 = vrot.lane.b32.xlu0 %v1897_v5, %s3257_s6  ;;  %875 = vst.msk [vmem:[%s5645_s1] ss:$3 sm:$0xf] %vm874_vm10, %v873_v24   ;;  %1954 = vrot.lane.b32.xlu1 %v1953_v22, %s3260_s29  ;;  %v2047_v5 = vsel %vm13_vm2, %v2937_v58, %v2043_v57  ;;  %v2103_v22 = vsel %vm13_vm2, %v2951_v12, %v2099_v11  ;;  %s3267_s29 = smov 19   ;;  %v2977_v36 = vld [vmem:[%s5644_s0 + $0x83] sm:$0x2]  }
  0xd0   :  { %v2965_v42 = vld [vmem:[%s5644_s0 + $0x182] sm:$0x8]   ;;  %v2969_v44 = vld [vmem:[%s5644_s0 + $0x1d7] sm:$0x8]   ;;  %v2973_v45 = vld [vmem:[%s5644_s0 + $0x12d] sm:$0x4]   ;;  %v2188_v46 = vsel %vm5_vm0, %v2972_v34, %v2971_v33  ;;  %v2207_v47 = vsel %vm5_vm0, %v2977_v36, %v2976_v35 }
  0xd1   :  { %v854_v23 = vpop.permute.xlu0 %853   ;;  %v910_v40 = vpop.permute.xlu1 %909   ;;  %v2978_v48 = vld [vmem:[%s5644_s0 + $0x102] sm:$0x4]   ;;  %v2980_v49 = vld [vmem:[%s5644_s0 + $0x59] sm:$0x1]   ;;  %vm1079_vm8 = vcmask 622152   ;;  %s3270_s23 = smov 16   ;;  %v2192_v57 = vsel %vm9_vm1, %v2973_v45, %v2188_v46 }
  0xd2   :  { %2639 = vst.msk [vmem:[%s5645_s1 + $0x1] ss:$3 sm:$0xf] %vm855_vm9, %v854_v23   ;;  %v2981_v50 = vld [vmem:[%s5644_s0 + $0xd8] sm:$0x2]   ;;  %vm1098_vm9 = vcmask 613952   ;;  %v2211_v59 = vsel %vm9_vm1, %v2978_v48, %v2207_v47 }
  0xd3   :  { %1936 = vrot.lane.b32.xlu0 %v1935_v21, %s3259_s28  ;;  %2653 = vst.msk [vmem:[%s5645_s1 + $0x1] ss:$3 sm:$0xf] %vm911_vm12, %v910_v40   ;;  %1992 = vrot.lane.b32.xlu1 %v1991_v38, %s3262_s22  ;;  %v2084_v21 = vsel %vm13_vm2, %v2946_v10, %v2080_v9  ;;  %v2140_v38 = vsel %vm13_vm2, %v2960_v28, %v2136_v27  ;;  %s3269_s22 = smov 17   ;;  %v2985_v51 = vld [vmem:[%s5644_s0 + $0x2e] sm:$0x1]  }
  0xd4   :  { %v2986_v52 = vld [vmem:[%s5644_s0 + $0xad] sm:$0x2]   ;;  %v2974_v58 = vld [vmem:[%s5644_s0 + $0x1ac] sm:$0x8]   ;;  %v2979_v60 = vld [vmem:[%s5644_s0 + $0x181] sm:$0x8]   ;;  %v2225_v62 = vsel %vm5_vm0, %v2981_v50, %v2980_v49 }
  0xd5   :  { %v891_v39 = vpop.permute.xlu0 %890   ;;  %v947_v56 = vpop.permute.xlu1 %946   ;;  %v2982_v61 = vld [vmem:[%s5644_s0 + $0x157] sm:$0x4]   ;;  %v2244_v63 = vsel %vm5_vm0, %v2986_v52, %v2985_v51  ;;  %v2987_v0 = vld [vmem:[%s5644_s0 + $0x12c] sm:$0x4]   ;;  %v2990_v1 = vld [vmem:[%s5644_s0 + $0x3] sm:$0x1]  }
  0xd6   :  { %2648 = vst.msk [vmem:[%s5645_s1 + $0x2] ss:$3 sm:$0xf] %vm892_vm11, %v891_v39   ;;  %v2991_v2 = vld [vmem:[%s5644_s0 + $0x82] sm:$0x2]   ;;  %vm1116_vm10 = vcmask 605752   ;;  %v2229_v9 = vsel %vm9_vm1, %v2982_v61, %v2225_v62  ;;  %v2248_v11 = vsel %vm9_vm1, %v2987_v0, %v2244_v63 }
  0xd7   :  { %1973 = vrot.lane.b32.xlu0 %v1972_v37, %s3261_s21  ;;  %2662 = vst.msk [vmem:[%s5645_s1 + $0x2] ss:$3 sm:$0xf] %vm948_vm14, %v947_v56   ;;  %2029 = vrot.lane.b32.xlu1 %v2028_v54, %s3264_s15  ;;  %v2121_v37 = vsel %vm13_vm2, %v2955_v26, %v2117_v25  ;;  %v2177_v54 = vsel %vm13_vm2, %v2969_v44, %v2173_v43  ;;  %s3271_s15 = smov 15   ;;  %s3272_s16 = smov 14   ;;  %vm1135_vm11 = vcmask 597552  }
  0xd8   :  { %v2994_v3 = vld [vmem:[%s5644_s0 + $0x58] sm:$0x1]   ;;  %v2983_v10 = vld [vmem:[%s5644_s0 + $0x1d6] sm:$0x8]   ;;  %v2988_v12 = vld [vmem:[%s5644_s0 + $0x1ab] sm:$0x8]   ;;  %v2263_v14 = vsel %vm5_vm0, %v2991_v2, %v2990_v1 }
  0xd9   :  { %v929_v55 = vpop.permute.xlu0 %928   ;;  %v985_v8 = vpop.permute.xlu1 %984   ;;  %v2995_v4 = vld [vmem:[%s5644_s0 + $0xd7] sm:$0x2]   ;;  %v2992_v13 = vld [vmem:[%s5644_s0 + $0x101] sm:$0x4]   ;;  %v2999_v17 = vld [vmem:[%s5644_s0 + $0x2d] sm:$0x1]  }
  0xda   :  { %931 = vst.msk [vmem:[%s5645_s1] ss:$3 sm:$0xf] %vm930_vm13, %v929_v55   ;;  %v2281_v15 = vsel %vm5_vm0, %v2995_v4, %v2994_v3  ;;  %v2996_v16 = vld [vmem:[%s5644_s0 + $0x156] sm:$0x4]   ;;  %vm1154_vm12 = vcmask 589352   ;;  %v2267_v25 = vsel %vm9_vm1, %v2992_v13, %v2263_v14 }
  0xdb   :  { %2010 = vrot.lane.b32.xlu0 %v2009_v53, %s3263_s14  ;;  %987 = vst.msk [vmem:[%s5645_s1] ss:$3 sm:$0xf] %vm986_vm3, %v985_v8   ;;  %2066 = vrot.lane.b32.xlu1 %v2065_v6, %s3266_s8  ;;  %v2159_v53 = vsel %vm13_vm2, %v2965_v42, %v2155_v41  ;;  %v2215_v6 = vsel %vm13_vm2, %v2979_v60, %v2211_v59  ;;  %v3000_v18 = vld [vmem:[%s5644_s0 + $0xac] sm:$0x2]   ;;  %s3273_s8 = smov 13  }
  0xdc   :  { %s3274_s9 = smov 12   ;;  %vm1172_vm13 = vcmask 581152   ;;  %v3004_v19 = vld [vmem:[%s5644_s0 + $0x2] sm:$0x1]   ;;  %v2993_v26 = vld [vmem:[%s5644_s0 + $0x180] sm:$0x8]   ;;  %v2285_v27 = vsel %vm9_vm1, %v2996_v16, %v2281_v15  ;;  %v2300_v30 = vsel %vm5_vm0, %v3000_v18, %v2999_v17 }
  0xdd   :  { %v966_v7 = vpop.permute.xlu0 %965   ;;  %v1022_v24 = vpop.permute.xlu1 %1021   ;;  %v3005_v20 = vld [vmem:[%s5644_s0 + $0x81] sm:$0x2]   ;;  %v2997_v28 = vld [vmem:[%s5644_s0 + $0x1d5] sm:$0x8]   ;;  %v3001_v29 = vld [vmem:[%s5644_s0 + $0x12b] sm:$0x4]  }
  0xde   :  { %2667 = vst.msk [vmem:[%s5645_s1 + $0x1] ss:$3 sm:$0xf] %vm967_vm15, %v966_v7   ;;  %v2319_v31 = vsel %vm5_vm0, %v3005_v20, %v3004_v19  ;;  %v3006_v32 = vld [vmem:[%s5644_s0 + $0x100] sm:$0x4]   ;;  %vm1191_vm14 = vcmask 572952   ;;  %v2304_v41 = vsel %vm9_vm1, %v3001_v29, %v2300_v30 }
  0xdf   :  { %2048 = vrot.lane.b32.xlu0 %v2047_v5, %s3265_s7  ;;  %2681 = vst.msk [vmem:[%s5645_s1 + $0x1] ss:$3 sm:$0xf] %vm1023_vm5, %v1022_v24   ;;  %2104 = vrot.lane.b32.xlu1 %v2103_v22, %s3268_s30  ;;  %v2196_v5 = vsel %vm13_vm2, %v2974_v58, %v2192_v57  ;;  %v2252_v22 = vsel %vm13_vm2, %v2988_v12, %v2248_v11  ;;  %v3008_v33 = vld [vmem:[%s5644_s0 + $0x57] sm:$0x1]   ;;  %s3275_s30 = smov 11  }
  0xe0   :  { %v3009_v34 = vld [vmem:[%s5644_s0 + $0xd6] sm:$0x2]   ;;  %s3276_s2 = smov 10   ;;  %vm1210_vm15 = vcmask 564752   ;;  %v3013_v35 = vld [vmem:[%s5644_s0 + $0x2c] sm:$0x1]   ;;  %v2323_v43 = vsel %vm9_vm1, %v3006_v32, %v2319_v31 }
  0xe1   :  { %v1003_v23 = vpop.permute.xlu0 %1002   ;;  %v1059_v40 = vpop.permute.xlu1 %1058   ;;  %v3014_v36 = vld [vmem:[%s5644_s0 + $0xab] sm:$0x2]   ;;  %v3002_v42 = vld [vmem:[%s5644_s0 + $0x1aa] sm:$0x8]   ;;  %v3007_v44 = vld [vmem:[%s5644_s0 + $0x17f] sm:$0x8]   ;;  %v2337_v46 = vsel %vm5_vm0, %v3009_v34, %v3008_v33 }
  0xe2   :  { %2676 = vst.msk [vmem:[%s5645_s1 + $0x2] ss:$3 sm:$0xf] %vm1004_vm4, %v1003_v23   ;;  %v3010_v45 = vld [vmem:[%s5644_s0 + $0x155] sm:$0x4]   ;;  %v2356_v47 = vsel %vm5_vm0, %v3014_v36, %v3013_v35  ;;  %vm1228_vm3 = vcmask 556552  }
  0xe3   :  { %2085 = vrot.lane.b32.xlu0 %v2084_v21, %s3267_s29  ;;  %2690 = vst.msk [vmem:[%s5645_s1 + $0x2] ss:$3 sm:$0xf] %vm1060_vm7, %v1059_v40   ;;  %2141 = vrot.lane.b32.xlu1 %v2140_v38, %s3270_s23  ;;  %v2233_v21 = vsel %vm13_vm2, %v2983_v10, %v2229_v9  ;;  %v2289_v38 = vsel %vm13_vm2, %v2997_v28, %v2285_v27  ;;  %v3015_v48 = vld [vmem:[%s5644_s0 + $0x12a] sm:$0x4]   ;;  %s3277_s23 = smov 9  }
  0xe4   :  { %v3018_v49 = vld [vmem:[%s5644_s0 + $0x1] sm:$0x1]   ;;  %s3278_s24 = smov 8   ;;  %vm1247_vm4 = vcmask 548352   ;;  %v3022_v51 = vld [vmem:[%s5644_s0 + $0x56] sm:$0x1]   ;;  %v2341_v57 = vsel %vm9_vm1, %v3010_v45, %v2337_v46  ;;  %v2360_v59 = vsel %vm9_vm1, %v3015_v48, %v2356_v47 }
  0xe5   :  { %v1041_v39 = vpop.permute.xlu0 %1040   ;;  %v1097_v56 = vpop.permute.xlu1 %1096   ;;  %v3019_v50 = vld [vmem:[%s5644_s0 + $0x80] sm:$0x2]   ;;  %v3023_v52 = vld [vmem:[%s5644_s0 + $0xd5] sm:$0x2]   ;;  %v3011_v58 = vld [vmem:[%s5644_s0 + $0x1d4] sm:$0x8]  }
  0xe6   :  { %1043 = vst.msk [vmem:[%s5645_s1] ss:$3 sm:$0xf] %vm1042_vm6, %v1041_v39   ;;  %v3016_v60 = vld [vmem:[%s5644_s0 + $0x1a9] sm:$0x8]   ;;  %v2375_v61 = vsel %vm5_vm0, %v3019_v50, %v3018_v49  ;;  %v2393_v63 = vsel %vm5_vm0, %v3023_v52, %v3022_v51  ;;  %s3279_s12 = smov 7   ;;  %v2345_v3 = vsel %vm13_vm2, %v3011_v58, %v2341_v57 }
  0xe7   :  { %2122 = vrot.lane.b32.xlu0 %v2121_v37, %s3269_s22  ;;  %1099 = vst.msk [vmem:[%s5645_s1] ss:$3 sm:$0xf] %vm1098_vm9, %v1097_v56   ;;  %2178 = vrot.lane.b32.xlu1 %v2177_v54, %s3272_s16  ;;  %v2271_v37 = vsel %vm13_vm2, %v2993_v26, %v2267_v25  ;;  %v2327_v54 = vsel %vm13_vm2, %v3007_v44, %v2323_v43  ;;  %v3020_v62 = vld [vmem:[%s5644_s0 + $0xff] sm:$0x4]   ;;  %vm1266_vm5 = vcmask 540152  }
  0xe8   :  { %v3024_v0 = vld [vmem:[%s5644_s0 + $0x154] sm:$0x4]   ;;  %s3280_s13 = smov 6   ;;  %vm1284_vm6 = vcmask 531952   ;;  %v3027_v1 = vld [vmem:[%s5644_s0 + $0x2b] sm:$0x1]   ;;  %v2364_v4 = vsel %vm13_vm2, %v3016_v60, %v2360_v59 }
  0xe9   :  { %v1078_v55 = vpop.permute.xlu0 %1077   ;;  %v1134_v8 = vpop.permute.xlu1 %1133   ;;  %v3028_v2 = vld [vmem:[%s5644_s0 + $0xaa] sm:$0x2]   ;;  %v2397_v9 = vsel %vm9_vm1, %v3024_v0, %v2393_v63  ;;  %v3025_v10 = vld [vmem:[%s5644_s0 + $0x1d3] sm:$0x8]   ;;  %s3281_s28 = smov 5   ;;  %s3282_s29 = smov 4  }
  0xea   :  { %2695 = vst.msk [vmem:[%s5645_s1 + $0x1] ss:$3 sm:$0xf] %vm1079_vm8, %v1078_v55   ;;  %v2412_v11 = vsel %vm5_vm0, %v3028_v2, %v3027_v1  ;;  %v3029_v12 = vld [vmem:[%s5644_s0 + $0x129] sm:$0x4]   ;;  %vm1303_vm0 = vcmask 523752   ;;  %v2401_v14 = vsel %vm13_vm2, %v3025_v10, %v2397_v9 }
  0xeb   :  { %2160 = vrot.lane.b32.xlu0 %v2159_v53, %s3271_s15  ;;  %2709 = vst.msk [vmem:[%s5645_s1 + $0x1] ss:$3 sm:$0xf] %vm1135_vm11, %v1134_v8   ;;  %2216 = vrot.lane.b32.xlu1 %v2215_v6, %s3274_s9  ;;  %v2308_v53 = vsel %vm13_vm2, %v3002_v42, %v2304_v41  ;;  %v3021_v8 = vld [vmem:[%s5644_s0 + $0x17e] sm:$0x8]   ;;  %vm1322_vm7 = vcmask 515552   ;;  %v2416_v17 = vsel %vm9_vm1, %v3029_v12, %v2412_v11 }
  0xec   :  { %v3030_v18 = vld [vmem:[%s5644_s0 + $0x1a8] sm:$0x8]   ;;  %s3283_s6 = smov 3   ;;  %s3284_s7 = smov 2   ;;  %vm1359_vm8 = vcmask 499152   ;;  %vm1396_vm9 = vcmask 482752  }
  0xed   :  { %v1115_v7 = vpop.permute.xlu0 %1114   ;;  %v1171_v24 = vpop.permute.xlu1 %1170   ;;  %v2420_v19 = vsel %vm13_vm2, %v3030_v18, %v2416_v17  ;;  %vm1434_vm11 = vcmask 466352  }
  0xee   :  { %2704 = vst.msk [vmem:[%s5645_s1 + $0x2] ss:$3 sm:$0xf] %vm1116_vm10, %v1115_v7   ;;  %v2379_v7 = vsel %vm9_vm1, %v3020_v62, %v2375_v61  ;;  %vm1340_vm1 = vcmask 507352   ;;  %vm1415_vm10 = vcmask 474552  }
  0xef   :  { %2197 = vrot.lane.b32.xlu0 %v2196_v5, %s3273_s8  ;;  %2718 = vst.msk [vmem:[%s5645_s1 + $0x2] ss:$3 sm:$0xf] %vm1172_vm13, %v1171_v24   ;;  %2253 = vrot.lane.b32.xlu1 %v2252_v22, %s3276_s2  ;;  %v2383_v13 = vsel %vm13_vm2, %v3021_v8, %v2379_v7  ;;  %vm1378_vm2 = vcmask 490952   ;;  %vm1471_vm13 = vcmask 449952  }
  0xf1   :  { %v1153_v23 = vpop.permute.xlu0 %1152   ;;  %v1209_v40 = vpop.permute.xlu1 %1208  }
  0xf2   :  { %1155 = vst.msk [vmem:[%s5645_s1] ss:$3 sm:$0xf] %vm1154_vm12, %v1153_v23   ;;  %vm1452_vm12 = vcmask 458152  }
  0xf3   :  { %2234 = vrot.lane.b32.xlu0 %v2233_v21, %s3275_s30  ;;  %1211 = vst.msk [vmem:[%s5645_s1] ss:$3 sm:$0xf] %vm1210_vm15, %v1209_v40   ;;  %2290 = vrot.lane.b32.xlu1 %v2289_v38, %s3278_s24  ;;  %vm1508_vm15 = vcmask 433552  }
  0xf5   :  { %v1190_v39 = vpop.permute.xlu0 %1189   ;;  %v1246_v56 = vpop.permute.xlu1 %1245  }
  0xf6   :  { %2723 = vst.msk [vmem:[%s5645_s1 + $0x1] ss:$3 sm:$0xf] %vm1191_vm14, %v1190_v39   ;;  %vm1490_vm14 = vcmask 441752  }
  0xf7   :  { %2272 = vrot.lane.b32.xlu0 %v2271_v37, %s3277_s23  ;;  %2737 = vst.msk [vmem:[%s5645_s1 + $0x1] ss:$3 sm:$0xf] %vm1247_vm4, %v1246_v56   ;;  %2328 = vrot.lane.b32.xlu1 %v2327_v54, %s3280_s13  ;;  %vm1546_vm4 = vcmask 417152  }
  0xf9   :  { %v1227_v55 = vpop.permute.xlu0 %1226   ;;  %v1283_v6 = vpop.permute.xlu1 %1282  }
  0xfa   :  { %2732 = vst.msk [vmem:[%s5645_s1 + $0x2] ss:$3 sm:$0xf] %vm1228_vm3, %v1227_v55   ;;  %vm1527_vm3 = vcmask 425352  }
  0xfb   :  { %2309 = vrot.lane.b32.xlu0 %v2308_v53, %s3279_s12  ;;  %2746 = vst.msk [vmem:[%s5645_s1 + $0x2] ss:$3 sm:$0xf] %vm1284_vm6, %v1283_v6   ;;  %2365 = vrot.lane.b32.xlu1 %v2364_v4, %s3282_s29  ;;  %s3285_s12 = smov 1   ;;  %vm1583_vm6 = vcmask 400752  }
  0xfd   :  { %v1265_v5 = vpop.permute.xlu0 %1264   ;;  %v1321_v16 = vpop.permute.xlu1 %1320  }
  0xfe   :  { %1267 = vst.msk [vmem:[%s5645_s1] ss:$3 sm:$0xf] %vm1266_vm5, %v1265_v5   ;;  %vm1564_vm5 = vcmask 408952  }
  0xff   :  { %2346 = vrot.lane.b32.xlu0 %v2345_v3, %s3281_s28  ;;  %1323 = vst.msk [vmem:[%s5645_s1] ss:$3 sm:$0xf] %vm1322_vm7, %v1321_v16   ;;  %2402 = vrot.lane.b32.xlu1 %v2401_v14, %s3284_s7  ;;  %vm1620_vm7 = vcmask 384352  }
 0x101   :  { %v1302_v15 = vpop.permute.xlu0 %1301   ;;  %v1358_v21 = vpop.permute.xlu1 %1357  }
 0x102   :  { %2751 = vst.msk [vmem:[%s5645_s1 + $0x1] ss:$3 sm:$0xf] %vm1303_vm0, %v1302_v15   ;;  %vm1602_vm0 = vcmask 392552  }
 0x103   :  { %2384 = vrot.lane.b32.xlu0 %v2383_v13, %s3283_s6  ;;  %2765 = vst.msk [vmem:[%s5645_s1 + $0x1] ss:$3 sm:$0xf] %vm1359_vm8, %v1358_v21   ;;  %vm1658_vm8 = vcmask 367952  }
 0x105   :  { %v1339_v20 = vpop.permute.xlu0 %1338   ;;  %v1395_v23 = vpop.permute.xlu1 %1394  }
 0x106   :  { %2760 = vst.msk [vmem:[%s5645_s1 + $0x2] ss:$3 sm:$0xf] %vm1340_vm1, %v1339_v20   ;;  %vm1639_vm1 = vcmask 376152  }
 0x107   :  { %2421 = vrot.lane.b32.xlu0 %v2420_v19, %s3285_s12  ;;  %2774 = vst.msk [vmem:[%s5645_s1 + $0x2] ss:$3 sm:$0xf] %vm1396_vm9, %v1395_v23   ;;  %vm1695_vm9 = vcmask 351552  }
 0x109   :  { %v1377_v22 = vpop.permute.xlu0 %1376   ;;  %v1433_v25 = vpop.permute.xlu1 %1432  }
 0x10a   :  { %1379 = vst.msk [vmem:[%s5645_s1] ss:$3 sm:$0xf] %vm1378_vm2, %v1377_v22   ;;  %vm1676_vm2 = vcmask 359752  }
 0x10b   :  { %1435 = vst.msk [vmem:[%s5645_s1] ss:$3 sm:$0xf] %vm1434_vm11, %v1433_v25   ;;  %vm1732_vm11 = vcmask 335152  }
 0x10d   :  { %v1414_v24 = vpop.permute.xlu0 %1413   ;;  %v1470_v27 = vpop.permute.xlu1 %1469  }
 0x10e   :  { %2779 = vst.msk [vmem:[%s5645_s1 + $0x1] ss:$3 sm:$0xf] %vm1415_vm10, %v1414_v24   ;;  %vm1714_vm10 = vcmask 343352  }
 0x10f   :  { %2793 = vst.msk [vmem:[%s5645_s1 + $0x1] ss:$3 sm:$0xf] %vm1471_vm13, %v1470_v27   ;;  %vm1770_vm13 = vcmask 318752  }
 0x111   :  { %v1451_v26 = vpop.permute.xlu0 %1450   ;;  %v1507_v29 = vpop.permute.xlu1 %1506  }
 0x112   :  { %2788 = vst.msk [vmem:[%s5645_s1 + $0x2] ss:$3 sm:$0xf] %vm1452_vm12, %v1451_v26   ;;  %vm1751_vm12 = vcmask 326952  }
 0x113   :  { %2802 = vst.msk [vmem:[%s5645_s1 + $0x2] ss:$3 sm:$0xf] %vm1508_vm15, %v1507_v29   ;;  %vm1807_vm15 = vcmask 302352  }
 0x115   :  { %v1489_v28 = vpop.permute.xlu0 %1488   ;;  %v1545_v31 = vpop.permute.xlu1 %1544  }
 0x116   :  { %1491 = vst.msk [vmem:[%s5645_s1] ss:$3 sm:$0xf] %vm1490_vm14, %v1489_v28   ;;  %vm1788_vm14 = vcmask 310552  }
 0x117   :  { %1547 = vst.msk [vmem:[%s5645_s1] ss:$3 sm:$0xf] %vm1546_vm4, %v1545_v31   ;;  %vm1844_vm4 = vcmask 285952  }
 0x119   :  { %v1526_v30 = vpop.permute.xlu0 %1525   ;;  %v1582_v33 = vpop.permute.xlu1 %1581  }
 0x11a   :  { %2807 = vst.msk [vmem:[%s5645_s1 + $0x1] ss:$3 sm:$0xf] %vm1527_vm3, %v1526_v30   ;;  %vm1826_vm3 = vcmask 294152  }
 0x11b   :  { %2821 = vst.msk [vmem:[%s5645_s1 + $0x1] ss:$3 sm:$0xf] %vm1583_vm6, %v1582_v33   ;;  %vm1882_vm6 = vcmask 269552  }
 0x11d   :  { %v1563_v32 = vpop.permute.xlu0 %1562   ;;  %v1619_v35 = vpop.permute.xlu1 %1618  }
 0x11e   :  { %2816 = vst.msk [vmem:[%s5645_s1 + $0x2] ss:$3 sm:$0xf] %vm1564_vm5, %v1563_v32   ;;  %vm1863_vm5 = vcmask 277752  }
 0x11f   :  { %2830 = vst.msk [vmem:[%s5645_s1 + $0x2] ss:$3 sm:$0xf] %vm1620_vm7, %v1619_v35   ;;  %vm1919_vm7 = vcmask 253152  }
 0x121   :  { %v1601_v34 = vpop.permute.xlu0 %1600   ;;  %v1657_v37 = vpop.permute.xlu1 %1656  }
 0x122   :  { %1603 = vst.msk [vmem:[%s5645_s1] ss:$3 sm:$0xf] %vm1602_vm0, %v1601_v34   ;;  %vm1900_vm0 = vcmask 261352  }
 0x123   :  { %1659 = vst.msk [vmem:[%s5645_s1] ss:$3 sm:$0xf] %vm1658_vm8, %v1657_v37   ;;  %vm1956_vm8 = vcmask 236752  }
 0x125   :  { %v1638_v36 = vpop.permute.xlu0 %1637   ;;  %v1694_v39 = vpop.permute.xlu1 %1693  }
 0x126   :  { %2835 = vst.msk [vmem:[%s5645_s1 + $0x1] ss:$3 sm:$0xf] %vm1639_vm1, %v1638_v36   ;;  %vm1938_vm1 = vcmask 244952  }
 0x127   :  { %2849 = vst.msk [vmem:[%s5645_s1 + $0x1] ss:$3 sm:$0xf] %vm1695_vm9, %v1694_v39   ;;  %vm1994_vm9 = vcmask 220352  }
 0x129   :  { %v1675_v38 = vpop.permute.xlu0 %1674   ;;  %v1731_v41 = vpop.permute.xlu1 %1730  }
 0x12a   :  { %2844 = vst.msk [vmem:[%s5645_s1 + $0x2] ss:$3 sm:$0xf] %vm1676_vm2, %v1675_v38   ;;  %vm1975_vm2 = vcmask 228552  }
 0x12b   :  { %2858 = vst.msk [vmem:[%s5645_s1 + $0x2] ss:$3 sm:$0xf] %vm1732_vm11, %v1731_v41   ;;  %vm2031_vm11 = vcmask 203952  }
 0x12d   :  { %v1713_v40 = vpop.permute.xlu0 %1712   ;;  %v1769_v43 = vpop.permute.xlu1 %1768  }
 0x12e   :  { %1715 = vst.msk [vmem:[%s5645_s1] ss:$3 sm:$0xf] %vm1714_vm10, %v1713_v40   ;;  %vm2012_vm10 = vcmask 212152  }
 0x12f   :  { %1771 = vst.msk [vmem:[%s5645_s1] ss:$3 sm:$0xf] %vm1770_vm13, %v1769_v43   ;;  %vm2068_vm13 = vcmask 187552  }
 0x131   :  { %v1750_v42 = vpop.permute.xlu0 %1749   ;;  %v1806_v45 = vpop.permute.xlu1 %1805  }
 0x132   :  { %2863 = vst.msk [vmem:[%s5645_s1 + $0x1] ss:$3 sm:$0xf] %vm1751_vm12, %v1750_v42   ;;  %vm2050_vm12 = vcmask 195752  }
 0x133   :  { %2877 = vst.msk [vmem:[%s5645_s1 + $0x1] ss:$3 sm:$0xf] %vm1807_vm15, %v1806_v45   ;;  %vm2106_vm15 = vcmask 171152  }
 0x135   :  { %v1787_v44 = vpop.permute.xlu0 %1786   ;;  %v1843_v47 = vpop.permute.xlu1 %1842  }
 0x136   :  { %2872 = vst.msk [vmem:[%s5645_s1 + $0x2] ss:$3 sm:$0xf] %vm1788_vm14, %v1787_v44   ;;  %vm2087_vm14 = vcmask 179352  }
 0x137   :  { %2886 = vst.msk [vmem:[%s5645_s1 + $0x2] ss:$3 sm:$0xf] %vm1844_vm4, %v1843_v47   ;;  %vm2143_vm4 = vcmask 154752  }
 0x139   :  { %v1825_v46 = vpop.permute.xlu0 %1824   ;;  %v1881_v49 = vpop.permute.xlu1 %1880  }
 0x13a   :  { %1827 = vst.msk [vmem:[%s5645_s1] ss:$3 sm:$0xf] %vm1826_vm3, %v1825_v46   ;;  %vm2124_vm3 = vcmask 162952  }
 0x13b   :  { %1883 = vst.msk [vmem:[%s5645_s1] ss:$3 sm:$0xf] %vm1882_vm6, %v1881_v49   ;;  %vm2180_vm6 = vcmask 138352  }
 0x13d   :  { %v1862_v48 = vpop.permute.xlu0 %1861   ;;  %v1918_v51 = vpop.permute.xlu1 %1917  }
 0x13e   :  { %2891 = vst.msk [vmem:[%s5645_s1 + $0x1] ss:$3 sm:$0xf] %vm1863_vm5, %v1862_v48   ;;  %vm2162_vm5 = vcmask 146552  }
 0x13f   :  { %2905 = vst.msk [vmem:[%s5645_s1 + $0x1] ss:$3 sm:$0xf] %vm1919_vm7, %v1918_v51   ;;  %vm2218_vm7 = vcmask 121952  }
 0x141   :  { %v1899_v50 = vpop.permute.xlu0 %1898   ;;  %v1955_v53 = vpop.permute.xlu1 %1954  }
 0x142   :  { %2900 = vst.msk [vmem:[%s5645_s1 + $0x2] ss:$3 sm:$0xf] %vm1900_vm0, %v1899_v50   ;;  %vm2199_vm0 = vcmask 130152  }
 0x143   :  { %2914 = vst.msk [vmem:[%s5645_s1 + $0x2] ss:$3 sm:$0xf] %vm1956_vm8, %v1955_v53   ;;  %vm2255_vm8 = vcmask 105552  }
 0x145   :  { %v1937_v52 = vpop.permute.xlu0 %1936   ;;  %v1993_v55 = vpop.permute.xlu1 %1992  }
 0x146   :  { %1939 = vst.msk [vmem:[%s5645_s1] ss:$3 sm:$0xf] %vm1938_vm1, %v1937_v52   ;;  %vm2236_vm1 = vcmask 113752  }
 0x147   :  { %1995 = vst.msk [vmem:[%s5645_s1] ss:$3 sm:$0xf] %vm1994_vm9, %v1993_v55   ;;  %vm2292_vm9 = vcmask 89152  }
 0x149   :  { %v1974_v54 = vpop.permute.xlu0 %1973   ;;  %v2030_v57 = vpop.permute.xlu1 %2029  }
 0x14a   :  { %2919 = vst.msk [vmem:[%s5645_s1 + $0x1] ss:$3 sm:$0xf] %vm1975_vm2, %v1974_v54   ;;  %vm2274_vm2 = vcmask 97352  }
 0x14b   :  { %2933 = vst.msk [vmem:[%s5645_s1 + $0x1] ss:$3 sm:$0xf] %vm2031_vm11, %v2030_v57   ;;  %vm2330_vm11 = vcmask 72752  }
 0x14d   :  { %v2011_v56 = vpop.permute.xlu0 %2010   ;;  %v2067_v59 = vpop.permute.xlu1 %2066  }
 0x14e   :  { %2928 = vst.msk [vmem:[%s5645_s1 + $0x2] ss:$3 sm:$0xf] %vm2012_vm10, %v2011_v56   ;;  %vm2311_vm10 = vcmask 80952  }
 0x14f   :  { %2942 = vst.msk [vmem:[%s5645_s1 + $0x2] ss:$3 sm:$0xf] %vm2068_vm13, %v2067_v59   ;;  %vm2367_vm13 = vcmask 56352  }
 0x151   :  { %v2049_v58 = vpop.permute.xlu0 %2048   ;;  %v2105_v61 = vpop.permute.xlu1 %2104  }
 0x152   :  { %2051 = vst.msk [vmem:[%s5645_s1] ss:$3 sm:$0xf] %vm2050_vm12, %v2049_v58   ;;  %vm2348_vm12 = vcmask 64552  }
 0x153   :  { %2107 = vst.msk [vmem:[%s5645_s1] ss:$3 sm:$0xf] %vm2106_vm15, %v2105_v61   ;;  %vm2404_vm15 = vcmask 39952  }
 0x155   :  { %v2086_v60 = vpop.permute.xlu0 %2085   ;;  %v2142_v63 = vpop.permute.xlu1 %2141  }
 0x156   :  { %2947 = vst.msk [vmem:[%s5645_s1 + $0x1] ss:$3 sm:$0xf] %vm2087_vm14, %v2086_v60   ;;  %vm2386_vm14 = vcmask 48152  }
 0x157   :  { %2961 = vst.msk [vmem:[%s5645_s1 + $0x1] ss:$3 sm:$0xf] %vm2143_vm4, %v2142_v63  }
 0x159   :  { %v2123_v62 = vpop.permute.xlu0 %2122   ;;  %v2179_v1 = vpop.permute.xlu1 %2178  }
 0x15a   :  { %2956 = vst.msk [vmem:[%s5645_s1 + $0x2] ss:$3 sm:$0xf] %vm2124_vm3, %v2123_v62   ;;  %vm2423_vm3 = vcmask 31752  }
 0x15b   :  { %2970 = vst.msk [vmem:[%s5645_s1 + $0x2] ss:$3 sm:$0xf] %vm2180_vm6, %v2179_v1  }
 0x15d   :  { %v2161_v0 = vpop.permute.xlu0 %2160   ;;  %v2217_v3 = vpop.permute.xlu1 %2216  }
 0x15e   :  { %2163 = vst.msk [vmem:[%s5645_s1] ss:$3 sm:$0xf] %vm2162_vm5, %v2161_v0  }
 0x15f   :  { %2219 = vst.msk [vmem:[%s5645_s1] ss:$3 sm:$0xf] %vm2218_vm7, %v2217_v3  }
 0x161   :  { %v2198_v2 = vpop.permute.xlu0 %2197   ;;  %v2254_v5 = vpop.permute.xlu1 %2253  }
 0x162   :  { %2975 = vst.msk [vmem:[%s5645_s1 + $0x1] ss:$3 sm:$0xf] %vm2199_vm0, %v2198_v2  }
 0x163   :  { %2989 = vst.msk [vmem:[%s5645_s1 + $0x1] ss:$3 sm:$0xf] %vm2255_vm8, %v2254_v5  }
 0x165   :  { %v2235_v4 = vpop.permute.xlu0 %2234   ;;  %v2291_v7 = vpop.permute.xlu1 %2290  }
 0x166   :  { %2984 = vst.msk [vmem:[%s5645_s1 + $0x2] ss:$3 sm:$0xf] %vm2236_vm1, %v2235_v4  }
 0x167   :  { %2998 = vst.msk [vmem:[%s5645_s1 + $0x2] ss:$3 sm:$0xf] %vm2292_vm9, %v2291_v7  }
 0x169   :  { %v2273_v6 = vpop.permute.xlu0 %2272   ;;  %v2329_v9 = vpop.permute.xlu1 %2328  }
 0x16a   :  { %2275 = vst.msk [vmem:[%s5645_s1] ss:$3 sm:$0xf] %vm2274_vm2, %v2273_v6  }
 0x16b   :  { %2331 = vst.msk [vmem:[%s5645_s1] ss:$3 sm:$0xf] %vm2330_vm11, %v2329_v9  }
 0x16d   :  { %v2310_v8 = vpop.permute.xlu0 %2309   ;;  %v2366_v11 = vpop.permute.xlu1 %2365  }
 0x16e   :  { %3003 = vst.msk [vmem:[%s5645_s1 + $0x1] ss:$3 sm:$0xf] %vm2311_vm10, %v2310_v8  }
 0x16f   :  { %3017 = vst.msk [vmem:[%s5645_s1 + $0x1] ss:$3 sm:$0xf] %vm2367_vm13, %v2366_v11  }
 0x171   :  { %v2347_v10 = vpop.permute.xlu0 %2346   ;;  %v2403_v13 = vpop.permute.xlu1 %2402  }
 0x172   :  { %3012 = vst.msk [vmem:[%s5645_s1 + $0x2] ss:$3 sm:$0xf] %vm2348_vm12, %v2347_v10  }
 0x173   :  { %3026 = vst.msk [vmem:[%s5645_s1 + $0x2] ss:$3 sm:$0xf] %vm2404_vm15, %v2403_v13  }
 0x175   :  { %v2385_v12 = vpop.permute.xlu0 %2384  }
 0x176   :  { %2387 = vst.msk [vmem:[%s5645_s1] ss:$3 sm:$0xf] %vm2386_vm14, %v2385_v12  }
 0x179   :  { %v2422_v14 = vpop.permute.xlu0 %2421  }
 0x17a   :  { %3031 = vst.msk [vmem:[%s5645_s1 + $0x1] ss:$3 sm:$0xf] %vm2423_vm3, %v2422_v14  }

// kernel: forward.23
= control target key start
LH: loop header
LB: loop body
LE: loop exit
PB: predicated region body
PF: predicated region fallthrough
CT: control target
= control target key end

     0   :  { %s396_s9 = smov 0   ;;  %s398_s10 = smov 0   ;;  %s432_s0 = inlined_call_operand.vmem [shape: f32[6,4,8,128], index: 0, kind: input, shape index: {}]   ;;  %s433_s1 = inlined_call_operand.vmem [shape: f32[6,4,8,128], index: 1, kind: input, shape index: {}]   ;;  %s434_s2 = inlined_call_operand.vmem [shape: f32[6,8,128], index: 2, kind: output, shape index: {}]  }
   0x1   :  { %s400_s11 = smov 0  }
   0x2 LB: > { %s24_s12 = sadd.s32 1, %s375_s10  ;;  %p322_p0 = scmp.ge.s32.totalorder %s379_s11, 1  ;;  %s379_s11 = sphi %s400_s11, %s12_s11   ;;  %s375_s10 = sphi %s398_s10, %s436_s10   ;;  %s371_s9 = sphi %s396_s9, %s435_s9  }
   0x3   : > { %p26_p1 = scmp.ge.s32.totalorder %s24_s12, 6  ;;  %p148_p2 = scmp.lt.s32.totalorder %s379_s11, 7 }
   0x5   : > { %s438_s12 = smov (%p26_p1, %s24_s12), 0  ;;  %p149_p3 = pnand %p322_p0, %p148_p2 }
   0x6   : > { %p183_p4 = scmp.lt.s32.totalorder (!%p149_p3), %s371_s9, 5 }
   0x7   : > { %152 = sbr.rel (%p149_p3) target bundleno = 30 (0x1e), region = 28 }
   0xe   : > { %s440_s9 = smov (!%p183_p4, %s371_s9), 5 }
   0xf   : > { %s330_s13 = sshll.u32 %s440_s9, 5  ;;  %s327_s20 = sshll.u32 %s440_s9, 3 }
  0x10   : > { %s190_s16 = scalar_lea.vmem %s432_s0, %s330_s13  ;;  %s200_s19 = scalar_lea.vmem %s433_s1, %s330_s13 }
  0x11   : > { %v211_v0 = vld [vmem:[%s190_s16] sm:$0xff]  ;;  %v212_v1 = vld [vmem:[%s190_s16 + $0x8] sm:$0xff]  ;;  %v213_v2 = vld [vmem:[%s190_s16 + $0x10] sm:$0xff]  ;;  %s205_s23 = scalar_lea.vmem %s434_s2, %s327_s20 }
  0x12   : > { %v215_v3 = vld [vmem:[%s200_s19] sm:$0xff]  ;;  %v216_v4 = vld [vmem:[%s200_s19 + $0x8] sm:$0xff]  ;;  %v217_v5 = vld [vmem:[%s200_s19 + $0x10] sm:$0xff] }
  0x13   : > { %v219_v6 = vsub.f32 %v211_v0, %v215_v3  ;;  %v220_v7 = vsub.f32 %v212_v1, %v216_v4  ;;  %v214_v8 = vld [vmem:[%s190_s16 + $0x18] sm:$0xff]  ;;  %v221_v10 = vsub.f32 %v213_v2, %v217_v5 }
  0x14   : > { %v218_v9 = vld [vmem:[%s200_s19 + $0x18] sm:$0xff] }
  0x15   : > { %v222_v11 = vsub.f32 %v214_v8, %v218_v9  ;;  %v224_v12 = vmul.f32 %v219_v6, %v219_v6  ;;  %v225_v13 = vmul.f32 %v220_v7, %v220_v7  ;;  %v226_v14 = vmul.f32 %v221_v10, %v221_v10 }
  0x17   : > { %v227_v15 = vmul.f32 %v222_v11, %v222_v11  ;;  %v228_v16 = vadd.f32 %v225_v13, %v224_v12 }
  0x19   : > { %v229_v17 = vadd.f32 %v228_v16, %v226_v14 }
  0x1b   : > { %v230_v18 = vadd.f32 %v229_v17, %v227_v15 }
  0x1d   : > { %232 = vst [vmem:[%s205_s23] sm:$0xff] %v230_v18 }
  0x1e PF: > { %s12_s11 = sadd.s32 1, %s379_s11   ;;  %s435_s9 = smov %s375_s10 }
  0x1f   : > { %p9_p5 = scmp.ge.s32.totalorder %s12_s11, 8   ;;  %s436_s10 = smov %s438_s12 }
  0x21   :  { %11 = sbr.rel (!%p9_p5) target bundleno = 2 (0x2), region = 65 }

// kernel: mul.181
= control target key start
LH: loop header
LB: loop body
LE: loop exit
PB: predicated region body
PF: predicated region fallthrough
CT: control target
= control target key end

     0   :  { %s34_s0 = inlined_call_operand.vmem [shape: f32[6], index: 0, kind: input, shape index: {}]   ;;  %s35_s1 = inlined_call_operand.vmem [shape: f32[6], index: 1, kind: input, shape index: {}]   ;;  %s36_s2 = inlined_call_operand.vmem [shape: f32[6], index: 2, kind: output, shape index: {}]  }
   0x1   :  { %v3_v0 = vld [vmem:[%s34_s0] sm:$0x1] }
   0x2   :  { %v4_v1 = vld [vmem:[%s35_s1] sm:$0x1] }
   0x3   :  { %v7_v2 = vmul.f32 %v4_v1, %v3_v0 }
   0x5   :  { %9 = vst [vmem:[%s36_s2] sm:$0x1] %v7_v2 }

// kernel: squeeze.69
= control target key start
LH: loop header
LB: loop body
LE: loop exit
PB: predicated region body
PF: predicated region fallthrough
CT: control target
= control target key end

     0   :  { %s135_s0 = inlined_call_operand.vmem [shape: f32[512], index: 0, kind: input, shape index: {}]   ;;  %s136_s1 = inlined_call_operand.hbm [shape: f32[2,16,16,1], index: 1, kind: output, shape index: {}]  }
   0x1   :  { %v5_v0 = vld [vmem:[%s135_s0] sm:$0xf] }
   0x2   :  { %6 = vst [vmem:[#allocation2] sm:$0xf] %v5_v0 }
   0x3   :  { %2 = vsyncpa [#allocation1], 0  ;;  %s94_s0 = smov 112   ;;  %s95_s8 = smov 80   ;;  %vm8_vm0 = vcmask 130048  }
   0x4   :  { %s96_s9 = smov 96   ;;  %s97_s10 = smov 64  }
   0x5   :  { %s98_s11 = smov 48   ;;  %s99_s12 = smov 32  }
   0x6   :  { %s100_s13 = smov 16   ;;  %s101_s14 = smov [#allocation0]  }
   0x7   :  { %s56_s15 = sshll.u32 %s101_s14, 4  ;;  %s57_s15 = int_to_ptr.vmem [resolvable:$true] %s56_s15 }
   0x8   :  { %s70_s16 = scalar_lea.vmem %s57_s15, 512  ;;  %p75_p1 = scmp.lt.s32.totalorder %s57_s15, %s57_s15 }
   0x9   :  { %v10_v1 = vld [vmem:[#allocation2] sm:$0xf]   ;;  %p71_p0 = scmp.ne.s32.totalorder %s57_s15, %s70_s16  ;;  %p76_p2 = scmp.lt.s32.totalorder %s70_s16, %s70_s16 }
   0xa   :  { %v22_v2 = vld [vmem:[#allocation2] sm:$0xf]   ;;  %11 = vrot.lane.b32.xlu0 %v10_v1, %s94_s0 }
   0xb   :  { %23 = vrot.lane.b32.xlu1 %v22_v2, %s95_s8  ;;  %v16_v3 = vld [vmem:[#allocation2] sm:$0xf]   ;;  %p77_p3 = por %p76_p2, %p75_p1 }
   0xc   :  { %v28_v4 = vld [vmem:[#allocation2] sm:$0xf]  }
   0xd   :  { %v7_v5 = vld [vmem:[#allocation2] sm:$0xf]   ;;  %p78_p4 = pnand %p77_p3, %p71_p0 }
   0xe   :  { %9 = vst.msk [vmem:[#allocation0] ss:$8 sm:$0xf] %vm8_vm0, %v7_v5   ;;  %17 = vrot.lane.b32.xlu0 %v16_v3, %s96_s9  ;;  %v34_v6 = vld [vmem:[#allocation2] sm:$0xf]  }
   0xf   :  { %29 = vrot.lane.b32.xlu1 %v28_v4, %s97_s10  ;;  %v40_v7 = vld [vmem:[#allocation2] sm:$0xf]  }
  0x10   :  { %v46_v8 = vld [vmem:[#allocation2] sm:$0xf]  }
  0x12   :  { %35 = vrot.lane.b32.xlu0 %v34_v6, %s98_s11 }
  0x13   :  { %41 = vrot.lane.b32.xlu1 %v40_v7, %s99_s12 }
  0x16   :  { %47 = vrot.lane.b32.xlu0 %v46_v8, %s100_s13 }
  0x7c   :  { %v12_v9 = vpop.permute.xlu0 %11  }
  0x7d   :  { %v24_v10 = vpop.permute.xlu1 %23   ;;  %15 = vst.msk [vmem:[#allocation0 + $0x1] ss:$8 sm:$0xf] %vm8_vm0, %v12_v9  }
  0x7e   :  { %27 = vst.msk [vmem:[#allocation0 + $0x3] ss:$8 sm:$0xf] %vm8_vm0, %v24_v10  }
  0x80   :  { %v18_v11 = vpop.permute.xlu0 %17  }
  0x81   :  { %v30_v12 = vpop.permute.xlu1 %29   ;;  %21 = vst.msk [vmem:[#allocation0 + $0x2] ss:$8 sm:$0xf] %vm8_vm0, %v18_v11  }
  0x82   :  { %33 = vst.msk [vmem:[#allocation0 + $0x4] ss:$8 sm:$0xf] %vm8_vm0, %v30_v12  }
  0x84   :  { %v36_v13 = vpop.permute.xlu0 %35  }
  0x85   :  { %v42_v14 = vpop.permute.xlu1 %41   ;;  %39 = vst.msk [vmem:[#allocation0 + $0x5] ss:$8 sm:$0xf] %vm8_vm0, %v36_v13  }
  0x86   :  { %45 = vst.msk [vmem:[#allocation0 + $0x6] ss:$8 sm:$0xf] %vm8_vm0, %v42_v14  }
  0x88   :  { %v48_v15 = vpop.permute.xlu0 %47  }
  0x89   :  { %51 = vst.msk [vmem:[#allocation0 + $0x7] ss:$8 sm:$0xf] %vm8_vm0, %v48_v15  }
  0x8a   :  { %81 = shalt.err (!%p78_p4)
}
  0x8b   :  { %s82_s19 = scalar_lea.hbm %s136_s1, 512 }
  0x8c   :  { %p83_p5 = scmp.ne.s32.totalorder %s136_s1, %s82_s19  ;;  %p86_p6 = scmp.lt.u32.totalorder %s82_s19, %s136_s1 }
  0x8e   :  { %p88_p7 = pnand %p86_p6, %p83_p5 }
  0x90   :  { %91 = shalt.err (!%p88_p7)
}
  0x91   :  { %59 = dma.vmem_to_hbm [thread:$0]  %s57_s15, 512, %s136_s1, [#allocation1]  }
  0x92   :  { %92 = dma.done.wait [#allocation1], 512  }
  0x93   :  { %93 = vsyncadd [#allocation1], 4294966784 }
  0x94   :  { %61 = vsyncpa [#allocation1], 1 }

</bundles_post_ra>
